<compile_context>
chip_gen: v5e
topology: v5e:2x2
jax: 0.10.0
libtpu: 0.0.40
codegen_flags: <defaults>
</compile_context>

<pallas_src>
import functools
import math

import jax
import jax.numpy as jnp
from jax.experimental import pallas as pl
from jax.experimental.pallas import tpu as pltpu

LRELU_MAIN = 0.2   # LVCBlock activations
LRELU_KP = 0.1     # KernelPredictor LeakyReLU(negative_slope=0.1)
CPAD = 128         # lane padding for the main-path channel dimension


def _round_up(x, m):
    return ((x + m - 1) // m) * m


# ----------------------------------------------------------------------------
# Generic fused matmul: (pre-LeakyReLU) -> dot -> + bias -> (post-LeakyReLU)
# ----------------------------------------------------------------------------
def _mm_bias_act_kernel(x_ref, w_ref, b_ref, o_ref, *, pre_slope, post_slope):
    x = x_ref[...]
    if pre_slope is not None:
        x = jnp.where(x >= 0.0, x, pre_slope * x)
    acc = jnp.dot(x, w_ref[...], preferred_element_type=jnp.float32)
    acc = acc + b_ref[...]
    if post_slope is not None:
        acc = jnp.where(acc >= 0.0, acc, post_slope * acc)
    o_ref[...] = acc


def matmul_bias_act(patches, w2, bias, *, pre_slope=None, post_slope=None):
    """patches: (M, K), w2: (K, N), bias: (N,) -> (M, N) fp32."""
    M, K = patches.shape
    N = w2.shape[1]
    n_pad = _round_up(N, 128)                      # lane-dense output stores
    tm = min(1024, _round_up(max(M, 8), 8))        # large M tile, mult of 8
    m_pad = _round_up(M, tm)

    xp = jnp.pad(patches, ((0, m_pad - M), (0, 0))) if m_pad != M else patches
    wp = jnp.pad(w2, ((0, 0), (0, n_pad - N))) if n_pad != N else w2
    bp = jnp.pad(bias.reshape(1, N), ((0, 0), (0, n_pad - N)))

    out = pl.pallas_call(
        functools.partial(_mm_bias_act_kernel,
                          pre_slope=pre_slope, post_slope=post_slope),
        out_shape=jax.ShapeDtypeStruct((m_pad, n_pad), jnp.float32),
        grid_spec=pltpu.PrefetchScalarGridSpec(
            num_scalar_prefetch=0,
            grid=(m_pad // tm,),
            in_specs=[
                pl.BlockSpec((tm, K), lambda i: (i, 0)),
                pl.BlockSpec((K, n_pad), lambda i: (0, 0)),
                pl.BlockSpec((1, n_pad), lambda i: (0, 0)),
            ],
            out_specs=pl.BlockSpec((tm, n_pad), lambda i: (i, 0)),
        ),
        compiler_params=pltpu.CompilerParams(dimension_semantics=("parallel",)),
    )(xp, wp, bp)
    return out[:M, :N]


# ----------------------------------------------------------------------------
# Conv1d / ConvTranspose1d as fused Pallas matmuls (im2col built in glue)
# ----------------------------------------------------------------------------
def conv1d_mm(x, w, b, *, padding, dilation=1, pre_slope=None, post_slope=None):
    """x: (B, L, Cin); w: (Cout, Cin, ks) torch layout; b: (Cout,) -> (B, L_out, Cout)."""
    B, L, Cin = x.shape
    Cout, _, ks = w.shape
    L_out = L + 2 * padding - dilation * (ks - 1)
    xp = jnp.pad(x, ((0, 0), (padding, padding), (0, 0)))
    patches = jnp.concatenate(
        [xp[:, k * dilation:k * dilation + L_out, :] for k in range(ks)], axis=-1)
    patches = patches.reshape(B * L_out, ks * Cin)
    w2 = jnp.transpose(w, (2, 1, 0)).reshape(ks * Cin, Cout)   # K index = k*Cin + ci
    out = matmul_bias_act(patches, w2, b, pre_slope=pre_slope, post_slope=post_slope)
    return out.reshape(B, L_out, Cout)


def conv_transpose1d_mm(x, w, b, stride, *, pre_slope=None):
    """x: (B, L, Cin); w: (Cin, Cout, K) torch ConvTranspose1d layout; b: (Cout,).
    padding = stride//2 + stride%2, output_padding = stride%2 (as in LVCBlock)
    -> (B, L*stride, Cout)."""
    B, L, Cin = x.shape
    _, Cout, Kk = w.shape
    pad = stride // 2 + stride % 2
    out_pad = stride % 2
    L_up = (L - 1) * stride + 1
    x_up = jnp.zeros((B, L_up, Cin), x.dtype).at[:, ::stride, :].set(x)
    lpad = Kk - 1 - pad
    rpad = Kk - 1 - pad + out_pad
    xp = jnp.pad(x_up, ((0, 0), (lpad, rpad), (0, 0)))
    L_out = L_up + lpad + rpad - (Kk - 1)                      # == L * stride
    patches = jnp.concatenate([xp[:, k:k + L_out, :] for k in range(Kk)], axis=-1)
    patches = patches.reshape(B * L_out, Kk * Cin)
    # y[t, co] = sum_{k, ci} xpad[t+k, ci] * w[ci, co, K-1-k]
    w2 = jnp.transpose(w[:, :, ::-1], (2, 0, 1)).reshape(Kk * Cin, Cout)
    out = matmul_bias_act(patches, w2, b, pre_slope=pre_slope, post_slope=None)
    return out.reshape(B, L_out, Cout)


# ----------------------------------------------------------------------------
# Fully fused KernelPredictor: one Pallas kernel per batch element.
# ----------------------------------------------------------------------------
def _kp_conv(h, tap_w, bias_row, *, L, ks, slope):
    """In-kernel 1D conv (dilation 1, 'same' padding) as ks shifted dots.
    h: (L, Cin) f32; tap_w(k) -> (Cin, Cout); bias_row: (1, Cout)."""
    pad = (ks - 1) // 2
    Cin = h.shape[1]
    z = jnp.zeros((pad, Cin), jnp.float32)
    hp = jnp.concatenate([z, h, z], axis=0)
    acc = None
    for k in range(ks):
        d = jnp.dot(hp[k:k + L, :], tap_w(k), preferred_element_type=jnp.float32)
        acc = d if acc is None else acc + d
    acc = acc + bias_row
    if slope is not None:
        acc = jnp.where(acc >= 0.0, acc, slope * acc)
    return acc


def _kp_kernel(c_ref, w_in_ref, b_in_ref, w_res_ref, b_res_ref, w_kb_ref, b_kb_ref,
               o_ref, *, Lc, ks_in, ks, n_res, slope):
    h = _kp_conv(c_ref[0].astype(jnp.float32),
                 lambda k: w_in_ref[k], b_in_ref[...],
                 L=Lc, ks=ks_in, slope=slope)                       # input_conv + LReLU
    r = h
    for j in range(n_res):                                          # residual stack (dropout p=0)
        r = _kp_conv(r, lambda k, j=j: w_res_ref[j, k], b_res_ref[j],
                     L=Lc, ks=ks, slope=slope)
    h = h + r
    o_ref[0] = _kp_conv(h, lambda k: w_kb_ref[k], b_kb_ref[...],    # fused kernel_conv|bias_conv
                        L=Lc, ks=ks, slope=None)


def kernel_predictor_forward(params, c, *, conv_layers, conv_in_channels,
                             conv_out_channels, conv_kernel_size,
                             kpnet_hidden_channels=64, kpnet_conv_size=3):
    B, cond_ch, Lc = c.shape
    H = kpnet_hidden_channels
    l_w = conv_in_channels * conv_out_channels * conv_kernel_size * conv_layers
    l_b = conv_out_channels * conv_layers
    N = l_w + l_b
    n_pad = _round_up(N, 128)

    ct = jnp.transpose(c, (0, 2, 1))                                 # (B, Lc, cond_ch)
    # per-tap weights laid out as (k, cin, cout) so each tap is a plain dot
    w_in = jnp.transpose(params['kp_in_w'], (2, 1, 0))               # (5, cond_ch, H)
    b_in = params['kp_in_b'].reshape(1, H)
    w_res = jnp.stack([params[f'kp_res{j}_w'] for j in range(6)])    # (6, H, H, ks)
    w_res = jnp.transpose(w_res, (0, 3, 2, 1))                       # (6, ks, H, H)
    b_res = jnp.stack([params[f'kp_res{j}_b'] for j in range(6)]).reshape(6, 1, H)
    w_kb = jnp.concatenate([params['kp_k_w'], params['kp_b_w']], axis=0)   # (N, H, ks)
    w_kb = jnp.transpose(w_kb, (2, 1, 0))                            # (ks, H, N)
    w_kb = jnp.pad(w_kb, ((0, 0), (0, 0), (0, n_pad - N)))
    b_kb = jnp.pad(
        jnp.concatenate([params['kp_k_b'], params['kp_b_b']]).reshape(1, N),
        ((0, 0), (0, n_pad - N)))

    kb = pl.pallas_call(
        functools.partial(_kp_kernel, Lc=Lc, ks_in=5, ks=kpnet_conv_size,
                          n_res=6, slope=LRELU_KP),
        out_shape=jax.ShapeDtypeStruct((B, Lc, n_pad), jnp.float32),
        grid_spec=pltpu.PrefetchScalarGridSpec(
            num_scalar_prefetch=0,
            grid=(B,),
            in_specs=[
                pl.BlockSpec((1, Lc, cond_ch), lambda b: (b, 0, 0)),
                pl.BlockSpec((5, cond_ch, H), lambda b: (0, 0, 0)),
                pl.BlockSpec((1, H), lambda b: (0, 0)),
                pl.BlockSpec((6, kpnet_conv_size, H, H), lambda b: (0, 0, 0, 0)),
                pl.BlockSpec((6, 1, H), lambda b: (0, 0, 0)),
                pl.BlockSpec((kpnet_conv_size, H, n_pad), lambda b: (0, 0, 0)),
                pl.BlockSpec((1, n_pad), lambda b: (0, 0)),
            ],
            out_specs=pl.BlockSpec((1, Lc, n_pad), lambda b: (b, 0, 0)),
        ),
        compiler_params=pltpu.CompilerParams(dimension_semantics=("parallel",)),
    )(ct, w_in, b_in, w_res, b_res, w_kb, b_kb)

    k = jnp.transpose(kb[..., :l_w], (0, 2, 1))                      # (B, l_w, Lc)
    bsl = jnp.transpose(kb[..., l_w:N], (0, 2, 1))                   # (B, l_b, Lc)
    kernels = k.reshape(B, conv_layers, conv_in_channels, conv_out_channels,
                        conv_kernel_size, Lc)
    bias = bsl.reshape(B, conv_layers, conv_out_channels, Lc)
    return kernels, bias


# ----------------------------------------------------------------------------
# Fused location-variable conv + bias + sigmoid*tanh gate + residual add
# ----------------------------------------------------------------------------
def _lvc_gate_res_kernel(p_ref, k_ref, b_ref, x_ref, o_ref, *, cpad):
    z = jnp.dot(p_ref[0], k_ref[0], preferred_element_type=jnp.float32)  # (hop, 2*cpad)
    z = z + b_ref[0]
    gate = jax.nn.sigmoid(z[:, :cpad]) * jnp.tanh(z[:, cpad:])           # lane-aligned split
    o_ref[0] = x_ref[0] + gate


def lvc_gate_residual(x_pad, y, kernel_i, bias_i, *, hop, C):
    """x_pad: (B, L, CPAD) running state (channels zero-padded to CPAD lanes)
    y: (B, L, C) dilated-conv output; kernel_i: (B, C, 2C, ks, Lseg);
    bias_i: (B, 2C, Lseg).  Returns the new padded state (B, L, CPAD)."""
    B, L, cpad = x_pad.shape
    ks, Lseg = kernel_i.shape[3], kernel_i.shape[4]
    assert L == Lseg * hop, "in_length != kernel_length * hop_size"
    pad = (ks - 1) // 2
    KK = ks * C

    # im2col for the ks-tap dilation-1 local conv (glue; only a 3x tiny tensor)
    yp = jnp.pad(y, ((0, 0), (pad, pad), (0, 0)))
    patches = jnp.concatenate([yp[:, k:k + L, :] for k in range(ks)], axis=-1)
    patches = patches.reshape(B * Lseg, hop, KK)

    # per-segment weights: K index = tap*C + cin; sigmoid half at lanes [0, C),
    # tanh half at lanes [cpad, cpad+C) -> padded lanes stay exactly zero.
    kt = jnp.transpose(kernel_i, (0, 4, 3, 1, 2)).reshape(B, Lseg, KK, 2 * C)
    kw = jnp.zeros((B, Lseg, KK, 2 * cpad), jnp.float32)
    kw = kw.at[..., :C].set(kt[..., :C]).at[..., cpad:cpad + C].set(kt[..., C:])
    kw = kw.reshape(B * Lseg, KK, 2 * cpad)

    bt = jnp.transpose(bias_i, (0, 2, 1))                      # (B, Lseg, 2C)
    bw = jnp.zeros((B, Lseg, 2 * cpad), jnp.float32)
    bw = bw.at[..., :C].set(bt[..., :C]).at[..., cpad:cpad + C].set(bt[..., C:])
    bw = bw.reshape(B * Lseg, 1, 2 * cpad)

    xr = x_pad.reshape(B * Lseg, hop, cpad)
    S = B * Lseg
    out = pl.pallas_call(
        functools.partial(_lvc_gate_res_kernel, cpad=cpad),
        out_shape=jax.ShapeDtypeStruct((S, hop, cpad), jnp.float32),
        grid_spec=pltpu.PrefetchScalarGridSpec(
            num_scalar_prefetch=0,
            grid=(S,),
            in_specs=[
                pl.BlockSpec((1, hop, KK), lambda s: (s, 0, 0)),
                pl.BlockSpec((1, KK, 2 * cpad), lambda s: (s, 0, 0)),
                pl.BlockSpec((1, 1, 2 * cpad), lambda s: (s, 0, 0)),
                pl.BlockSpec((1, hop, cpad), lambda s: (s, 0, 0)),
            ],
            out_specs=pl.BlockSpec((1, hop, cpad), lambda s: (s, 0, 0)),
        ),
        compiler_params=pltpu.CompilerParams(dimension_semantics=("parallel",)),
    )(patches, kw, bw, xr)
    return out.reshape(B, L, cpad)


# ----------------------------------------------------------------------------
# Parameter init (PyTorch default-style uniform init)
# ----------------------------------------------------------------------------
def _conv1d_param(key, cout, cin, ks):
    k1, k2 = jax.random.split(key)
    bound = 1.0 / math.sqrt(cin * ks)
    w = jax.random.uniform(k1, (cout, cin, ks), jnp.float32, -bound, bound)
    b = jax.random.uniform(k2, (cout,), jnp.float32, -bound, bound)
    return w, b


def init_lvc_block_params(key, *, in_channels, cond_channels, upsample_ratio,
                          conv_layers=4, conv_kernel_size=3,
                          kpnet_hidden_channels=64, kpnet_conv_size=3):
    p = {}
    keys = iter(jax.random.split(key, 16 + conv_layers))
    # KernelPredictor
    p['kp_in_w'], p['kp_in_b'] = _conv1d_param(next(keys), kpnet_hidden_channels,
                                               cond_channels, 5)
    for j in range(6):
        p[f'kp_res{j}_w'], p[f'kp_res{j}_b'] = _conv1d_param(
            next(keys), kpnet_hidden_channels, kpnet_hidden_channels, kpnet_conv_size)
    l_w = in_channels * (2 * in_channels) * conv_kernel_size * conv_layers
    l_b = (2 * in_channels) * conv_layers
    p['kp_k_w'], p['kp_k_b'] = _conv1d_param(next(keys), l_w, kpnet_hidden_channels,
                                             kpnet_conv_size)
    p['kp_b_w'], p['kp_b_b'] = _conv1d_param(next(keys), l_b, kpnet_hidden_channels,
                                             kpnet_conv_size)
    # upsample ConvTranspose1d: torch weight layout (Cin, Cout, K)
    k1, k2 = jax.random.split(next(keys))
    Kk = 2 * upsample_ratio
    bound = 1.0 / math.sqrt(in_channels * Kk)
    p['up_w'] = jax.random.uniform(k1, (in_channels, in_channels, Kk), jnp.float32,
                                   -bound, bound)
    p['up_b'] = jax.random.uniform(k2, (in_channels,), jnp.float32, -bound, bound)
    # dilated convs
    for i in range(conv_layers):
        p[f'conv{i}_w'], p[f'conv{i}_b'] = _conv1d_param(
            next(keys), in_channels, in_channels, conv_kernel_size)
    return p


# ----------------------------------------------------------------------------
# LVCBlock forward
# ----------------------------------------------------------------------------
def lvc_block_forward(params, x, c, *, in_channels, upsample_ratio,
                      conv_layers=4, conv_kernel_size=3, cond_hop_length=256,
                      kpnet_hidden_channels=64, kpnet_conv_size=3):
    """x: (B, in_channels, L_in); c: (B, cond_channels, cond_len)
    -> (B, in_channels, L_in * upsample_ratio)."""
    B, C, _ = x.shape
    assert C == in_channels and C <= CPAD
    kernels, bias = kernel_predictor_forward(
        params, c, conv_layers=conv_layers, conv_in_channels=in_channels,
        conv_out_channels=2 * in_channels, conv_kernel_size=conv_kernel_size,
        kpnet_hidden_channels=kpnet_hidden_channels, kpnet_conv_size=kpnet_conv_size)

    # x = leaky_relu(x, 0.2); x = upsample(x)   (pre-activation fused in-kernel)
    xt = jnp.transpose(x, (0, 2, 1))
    xt = conv_transpose1d_mm(xt, params['up_w'], params['up_b'], upsample_ratio,
                             pre_slope=LRELU_MAIN)
    L_up = xt.shape[1]
    assert L_up == kernels.shape[-1] * cond_hop_length, "length of (x, kernel) is not matched"

    # keep running state channel-padded to 128 lanes; padded lanes stay zero
    xp = jnp.pad(xt, ((0, 0), (0, 0), (0, CPAD - C)))
    for i in range(conv_layers):
        dil = 3 ** i
        pad_i = dil * ((conv_kernel_size - 1) // 2)
        # y = lrelu(x, .2); y = convs[i](y); y = lrelu(y, .2)  -- both fused in-kernel
        y = conv1d_mm(xp[..., :C], params[f'conv{i}_w'], params[f'conv{i}_b'],
                      padding=pad_i, dilation=dil,
                      pre_slope=LRELU_MAIN, post_slope=LRELU_MAIN)
        # y = LVC(y, k_i, b_i, 1, hop); x = x + sigmoid(y[:, :C]) * tanh(y[:, C:]) -- fused
        xp = lvc_gate_residual(xp, y, kernels[:, i], bias[:, i],
                               hop=cond_hop_length, C=C)
    return jnp.transpose(xp[..., :C], (0, 2, 1))


if __name__ == "__main__":
    # Small config consistent with LVCBlock defaults:
    # in_channels=8, cond_channels=16, upsample_ratio=8, cond_hop_length=256,
    # conv_layers=4, conv_kernel_size=3, kpnet_hidden=64, kpnet_conv_size=3.
    in_channels = 8
    cond_channels = 16
    upsample_ratio = 8
    conv_layers = 4
    conv_kernel_size = 3
    cond_hop_length = 256
    B = 2
    cond_length = 4
    in_length = cond_length * cond_hop_length // upsample_ratio   # 128

    key = jax.random.PRNGKey(0)
    kp, kx, kc = jax.random.split(key, 3)
    params = init_lvc_block_params(
        kp, in_channels=in_channels, cond_channels=cond_channels,
        upsample_ratio=upsample_ratio, conv_layers=conv_layers,
        conv_kernel_size=conv_kernel_size)
    x = jax.random.normal(kx, (B, in_channels, in_length), jnp.float32)
    c = jax.random.normal(kc, (B, cond_channels, cond_length), jnp.float32)

    fwd = jax.jit(functools.partial(
        lvc_block_forward, in_channels=in_channels, upsample_ratio=upsample_ratio,
        conv_layers=conv_layers, conv_kernel_size=conv_kernel_size,
        cond_hop_length=cond_hop_length))
    out = jax.block_until_ready(fwd(params, x, c))

    assert out.shape == (B, in_channels, in_length * upsample_ratio), out.shape
    assert bool(jnp.all(jnp.isfinite(out)))
    print("KERNEL_OK")
</pallas_src>

<mosaic_0001>
module attributes {stable_mosaic.version = 11 : i64} {
  func.func @_mm_bias_act_kernel(%arg0: i32, %arg1: memref<1024x128xf32, #tpu.memory_space<vmem>>, %arg2: memref<128x128xf32, #tpu.memory_space<vmem>>, %arg3: memref<1x128xf32, #tpu.memory_space<vmem>>, %arg4: memref<1024x128xf32, #tpu.memory_space<vmem>>) attributes {dimension_semantics = [#tpu.dimension_semantics<parallel>], iteration_bounds = array<i64: 2>, scalar_prefetch = 0 : i64, scratch_operands = 0 : i64, tpu.core_type = #tpu.core_type<tc>, window_params = [{transform_indices = @transform_0, window_bounds = array<i64: 1024, 128>}, {pipeline_mode = #tpu.pipeline_mode<synchronous>, transform_indices = @transform_1, window_bounds = array<i64: 128, 128>}, {pipeline_mode = #tpu.pipeline_mode<synchronous>, transform_indices = @transform_2, window_bounds = array<i64: 1, 128>}, {transform_indices = @transform_3, window_bounds = array<i64: 1024, 128>}]} {
    %c0 = arith.constant 0 : index
    %c0_0 = arith.constant 0 : index
    %0 = vector.load %arg1[%c0, %c0_0] : memref<1024x128xf32, #tpu.memory_space<vmem>>, vector<1024x128xf32>
    %cst = arith.constant 0.000000e+00 : f32
    %1 = vector.broadcast %cst : f32 to vector<1024x128xf32>
    %2 = arith.cmpf oge, %0, %1 : vector<1024x128xf32>
    %cst_1 = arith.constant 2.000000e-01 : f32
    %3 = vector.broadcast %cst_1 : f32 to vector<1024x128xf32>
    %4 = arith.mulf %3, %0 : vector<1024x128xf32>
    %5 = arith.select %2, %0, %4 : vector<1024x128xi1>, vector<1024x128xf32>
    %c0_2 = arith.constant 0 : index
    %c0_3 = arith.constant 0 : index
    %6 = vector.load %arg2[%c0_2, %c0_3] : memref<128x128xf32, #tpu.memory_space<vmem>>, vector<128x128xf32>
    %cst_4 = arith.constant dense<0.000000e+00> : vector<1024x128xf32>
    %7 = tpu.matmul %5, %6, %cst_4 {dimension_numbers = #tpu.dot_dimension_numbers<[1], [0], [0], [1], [0, 0, 1, 1], [], []>} : vector<1024x128xf32>, vector<128x128xf32>, vector<1024x128xf32> -> vector<1024x128xf32>
    %c0_5 = arith.constant 0 : index
    %c0_6 = arith.constant 0 : index
    %8 = vector.load %arg3[%c0_5, %c0_6] : memref<1x128xf32, #tpu.memory_space<vmem>>, vector<1x128xf32>
    %9 = vector.broadcast %8 : vector<1x128xf32> to vector<1024x128xf32>
    %10 = arith.addf %7, %9 : vector<1024x128xf32>
    %c0_7 = arith.constant 0 : index
    %c0_8 = arith.constant 0 : index
    %11 = vector.load %arg4[%c0_7, %c0_8] : memref<1024x128xf32, #tpu.memory_space<vmem>>, vector<1024x128xf32>
    tpu.vector_store %arg4[%c0_7, %c0_8], %10 {strides = array<i32>} : memref<1024x128xf32, #tpu.memory_space<vmem>>, vector<1024x128xf32>,
    return
  }
  func.func @transform_0(%arg0: i32) -> (i32, i32) {
    %c0_i32 = arith.constant 0 : i32
    %c0_i32_0 = arith.constant 0 : i32
    return %arg0, %c0_i32 : i32, i32
  }
  func.func @transform_1(%arg0: i32) -> (i32, i32) {
    %c0_i32 = arith.constant 0 : i32
    %c0_i32_0 = arith.constant 0 : i32
    %c0_i32_1 = arith.constant 0 : i32
    return %c0_i32, %c0_i32_0 : i32, i32
  }
  func.func @transform_2(%arg0: i32) -> (i32, i32) {
    %c0_i32 = arith.constant 0 : i32
    %c0_i32_0 = arith.constant 0 : i32
    %c0_i32_1 = arith.constant 0 : i32
    return %c0_i32, %c0_i32_0 : i32, i32
  }
  func.func @transform_3(%arg0: i32) -> (i32, i32) {
    %c0_i32 = arith.constant 0 : i32
    %c0_i32_0 = arith.constant 0 : i32
    return %arg0, %c0_i32 : i32, i32
  }
}

module attributes {stable_mosaic.version = 11 : i64} {
  func.func @_mm_bias_act_kernel(%arg0: i32, %arg1: memref<1024x24xf32, #tpu.memory_space<vmem>>, %arg2: memref<24x128xf32, #tpu.memory_space<vmem>>, %arg3: memref<1x128xf32, #tpu.memory_space<vmem>>, %arg4: memref<1024x128xf32, #tpu.memory_space<vmem>>) attributes {dimension_semantics = [#tpu.dimension_semantics<parallel>], iteration_bounds = array<i64: 2>, scalar_prefetch = 0 : i64, scratch_operands = 0 : i64, tpu.core_type = #tpu.core_type<tc>, window_params = [{transform_indices = @transform_0, window_bounds = array<i64: 1024, 24>}, {pipeline_mode = #tpu.pipeline_mode<synchronous>, transform_indices = @transform_1, window_bounds = array<i64: 24, 128>}, {pipeline_mode = #tpu.pipeline_mode<synchronous>, transform_indices = @transform_2, window_bounds = array<i64: 1, 128>}, {transform_indices = @transform_3, window_bounds = array<i64: 1024, 128>}]} {
    %c0 = arith.constant 0 : index
    %c0_0 = arith.constant 0 : index
    %0 = vector.load %arg1[%c0, %c0_0] : memref<1024x24xf32, #tpu.memory_space<vmem>>, vector<1024x24xf32>
    %cst = arith.constant 0.000000e+00 : f32
    %1 = vector.broadcast %cst : f32 to vector<1024x24xf32>
    %2 = arith.cmpf oge, %0, %1 : vector<1024x24xf32>
    %cst_1 = arith.constant 2.000000e-01 : f32
    %3 = vector.broadcast %cst_1 : f32 to vector<1024x24xf32>
    %4 = arith.mulf %3, %0 : vector<1024x24xf32>
    %5 = arith.select %2, %0, %4 : vector<1024x24xi1>, vector<1024x24xf32>
    %c0_2 = arith.constant 0 : index
    %c0_3 = arith.constant 0 : index
    %6 = vector.load %arg2[%c0_2, %c0_3] : memref<24x128xf32, #tpu.memory_space<vmem>>, vector<24x128xf32>
    %cst_4 = arith.constant dense<0.000000e+00> : vector<1024x128xf32>
    %7 = tpu.matmul %5, %6, %cst_4 {dimension_numbers = #tpu.dot_dimension_numbers<[1], [0], [0], [1], [0, 0, 1, 1], [], []>} : vector<1024x24xf32>, vector<24x128xf32>, vector<1024x128xf32> -> vector<1024x128xf32>
    %c0_5 = arith.constant 0 : index
    %c0_6 = arith.constant 0 : index
    %8 = vector.load %arg3[%c0_5, %c0_6] : memref<1x128xf32, #tpu.memory_space<vmem>>, vector<1x128xf32>
    %9 = vector.broadcast %8 : vector<1x128xf32> to vector<1024x128xf32>
    %10 = arith.addf %7, %9 : vector<1024x128xf32>
    %cst_7 = arith.constant 0.000000e+00 : f32
    %11 = vector.broadcast %cst_7 : f32 to vector<1024x128xf32>
    %12 = arith.cmpf oge, %10, %11 : vector<1024x128xf32>
    %cst_8 = arith.constant 2.000000e-01 : f32
    %13 = vector.broadcast %cst_8 : f32 to vector<1024x128xf32>
    %14 = arith.mulf %13, %10 : vector<1024x128xf32>
    %15 = arith.select %12, %10, %14 : vector<1024x128xi1>, vector<1024x128xf32>
    %c0_9 = arith.constant 0 : index
    %c0_10 = arith.constant 0 : index
    %16 = vector.load %arg4[%c0_9, %c0_10] : memref<1024x128xf32, #tpu.memory_space<vmem>>, vector<1024x128xf32>
    tpu.vector_store %arg4[%c0_9, %c0_10], %15 {strides = array<i32>} : memref<1024x128xf32, #tpu.memory_space<vmem>>, vector<1024x128xf32>,
    return
  }
  func.func @transform_0(%arg0: i32) -> (i32, i32) {
    %c0_i32 = arith.constant 0 : i32
    %c0_i32_0 = arith.constant 0 : i32
    return %arg0, %c0_i32 : i32, i32
  }
  func.func @transform_1(%arg0: i32) -> (i32, i32) {
    %c0_i32 = arith.constant 0 : i32
    %c0_i32_0 = arith.constant 0 : i32
    %c0_i32_1 = arith.constant 0 : i32
    return %c0_i32, %c0_i32_0 : i32, i32
  }
  func.func @transform_2(%arg0: i32) -> (i32, i32) {
    %c0_i32 = arith.constant 0 : i32
    %c0_i32_0 = arith.constant 0 : i32
    %c0_i32_1 = arith.constant 0 : i32
    return %c0_i32, %c0_i32_0 : i32, i32
  }
  func.func @transform_3(%arg0: i32) -> (i32, i32) {
    %c0_i32 = arith.constant 0 : i32
    %c0_i32_0 = arith.constant 0 : i32
    return %arg0, %c0_i32 : i32, i32
  }
}

module attributes {stable_mosaic.version = 11 : i64} {
  func.func @_kp_kernel(%arg0: i32, %arg1: memref<1x4x16xf32, #tpu.memory_space<vmem>>, %arg2: memref<5x16x64xf32, #tpu.memory_space<vmem>>, %arg3: memref<1x64xf32, #tpu.memory_space<vmem>>, %arg4: memref<6x3x64x64xf32, #tpu.memory_space<vmem>>, %arg5: memref<6x1x64xf32, #tpu.memory_space<vmem>>, %arg6: memref<3x64x1664xf32, #tpu.memory_space<vmem>>, %arg7: memref<1x1664xf32, #tpu.memory_space<vmem>>, %arg8: memref<1x4x1664xf32, #tpu.memory_space<vmem>>) attributes {dimension_semantics = [#tpu.dimension_semantics<parallel>], iteration_bounds = array<i64: 2>, scalar_prefetch = 0 : i64, scratch_operands = 0 : i64, tpu.core_type = #tpu.core_type<tc>, window_params = [{transform_indices = @transform_0, window_bounds = array<i64: 1, 4, 16>}, {pipeline_mode = #tpu.pipeline_mode<synchronous>, transform_indices = @transform_1, window_bounds = array<i64: 5, 16, 64>}, {pipeline_mode = #tpu.pipeline_mode<synchronous>, transform_indices = @transform_2, window_bounds = array<i64: 1, 64>}, {pipeline_mode = #tpu.pipeline_mode<synchronous>, transform_indices = @transform_3, window_bounds = array<i64: 6, 3, 64, 64>}, {pipeline_mode = #tpu.pipeline_mode<synchronous>, transform_indices = @transform_4, window_bounds = array<i64: 6, 1, 64>}, {pipeline_mode = #tpu.pipeline_mode<synchronous>, transform_indices = @transform_5, window_bounds = array<i64: 3, 64, 1664>}, {pipeline_mode = #tpu.pipeline_mode<synchronous>, transform_indices = @transform_6, window_bounds = array<i64: 1, 1664>}, {transform_indices = @transform_7, window_bounds = array<i64: 1, 4, 1664>}]} {
    %c0 = arith.constant 0 : index
    %c0_0 = arith.constant 0 : index
    %c0_1 = arith.constant 0 : index
    %0 = vector.load %arg1[%c0, %c0_0, %c0_1] : memref<1x4x16xf32, #tpu.memory_space<vmem>>, vector<1x4x16xf32>
    %1 = vector.shape_cast %0 : vector<1x4x16xf32> to vector<4x16xf32>
    %c0_2 = arith.constant 0 : index
    %c0_3 = arith.constant 0 : index
    %2 = vector.load %arg3[%c0_2, %c0_3] : memref<1x64xf32, #tpu.memory_space<vmem>>, vector<1x64xf32>
    %cst = arith.constant 0.000000e+00 : f32
    %3 = vector.broadcast %cst : f32 to vector<2x16xf32>
    %4 = tpu.concatenate %3, %1, %3 in 0 : vector<2x16xf32>, vector<4x16xf32>, vector<2x16xf32> -> vector<8x16xf32>
    %5 = vector.extract_strided_slice %4 {offsets = [0, 0], sizes = [4, 16], strides = [1, 1]} : vector<8x16xf32> to vector<4x16xf32>
    %c0_4 = arith.constant 0 : index
    %c0_5 = arith.constant 0 : index
    %c0_6 = arith.constant 0 : index
    %6 = vector.load %arg2[%c0_4, %c0_5, %c0_6] : memref<5x16x64xf32, #tpu.memory_space<vmem>>, vector<1x16x64xf32>
    %7 = vector.shape_cast %6 : vector<1x16x64xf32> to vector<16x64xf32>
    %cst_7 = arith.constant dense<0.000000e+00> : vector<4x64xf32>
    %8 = tpu.matmul %5, %7, %cst_7 {dimension_numbers = #tpu.dot_dimension_numbers<[1], [0], [0], [1], [0, 0, 1, 1], [], []>} : vector<4x16xf32>, vector<16x64xf32>, vector<4x64xf32> -> vector<4x64xf32>
    %9 = vector.extract_strided_slice %4 {offsets = [1, 0], sizes = [4, 16], strides = [1, 1]} : vector<8x16xf32> to vector<4x16xf32>
    %c1 = arith.constant 1 : index
    %c0_8 = arith.constant 0 : index
    %c0_9 = arith.constant 0 : index
    %10 = vector.load %arg2[%c1, %c0_8, %c0_9] : memref<5x16x64xf32, #tpu.memory_space<vmem>>, vector<1x16x64xf32>
    %11 = vector.shape_cast %10 : vector<1x16x64xf32> to vector<16x64xf32>
    %cst_10 = arith.constant dense<0.000000e+00> : vector<4x64xf32>
    %12 = tpu.matmul %9, %11, %cst_10 {dimension_numbers = #tpu.dot_dimension_numbers<[1], [0], [0], [1], [0, 0, 1, 1], [], []>} : vector<4x16xf32>, vector<16x64xf32>, vector<4x64xf32> -> vector<4x64xf32>
    %13 = arith.addf %8, %12 : vector<4x64xf32>
    %14 = vector.extract_strided_slice %4 {offsets = [2, 0], sizes = [4, 16], strides = [1, 1]} : vector<8x16xf32> to vector<4x16xf32>
    %c2 = arith.constant 2 : index
    %c0_11 = arith.constant 0 : index
    %c0_12 = arith.constant 0 : index
    %15 = vector.load %arg2[%c2, %c0_11, %c0_12] : memref<5x16x64xf32, #tpu.memory_space<vmem>>, vector<1x16x64xf32>
    %16 = vector.shape_cast %15 : vector<1x16x64xf32> to vector<16x64xf32>
    %cst_13 = arith.constant dense<0.000000e+00> : vector<4x64xf32>
    %17 = tpu.matmul %14, %16, %cst_13 {dimension_numbers = #tpu.dot_dimension_numbers<[1], [0], [0], [1], [0, 0, 1, 1], [], []>} : vector<4x16xf32>, vector<16x64xf32>, vector<4x64xf32> -> vector<4x64xf32>
    %18 = arith.addf %13, %17 : vector<4x64xf32>
    %19 = vector.extract_strided_slice %4 {offsets = [3, 0], sizes = [4, 16], strides = [1, 1]} : vector<8x16xf32> to vector<4x16xf32>
    %c3 = arith.constant 3 : index
    %c0_14 = arith.constant 0 : index
    %c0_15 = arith.constant 0 : index
    %20 = vector.load %arg2[%c3, %c0_14, %c0_15] : memref<5x16x64xf32, #tpu.memory_space<vmem>>, vector<1x16x64xf32>
    %21 = vector.shape_cast %20 : vector<1x16x64xf32> to vector<16x64xf32>
    %cst_16 = arith.constant dense<0.000000e+00> : vector<4x64xf32>
    %22 = tpu.matmul %19, %21, %cst_16 {dimension_numbers = #tpu.dot_dimension_numbers<[1], [0], [0], [1], [0, 0, 1, 1], [], []>} : vector<4x16xf32>, vector<16x64xf32>, vector<4x64xf32> -> vector<4x64xf32>
    %23 = arith.addf %18, %22 : vector<4x64xf32>
    %24 = vector.extract_strided_slice %4 {offsets = [4, 0], sizes = [4, 16], strides = [1, 1]} : vector<8x16xf32> to vector<4x16xf32>
    %c4 = arith.constant 4 : index
    %c0_17 = arith.constant 0 : index
    %c0_18 = arith.constant 0 : index
    %25 = vector.load %arg2[%c4, %c0_17, %c0_18] : memref<5x16x64xf32, #tpu.memory_space<vmem>>, vector<1x16x64xf32>
    %26 = vector.shape_cast %25 : vector<1x16x64xf32> to vector<16x64xf32>
    %cst_19 = arith.constant dense<0.000000e+00> : vector<4x64xf32>
    %27 = tpu.matmul %24, %26, %cst_19 {dimension_numbers = #tpu.dot_dimension_numbers<[1], [0], [0], [1], [0, 0, 1, 1], [], []>} : vector<4x16xf32>, vector<16x64xf32>, vector<4x64xf32> -> vector<4x64xf32>
    %28 = arith.addf %23, %27 : vector<4x64xf32>
    %29 = vector.broadcast %2 : vector<1x64xf32> to vector<4x64xf32>
    %30 = arith.addf %28, %29 : vector<4x64xf32>
    %cst_20 = arith.constant 0.000000e+00 : f32
    %31 = vector.broadcast %cst_20 : f32 to vector<4x64xf32>
    %32 = arith.cmpf oge, %30, %31 : vector<4x64xf32>
    %cst_21 = arith.constant 1.000000e-01 : f32
    %33 = vector.broadcast %cst_21 : f32 to vector<4x64xf32>
    %34 = arith.mulf %33, %30 : vector<4x64xf32>
    %35 = arith.select %32, %30, %34 : vector<4x64xi1>, vector<4x64xf32>
    %c0_22 = arith.constant 0 : index
    %c0_23 = arith.constant 0 : index
    %c0_24 = arith.constant 0 : index
    %36 = vector.load %arg5[%c0_22, %c0_23, %c0_24] : memref<6x1x64xf32, #tpu.memory_space<vmem>>, vector<1x1x64xf32>
    %37 = vector.shape_cast %36 : vector<1x1x64xf32> to vector<1x64xf32>
    %cst_25 = arith.constant 0.000000e+00 : f32
    %38 = vector.broadcast %cst_25 : f32 to vector<1x64xf32>
    %39 = tpu.concatenate %38, %35, %38 in 0 : vector<1x64xf32>, vector<4x64xf32>, vector<1x64xf32> -> vector<6x64xf32>
    %40 = vector.extract_strided_slice %39 {offsets = [0, 0], sizes = [4, 64], strides = [1, 1]} : vector<6x64xf32> to vector<4x64xf32>
    %c0_26 = arith.constant 0 : index
    %c0_27 = arith.constant 0 : index
    %c0_28 = arith.constant 0 : index
    %c0_29 = arith.constant 0 : index
    %41 = vector.load %arg4[%c0_26, %c0_27, %c0_28, %c0_29] : memref<6x3x64x64xf32, #tpu.memory_space<vmem>>, vector<1x1x64x64xf32>
    %42 = vector.shape_cast %41 : vector<1x1x64x64xf32> to vector<64x64xf32>
    %cst_30 = arith.constant dense<0.000000e+00> : vector<4x64xf32>
    %43 = tpu.matmul %40, %42, %cst_30 {dimension_numbers = #tpu.dot_dimension_numbers<[1], [0], [0], [1], [0, 0, 1, 1], [], []>} : vector<4x64xf32>, vector<64x64xf32>, vector<4x64xf32> -> vector<4x64xf32>
    %44 = vector.extract_strided_slice %39 {offsets = [1, 0], sizes = [4, 64], strides = [1, 1]} : vector<6x64xf32> to vector<4x64xf32>
    %c0_31 = arith.constant 0 : index
    %c1_32 = arith.constant 1 : index
    %c0_33 = arith.constant 0 : index
    %c0_34 = arith.constant 0 : index
    %45 = vector.load %arg4[%c0_31, %c1_32, %c0_33, %c0_34] : memref<6x3x64x64xf32, #tpu.memory_space<vmem>>, vector<1x1x64x64xf32>
    %46 = vector.shape_cast %45 : vector<1x1x64x64xf32> to vector<64x64xf32>
    %cst_35 = arith.constant dense<0.000000e+00> : vector<4x64xf32>
    %47 = tpu.matmul %44, %46, %cst_35 {dimension_numbers = #tpu.dot_dimension_numbers<[1], [0], [0], [1], [0, 0, 1, 1], [], []>} : vector<4x64xf32>, vector<64x64xf32>, vector<4x64xf32> -> vector<4x64xf32>
    %48 = arith.addf %43, %47 : vector<4x64xf32>
    %49 = vector.extract_strided_slice %39 {offsets = [2, 0], sizes = [4, 64], strides = [1, 1]} : vector<6x64xf32> to vector<4x64xf32>
    %c0_36 = arith.constant 0 : index
    %c2_37 = arith.constant 2 : index
    %c0_38 = arith.constant 0 : index
    %c0_39 = arith.constant 0 : index
    %50 = vector.load %arg4[%c0_36, %c2_37, %c0_38, %c0_39] : memref<6x3x64x64xf32, #tpu.memory_space<vmem>>, vector<1x1x64x64xf32>
    %51 = vector.shape_cast %50 : vector<1x1x64x64xf32> to vector<64x64xf32>
    %cst_40 = arith.constant dense<0.000000e+00> : vector<4x64xf32>
    %52 = tpu.matmul %49, %51, %cst_40 {dimension_numbers = #tpu.dot_dimension_numbers<[1], [0], [0], [1], [0, 0, 1, 1], [], []>} : vector<4x64xf32>, vector<64x64xf32>, vector<4x64xf32> -> vector<4x64xf32>
    %53 = arith.addf %48, %52 : vector<4x64xf32>
    %54 = vector.broadcast %37 : vector<1x64xf32> to vector<4x64xf32>
    %55 = arith.addf %53, %54 : vector<4x64xf32>
    %cst_41 = arith.constant 0.000000e+00 : f32
    %56 = vector.broadcast %cst_41 : f32 to vector<4x64xf32>
    %57 = arith.cmpf oge, %55, %56 : vector<4x64xf32>
    %cst_42 = arith.constant 1.000000e-01 : f32
    %58 = vector.broadcast %cst_42 : f32 to vector<4x64xf32>
    %59 = arith.mulf %58, %55 : vector<4x64xf32>
    %60 = arith.select %57, %55, %59 : vector<4x64xi1>, vector<4x64xf32>
    %c1_43 = arith.constant 1 : index
    %c0_44 = arith.constant 0 : index
    %c0_45 = arith.constant 0 : index
    %61 = vector.load %arg5[%c1_43, %c0_44, %c0_45] : memref<6x1x64xf32, #tpu.memory_space<vmem>>, vector<1x1x64xf32>
    %62 = vector.shape_cast %61 : vector<1x1x64xf32> to vector<1x64xf32>
    %cst_46 = arith.constant 0.000000e+00 : f32
    %63 = vector.broadcast %cst_46 : f32 to vector<1x64xf32>
    %64 = tpu.concatenate %63, %60, %63 in 0 : vector<1x64xf32>, vector<4x64xf32>, vector<1x64xf32> -> vector<6x64xf32>
    %65 = vector.extract_strided_slice %64 {offsets = [0, 0], sizes = [4, 64], strides = [1, 1]} : vector<6x64xf32> to vector<4x64xf32>
    %c1_47 = arith.constant 1 : index
    %c0_48 = arith.constant 0 : index
    %c0_49 = arith.constant 0 : index
    %c0_50 = arith.constant 0 : index
    %66 = vector.load %arg4[%c1_47, %c0_48, %c0_49, %c0_50] : memref<6x3x64x64xf32, #tpu.memory_space<vmem>>, vector<1x1x64x64xf32>
    %67 = vector.shape_cast %66 : vector<1x1x64x64xf32> to vector<64x64xf32>
    %cst_51 = arith.constant dense<0.000000e+00> : vector<4x64xf32>
    %68 = tpu.matmul %65, %67, %cst_51 {dimension_numbers = #tpu.dot_dimension_numbers<[1], [0], [0], [1], [0, 0, 1, 1], [], []>} : vector<4x64xf32>, vector<64x64xf32>, vector<4x64xf32> -> vector<4x64xf32>
    %69 = vector.extract_strided_slice %64 {offsets = [1, 0], sizes = [4, 64], strides = [1, 1]} : vector<6x64xf32> to vector<4x64xf32>
    %c1_52 = arith.constant 1 : index
    %c1_53 = arith.constant 1 : index
    %c0_54 = arith.constant 0 : index
    %c0_55 = arith.constant 0 : index
    %70 = vector.load %arg4[%c1_52, %c1_53, %c0_54, %c0_55] : memref<6x3x64x64xf32, #tpu.memory_space<vmem>>, vector<1x1x64x64xf32>
    %71 = vector.shape_cast %70 : vector<1x1x64x64xf32> to vector<64x64xf32>
    %cst_56 = arith.constant dense<0.000000e+00> : vector<4x64xf32>
    %72 = tpu.matmul %69, %71, %cst_56 {dimension_numbers = #tpu.dot_dimension_numbers<[1], [0], [0], [1], [0, 0, 1, 1], [], []>} : vector<4x64xf32>, vector<64x64xf32>, vector<4x64xf32> -> vector<4x64xf32>
    %73 = arith.addf %68, %72 : vector<4x64xf32>
    %74 = vector.extract_strided_slice %64 {offsets = [2, 0], sizes = [4, 64], strides = [1, 1]} : vector<6x64xf32> to vector<4x64xf32>
    %c1_57 = arith.constant 1 : index
    %c2_58 = arith.constant 2 : index
    %c0_59 = arith.constant 0 : index
    %c0_60 = arith.constant 0 : index
    %75 = vector.load %arg4[%c1_57, %c2_58, %c0_59, %c0_60] : memref<6x3x64x64xf32, #tpu.memory_space<vmem>>, vector<1x1x64x64xf32>
    %76 = vector.shape_cast %75 : vector<1x1x64x64xf32> to vector<64x64xf32>
    %cst_61 = arith.constant dense<0.000000e+00> : vector<4x64xf32>
    %77 = tpu.matmul %74, %76, %cst_61 {dimension_numbers = #tpu.dot_dimension_numbers<[1], [0], [0], [1], [0, 0, 1, 1], [], []>} : vector<4x64xf32>, vector<64x64xf32>, vector<4x64xf32> -> vector<4x64xf32>
    %78 = arith.addf %73, %77 : vector<4x64xf32>
    %79 = vector.broadcast %62 : vector<1x64xf32> to vector<4x64xf32>
    %80 = arith.addf %78, %79 : vector<4x64xf32>
    %cst_62 = arith.constant 0.000000e+00 : f32
    %81 = vector.broadcast %cst_62 : f32 to vector<4x64xf32>
    %82 = arith.cmpf oge, %80, %81 : vector<4x64xf32>
    %cst_63 = arith.constant 1.000000e-01 : f32
    %83 = vector.broadcast %cst_63 : f32 to vector<4x64xf32>
    %84 = arith.mulf %83, %80 : vector<4x64xf32>
    %85 = arith.select %82, %80, %84 : vector<4x64xi1>, vector<4x64xf32>
    %c2_64 = arith.constant 2 : index
    %c0_65 = arith.constant 0 : index
    %c0_66 = arith.constant 0 : index
    %86 = vector.load %arg5[%c2_64, %c0_65, %c0_66] : memref<6x1x64xf32, #tpu.memory_space<vmem>>, vector<1x1x64xf32>
    %87 = vector.shape_cast %86 : vector<1x1x64xf32> to vector<1x64xf32>
    %cst_67 = arith.constant 0.000000e+00 : f32
    %88 = vector.broadcast %cst_67 : f32 to vector<1x64xf32>
    %89 = tpu.concatenate %88, %85, %88 in 0 : vector<1x64xf32>, vector<4x64xf32>, vector<1x64xf32> -> vector<6x64xf32>
    %90 = vector.extract_strided_slice %89 {offsets = [0, 0], sizes = [4, 64], strides = [1, 1]} : vector<6x64xf32> to vector<4x64xf32>
    %c2_68 = arith.constant 2 : index
    %c0_69 = arith.constant 0 : index
    %c0_70 = arith.constant 0 : index
    %c0_71 = arith.constant 0 : index
    %91 = vector.load %arg4[%c2_68, %c0_69, %c0_70, %c0_71] : memref<6x3x64x64xf32, #tpu.memory_space<vmem>>, vector<1x1x64x64xf32>
    %92 = vector.shape_cast %91 : vector<1x1x64x64xf32> to vector<64x64xf32>
    %cst_72 = arith.constant dense<0.000000e+00> : vector<4x64xf32>
    %93 = tpu.matmul %90, %92, %cst_72 {dimension_numbers = #tpu.dot_dimension_numbers<[1], [0], [0], [1], [0, 0, 1, 1], [], []>} : vector<4x64xf32>, vector<64x64xf32>, vector<4x64xf32> -> vector<4x64xf32>
    %94 = vector.extract_strided_slice %89 {offsets = [1, 0], sizes = [4, 64], strides = [1, 1]} : vector<6x64xf32> to vector<4x64xf32>
    %c2_73 = arith.constant 2 : index
    %c1_74 = arith.constant 1 : index
    %c0_75 = arith.constant 0 : index
    %c0_76 = arith.constant 0 : index
    %95 = vector.load %arg4[%c2_73, %c1_74, %c0_75, %c0_76] : memref<6x3x64x64xf32, #tpu.memory_space<vmem>>, vector<1x1x64x64xf32>
    %96 = vector.shape_cast %95 : vector<1x1x64x64xf32> to vector<64x64xf32>
    %cst_77 = arith.constant dense<0.000000e+00> : vector<4x64xf32>
    %97 = tpu.matmul %94, %96, %cst_77 {dimension_numbers = #tpu.dot_dimension_numbers<[1], [0], [0], [1], [0, 0, 1, 1], [], []>} : vector<4x64xf32>, vector<64x64xf32>, vector<4x64xf32> -> vector<4x64xf32>
    %98 = arith.addf %93, %97 : vector<4x64xf32>
    %99 = vector.extract_strided_slice %89 {offsets = [2, 0], sizes = [4, 64], strides = [1, 1]} : vector<6x64xf32> to vector<4x64xf32>
    %c2_78 = arith.constant 2 : index
    %c2_79 = arith.constant 2 : index
    %c0_80 = arith.constant 0 : index
    %c0_81 = arith.constant 0 : index
    %100 = vector.load %arg4[%c2_78, %c2_79, %c0_80, %c0_81] : memref<6x3x64x64xf32, #tpu.memory_space<vmem>>, vector<1x1x64x64xf32>
    %101 = vector.shape_cast %100 : vector<1x1x64x64xf32> to vector<64x64xf32>
    %cst_82 = arith.constant dense<0.000000e+00> : vector<4x64xf32>
    %102 = tpu.matmul %99, %101, %cst_82 {dimension_numbers = #tpu.dot_dimension_numbers<[1], [0], [0], [1], [0, 0, 1, 1], [], []>} : vector<4x64xf32>, vector<64x64xf32>, vector<4x64xf32> -> vector<4x64xf32>
    %103 = arith.addf %98, %102 : vector<4x64xf32>
    %104 = vector.broadcast %87 : vector<1x64xf32> to vector<4x64xf32>
    %105 = arith.addf %103, %104 : vector<4x64xf32>
    %cst_83 = arith.constant 0.000000e+00 : f32
    %106 = vector.broadcast %cst_83 : f32 to vector<4x64xf32>
    %107 = arith.cmpf oge, %105, %106 : vector<4x64xf32>
    %cst_84 = arith.constant 1.000000e-01 : f32
    %108 = vector.broadcast %cst_84 : f32 to vector<4x64xf32>
    %109 = arith.mulf %108, %105 : vector<4x64xf32>
    %110 = arith.select %107, %105, %109 : vector<4x64xi1>, vector<4x64xf32>
    %c3_85 = arith.constant 3 : index
    %c0_86 = arith.constant 0 : index
    %c0_87 = arith.constant 0 : index
    %111 = vector.load %arg5[%c3_85, %c0_86, %c0_87] : memref<6x1x64xf32, #tpu.memory_space<vmem>>, vector<1x1x64xf32>
    %112 = vector.shape_cast %111 : vector<1x1x64xf32> to vector<1x64xf32>
    %cst_88 = arith.constant 0.000000e+00 : f32
    %113 = vector.broadcast %cst_88 : f32 to vector<1x64xf32>
    %114 = tpu.concatenate %113, %110, %113 in 0 : vector<1x64xf32>, vector<4x64xf32>, vector<1x64xf32> -> vector<6x64xf32>
    %115 = vector.extract_strided_slice %114 {offsets = [0, 0], sizes = [4, 64], strides = [1, 1]} : vector<6x64xf32> to vector<4x64xf32>
    %c3_89 = arith.constant 3 : index
    %c0_90 = arith.constant 0 : index
    %c0_91 = arith.constant 0 : index
    %c0_92 = arith.constant 0 : index
    %116 = vector.load %arg4[%c3_89, %c0_90, %c0_91, %c0_92] : memref<6x3x64x64xf32, #tpu.memory_space<vmem>>, vector<1x1x64x64xf32>
    %117 = vector.shape_cast %116 : vector<1x1x64x64xf32> to vector<64x64xf32>
    %cst_93 = arith.constant dense<0.000000e+00> : vector<4x64xf32>
    %118 = tpu.matmul %115, %117, %cst_93 {dimension_numbers = #tpu.dot_dimension_numbers<[1], [0], [0], [1], [0, 0, 1, 1], [], []>} : vector<4x64xf32>, vector<64x64xf32>, vector<4x64xf32> -> vector<4x64xf32>
    %119 = vector.extract_strided_slice %114 {offsets = [1, 0], sizes = [4, 64], strides = [1, 1]} : vector<6x64xf32> to vector<4x64xf32>
    %c3_94 = arith.constant 3 : index
    %c1_95 = arith.constant 1 : index
    %c0_96 = arith.constant 0 : index
    %c0_97 = arith.constant 0 : index
    %120 = vector.load %arg4[%c3_94, %c1_95, %c0_96, %c0_97] : memref<6x3x64x64xf32, #tpu.memory_space<vmem>>, vector<1x1x64x64xf32>
    %121 = vector.shape_cast %120 : vector<1x1x64x64xf32> to vector<64x64xf32>
    %cst_98 = arith.constant dense<0.000000e+00> : vector<4x64xf32>
    %122 = tpu.matmul %119, %121, %cst_98 {dimension_numbers = #tpu.dot_dimension_numbers<[1], [0], [0], [1], [0, 0, 1, 1], [], []>} : vector<4x64xf32>, vector<64x64xf32>, vector<4x64xf32> -> vector<4x64xf32>
    %123 = arith.addf %118, %122 : vector<4x64xf32>
    %124 = vector.extract_strided_slice %114 {offsets = [2, 0], sizes = [4, 64], strides = [1, 1]} : vector<6x64xf32> to vector<4x64xf32>
    %c3_99 = arith.constant 3 : index
    %c2_100 = arith.constant 2 : index
    %c0_101 = arith.constant 0 : index
    %c0_102 = arith.constant 0 : index
    %125 = vector.load %arg4[%c3_99, %c2_100, %c0_101, %c0_102] : memref<6x3x64x64xf32, #tpu.memory_space<vmem>>, vector<1x1x64x64xf32>
    %126 = vector.shape_cast %125 : vector<1x1x64x64xf32> to vector<64x64xf32>
    %cst_103 = arith.constant dense<0.000000e+00> : vector<4x64xf32>
    %127 = tpu.matmul %124, %126, %cst_103 {dimension_numbers = #tpu.dot_dimension_numbers<[1], [0], [0], [1], [0, 0, 1, 1], [], []>} : vector<4x64xf32>, vector<64x64xf32>, vector<4x64xf32> -> vector<4x64xf32>
    %128 = arith.addf %123, %127 : vector<4x64xf32>
    %129 = vector.broadcast %112 : vector<1x64xf32> to vector<4x64xf32>
    %130 = arith.addf %128, %129 : vector<4x64xf32>
    %cst_104 = arith.constant 0.000000e+00 : f32
    %131 = vector.broadcast %cst_104 : f32 to vector<4x64xf32>
    %132 = arith.cmpf oge, %130, %131 : vector<4x64xf32>
    %cst_105 = arith.constant 1.000000e-01 : f32
    %133 = vector.broadcast %cst_105 : f32 to vector<4x64xf32>
    %134 = arith.mulf %133, %130 : vector<4x64xf32>
    %135 = arith.select %132, %130, %134 : vector<4x64xi1>, vector<4x64xf32>
    %c4_106 = arith.constant 4 : index
    %c0_107 = arith.constant 0 : index
    %c0_108 = arith.constant 0 : index
    %136 = vector.load %arg5[%c4_106, %c0_107, %c0_108] : memref<6x1x64xf32, #tpu.memory_space<vmem>>, vector<1x1x64xf32>
    %137 = vector.shape_cast %136 : vector<1x1x64xf32> to vector<1x64xf32>
    %cst_109 = arith.constant 0.000000e+00 : f32
    %138 = vector.broadcast %cst_109 : f32 to vector<1x64xf32>
    %139 = tpu.concatenate %138, %135, %138 in 0 : vector<1x64xf32>, vector<4x64xf32>, vector<1x64xf32> -> vector<6x64xf32>
    %140 = vector.extract_strided_slice %139 {offsets = [0, 0], sizes = [4, 64], strides = [1, 1]} : vector<6x64xf32> to vector<4x64xf32>
    %c4_110 = arith.constant 4 : index
    %c0_111 = arith.constant 0 : index
    %c0_112 = arith.constant 0 : index
    %c0_113 = arith.constant 0 : index
    %141 = vector.load %arg4[%c4_110, %c0_111, %c0_112, %c0_113] : memref<6x3x64x64xf32, #tpu.memory_space<vmem>>, vector<1x1x64x64xf32>
    %142 = vector.shape_cast %141 : vector<1x1x64x64xf32> to vector<64x64xf32>
    %cst_114 = arith.constant dense<0.000000e+00> : vector<4x64xf32>
    %143 = tpu.matmul %140, %142, %cst_114 {dimension_numbers = #tpu.dot_dimension_numbers<[1], [0], [0], [1], [0, 0, 1, 1], [], []>} : vector<4x64xf32>, vector<64x64xf32>, vector<4x64xf32> -> vector<4x64xf32>
    %144 = vector.extract_strided_slice %139 {offsets = [1, 0], sizes = [4, 64], strides = [1, 1]} : vector<6x64xf32> to vector<4x64xf32>
    %c4_115 = arith.constant 4 : index
    %c1_116 = arith.constant 1 : index
    %c0_117 = arith.constant 0 : index
    %c0_118 = arith.constant 0 : index
    %145 = vector.load %arg4[%c4_115, %c1_116, %c0_117, %c0_118] : memref<6x3x64x64xf32, #tpu.memory_space<vmem>>, vector<1x1x64x64xf32>
    %146 = vector.shape_cast %145 : vector<1x1x64x64xf32> to vector<64x64xf32>
    %cst_119 = arith.constant dense<0.000000e+00> : vector<4x64xf32>
    %147 = tpu.matmul %144, %146, %cst_119 {dimension_numbers = #tpu.dot_dimension_numbers<[1], [0], [0], [1], [0, 0, 1, 1], [], []>} : vector<4x64xf32>, vector<64x64xf32>, vector<4x64xf32> -> vector<4x64xf32>
    %148 = arith.addf %143, %147 : vector<4x64xf32>
    %149 = vector.extract_strided_slice %139 {offsets = [2, 0], sizes = [4, 64], strides = [1, 1]} : vector<6x64xf32> to vector<4x64xf32>
    %c4_120 = arith.constant 4 : index
    %c2_121 = arith.constant 2 : index
    %c0_122 = arith.constant 0 : index
    %c0_123 = arith.constant 0 : index
    %150 = vector.load %arg4[%c4_120, %c2_121, %c0_122, %c0_123] : memref<6x3x64x64xf32, #tpu.memory_space<vmem>>, vector<1x1x64x64xf32>
    %151 = vector.shape_cast %150 : vector<1x1x64x64xf32> to vector<64x64xf32>
    %cst_124 = arith.constant dense<0.000000e+00> : vector<4x64xf32>
    %152 = tpu.matmul %149, %151, %cst_124 {dimension_numbers = #tpu.dot_dimension_numbers<[1], [0], [0], [1], [0, 0, 1, 1], [], []>} : vector<4x64xf32>, vector<64x64xf32>, vector<4x64xf32> -> vector<4x64xf32>
    %153 = arith.addf %148, %152 : vector<4x64xf32>
    %154 = vector.broadcast %137 : vector<1x64xf32> to vector<4x64xf32>
    %155 = arith.addf %153, %154 : vector<4x64xf32>
    %cst_125 = arith.constant 0.000000e+00 : f32
    %156 = vector.broadcast %cst_125 : f32 to vector<4x64xf32>
    %157 = arith.cmpf oge, %155, %156 : vector<4x64xf32>
    %cst_126 = arith.constant 1.000000e-01 : f32
    %158 = vector.broadcast %cst_126 : f32 to vector<4x64xf32>
    %159 = arith.mulf %158, %155 : vector<4x64xf32>
    %160 = arith.select %157, %155, %159 : vector<4x64xi1>, vector<4x64xf32>
    %c5 = arith.constant 5 : index
    %c0_127 = arith.constant 0 : index
    %c0_128 = arith.constant 0 : index
    %161 = vector.load %arg5[%c5, %c0_127, %c0_128] : memref<6x1x64xf32, #tpu.memory_space<vmem>>, vector<1x1x64xf32>
    %162 = vector.shape_cast %161 : vector<1x1x64xf32> to vector<1x64xf32>
    %cst_129 = arith.constant 0.000000e+00 : f32
    %163 = vector.broadcast %cst_129 : f32 to vector<1x64xf32>
    %164 = tpu.concatenate %163, %160, %163 in 0 : vector<1x64xf32>, vector<4x64xf32>, vector<1x64xf32> -> vector<6x64xf32>
    %165 = vector.extract_strided_slice %164 {offsets = [0, 0], sizes = [4, 64], strides = [1, 1]} : vector<6x64xf32> to vector<4x64xf32>
    %c5_130 = arith.constant 5 : index
    %c0_131 = arith.constant 0 : index
    %c0_132 = arith.constant 0 : index
    %c0_133 = arith.constant 0 : index
    %166 = vector.load %arg4[%c5_130, %c0_131, %c0_132, %c0_133] : memref<6x3x64x64xf32, #tpu.memory_space<vmem>>, vector<1x1x64x64xf32>
    %167 = vector.shape_cast %166 : vector<1x1x64x64xf32> to vector<64x64xf32>
    %cst_134 = arith.constant dense<0.000000e+00> : vector<4x64xf32>
    %168 = tpu.matmul %165, %167, %cst_134 {dimension_numbers = #tpu.dot_dimension_numbers<[1], [0], [0], [1], [0, 0, 1, 1], [], []>} : vector<4x64xf32>, vector<64x64xf32>, vector<4x64xf32> -> vector<4x64xf32>
    %169 = vector.extract_strided_slice %164 {offsets = [1, 0], sizes = [4, 64], strides = [1, 1]} : vector<6x64xf32> to vector<4x64xf32>
    %c5_135 = arith.constant 5 : index
    %c1_136 = arith.constant 1 : index
    %c0_137 = arith.constant 0 : index
    %c0_138 = arith.constant 0 : index
    %170 = vector.load %arg4[%c5_135, %c1_136, %c0_137, %c0_138] : memref<6x3x64x64xf32, #tpu.memory_space<vmem>>, vector<1x1x64x64xf32>
    %171 = vector.shape_cast %170 : vector<1x1x64x64xf32> to vector<64x64xf32>
    %cst_139 = arith.constant dense<0.000000e+00> : vector<4x64xf32>
    %172 = tpu.matmul %169, %171, %cst_139 {dimension_numbers = #tpu.dot_dimension_numbers<[1], [0], [0], [1], [0, 0, 1, 1], [], []>} : vector<4x64xf32>, vector<64x64xf32>, vector<4x64xf32> -> vector<4x64xf32>
    %173 = arith.addf %168, %172 : vector<4x64xf32>
    %174 = vector.extract_strided_slice %164 {offsets = [2, 0], sizes = [4, 64], strides = [1, 1]} : vector<6x64xf32> to vector<4x64xf32>
    %c5_140 = arith.constant 5 : index
    %c2_141 = arith.constant 2 : index
    %c0_142 = arith.constant 0 : index
    %c0_143 = arith.constant 0 : index
    %175 = vector.load %arg4[%c5_140, %c2_141, %c0_142, %c0_143] : memref<6x3x64x64xf32, #tpu.memory_space<vmem>>, vector<1x1x64x64xf32>
    %176 = vector.shape_cast %175 : vector<1x1x64x64xf32> to vector<64x64xf32>
    %cst_144 = arith.constant dense<0.000000e+00> : vector<4x64xf32>
    %177 = tpu.matmul %174, %176, %cst_144 {dimension_numbers = #tpu.dot_dimension_numbers<[1], [0], [0], [1], [0, 0, 1, 1], [], []>} : vector<4x64xf32>, vector<64x64xf32>, vector<4x64xf32> -> vector<4x64xf32>
    %178 = arith.addf %173, %177 : vector<4x64xf32>
    %179 = vector.broadcast %162 : vector<1x64xf32> to vector<4x64xf32>
    %180 = arith.addf %178, %179 : vector<4x64xf32>
    %cst_145 = arith.constant 0.000000e+00 : f32
    %181 = vector.broadcast %cst_145 : f32 to vector<4x64xf32>
    %182 = arith.cmpf oge, %180, %181 : vector<4x64xf32>
    %cst_146 = arith.constant 1.000000e-01 : f32
    %183 = vector.broadcast %cst_146 : f32 to vector<4x64xf32>
    %184 = arith.mulf %183, %180 : vector<4x64xf32>
    %185 = arith.select %182, %180, %184 : vector<4x64xi1>, vector<4x64xf32>
    %186 = arith.addf %35, %185 : vector<4x64xf32>
    %c0_147 = arith.constant 0 : index
    %c0_148 = arith.constant 0 : index
    %187 = vector.load %arg7[%c0_147, %c0_148] : memref<1x1664xf32, #tpu.memory_space<vmem>>, vector<1x1664xf32>
    %cst_149 = arith.constant 0.000000e+00 : f32
    %188 = vector.broadcast %cst_149 : f32 to vector<1x64xf32>
    %189 = tpu.concatenate %188, %186, %188 in 0 : vector<1x64xf32>, vector<4x64xf32>, vector<1x64xf32> -> vector<6x64xf32>
    %190 = vector.extract_strided_slice %189 {offsets = [0, 0], sizes = [4, 64], strides = [1, 1]} : vector<6x64xf32> to vector<4x64xf32>
    %c0_150 = arith.constant 0 : index
    %c0_151 = arith.constant 0 : index
    %c0_152 = arith.constant 0 : index
    %191 = vector.load %arg6[%c0_150, %c0_151, %c0_152] : memref<3x64x1664xf32, #tpu.memory_space<vmem>>, vector<1x64x1664xf32>
    %192 = vector.shape_cast %191 : vector<1x64x1664xf32> to vector<64x1664xf32>
    %cst_153 = arith.constant dense<0.000000e+00> : vector<4x1664xf32>
    %193 = tpu.matmul %190, %192, %cst_153 {dimension_numbers = #tpu.dot_dimension_numbers<[1], [0], [0], [1], [0, 0, 1, 1], [], []>} : vector<4x64xf32>, vector<64x1664xf32>, vector<4x1664xf32> -> vector<4x1664xf32>
    %194 = vector.extract_strided_slice %189 {offsets = [1, 0], sizes = [4, 64], strides = [1, 1]} : vector<6x64xf32> to vector<4x64xf32>
    %c1_154 = arith.constant 1 : index
    %c0_155 = arith.constant 0 : index
    %c0_156 = arith.constant 0 : index
    %195 = vector.load %arg6[%c1_154, %c0_155, %c0_156] : memref<3x64x1664xf32, #tpu.memory_space<vmem>>, vector<1x64x1664xf32>
    %196 = vector.shape_cast %195 : vector<1x64x1664xf32> to vector<64x1664xf32>
    %cst_157 = arith.constant dense<0.000000e+00> : vector<4x1664xf32>
    %197 = tpu.matmul %194, %196, %cst_157 {dimension_numbers = #tpu.dot_dimension_numbers<[1], [0], [0], [1], [0, 0, 1, 1], [], []>} : vector<4x64xf32>, vector<64x1664xf32>, vector<4x1664xf32> -> vector<4x1664xf32>
    %198 = arith.addf %193, %197 : vector<4x1664xf32>
    %199 = vector.extract_strided_slice %189 {offsets = [2, 0], sizes = [4, 64], strides = [1, 1]} : vector<6x64xf32> to vector<4x64xf32>
    %c2_158 = arith.constant 2 : index
    %c0_159 = arith.constant 0 : index
    %c0_160 = arith.constant 0 : index
    %200 = vector.load %arg6[%c2_158, %c0_159, %c0_160] : memref<3x64x1664xf32, #tpu.memory_space<vmem>>, vector<1x64x1664xf32>
    %201 = vector.shape_cast %200 : vector<1x64x1664xf32> to vector<64x1664xf32>
    %cst_161 = arith.constant dense<0.000000e+00> : vector<4x1664xf32>
    %202 = tpu.matmul %199, %201, %cst_161 {dimension_numbers = #tpu.dot_dimension_numbers<[1], [0], [0], [1], [0, 0, 1, 1], [], []>} : vector<4x64xf32>, vector<64x1664xf32>, vector<4x1664xf32> -> vector<4x1664xf32>
    %203 = arith.addf %198, %202 : vector<4x1664xf32>
    %204 = vector.broadcast %187 : vector<1x1664xf32> to vector<4x1664xf32>
    %205 = arith.addf %203, %204 : vector<4x1664xf32>
    %c0_162 = arith.constant 0 : index
    %c0_163 = arith.constant 0 : index
    %c0_164 = arith.constant 0 : index
    %206 = vector.load %arg8[%c0_162, %c0_163, %c0_164] : memref<1x4x1664xf32, #tpu.memory_space<vmem>>, vector<1x4x1664xf32>
    %207 = vector.shape_cast %206 : vector<1x4x1664xf32> to vector<4x1664xf32>
    %208 = vector.shape_cast %205 : vector<4x1664xf32> to vector<1x4x1664xf32>
    tpu.vector_store %arg8[%c0_162, %c0_163, %c0_164], %208 {strides = array<i32>} : memref<1x4x1664xf32, #tpu.memory_space<vmem>>, vector<1x4x1664xf32>,
    return
  }
  func.func @transform_0(%arg0: i32) -> (i32, i32, i32) {
    %c0_i32 = arith.constant 0 : i32
    %c0_i32_0 = arith.constant 0 : i32
    %c0_i32_1 = arith.constant 0 : i32
    return %arg0, %c0_i32, %c0_i32_0 : i32, i32, i32
  }
  func.func @transform_1(%arg0: i32) -> (i32, i32, i32) {
    %c0_i32 = arith.constant 0 : i32
    %c0_i32_0 = arith.constant 0 : i32
    %c0_i32_1 = arith.constant 0 : i32
    %c0_i32_2 = arith.constant 0 : i32
    return %c0_i32, %c0_i32_0, %c0_i32_1 : i32, i32, i32
  }
  func.func @transform_2(%arg0: i32) -> (i32, i32) {
    %c0_i32 = arith.constant 0 : i32
    %c0_i32_0 = arith.constant 0 : i32
    %c0_i32_1 = arith.constant 0 : i32
    return %c0_i32, %c0_i32_0 : i32, i32
  }
  func.func @transform_3(%arg0: i32) -> (i32, i32, i32, i32) {
    %c0_i32 = arith.constant 0 : i32
    %c0_i32_0 = arith.constant 0 : i32
    %c0_i32_1 = arith.constant 0 : i32
    %c0_i32_2 = arith.constant 0 : i32
    %c0_i32_3 = arith.constant 0 : i32
    return %c0_i32, %c0_i32_0, %c0_i32_1, %c0_i32_2 : i32, i32, i32, i32
  }
  func.func @transform_4(%arg0: i32) -> (i32, i32, i32) {
    %c0_i32 = arith.constant 0 : i32
    %c0_i32_0 = arith.constant 0 : i32
    %c0_i32_1 = arith.constant 0 : i32
    %c0_i32_2 = arith.constant 0 : i32
    return %c0_i32, %c0_i32_0, %c0_i32_1 : i32, i32, i32
  }
  func.func @transform_5(%arg0: i32) -> (i32, i32, i32) {
    %c0_i32 = arith.constant 0 : i32
    %c0_i32_0 = arith.constant 0 : i32
    %c0_i32_1 = arith.constant 0 : i32
    %c0_i32_2 = arith.constant 0 : i32
    return %c0_i32, %c0_i32_0, %c0_i32_1 : i32, i32, i32
  }
  func.func @transform_6(%arg0: i32) -> (i32, i32) {
    %c0_i32 = arith.constant 0 : i32
    %c0_i32_0 = arith.constant 0 : i32
    %c0_i32_1 = arith.constant 0 : i32
    return %c0_i32, %c0_i32_0 : i32, i32
  }
  func.func @transform_7(%arg0: i32) -> (i32, i32, i32) {
    %c0_i32 = arith.constant 0 : i32
    %c0_i32_0 = arith.constant 0 : i32
    %c0_i32_1 = arith.constant 0 : i32
    return %arg0, %c0_i32, %c0_i32_0 : i32, i32, i32
  }
}

module attributes {stable_mosaic.version = 11 : i64} {
  func.func @_lvc_gate_res_kernel(%arg0: i32, %arg1: memref<1x256x24xf32, #tpu.memory_space<vmem>>, %arg2: memref<1x24x256xf32, #tpu.memory_space<vmem>>, %arg3: memref<1x1x256xf32, #tpu.memory_space<vmem>>, %arg4: memref<1x256x128xf32, #tpu.memory_space<vmem>>, %arg5: memref<1x256x128xf32, #tpu.memory_space<vmem>>) attributes {dimension_semantics = [#tpu.dimension_semantics<parallel>], iteration_bounds = array<i64: 8>, scalar_prefetch = 0 : i64, scratch_operands = 0 : i64, tpu.core_type = #tpu.core_type<tc>, window_params = [{transform_indices = @transform_0, window_bounds = array<i64: 1, 256, 24>}, {transform_indices = @transform_1, window_bounds = array<i64: 1, 24, 256>}, {transform_indices = @transform_2, window_bounds = array<i64: 1, 1, 256>}, {transform_indices = @transform_3, window_bounds = array<i64: 1, 256, 128>}, {transform_indices = @transform_4, window_bounds = array<i64: 1, 256, 128>}]} {
    %c0 = arith.constant 0 : index
    %c0_0 = arith.constant 0 : index
    %c0_1 = arith.constant 0 : index
    %0 = vector.load %arg1[%c0, %c0_0, %c0_1] : memref<1x256x24xf32, #tpu.memory_space<vmem>>, vector<1x256x24xf32>
    %1 = vector.shape_cast %0 : vector<1x256x24xf32> to vector<256x24xf32>
    %c0_2 = arith.constant 0 : index
    %c0_3 = arith.constant 0 : index
    %c0_4 = arith.constant 0 : index
    %2 = vector.load %arg2[%c0_2, %c0_3, %c0_4] : memref<1x24x256xf32, #tpu.memory_space<vmem>>, vector<1x24x256xf32>
    %3 = vector.shape_cast %2 : vector<1x24x256xf32> to vector<24x256xf32>
    %cst = arith.constant dense<0.000000e+00> : vector<256x256xf32>
    %4 = tpu.matmul %1, %3, %cst {dimension_numbers = #tpu.dot_dimension_numbers<[1], [0], [0], [1], [0, 0, 1, 1], [], []>} : vector<256x24xf32>, vector<24x256xf32>, vector<256x256xf32> -> vector<256x256xf32>
    %c0_5 = arith.constant 0 : index
    %c0_6 = arith.constant 0 : index
    %c0_7 = arith.constant 0 : index
    %5 = vector.load %arg3[%c0_5, %c0_6, %c0_7] : memref<1x1x256xf32, #tpu.memory_space<vmem>>, vector<1x1x256xf32>
    %6 = vector.shape_cast %5 : vector<1x1x256xf32> to vector<1x256xf32>
    %7 = vector.broadcast %6 : vector<1x256xf32> to vector<256x256xf32>
    %8 = arith.addf %4, %7 : vector<256x256xf32>
    %9 = vector.extract_strided_slice %8 {offsets = [0, 0], sizes = [256, 128], strides = [1, 1]} : vector<256x256xf32> to vector<256x128xf32>
    %10 = arith.negf %9 : vector<256x128xf32>
    %11 = math.exp %10 : vector<256x128xf32>
    %cst_8 = arith.constant 1.000000e+00 : f32
    %12 = vector.broadcast %cst_8 : f32 to vector<256x128xf32>
    %13 = arith.addf %12, %11 : vector<256x128xf32>
    %14 = arith.divf %12, %13 : vector<256x128xf32>
    %15 = vector.extract_strided_slice %8 {offsets = [0, 128], sizes = [256, 128], strides = [1, 1]} : vector<256x256xf32> to vector<256x128xf32>
    %16 = math.tanh %15 : vector<256x128xf32>
    %17 = arith.mulf %14, %16 : vector<256x128xf32>
    %c0_9 = arith.constant 0 : index
    %c0_10 = arith.constant 0 : index
    %c0_11 = arith.constant 0 : index
    %18 = vector.load %arg4[%c0_9, %c0_10, %c0_11] : memref<1x256x128xf32, #tpu.memory_space<vmem>>, vector<1x256x128xf32>
    %19 = vector.shape_cast %18 : vector<1x256x128xf32> to vector<256x128xf32>
    %20 = arith.addf %19, %17 : vector<256x128xf32>
    %c0_12 = arith.constant 0 : index
    %c0_13 = arith.constant 0 : index
    %c0_14 = arith.constant 0 : index
    %21 = vector.load %arg5[%c0_12, %c0_13, %c0_14] : memref<1x256x128xf32, #tpu.memory_space<vmem>>, vector<1x256x128xf32>
    %22 = vector.shape_cast %21 : vector<1x256x128xf32> to vector<256x128xf32>
    %23 = vector.shape_cast %20 : vector<256x128xf32> to vector<1x256x128xf32>
    tpu.vector_store %arg5[%c0_12, %c0_13, %c0_14], %23 {strides = array<i32>} : memref<1x256x128xf32, #tpu.memory_space<vmem>>, vector<1x256x128xf32>,
    return
  }
  func.func @transform_0(%arg0: i32) -> (i32, i32, i32) {
    %c0_i32 = arith.constant 0 : i32
    %c0_i32_0 = arith.constant 0 : i32
    %c0_i32_1 = arith.constant 0 : i32
    return %arg0, %c0_i32, %c0_i32_0 : i32, i32, i32
  }
  func.func @transform_1(%arg0: i32) -> (i32, i32, i32) {
    %c0_i32 = arith.constant 0 : i32
    %c0_i32_0 = arith.constant 0 : i32
    %c0_i32_1 = arith.constant 0 : i32
    return %arg0, %c0_i32, %c0_i32_0 : i32, i32, i32
  }
  func.func @transform_2(%arg0: i32) -> (i32, i32, i32) {
    %c0_i32 = arith.constant 0 : i32
    %c0_i32_0 = arith.constant 0 : i32
    %c0_i32_1 = arith.constant 0 : i32
    return %arg0, %c0_i32, %c0_i32_0 : i32, i32, i32
  }
  func.func @transform_3(%arg0: i32) -> (i32, i32, i32) {
    %c0_i32 = arith.constant 0 : i32
    %c0_i32_0 = arith.constant 0 : i32
    %c0_i32_1 = arith.constant 0 : i32
    return %arg0, %c0_i32, %c0_i32_0 : i32, i32, i32
  }
  func.func @transform_4(%arg0: i32) -> (i32, i32, i32) {
    %c0_i32 = arith.constant 0 : i32
    %c0_i32_0 = arith.constant 0 : i32
    %c0_i32_1 = arith.constant 0 : i32
    return %arg0, %c0_i32, %c0_i32_0 : i32, i32, i32
  }
}

</mosaic_0001>

<bundles_post_ra>
// kernel: lvc_block_forward.11
= control target key start
LH: loop header
LB: loop body
LE: loop exit
PB: predicated region body
PF: predicated region fallthrough
CT: control target
= control target key end

     0   :  { %s1388_s12 = smov 0   ;;  %s1858_s0 = inlined_call_operand.vmem [shape: f32[2048,128], index: 0, kind: input, shape index: {}]   ;;  %s1859_s1 = inlined_call_operand.vmem [shape: f32[128,128], index: 1, kind: input, shape index: {}]   ;;  %s1860_s2 = inlined_call_operand.vmem [shape: f32[1,128], index: 2, kind: input, shape index: {}]   ;;  %s1861_s3 = inlined_call_operand.vmem [shape: f32[2048,128], index: 3, kind: output, shape index: {}]  }
   0x1 LB: > { %s1291_s13 = sadd.s32 4294967295, %s1366_s12   ;;  %p1295_p0 = scmp.ge.s32.totalorder %s1366_s12, 1  ;;  %s1366_s12 = sphi %s1388_s12, %s13_s12  }
   0x2   : > { %p138_p1 = scmp.lt.s32.totalorder %s1366_s12, 3 }
   0x4   : > { %p139_p2 = pnand %p1295_p0, %p138_p1 }
   0x5   : > { %s1296_s22 = sshll.u32 (!%p139_p2), %s1291_s13, 7 }
   0x6   : > { %142 = sbr.rel (%p139_p2) target bundleno = 427 (0x1ab), region = 32  ;;  %p163_p3 = scmp.lt.s32.totalorder (!%p139_p2), %s1296_s22, 255 }
   0xb   : > { %v701_v0 = vld [vmem:[%s1859_s1 + $0x78] sm:$0xff]  ;;  %v700_v1 = vld [vmem:[%s1859_s1 + $0x70] sm:$0xff]  ;;  %v699_v2 = vld [vmem:[%s1859_s1 + $0x68] sm:$0xff]  ;;  %s1863_s22 = smov (!%p163_p3, %s1296_s22), 255 }
   0xc   : > { %1303 = vmatpush.msra.mxu2 %v701_v0  ;;  %1304 = vmatpush.msra.mxu3 %v701_v0  ;;  %v698_v3 = vld [vmem:[%s1859_s1 + $0x60] sm:$0xff]  ;;  %v697_v4 = vld [vmem:[%s1859_s1 + $0x58] sm:$0xff]  ;;  %v696_v5 = vld [vmem:[%s1859_s1 + $0x50] sm:$0xff]  ;;  %s1297_s8 = sshll.u32 %s1863_s22, 3 }
   0xd   : > { %706 = vmatpush.msra.mxu0 %v701_v0  ;;  %1302 = vmatpush.msra.mxu1 %v701_v0  ;;  %v695_v6 = vld [vmem:[%s1859_s1 + $0x48] sm:$0xff]  ;;  %v694_v7 = vld [vmem:[%s1859_s1 + $0x40] sm:$0xff]  ;;  %v693_v8 = vld [vmem:[%s1859_s1 + $0x38] sm:$0xff]  ;;  %s1437_s14 = scalar_lea.vmem %s1858_s0, %s1297_s8  ;;  %s1534_s30 = scalar_lea.vmem %s1861_s3, %s1297_s8 }
   0xe   : > { %1306 = vmatpush.msra.mxu2 %v700_v1  ;;  %1307 = vmatpush.msra.mxu3 %v700_v1  ;;  %v692_v9 = vld [vmem:[%s1859_s1 + $0x30] sm:$0xff]  ;;  %v691_v10 = vld [vmem:[%s1859_s1 + $0x28] sm:$0xff]  ;;  %v690_v11 = vld [vmem:[%s1859_s1 + $0x20] sm:$0xff] }
   0xf   : > { %707 = vmatpush.msra.mxu0 %v700_v1  ;;  %1305 = vmatpush.msra.mxu1 %v700_v1  ;;  %v689_v12 = vld [vmem:[%s1859_s1 + $0x18] sm:$0xff]  ;;  %v238_v13 = vld [vmem:[%s1437_s14 + $0x200] sm:$0xff]  ;;  %v688_v15 = vld [vmem:[%s1859_s1 + $0x10] sm:$0xff] }
  0x10   : > { %1309 = vmatpush.msra.mxu2 %v699_v2  ;;  %1310 = vmatpush.msra.mxu3 %v699_v2  ;;  %v270_v14 = vld [vmem:[%s1437_s14 + $0x300] sm:$0xff]  ;;  %v494_v18 = vmul.f32 0.2, %v238_v13  ;;  %v687_v20 = vld [vmem:[%s1859_s1 + $0x8] sm:$0xff]  ;;  %vm366_vm0 = vcmp.ge.f32.partialorder %v238_v13, 0.0  ;;  %v240_v38 = vld [vmem:[%s1437_s14 + $0x210] sm:$0xff] }
  0x11   : > { %708 = vmatpush.msra.mxu0 %v699_v2  ;;  %1308 = vmatpush.msra.mxu1 %v699_v2  ;;  %v174_v16 = vld [vmem:[%s1437_s14] sm:$0xff]  ;;  %v526_v19 = vmul.f32 0.2, %v270_v14  ;;  %vm398_vm1 = vcmp.ge.f32.partialorder %v270_v14, 0.0  ;;  %v239_v26 = vld [vmem:[%s1437_s14 + $0x208] sm:$0xff]  ;;  %v272_v39 = vld [vmem:[%s1437_s14 + $0x310] sm:$0xff] }
  0x12   : > { %1312 = vmatpush.msra.mxu2 %v698_v3  ;;  %1313 = vmatpush.msra.mxu3 %v698_v3  ;;  %v206_v17 = vld [vmem:[%s1437_s14 + $0x100] sm:$0xff]  ;;  %v430_v21 = vmul.f32 0.2, %v174_v16  ;;  %vm302_vm2 = vcmp.ge.f32.partialorder %v174_v16, 0.0  ;;  %v622_v24 = vsel %vm366_vm0, %v238_v13, %v494_v18  ;;  %v271_v27 = vld [vmem:[%s1437_s14 + $0x308] sm:$0xff]  ;;  %vm367_vm4 = vcmp.ge.f32.partialorder %v239_v26, 0.0 }
  0x13   : > { %709 = vmatpush.msra.mxu0 %v698_v3  ;;  %1311 = vmatpush.msra.mxu1 %v698_v3  ;;  %v462_v22 = vmul.f32 0.2, %v206_v17  ;;  %v686_v23 = vld [vmem:[%s1859_s1] sm:$0xff]  ;;  %vm334_vm3 = vcmp.ge.f32.partialorder %v206_v17, 0.0  ;;  %v654_v25 = vsel %vm398_vm1, %v270_v14, %v526_v19  ;;  %v175_v30 = vld [vmem:[%s1437_s14 + $0x8] sm:$0xff]  ;;  %vm399_vm5 = vcmp.ge.f32.partialorder %v271_v27, 0.0 }
  0x14   : > { %1315 = vmatpush.msra.mxu2 %v697_v4  ;;  %1316 = vmatpush.msra.mxu3 %v697_v4  ;;  %v558_v28 = vsel %vm302_vm2, %v174_v16, %v430_v21  ;;  %v207_v31 = vld [vmem:[%s1437_s14 + $0x108] sm:$0xff]  ;;  %v495_v32 = vmul.f32 0.2, %v239_v26  ;;  %v527_v33 = vmul.f32 0.2, %v271_v27  ;;  %vm303_vm6 = vcmp.ge.f32.partialorder %v175_v30, 0.0 }
  0x15   : > { %710 = vmatpush.msra.mxu0 %v697_v4  ;;  %1314 = vmatpush.msra.mxu1 %v697_v4  ;;  %v590_v29 = vsel %vm334_vm3, %v206_v17, %v462_v22  ;;  %v431_v34 = vmul.f32 0.2, %v175_v30  ;;  %v463_v35 = vmul.f32 0.2, %v207_v31  ;;  %vm335_vm7 = vcmp.ge.f32.partialorder %v207_v31, 0.0  ;;  %v176_v42 = vld [vmem:[%s1437_s14 + $0x10] sm:$0xff] }
  0x16   : > { %1318 = vmatpush.msra.mxu2 %v696_v5  ;;  %1319 = vmatpush.msra.mxu3 %v696_v5  ;;  %v623_v36 = vsel %vm367_vm4, %v239_v26, %v495_v32  ;;  %v655_v37 = vsel %vm399_vm5, %v271_v27, %v527_v33  ;;  %v208_v43 = vld [vmem:[%s1437_s14 + $0x110] sm:$0xff]  ;;  %v496_v44 = vmul.f32 0.2, %v240_v38  ;;  %v528_v45 = vmul.f32 0.2, %v272_v39  ;;  %v241_v50 = vld [vmem:[%s1437_s14 + $0x218] sm:$0xff] }
  0x17   : > { %711 = vmatpush.msra.mxu0 %v696_v5  ;;  %1317 = vmatpush.msra.mxu1 %v696_v5  ;;  %v559_v40 = vsel %vm303_vm6, %v175_v30, %v431_v34  ;;  %v591_v41 = vsel %vm335_vm7, %v207_v31, %v463_v35  ;;  %vm368_vm8 = vcmp.ge.f32.partialorder %v240_v38, 0.0  ;;  %vm400_vm9 = vcmp.ge.f32.partialorder %v272_v39, 0.0  ;;  %v273_v51 = vld [vmem:[%s1437_s14 + $0x318] sm:$0xff]  ;;  %v242_v62 = vld [vmem:[%s1437_s14 + $0x220] sm:$0xff]  ;;  %v179_v14 = vld [vmem:[%s1437_s14 + $0x28] sm:$0xff] }
  0x18   : > { %1321 = vmatpush.msra.mxu2 %v695_v6  ;;  %1322 = vmatpush.msra.mxu3 %v695_v6  ;;  %v432_v46 = vmul.f32 0.2, %v176_v42  ;;  %v464_v47 = vmul.f32 0.2, %v208_v43  ;;  %vm304_vm10 = vcmp.ge.f32.partialorder %v176_v42, 0.0  ;;  %vm336_vm11 = vcmp.ge.f32.partialorder %v208_v43, 0.0 }
  0x19   : > { %712 = vmatpush.msra.mxu0 %v695_v6  ;;  %1320 = vmatpush.msra.mxu1 %v695_v6  ;;  %v624_v48 = vsel %vm368_vm8, %v240_v38, %v496_v44  ;;  %v656_v49 = vsel %vm400_vm9, %v272_v39, %v528_v45  ;;  %v177_v54 = vld [vmem:[%s1437_s14 + $0x18] sm:$0xff]  ;;  %v497_v56 = vmul.f32 0.2, %v241_v50  ;;  %v529_v57 = vmul.f32 0.2, %v273_v51  ;;  %v274_v63 = vld [vmem:[%s1437_s14 + $0x320] sm:$0xff] }
  0x1a   : > { %1324 = vmatpush.msra.mxu2 %v694_v7  ;;  %1325 = vmatpush.msra.mxu3 %v694_v7  ;;  %v560_v52 = vsel %vm304_vm10, %v176_v42, %v432_v46  ;;  %v592_v53 = vsel %vm336_vm11, %v208_v43, %v464_v47  ;;  %v209_v55 = vld [vmem:[%s1437_s14 + $0x118] sm:$0xff]  ;;  %vm369_vm12 = vcmp.ge.f32.partialorder %v241_v50, 0.0  ;;  %vm401_vm13 = vcmp.ge.f32.partialorder %v273_v51, 0.0  ;;  %v178_v2 = vld [vmem:[%s1437_s14 + $0x20] sm:$0xff]  ;;  %v244_v22 = vld [vmem:[%s1437_s14 + $0x230] sm:$0xff] }
  0x1b   : > { %713 = vmatpush.msra.mxu0 %v694_v7  ;;  %1323 = vmatpush.msra.mxu1 %v694_v7  ;;  %v433_v58 = vmul.f32 0.2, %v177_v54  ;;  %v465_v59 = vmul.f32 0.2, %v209_v55  ;;  %vm305_vm14 = vcmp.ge.f32.partialorder %v177_v54, 0.0  ;;  %vm337_vm15 = vcmp.ge.f32.partialorder %v209_v55, 0.0 }
  0x1c   : > { %1327 = vmatpush.msra.mxu2 %v693_v8  ;;  %1328 = vmatpush.msra.mxu3 %v693_v8  ;;  %v625_v60 = vsel %vm369_vm12, %v241_v50, %v497_v56  ;;  %v657_v61 = vsel %vm401_vm13, %v273_v51, %v529_v57  ;;  %v210_v3 = vld [vmem:[%s1437_s14 + $0x120] sm:$0xff]  ;;  %v498_v4 = vmul.f32 0.2, %v242_v62  ;;  %v530_v5 = vmul.f32 0.2, %v274_v63  ;;  %v180_v26 = vld [vmem:[%s1437_s14 + $0x30] sm:$0xff] }
  0x1d   : > { %714 = vmatpush.msra.mxu0 %v693_v8  ;;  %1326 = vmatpush.msra.mxu1 %v693_v8  ;;  %v561_v0 = vsel %vm305_vm14, %v177_v54, %v433_v58  ;;  %v593_v1 = vsel %vm337_vm15, %v209_v55, %v465_v59  ;;  %vm370_vm0 = vcmp.ge.f32.partialorder %v242_v62, 0.0  ;;  %vm402_vm1 = vcmp.ge.f32.partialorder %v274_v63, 0.0  ;;  %v212_v27 = vld [vmem:[%s1437_s14 + $0x130] sm:$0xff]  ;;  %v245_v34 = vld [vmem:[%s1437_s14 + $0x238] sm:$0xff]  ;;  %v246_v46 = vld [vmem:[%s1437_s14 + $0x240] sm:$0xff] }
  0x1e   : > { %1330 = vmatpush.msra.mxu2 %v692_v9  ;;  %1331 = vmatpush.msra.mxu3 %v692_v9  ;;  %v434_v6 = vmul.f32 0.2, %v178_v2  ;;  %v466_v7 = vmul.f32 0.2, %v210_v3  ;;  %vm306_vm2 = vcmp.ge.f32.partialorder %v178_v2, 0.0  ;;  %vm338_vm3 = vcmp.ge.f32.partialorder %v210_v3, 0.0 }
  0x1f   : > { %715 = vmatpush.msra.mxu0 %v692_v9  ;;  %1329 = vmatpush.msra.mxu1 %v692_v9  ;;  %v626_v8 = vsel %vm370_vm0, %v242_v62, %v498_v4  ;;  %v658_v9 = vsel %vm402_vm1, %v274_v63, %v530_v5  ;;  %v435_v18 = vmul.f32 0.2, %v179_v14  ;;  %vm307_vm6 = vcmp.ge.f32.partialorder %v179_v14, 0.0  ;;  %v277_v35 = vld [vmem:[%s1437_s14 + $0x338] sm:$0xff]  ;;  %v278_v47 = vld [vmem:[%s1437_s14 + $0x340] sm:$0xff]  ;;  %v247_v58 = vld [vmem:[%s1437_s14 + $0x248] sm:$0xff] }
  0x20   : > { %1333 = vmatpush.msra.mxu2 %v691_v10  ;;  %1334 = vmatpush.msra.mxu3 %v691_v10  ;;  %v594_v13 = vsel %vm338_vm3, %v210_v3, %v466_v7  ;;  %vm372_vm8 = vcmp.ge.f32.partialorder %v244_v22, 0.0  ;;  %v436_v30 = vmul.f32 0.2, %v180_v26  ;;  %v468_v31 = vmul.f32 0.2, %v212_v27  ;;  %v181_v38 = vld [vmem:[%s1437_s14 + $0x38] sm:$0xff] }
  0x21   : > { %716 = vmatpush.msra.mxu0 %v691_v10  ;;  %1332 = vmatpush.msra.mxu1 %v691_v10  ;;  %v243_v10 = vld [vmem:[%s1437_s14 + $0x228] sm:$0xff]  ;;  %vm308_vm10 = vcmp.ge.f32.partialorder %v180_v26, 0.0  ;;  %vm340_vm11 = vcmp.ge.f32.partialorder %v212_v27, 0.0  ;;  %v213_v39 = vld [vmem:[%s1437_s14 + $0x138] sm:$0xff]  ;;  %vm373_vm12 = vcmp.ge.f32.partialorder %v245_v34, 0.0  ;;  %vm405_vm13 = vcmp.ge.f32.partialorder %v277_v35, 0.0 }
  0x22   : > { %1336 = vmatpush.msra.mxu2 %v690_v11  ;;  %1337 = vmatpush.msra.mxu3 %v690_v11  ;;  %v499_v16 = vmul.f32 0.2, %v243_v10  ;;  %vm371_vm4 = vcmp.ge.f32.partialorder %v243_v10, 0.0  ;;  %v437_v42 = vmul.f32 0.2, %v181_v38  ;;  %vm309_vm14 = vcmp.ge.f32.partialorder %v181_v38, 0.0 }
  0x23   : > { %717 = vmatpush.msra.mxu0 %v690_v11  ;;  %1335 = vmatpush.msra.mxu1 %v690_v11  ;;  %v275_v11 = vld [vmem:[%s1437_s14 + $0x328] sm:$0xff]  ;;  %v469_v43 = vmul.f32 0.2, %v213_v39  ;;  %vm341_vm15 = vcmp.ge.f32.partialorder %v213_v39, 0.0  ;;  %v182_v50 = vld [vmem:[%s1437_s14 + $0x40] sm:$0xff]  ;;  %vm374_vm0 = vcmp.ge.f32.partialorder %v246_v46, 0.0 }
  0x24   : > { %1339 = vmatpush.msra.mxu2 %v689_v12  ;;  %1340 = vmatpush.msra.mxu3 %v689_v12  ;;  %v531_v17 = vmul.f32 0.2, %v275_v11  ;;  %vm403_vm5 = vcmp.ge.f32.partialorder %v275_v11, 0.0  ;;  %v214_v51 = vld [vmem:[%s1437_s14 + $0x140] sm:$0xff]  ;;  %vm406_vm1 = vcmp.ge.f32.partialorder %v278_v47, 0.0  ;;  %v279_v59 = vld [vmem:[%s1437_s14 + $0x348] sm:$0xff] }
  0x25   : > { %718 = vmatpush.msra.mxu0 %v689_v12  ;;  %1338 = vmatpush.msra.mxu1 %v689_v12  ;;  %v562_v12 = vsel %vm306_vm2, %v178_v2, %v434_v6  ;;  %v438_v54 = vmul.f32 0.2, %v182_v50  ;;  %v470_v55 = vmul.f32 0.2, %v214_v51  ;;  %vm310_vm2 = vcmp.ge.f32.partialorder %v182_v50, 0.0  ;;  %v183_v62 = vld [vmem:[%s1437_s14 + $0x48] sm:$0xff] }
  0x26   : > { %1342 = vmatpush.msra.mxu2 %v688_v15  ;;  %1343 = vmatpush.msra.mxu3 %v688_v15  ;;  %v659_v21 = vsel %vm403_vm5, %v275_v11, %v531_v17  ;;  %vm342_vm3 = vcmp.ge.f32.partialorder %v214_v51, 0.0  ;;  %v215_v63 = vld [vmem:[%s1437_s14 + $0x148] sm:$0xff]  ;;  %vm407_vm5 = vcmp.ge.f32.partialorder %v279_v59, 0.0  ;;  %v439_v2 = vmul.f32 0.2, %v183_v62  ;;  %v248_v6 = vld [vmem:[%s1437_s14 + $0x250] sm:$0xff] }
  0x27   : > { %719 = vmatpush.msra.mxu0 %v688_v15  ;;  %1341 = vmatpush.msra.mxu1 %v688_v15  ;;  %v211_v15 = vld [vmem:[%s1437_s14 + $0x128] sm:$0xff]  ;;  %v471_v3 = vmul.f32 0.2, %v215_v63  ;;  %v280_v7 = vld [vmem:[%s1437_s14 + $0x350] sm:$0xff] }
  0x28   : > { %1345 = vmatpush.msra.mxu2 %v687_v20  ;;  %1346 = vmatpush.msra.mxu3 %v687_v20  ;;  %v467_v19 = vmul.f32 0.2, %v211_v15  ;;  %vm339_vm7 = vcmp.ge.f32.partialorder %v211_v15, 0.0  ;;  %v216_v11 = vld [vmem:[%s1437_s14 + $0x150] sm:$0xff] }
  0x29   : > { %720 = vmatpush.msra.mxu0 %v687_v20  ;;  %1344 = vmatpush.msra.mxu1 %v687_v20  ;;  %v627_v20 = vsel %vm371_vm4, %v243_v10, %v499_v16  ;;  %vm375_vm4 = vcmp.ge.f32.partialorder %v247_v58, 0.0  ;;  %v184_v10 = vld [vmem:[%s1437_s14 + $0x50] sm:$0xff] }
  0x2a   : > { %1348 = vmatpush.msra.mxu2 %v686_v23  ;;  %1349 = vmatpush.msra.mxu3 %v686_v23 }
  0x2b   : > { %914 = vmatmul.f32.vlgmr.msra.gmra.mxu2 %v622_v24  ;;  %1010 = vmatmul.f32.vlgmr.msra.gmra.mxu3 %v654_v25  ;;  %v563_v24 = vsel %vm307_vm6, %v179_v14, %v435_v18  ;;  %v595_v25 = vsel %vm339_vm7, %v211_v15, %v467_v19  ;;  %vm311_vm6 = vcmp.ge.f32.partialorder %v183_v62, 0.0  ;;  %vm343_vm7 = vcmp.ge.f32.partialorder %v215_v63, 0.0  ;;  %v249_v18 = vld [vmem:[%s1437_s14 + $0x258] sm:$0xff] }
  0x2c   : > { %721 = vmatpush.msra.mxu0 %v686_v23  ;;  %1347 = vmatpush.msra.mxu1 %v686_v23  ;;  %v276_v23 = vld [vmem:[%s1437_s14 + $0x330] sm:$0xff]  ;;  %v440_v14 = vmul.f32 0.2, %v184_v10  ;;  %v472_v15 = vmul.f32 0.2, %v216_v11  ;;  %v281_v19 = vld [vmem:[%s1437_s14 + $0x358] sm:$0xff] }
  0x2d   : > { %722 = vmatmul.f32.vlgmr.msra.gmra.mxu0 %v558_v28  ;;  %818 = vmatmul.f32.vlgmr.msra.gmra.mxu1 %v590_v29  ;;  %v500_v28 = vmul.f32 0.2, %v244_v22  ;;  %v532_v29 = vmul.f32 0.2, %v276_v23  ;;  %vm404_vm9 = vcmp.ge.f32.partialorder %v276_v23, 0.0 }
  0x2f   : > { %v628_v32 = vsel %vm372_vm8, %v244_v22, %v500_v28  ;;  %v660_v33 = vsel %vm404_vm9, %v276_v23, %v532_v29  ;;  %vm376_vm8 = vcmp.ge.f32.partialorder %v248_v6, 0.0  ;;  %vm408_vm9 = vcmp.ge.f32.partialorder %v280_v7, 0.0  ;;  %v185_v22 = vld [vmem:[%s1437_s14 + $0x58] sm:$0xff] }
  0x30   : > { %v217_v23 = vld [vmem:[%s1437_s14 + $0x158] sm:$0xff] }
  0x33   : > { %917 = vmatmul.f32.gmra.mxu2 %v623_v36  ;;  %1013 = vmatmul.f32.gmra.mxu3 %v655_v37  ;;  %v564_v36 = vsel %vm308_vm10, %v180_v26, %v436_v30  ;;  %v596_v37 = vsel %vm340_vm11, %v212_v27, %v468_v31  ;;  %vm312_vm10 = vcmp.ge.f32.partialorder %v184_v10, 0.0  ;;  %vm344_vm11 = vcmp.ge.f32.partialorder %v216_v11, 0.0  ;;  %v250_v30 = vld [vmem:[%s1437_s14 + $0x260] sm:$0xff] }
  0x34   : > { %v441_v26 = vmul.f32 0.2, %v185_v22  ;;  %v473_v27 = vmul.f32 0.2, %v217_v23  ;;  %v282_v31 = vld [vmem:[%s1437_s14 + $0x360] sm:$0xff] }
  0x35   : > { %725 = vmatmul.f32.gmra.mxu0 %v559_v40  ;;  %821 = vmatmul.f32.gmra.mxu1 %v591_v41  ;;  %v501_v40 = vmul.f32 0.2, %v245_v34  ;;  %v533_v41 = vmul.f32 0.2, %v277_v35 }
  0x37   : > { %v629_v44 = vsel %vm373_vm12, %v245_v34, %v501_v40  ;;  %v661_v45 = vsel %vm405_vm13, %v277_v35, %v533_v41  ;;  %vm377_vm12 = vcmp.ge.f32.partialorder %v249_v18, 0.0  ;;  %vm409_vm13 = vcmp.ge.f32.partialorder %v281_v19, 0.0  ;;  %v186_v34 = vld [vmem:[%s1437_s14 + $0x60] sm:$0xff] }
  0x38   : > { %v218_v35 = vld [vmem:[%s1437_s14 + $0x160] sm:$0xff] }
  0x3b   : > { %920 = vmatmul.f32.gmra.mxu2 %v624_v48  ;;  %1016 = vmatmul.f32.gmra.mxu3 %v656_v49  ;;  %v565_v48 = vsel %vm309_vm14, %v181_v38, %v437_v42  ;;  %v597_v49 = vsel %vm341_vm15, %v213_v39, %v469_v43  ;;  %vm313_vm14 = vcmp.ge.f32.partialorder %v185_v22, 0.0  ;;  %vm345_vm15 = vcmp.ge.f32.partialorder %v217_v23, 0.0  ;;  %v251_v42 = vld [vmem:[%s1437_s14 + $0x268] sm:$0xff] }
  0x3c   : > { %v442_v38 = vmul.f32 0.2, %v186_v34  ;;  %v474_v39 = vmul.f32 0.2, %v218_v35  ;;  %v283_v43 = vld [vmem:[%s1437_s14 + $0x368] sm:$0xff] }
  0x3d   : > { %728 = vmatmul.f32.gmra.mxu0 %v560_v52  ;;  %824 = vmatmul.f32.gmra.mxu1 %v592_v53  ;;  %v502_v52 = vmul.f32 0.2, %v246_v46  ;;  %v534_v53 = vmul.f32 0.2, %v278_v47 }
  0x3f   : > { %v630_v56 = vsel %vm374_vm0, %v246_v46, %v502_v52  ;;  %v662_v57 = vsel %vm406_vm1, %v278_v47, %v534_v53  ;;  %vm378_vm0 = vcmp.ge.f32.partialorder %v250_v30, 0.0  ;;  %vm410_vm1 = vcmp.ge.f32.partialorder %v282_v31, 0.0  ;;  %v187_v46 = vld [vmem:[%s1437_s14 + $0x68] sm:$0xff] }
  0x40   : > { %v219_v47 = vld [vmem:[%s1437_s14 + $0x168] sm:$0xff] }
  0x43   : > { %923 = vmatmul.f32.gmra.mxu2 %v625_v60  ;;  %1019 = vmatmul.f32.gmra.mxu3 %v657_v61  ;;  %v566_v60 = vsel %vm310_vm2, %v182_v50, %v438_v54  ;;  %v598_v61 = vsel %vm342_vm3, %v214_v51, %v470_v55  ;;  %vm314_vm2 = vcmp.ge.f32.partialorder %v186_v34, 0.0  ;;  %vm346_vm3 = vcmp.ge.f32.partialorder %v218_v35, 0.0  ;;  %v252_v54 = vld [vmem:[%s1437_s14 + $0x270] sm:$0xff] }
  0x44   : > { %v443_v50 = vmul.f32 0.2, %v187_v46  ;;  %v475_v51 = vmul.f32 0.2, %v219_v47  ;;  %v284_v55 = vld [vmem:[%s1437_s14 + $0x370] sm:$0xff] }
  0x45   : > { %731 = vmatmul.f32.gmra.mxu0 %v561_v0  ;;  %827 = vmatmul.f32.gmra.mxu1 %v593_v1  ;;  %v503_v0 = vmul.f32 0.2, %v247_v58  ;;  %v535_v1 = vmul.f32 0.2, %v279_v59 }
  0x47   : > { %v631_v4 = vsel %vm375_vm4, %v247_v58, %v503_v0  ;;  %v663_v5 = vsel %vm407_vm5, %v279_v59, %v535_v1  ;;  %vm379_vm4 = vcmp.ge.f32.partialorder %v251_v42, 0.0  ;;  %vm411_vm5 = vcmp.ge.f32.partialorder %v283_v43, 0.0  ;;  %v188_v58 = vld [vmem:[%s1437_s14 + $0x70] sm:$0xff] }
  0x48   : > { %v220_v59 = vld [vmem:[%s1437_s14 + $0x170] sm:$0xff] }
  0x4b   : > { %926 = vmatmul.f32.gmra.mxu2 %v626_v8  ;;  %1022 = vmatmul.f32.gmra.mxu3 %v658_v9  ;;  %v567_v8 = vsel %vm311_vm6, %v183_v62, %v439_v2  ;;  %v599_v9 = vsel %vm343_vm7, %v215_v63, %v471_v3  ;;  %vm315_vm6 = vcmp.ge.f32.partialorder %v187_v46, 0.0  ;;  %vm347_vm7 = vcmp.ge.f32.partialorder %v219_v47, 0.0  ;;  %v253_v2 = vld [vmem:[%s1437_s14 + $0x278] sm:$0xff] }
  0x4c   : > { %v444_v62 = vmul.f32 0.2, %v188_v58  ;;  %v476_v63 = vmul.f32 0.2, %v220_v59  ;;  %v285_v3 = vld [vmem:[%s1437_s14 + $0x378] sm:$0xff] }
  0x4d   : > { %734 = vmatmul.f32.gmra.mxu0 %v562_v12  ;;  %830 = vmatmul.f32.gmra.mxu1 %v594_v13  ;;  %v504_v12 = vmul.f32 0.2, %v248_v6  ;;  %v536_v13 = vmul.f32 0.2, %v280_v7 }
  0x4f   : > { %v632_v16 = vsel %vm376_vm8, %v248_v6, %v504_v12  ;;  %v664_v17 = vsel %vm408_vm9, %v280_v7, %v536_v13  ;;  %vm380_vm8 = vcmp.ge.f32.partialorder %v252_v54, 0.0  ;;  %vm412_vm9 = vcmp.ge.f32.partialorder %v284_v55, 0.0  ;;  %v189_v6 = vld [vmem:[%s1437_s14 + $0x78] sm:$0xff] }
  0x50   : > { %v221_v7 = vld [vmem:[%s1437_s14 + $0x178] sm:$0xff] }
  0x53   : > { %929 = vmatmul.f32.gmra.mxu2 %v627_v20  ;;  %1025 = vmatmul.f32.gmra.mxu3 %v659_v21  ;;  %v568_v20 = vsel %vm312_vm10, %v184_v10, %v440_v14  ;;  %v600_v21 = vsel %vm344_vm11, %v216_v11, %v472_v15  ;;  %vm316_vm10 = vcmp.ge.f32.partialorder %v188_v58, 0.0  ;;  %vm348_vm11 = vcmp.ge.f32.partialorder %v220_v59, 0.0  ;;  %v254_v14 = vld [vmem:[%s1437_s14 + $0x280] sm:$0xff] }
  0x54   : > { %v445_v10 = vmul.f32 0.2, %v189_v6  ;;  %v477_v11 = vmul.f32 0.2, %v221_v7  ;;  %v286_v15 = vld [vmem:[%s1437_s14 + $0x380] sm:$0xff] }
  0x55   : > { %737 = vmatmul.f32.gmra.mxu0 %v563_v24  ;;  %833 = vmatmul.f32.gmra.mxu1 %v595_v25  ;;  %v505_v24 = vmul.f32 0.2, %v249_v18  ;;  %v537_v25 = vmul.f32 0.2, %v281_v19 }
  0x57   : > { %v633_v28 = vsel %vm377_vm12, %v249_v18, %v505_v24  ;;  %v665_v29 = vsel %vm409_vm13, %v281_v19, %v537_v25  ;;  %vm381_vm12 = vcmp.ge.f32.partialorder %v253_v2, 0.0  ;;  %vm413_vm13 = vcmp.ge.f32.partialorder %v285_v3, 0.0  ;;  %v190_v18 = vld [vmem:[%s1437_s14 + $0x80] sm:$0xff] }
  0x58   : > { %v222_v19 = vld [vmem:[%s1437_s14 + $0x180] sm:$0xff] }
  0x59   : > { %v1525_v24 = vld [vmem:[%s1860_s2] ss:$0 sm:$0xff] }
  0x5b   : > { %932 = vmatmul.f32.gmra.mxu2 %v628_v32  ;;  %1028 = vmatmul.f32.gmra.mxu3 %v660_v33  ;;  %v569_v32 = vsel %vm313_vm14, %v185_v22, %v441_v26  ;;  %v601_v33 = vsel %vm345_vm15, %v217_v23, %v473_v27  ;;  %vm317_vm14 = vcmp.ge.f32.partialorder %v189_v6, 0.0  ;;  %vm349_vm15 = vcmp.ge.f32.partialorder %v221_v7, 0.0  ;;  %v255_v27 = vld [vmem:[%s1437_s14 + $0x288] sm:$0xff] }
  0x5c   : > { %v446_v22 = vmul.f32 0.2, %v190_v18  ;;  %v478_v23 = vmul.f32 0.2, %v222_v19 }
  0x5d   : > { %740 = vmatmul.f32.gmra.mxu0 %v564_v36  ;;  %836 = vmatmul.f32.gmra.mxu1 %v596_v37  ;;  %v506_v36 = vmul.f32 0.2, %v250_v30  ;;  %v538_v37 = vmul.f32 0.2, %v282_v31 }
  0x5f   : > { %v634_v40 = vsel %vm378_vm0, %v250_v30, %v506_v36  ;;  %v666_v41 = vsel %vm410_vm1, %v282_v31, %v538_v37  ;;  %vm382_vm0 = vcmp.ge.f32.partialorder %v254_v14, 0.0  ;;  %vm414_vm1 = vcmp.ge.f32.partialorder %v286_v15, 0.0  ;;  %v223_v36 = vld [vmem:[%s1437_s14 + $0x188] sm:$0xff] }
  0x60   : > { %v511_v37 = vmul.f32 0.2, %v255_v27 }
  0x63   : > { %935 = vmatmul.f32.gmra.mxu2 %v629_v44  ;;  %1031 = vmatmul.f32.gmra.mxu3 %v661_v45  ;;  %v570_v44 = vsel %vm314_vm2, %v186_v34, %v442_v38  ;;  %v602_v45 = vsel %vm346_vm3, %v218_v35, %v474_v39  ;;  %vm318_vm2 = vcmp.ge.f32.partialorder %v190_v18, 0.0  ;;  %vm350_vm3 = vcmp.ge.f32.partialorder %v222_v19, 0.0  ;;  %v191_v35 = vld [vmem:[%s1437_s14 + $0x88] sm:$0xff] }
  0x64   : > { %v574_v31 = vsel %vm318_vm2, %v190_v18, %v446_v22 }
  0x65   : > { %743 = vmatmul.f32.gmra.mxu0 %v565_v48  ;;  %839 = vmatmul.f32.gmra.mxu1 %v597_v49  ;;  %v507_v48 = vmul.f32 0.2, %v251_v42  ;;  %v539_v49 = vmul.f32 0.2, %v283_v43 }
  0x67   : > { %v635_v52 = vsel %vm379_vm4, %v251_v42, %v507_v48  ;;  %v667_v53 = vsel %vm411_vm5, %v283_v43, %v539_v49  ;;  %vm383_vm4 = vcmp.ge.f32.partialorder %v255_v27, 0.0  ;;  %v479_v42 = vmul.f32 0.2, %v223_v36  ;;  %v288_v48 = vld [vmem:[%s1437_s14 + $0x390] sm:$0xff] }
  0x6b   : > { %938 = vmatmul.f32.gmra.mxu2 %v630_v56  ;;  %1034 = vmatmul.f32.gmra.mxu3 %v662_v57  ;;  %v571_v56 = vsel %vm315_vm6, %v187_v46, %v443_v50  ;;  %v603_v57 = vsel %vm347_vm7, %v219_v47, %v475_v51  ;;  %vm319_vm6 = vcmp.ge.f32.partialorder %v191_v35, 0.0  ;;  %vm351_vm7 = vcmp.ge.f32.partialorder %v223_v36, 0.0  ;;  %v256_v47 = vld [vmem:[%s1437_s14 + $0x290] sm:$0xff] }
  0x6d   : > { %746 = vmatmul.f32.gmra.mxu0 %v566_v60  ;;  %842 = vmatmul.f32.gmra.mxu1 %v598_v61  ;;  %v508_v60 = vmul.f32 0.2, %v252_v54  ;;  %v540_v61 = vmul.f32 0.2, %v284_v55 }
  0x6f   : > { %v636_v0 = vsel %vm380_vm8, %v252_v54, %v508_v60  ;;  %v668_v1 = vsel %vm412_vm9, %v284_v55, %v540_v61  ;;  %v192_v55 = vld [vmem:[%s1437_s14 + $0x90] sm:$0xff]  ;;  %vm384_vm8 = vcmp.ge.f32.partialorder %v256_v47, 0.0  ;;  %vm416_vm9 = vcmp.ge.f32.partialorder %v288_v48, 0.0 }
  0x70   : > { %v448_v61 = vmul.f32 0.2, %v192_v55 }
  0x73   : > { %941 = vmatmul.f32.gmra.mxu2 %v631_v4  ;;  %1037 = vmatmul.f32.gmra.mxu3 %v663_v5  ;;  %v572_v4 = vsel %vm316_vm10, %v188_v58, %v444_v62  ;;  %v604_v5 = vsel %vm348_vm11, %v220_v59, %v476_v63  ;;  %v544_v58 = vmul.f32 0.2, %v288_v48  ;;  %vm320_vm10 = vcmp.ge.f32.partialorder %v192_v55, 0.0 }
  0x75   : > { %749 = vmatmul.f32.gmra.mxu0 %v567_v8  ;;  %845 = vmatmul.f32.gmra.mxu1 %v599_v9  ;;  %v509_v8 = vmul.f32 0.2, %v253_v2  ;;  %v541_v9 = vmul.f32 0.2, %v285_v3 }
  0x77   : > { %v637_v12 = vsel %vm381_vm12, %v253_v2, %v509_v8  ;;  %v669_v13 = vsel %vm413_vm13, %v285_v3, %v541_v9  ;;  %v672_v2 = vsel %vm416_vm9, %v288_v48, %v544_v58  ;;  %v257_v3 = vld [vmem:[%s1437_s14 + $0x298] sm:$0xff] }
  0x78   : > { %vm385_vm12 = vcmp.ge.f32.partialorder %v257_v3, 0.0 }
  0x7b   : > { %944 = vmatmul.f32.gmra.mxu2 %v632_v16  ;;  %1040 = vmatmul.f32.gmra.mxu3 %v664_v17  ;;  %v573_v16 = vsel %vm317_vm14, %v189_v6, %v445_v10  ;;  %v605_v17 = vsel %vm349_vm15, %v221_v7, %v477_v11  ;;  %v576_v7 = vsel %vm320_vm10, %v192_v55, %v448_v61  ;;  %v193_v11 = vld [vmem:[%s1437_s14 + $0x98] sm:$0xff] }
  0x7c   : > { %vm321_vm14 = vcmp.ge.f32.partialorder %v193_v11, 0.0 }
  0x7d   : > { %752 = vmatmul.f32.gmra.mxu0 %v568_v20  ;;  %848 = vmatmul.f32.gmra.mxu1 %v600_v21  ;;  %v510_v20 = vmul.f32 0.2, %v254_v14  ;;  %v542_v21 = vmul.f32 0.2, %v286_v15 }
  0x7f   : > { %v638_v25 = vsel %vm382_vm0, %v254_v14, %v510_v20  ;;  %v670_v26 = vsel %vm414_vm1, %v286_v15, %v542_v21 }
  0x83   : > { %947 = vmatmul.f32.gmra.mxu2 %v633_v28  ;;  %1043 = vmatmul.f32.gmra.mxu3 %v665_v29  ;;  %v287_v28 = vld [vmem:[%s1437_s14 + $0x388] sm:$0xff] }
  0x84   : > { %v543_v38 = vmul.f32 0.2, %v287_v28  ;;  %vm415_vm5 = vcmp.ge.f32.partialorder %v287_v28, 0.0 }
  0x85   : > { %755 = vmatmul.f32.gmra.mxu0 %v569_v32  ;;  %851 = vmatmul.f32.gmra.mxu1 %v601_v33  ;;  %v606_v32 = vsel %vm350_vm3, %v222_v19, %v478_v23  ;;  %v258_v23 = vld [vmem:[%s1437_s14 + $0x2a0] sm:$0xff] }
  0x86   : > { %v671_v46 = vsel %vm415_vm5, %v287_v28, %v543_v38  ;;  %vm386_vm0 = vcmp.ge.f32.partialorder %v258_v23, 0.0 }
  0x8b   : > { %950 = vmatmul.f32.gmra.mxu2 %v634_v40  ;;  %1046 = vmatmul.f32.gmra.mxu3 %v666_v41  ;;  %v447_v41 = vmul.f32 0.2, %v191_v35 }
  0x8d   : > { %758 = vmatmul.f32.gmra.mxu0 %v570_v44  ;;  %854 = vmatmul.f32.gmra.mxu1 %v602_v45  ;;  %v639_v45 = vsel %vm383_vm4, %v255_v27, %v511_v37  ;;  %v575_v51 = vsel %vm319_vm6, %v191_v35, %v447_v41 }
  0x93   : > { %953 = vmatmul.f32.gmra.mxu2 %v635_v52  ;;  %1049 = vmatmul.f32.gmra.mxu3 %v667_v53  ;;  %v607_v52 = vsel %vm351_vm7, %v223_v36, %v479_v42 }
  0x95   : > { %761 = vmatmul.f32.gmra.mxu0 %v571_v56  ;;  %857 = vmatmul.f32.gmra.mxu1 %v603_v57  ;;  %v224_v56 = vld [vmem:[%s1437_s14 + $0x190] sm:$0xff]  ;;  %v512_v57 = vmul.f32 0.2, %v256_v47 }
  0x96   : > { %v480_v62 = vmul.f32 0.2, %v224_v56  ;;  %vm352_vm11 = vcmp.ge.f32.partialorder %v224_v56, 0.0 }
  0x98   : > { %v608_v8 = vsel %vm352_vm11, %v224_v56, %v480_v62 }
  0x9b   : > { %956 = vmatmul.f32.gmra.mxu2 %v636_v0  ;;  %1052 = vmatmul.f32.gmra.mxu3 %v668_v1  ;;  %v640_v1 = vsel %vm384_vm8, %v256_v47, %v512_v57 }
  0x9d   : > { %764 = vmatmul.f32.gmra.mxu0 %v572_v4  ;;  %860 = vmatmul.f32.gmra.mxu1 %v604_v5  ;;  %v289_v4 = vld [vmem:[%s1437_s14 + $0x398] sm:$0xff] }
  0x9e   : > { %v545_v14 = vmul.f32 0.2, %v289_v4  ;;  %vm417_vm13 = vcmp.ge.f32.partialorder %v289_v4, 0.0 }
  0xa0   : > { %v673_v22 = vsel %vm417_vm13, %v289_v4, %v545_v14 }
  0xa3   : > { %959 = vmatmul.f32.gmra.mxu2 %v637_v12  ;;  %1055 = vmatmul.f32.gmra.mxu3 %v669_v13  ;;  %v225_v12 = vld [vmem:[%s1437_s14 + $0x198] sm:$0xff]  ;;  %v513_v13 = vmul.f32 0.2, %v257_v3 }
  0xa4   : > { %v481_v18 = vmul.f32 0.2, %v225_v12  ;;  %vm353_vm15 = vcmp.ge.f32.partialorder %v225_v12, 0.0 }
  0xa5   : > { %767 = vmatmul.f32.gmra.mxu0 %v573_v16  ;;  %863 = vmatmul.f32.gmra.mxu1 %v605_v17  ;;  %v449_v17 = vmul.f32 0.2, %v193_v11  ;;  %v641_v21 = vsel %vm385_vm12, %v257_v3, %v513_v13 }
  0xa7   : > { %v577_v28 = vsel %vm321_vm14, %v193_v11, %v449_v17 }
  0xaa   : > { %v723_v29 = vpop.f32.mrf.mxu0  ;;  %v819_v30 = vpop.f32.mrf.mxu1 }
  0xab   : > { %962 = vmatmul.f32.gmra.mxu2 %v638_v25  ;;  %1058 = vmatmul.f32.gmra.mxu3 %v670_v26  ;;  %v724_v33 = vadd.f32 %v1525_v24, %v723_v29  ;;  %v820_v34 = vadd.f32 %v1525_v24, %v819_v30  ;;  %v290_v25 = vld [vmem:[%s1437_s14 + $0x3a0] sm:$0xff]  ;;  %v609_v29 = vsel %vm353_vm15, %v225_v12, %v481_v18 }
  0xac   : > { %v546_v35 = vmul.f32 0.2, %v290_v25  ;;  %vm418_vm1 = vcmp.ge.f32.partialorder %v290_v25, 0.0 }
  0xad   : > { %1107 = vst [vmem:[%s1534_s30] sm:$0xff] %v724_v33  ;;  %770 = vmatmul.f32.gmra.mxu0 %v574_v31  ;;  %866 = vmatmul.f32.gmra.mxu1 %v606_v32  ;;  %v194_v32 = vld [vmem:[%s1437_s14 + $0xa0] sm:$0xff] }
  0xae   : > { %1139 = vst [vmem:[%s1534_s30 + $0x100] sm:$0xff] %v820_v34  ;;  %v915_v39 = vpop.f32.mrf.mxu2  ;;  %v1011_v40 = vpop.f32.mrf.mxu3  ;;  %v226_v33 = vld [vmem:[%s1437_s14 + $0x1a0] sm:$0xff]  ;;  %v514_v34 = vmul.f32 0.2, %v258_v23  ;;  %v450_v38 = vmul.f32 0.2, %v194_v32 }
  0xaf   : > { %v916_v43 = vadd.f32 %v1525_v24, %v915_v39  ;;  %v1012_v44 = vadd.f32 %v1525_v24, %v1011_v40  ;;  %v482_v39 = vmul.f32 0.2, %v226_v33  ;;  %vm322_vm2 = vcmp.ge.f32.partialorder %v194_v32, 0.0 }
  0xb0   : > { %vm354_vm3 = vcmp.ge.f32.partialorder %v226_v33, 0.0  ;;  %v642_v42 = vsel %vm386_vm0, %v258_v23, %v514_v34  ;;  %v578_v48 = vsel %vm322_vm2, %v194_v32, %v450_v38 }
  0xb1   : > { %1171 = vst [vmem:[%s1534_s30 + $0x200] sm:$0xff] %v916_v43  ;;  %v674_v43 = vsel %vm418_vm1, %v290_v25, %v546_v35 }
  0xb2   : > { %1203 = vst [vmem:[%s1534_s30 + $0x300] sm:$0xff] %v1012_v44  ;;  %v726_v49 = vpop.f32.mrf.mxu0  ;;  %v822_v50 = vpop.f32.mrf.mxu1  ;;  %v259_v44 = vld [vmem:[%s1437_s14 + $0x2a8] sm:$0xff] }
  0xb3   : > { %965 = vmatmul.f32.gmra.mxu2 %v639_v45  ;;  %1061 = vmatmul.f32.gmra.mxu3 %v671_v46  ;;  %v727_v53 = vadd.f32 %v1525_v24, %v726_v49  ;;  %v823_v54 = vadd.f32 %v1525_v24, %v822_v50  ;;  %v291_v45 = vld [vmem:[%s1437_s14 + $0x3a8] sm:$0xff]  ;;  %v610_v49 = vsel %vm354_vm3, %v226_v33, %v482_v39  ;;  %vm387_vm4 = vcmp.ge.f32.partialorder %v259_v44, 0.0 }
  0xb4   : > { %v547_v55 = vmul.f32 0.2, %v291_v45  ;;  %vm419_vm5 = vcmp.ge.f32.partialorder %v291_v45, 0.0 }
  0xb5   : > { %1108 = vst [vmem:[%s1534_s30 + $0x8] sm:$0xff] %v727_v53  ;;  %773 = vmatmul.f32.gmra.mxu0 %v575_v51  ;;  %869 = vmatmul.f32.gmra.mxu1 %v607_v52  ;;  %v195_v52 = vld [vmem:[%s1437_s14 + $0xa8] sm:$0xff] }
  0xb6   : > { %1140 = vst [vmem:[%s1534_s30 + $0x108] sm:$0xff] %v823_v54  ;;  %v918_v59 = vpop.f32.mrf.mxu2  ;;  %v1014_v60 = vpop.f32.mrf.mxu3  ;;  %v227_v53 = vld [vmem:[%s1437_s14 + $0x1a8] sm:$0xff]  ;;  %v515_v54 = vmul.f32 0.2, %v259_v44  ;;  %v451_v58 = vmul.f32 0.2, %v195_v52 }
  0xb7   : > { %v919_v63 = vadd.f32 %v1525_v24, %v918_v59  ;;  %v1015_v0 = vadd.f32 %v1525_v24, %v1014_v60  ;;  %v483_v59 = vmul.f32 0.2, %v227_v53  ;;  %vm323_vm6 = vcmp.ge.f32.partialorder %v195_v52, 0.0 }
  0xb8   : > { %vm355_vm7 = vcmp.ge.f32.partialorder %v227_v53, 0.0  ;;  %v643_v62 = vsel %vm387_vm4, %v259_v44, %v515_v54  ;;  %v579_v4 = vsel %vm323_vm6, %v195_v52, %v451_v58 }
  0xb9   : > { %1172 = vst [vmem:[%s1534_s30 + $0x208] sm:$0xff] %v919_v63  ;;  %v675_v63 = vsel %vm419_vm5, %v291_v45, %v547_v55 }
  0xba   : > { %1204 = vst [vmem:[%s1534_s30 + $0x308] sm:$0xff] %v1015_v0  ;;  %v729_v5 = vpop.f32.mrf.mxu0  ;;  %v825_v6 = vpop.f32.mrf.mxu1  ;;  %v260_v0 = vld [vmem:[%s1437_s14 + $0x2b0] sm:$0xff] }
  0xbb   : > { %968 = vmatmul.f32.gmra.mxu2 %v640_v1  ;;  %1064 = vmatmul.f32.gmra.mxu3 %v672_v2  ;;  %v730_v9 = vadd.f32 %v1525_v24, %v729_v5  ;;  %v826_v10 = vadd.f32 %v1525_v24, %v825_v6  ;;  %v292_v1 = vld [vmem:[%s1437_s14 + $0x3b0] sm:$0xff]  ;;  %v611_v5 = vsel %vm355_vm7, %v227_v53, %v483_v59  ;;  %vm388_vm8 = vcmp.ge.f32.partialorder %v260_v0, 0.0 }
  0xbc   : > { %v548_v11 = vmul.f32 0.2, %v292_v1  ;;  %vm420_vm9 = vcmp.ge.f32.partialorder %v292_v1, 0.0 }
  0xbd   : > { %1109 = vst [vmem:[%s1534_s30 + $0x10] sm:$0xff] %v730_v9  ;;  %776 = vmatmul.f32.gmra.mxu0 %v576_v7  ;;  %872 = vmatmul.f32.gmra.mxu1 %v608_v8  ;;  %v196_v8 = vld [vmem:[%s1437_s14 + $0xb0] sm:$0xff] }
  0xbe   : > { %1141 = vst [vmem:[%s1534_s30 + $0x110] sm:$0xff] %v826_v10  ;;  %v921_v15 = vpop.f32.mrf.mxu2  ;;  %v1017_v16 = vpop.f32.mrf.mxu3  ;;  %v228_v9 = vld [vmem:[%s1437_s14 + $0x1b0] sm:$0xff]  ;;  %v516_v10 = vmul.f32 0.2, %v260_v0  ;;  %v452_v14 = vmul.f32 0.2, %v196_v8 }
  0xbf   : > { %v922_v19 = vadd.f32 %v1525_v24, %v921_v15  ;;  %v1018_v20 = vadd.f32 %v1525_v24, %v1017_v16  ;;  %v484_v15 = vmul.f32 0.2, %v228_v9  ;;  %vm324_vm10 = vcmp.ge.f32.partialorder %v196_v8, 0.0 }
  0xc0   : > { %vm356_vm11 = vcmp.ge.f32.partialorder %v228_v9, 0.0  ;;  %v644_v18 = vsel %vm388_vm8, %v260_v0, %v516_v10  ;;  %v580_v25 = vsel %vm324_vm10, %v196_v8, %v452_v14 }
  0xc1   : > { %1173 = vst [vmem:[%s1534_s30 + $0x210] sm:$0xff] %v922_v19  ;;  %v676_v19 = vsel %vm420_vm9, %v292_v1, %v548_v11 }
  0xc2   : > { %1205 = vst [vmem:[%s1534_s30 + $0x310] sm:$0xff] %v1018_v20  ;;  %v732_v26 = vpop.f32.mrf.mxu0  ;;  %v828_v27 = vpop.f32.mrf.mxu1  ;;  %v261_v20 = vld [vmem:[%s1437_s14 + $0x2b8] sm:$0xff] }
  0xc3   : > { %971 = vmatmul.f32.gmra.mxu2 %v641_v21  ;;  %1067 = vmatmul.f32.gmra.mxu3 %v673_v22  ;;  %v733_v30 = vadd.f32 %v1525_v24, %v732_v26  ;;  %v829_v31 = vadd.f32 %v1525_v24, %v828_v27  ;;  %v293_v21 = vld [vmem:[%s1437_s14 + $0x3b8] sm:$0xff]  ;;  %v612_v26 = vsel %vm356_vm11, %v228_v9, %v484_v15  ;;  %vm389_vm12 = vcmp.ge.f32.partialorder %v261_v20, 0.0 }
  0xc4   : > { %v549_v32 = vmul.f32 0.2, %v293_v21  ;;  %vm421_vm13 = vcmp.ge.f32.partialorder %v293_v21, 0.0 }
  0xc5   : > { %1110 = vst [vmem:[%s1534_s30 + $0x18] sm:$0xff] %v733_v30  ;;  %779 = vmatmul.f32.gmra.mxu0 %v577_v28  ;;  %875 = vmatmul.f32.gmra.mxu1 %v609_v29  ;;  %v197_v29 = vld [vmem:[%s1437_s14 + $0xb8] sm:$0xff] }
  0xc6   : > { %1142 = vst [vmem:[%s1534_s30 + $0x118] sm:$0xff] %v829_v31  ;;  %v924_v36 = vpop.f32.mrf.mxu2  ;;  %v1020_v37 = vpop.f32.mrf.mxu3  ;;  %v229_v30 = vld [vmem:[%s1437_s14 + $0x1b8] sm:$0xff]  ;;  %v517_v31 = vmul.f32 0.2, %v261_v20  ;;  %v453_v35 = vmul.f32 0.2, %v197_v29 }
  0xc7   : > { %v925_v40 = vadd.f32 %v1525_v24, %v924_v36  ;;  %v1021_v41 = vadd.f32 %v1525_v24, %v1020_v37  ;;  %v485_v36 = vmul.f32 0.2, %v229_v30  ;;  %vm325_vm14 = vcmp.ge.f32.partialorder %v197_v29, 0.0 }
  0xc8   : > { %vm357_vm15 = vcmp.ge.f32.partialorder %v229_v30, 0.0  ;;  %v645_v39 = vsel %vm389_vm12, %v261_v20, %v517_v31  ;;  %v581_v45 = vsel %vm325_vm14, %v197_v29, %v453_v35 }
  0xc9   : > { %1174 = vst [vmem:[%s1534_s30 + $0x218] sm:$0xff] %v925_v40  ;;  %v677_v40 = vsel %vm421_vm13, %v293_v21, %v549_v32 }
  0xca   : > { %1206 = vst [vmem:[%s1534_s30 + $0x318] sm:$0xff] %v1021_v41  ;;  %v735_v46 = vpop.f32.mrf.mxu0  ;;  %v831_v47 = vpop.f32.mrf.mxu1  ;;  %v262_v41 = vld [vmem:[%s1437_s14 + $0x2c0] sm:$0xff] }
  0xcb   : > { %974 = vmatmul.f32.gmra.mxu2 %v642_v42  ;;  %1070 = vmatmul.f32.gmra.mxu3 %v674_v43  ;;  %v736_v50 = vadd.f32 %v1525_v24, %v735_v46  ;;  %v832_v51 = vadd.f32 %v1525_v24, %v831_v47  ;;  %v294_v42 = vld [vmem:[%s1437_s14 + $0x3c0] sm:$0xff]  ;;  %v613_v46 = vsel %vm357_vm15, %v229_v30, %v485_v36  ;;  %vm390_vm0 = vcmp.ge.f32.partialorder %v262_v41, 0.0 }
  0xcc   : > { %v550_v52 = vmul.f32 0.2, %v294_v42  ;;  %vm422_vm1 = vcmp.ge.f32.partialorder %v294_v42, 0.0 }
  0xcd   : > { %1111 = vst [vmem:[%s1534_s30 + $0x20] sm:$0xff] %v736_v50  ;;  %782 = vmatmul.f32.gmra.mxu0 %v578_v48  ;;  %878 = vmatmul.f32.gmra.mxu1 %v610_v49  ;;  %v198_v49 = vld [vmem:[%s1437_s14 + $0xc0] sm:$0xff] }
  0xce   : > { %1143 = vst [vmem:[%s1534_s30 + $0x120] sm:$0xff] %v832_v51  ;;  %v927_v56 = vpop.f32.mrf.mxu2  ;;  %v1023_v57 = vpop.f32.mrf.mxu3  ;;  %v230_v50 = vld [vmem:[%s1437_s14 + $0x1c0] sm:$0xff]  ;;  %v518_v51 = vmul.f32 0.2, %v262_v41  ;;  %v454_v55 = vmul.f32 0.2, %v198_v49 }
  0xcf   : > { %v928_v60 = vadd.f32 %v1525_v24, %v927_v56  ;;  %v1024_v61 = vadd.f32 %v1525_v24, %v1023_v57  ;;  %v486_v56 = vmul.f32 0.2, %v230_v50  ;;  %vm326_vm2 = vcmp.ge.f32.partialorder %v198_v49, 0.0 }
  0xd0   : > { %vm358_vm3 = vcmp.ge.f32.partialorder %v230_v50, 0.0  ;;  %v646_v59 = vsel %vm390_vm0, %v262_v41, %v518_v51  ;;  %v582_v1 = vsel %vm326_vm2, %v198_v49, %v454_v55 }
  0xd1   : > { %1175 = vst [vmem:[%s1534_s30 + $0x220] sm:$0xff] %v928_v60  ;;  %v678_v60 = vsel %vm422_vm1, %v294_v42, %v550_v52 }
  0xd2   : > { %1207 = vst [vmem:[%s1534_s30 + $0x320] sm:$0xff] %v1024_v61  ;;  %v738_v2 = vpop.f32.mrf.mxu0  ;;  %v834_v3 = vpop.f32.mrf.mxu1  ;;  %v263_v61 = vld [vmem:[%s1437_s14 + $0x2c8] sm:$0xff] }
  0xd3   : > { %977 = vmatmul.f32.gmra.mxu2 %v643_v62  ;;  %1073 = vmatmul.f32.gmra.mxu3 %v675_v63  ;;  %v739_v6 = vadd.f32 %v1525_v24, %v738_v2  ;;  %v835_v7 = vadd.f32 %v1525_v24, %v834_v3  ;;  %v295_v62 = vld [vmem:[%s1437_s14 + $0x3c8] sm:$0xff]  ;;  %v614_v2 = vsel %vm358_vm3, %v230_v50, %v486_v56  ;;  %vm391_vm4 = vcmp.ge.f32.partialorder %v263_v61, 0.0 }
  0xd4   : > { %v551_v8 = vmul.f32 0.2, %v295_v62  ;;  %vm423_vm5 = vcmp.ge.f32.partialorder %v295_v62, 0.0 }
  0xd5   : > { %1112 = vst [vmem:[%s1534_s30 + $0x28] sm:$0xff] %v739_v6  ;;  %785 = vmatmul.f32.gmra.mxu0 %v579_v4  ;;  %881 = vmatmul.f32.gmra.mxu1 %v611_v5  ;;  %v199_v5 = vld [vmem:[%s1437_s14 + $0xc8] sm:$0xff] }
  0xd6   : > { %1144 = vst [vmem:[%s1534_s30 + $0x128] sm:$0xff] %v835_v7  ;;  %v930_v12 = vpop.f32.mrf.mxu2  ;;  %v1026_v13 = vpop.f32.mrf.mxu3  ;;  %v231_v6 = vld [vmem:[%s1437_s14 + $0x1c8] sm:$0xff]  ;;  %v519_v7 = vmul.f32 0.2, %v263_v61  ;;  %v455_v11 = vmul.f32 0.2, %v199_v5 }
  0xd7   : > { %v931_v16 = vadd.f32 %v1525_v24, %v930_v12  ;;  %v1027_v17 = vadd.f32 %v1525_v24, %v1026_v13  ;;  %v487_v12 = vmul.f32 0.2, %v231_v6  ;;  %vm327_vm6 = vcmp.ge.f32.partialorder %v199_v5, 0.0 }
  0xd8   : > { %vm359_vm7 = vcmp.ge.f32.partialorder %v231_v6, 0.0  ;;  %v647_v15 = vsel %vm391_vm4, %v263_v61, %v519_v7  ;;  %v583_v21 = vsel %vm327_vm6, %v199_v5, %v455_v11 }
  0xd9   : > { %1176 = vst [vmem:[%s1534_s30 + $0x228] sm:$0xff] %v931_v16  ;;  %v679_v16 = vsel %vm423_vm5, %v295_v62, %v551_v8 }
  0xda   : > { %1208 = vst [vmem:[%s1534_s30 + $0x328] sm:$0xff] %v1027_v17  ;;  %v741_v22 = vpop.f32.mrf.mxu0  ;;  %v837_v23 = vpop.f32.mrf.mxu1  ;;  %v264_v17 = vld [vmem:[%s1437_s14 + $0x2d0] sm:$0xff] }
  0xdb   : > { %980 = vmatmul.f32.gmra.mxu2 %v644_v18  ;;  %1076 = vmatmul.f32.gmra.mxu3 %v676_v19  ;;  %v742_v27 = vadd.f32 %v1525_v24, %v741_v22  ;;  %v838_v28 = vadd.f32 %v1525_v24, %v837_v23  ;;  %v296_v18 = vld [vmem:[%s1437_s14 + $0x3d0] sm:$0xff]  ;;  %v615_v22 = vsel %vm359_vm7, %v231_v6, %v487_v12  ;;  %vm392_vm8 = vcmp.ge.f32.partialorder %v264_v17, 0.0 }
  0xdc   : > { %v552_v29 = vmul.f32 0.2, %v296_v18  ;;  %vm424_vm9 = vcmp.ge.f32.partialorder %v296_v18, 0.0 }
  0xdd   : > { %1113 = vst [vmem:[%s1534_s30 + $0x30] sm:$0xff] %v742_v27  ;;  %788 = vmatmul.f32.gmra.mxu0 %v580_v25  ;;  %884 = vmatmul.f32.gmra.mxu1 %v612_v26  ;;  %v200_v26 = vld [vmem:[%s1437_s14 + $0xd0] sm:$0xff] }
  0xde   : > { %1145 = vst [vmem:[%s1534_s30 + $0x130] sm:$0xff] %v838_v28  ;;  %v933_v33 = vpop.f32.mrf.mxu2  ;;  %v1029_v34 = vpop.f32.mrf.mxu3  ;;  %v232_v27 = vld [vmem:[%s1437_s14 + $0x1d0] sm:$0xff]  ;;  %v520_v28 = vmul.f32 0.2, %v264_v17  ;;  %v456_v32 = vmul.f32 0.2, %v200_v26 }
  0xdf   : > { %v934_v37 = vadd.f32 %v1525_v24, %v933_v33  ;;  %v1030_v38 = vadd.f32 %v1525_v24, %v1029_v34  ;;  %v488_v33 = vmul.f32 0.2, %v232_v27  ;;  %vm328_vm10 = vcmp.ge.f32.partialorder %v200_v26, 0.0 }
  0xe0   : > { %vm360_vm11 = vcmp.ge.f32.partialorder %v232_v27, 0.0  ;;  %v648_v36 = vsel %vm392_vm8, %v264_v17, %v520_v28  ;;  %v584_v42 = vsel %vm328_vm10, %v200_v26, %v456_v32 }
  0xe1   : > { %1177 = vst [vmem:[%s1534_s30 + $0x230] sm:$0xff] %v934_v37  ;;  %v680_v37 = vsel %vm424_vm9, %v296_v18, %v552_v29 }
  0xe2   : > { %1209 = vst [vmem:[%s1534_s30 + $0x330] sm:$0xff] %v1030_v38  ;;  %v744_v43 = vpop.f32.mrf.mxu0  ;;  %v840_v44 = vpop.f32.mrf.mxu1  ;;  %v265_v38 = vld [vmem:[%s1437_s14 + $0x2d8] sm:$0xff] }
  0xe3   : > { %983 = vmatmul.f32.gmra.mxu2 %v645_v39  ;;  %1079 = vmatmul.f32.gmra.mxu3 %v677_v40  ;;  %v745_v47 = vadd.f32 %v1525_v24, %v744_v43  ;;  %v841_v48 = vadd.f32 %v1525_v24, %v840_v44  ;;  %v297_v39 = vld [vmem:[%s1437_s14 + $0x3d8] sm:$0xff]  ;;  %v616_v43 = vsel %vm360_vm11, %v232_v27, %v488_v33  ;;  %vm393_vm12 = vcmp.ge.f32.partialorder %v265_v38, 0.0 }
  0xe4   : > { %v553_v49 = vmul.f32 0.2, %v297_v39  ;;  %vm425_vm13 = vcmp.ge.f32.partialorder %v297_v39, 0.0 }
  0xe5   : > { %1114 = vst [vmem:[%s1534_s30 + $0x38] sm:$0xff] %v745_v47  ;;  %791 = vmatmul.f32.gmra.mxu0 %v581_v45  ;;  %887 = vmatmul.f32.gmra.mxu1 %v613_v46  ;;  %v201_v46 = vld [vmem:[%s1437_s14 + $0xd8] sm:$0xff] }
  0xe6   : > { %1146 = vst [vmem:[%s1534_s30 + $0x138] sm:$0xff] %v841_v48  ;;  %v936_v53 = vpop.f32.mrf.mxu2  ;;  %v1032_v54 = vpop.f32.mrf.mxu3  ;;  %v233_v47 = vld [vmem:[%s1437_s14 + $0x1d8] sm:$0xff]  ;;  %v521_v48 = vmul.f32 0.2, %v265_v38  ;;  %v457_v52 = vmul.f32 0.2, %v201_v46 }
  0xe7   : > { %v937_v57 = vadd.f32 %v1525_v24, %v936_v53  ;;  %v1033_v58 = vadd.f32 %v1525_v24, %v1032_v54  ;;  %v489_v53 = vmul.f32 0.2, %v233_v47  ;;  %vm329_vm14 = vcmp.ge.f32.partialorder %v201_v46, 0.0 }
  0xe8   : > { %vm361_vm15 = vcmp.ge.f32.partialorder %v233_v47, 0.0  ;;  %v649_v56 = vsel %vm393_vm12, %v265_v38, %v521_v48  ;;  %v585_v62 = vsel %vm329_vm14, %v201_v46, %v457_v52 }
  0xe9   : > { %1178 = vst [vmem:[%s1534_s30 + $0x238] sm:$0xff] %v937_v57  ;;  %v681_v57 = vsel %vm425_vm13, %v297_v39, %v553_v49 }
  0xea   : > { %1210 = vst [vmem:[%s1534_s30 + $0x338] sm:$0xff] %v1033_v58  ;;  %v747_v63 = vpop.f32.mrf.mxu0  ;;  %v843_v0 = vpop.f32.mrf.mxu1  ;;  %v266_v58 = vld [vmem:[%s1437_s14 + $0x2e0] sm:$0xff] }
  0xeb   : > { %986 = vmatmul.f32.gmra.mxu2 %v646_v59  ;;  %1082 = vmatmul.f32.gmra.mxu3 %v678_v60  ;;  %v748_v3 = vadd.f32 %v1525_v24, %v747_v63  ;;  %v844_v4 = vadd.f32 %v1525_v24, %v843_v0  ;;  %v298_v59 = vld [vmem:[%s1437_s14 + $0x3e0] sm:$0xff]  ;;  %v617_v63 = vsel %vm361_vm15, %v233_v47, %v489_v53  ;;  %vm394_vm0 = vcmp.ge.f32.partialorder %v266_v58, 0.0 }
  0xec   : > { %v554_v5 = vmul.f32 0.2, %v298_v59  ;;  %vm426_vm1 = vcmp.ge.f32.partialorder %v298_v59, 0.0 }
  0xed   : > { %1115 = vst [vmem:[%s1534_s30 + $0x40] sm:$0xff] %v748_v3  ;;  %794 = vmatmul.f32.gmra.mxu0 %v582_v1  ;;  %890 = vmatmul.f32.gmra.mxu1 %v614_v2  ;;  %v202_v2 = vld [vmem:[%s1437_s14 + $0xe0] sm:$0xff] }
  0xee   : > { %1147 = vst [vmem:[%s1534_s30 + $0x140] sm:$0xff] %v844_v4  ;;  %v939_v9 = vpop.f32.mrf.mxu2  ;;  %v1035_v10 = vpop.f32.mrf.mxu3  ;;  %v234_v3 = vld [vmem:[%s1437_s14 + $0x1e0] sm:$0xff]  ;;  %v522_v4 = vmul.f32 0.2, %v266_v58  ;;  %v458_v8 = vmul.f32 0.2, %v202_v2 }
  0xef   : > { %v940_v13 = vadd.f32 %v1525_v24, %v939_v9  ;;  %v1036_v14 = vadd.f32 %v1525_v24, %v1035_v10  ;;  %v490_v9 = vmul.f32 0.2, %v234_v3  ;;  %vm330_vm2 = vcmp.ge.f32.partialorder %v202_v2, 0.0 }
  0xf0   : > { %vm362_vm3 = vcmp.ge.f32.partialorder %v234_v3, 0.0  ;;  %v650_v12 = vsel %vm394_vm0, %v266_v58, %v522_v4  ;;  %v586_v18 = vsel %vm330_vm2, %v202_v2, %v458_v8 }
  0xf1   : > { %1179 = vst [vmem:[%s1534_s30 + $0x240] sm:$0xff] %v940_v13  ;;  %v682_v13 = vsel %vm426_vm1, %v298_v59, %v554_v5 }
  0xf2   : > { %1211 = vst [vmem:[%s1534_s30 + $0x340] sm:$0xff] %v1036_v14  ;;  %v750_v19 = vpop.f32.mrf.mxu0  ;;  %v846_v20 = vpop.f32.mrf.mxu1  ;;  %v267_v14 = vld [vmem:[%s1437_s14 + $0x2e8] sm:$0xff] }
  0xf3   : > { %989 = vmatmul.f32.gmra.mxu2 %v647_v15  ;;  %1085 = vmatmul.f32.gmra.mxu3 %v679_v16  ;;  %v751_v23 = vadd.f32 %v1525_v24, %v750_v19  ;;  %v847_v25 = vadd.f32 %v1525_v24, %v846_v20  ;;  %v299_v15 = vld [vmem:[%s1437_s14 + $0x3e8] sm:$0xff]  ;;  %v618_v19 = vsel %vm362_vm3, %v234_v3, %v490_v9  ;;  %vm395_vm4 = vcmp.ge.f32.partialorder %v267_v14, 0.0 }
  0xf4   : > { %v555_v26 = vmul.f32 0.2, %v299_v15  ;;  %vm427_vm5 = vcmp.ge.f32.partialorder %v299_v15, 0.0 }
  0xf5   : > { %1116 = vst [vmem:[%s1534_s30 + $0x48] sm:$0xff] %v751_v23  ;;  %797 = vmatmul.f32.gmra.mxu0 %v583_v21  ;;  %893 = vmatmul.f32.gmra.mxu1 %v615_v22  ;;  %v203_v22 = vld [vmem:[%s1437_s14 + $0xe8] sm:$0xff] }
  0xf6   : > { %1148 = vst [vmem:[%s1534_s30 + $0x148] sm:$0xff] %v847_v25  ;;  %v942_v30 = vpop.f32.mrf.mxu2  ;;  %v1038_v31 = vpop.f32.mrf.mxu3  ;;  %v235_v23 = vld [vmem:[%s1437_s14 + $0x1e8] sm:$0xff]  ;;  %v523_v25 = vmul.f32 0.2, %v267_v14  ;;  %v459_v29 = vmul.f32 0.2, %v203_v22 }
  0xf7   : > { %v943_v34 = vadd.f32 %v1525_v24, %v942_v30  ;;  %v1039_v35 = vadd.f32 %v1525_v24, %v1038_v31  ;;  %v491_v30 = vmul.f32 0.2, %v235_v23  ;;  %vm331_vm6 = vcmp.ge.f32.partialorder %v203_v22, 0.0 }
  0xf8   : > { %vm363_vm7 = vcmp.ge.f32.partialorder %v235_v23, 0.0  ;;  %v651_v33 = vsel %vm395_vm4, %v267_v14, %v523_v25  ;;  %v587_v39 = vsel %vm331_vm6, %v203_v22, %v459_v29 }
  0xf9   : > { %1180 = vst [vmem:[%s1534_s30 + $0x248] sm:$0xff] %v943_v34  ;;  %v683_v34 = vsel %vm427_vm5, %v299_v15, %v555_v26 }
  0xfa   : > { %1212 = vst [vmem:[%s1534_s30 + $0x348] sm:$0xff] %v1039_v35  ;;  %v753_v40 = vpop.f32.mrf.mxu0  ;;  %v849_v41 = vpop.f32.mrf.mxu1  ;;  %v268_v35 = vld [vmem:[%s1437_s14 + $0x2f0] sm:$0xff] }
  0xfb   : > { %992 = vmatmul.f32.gmra.mxu2 %v648_v36  ;;  %1088 = vmatmul.f32.gmra.mxu3 %v680_v37  ;;  %v754_v44 = vadd.f32 %v1525_v24, %v753_v40  ;;  %v850_v45 = vadd.f32 %v1525_v24, %v849_v41  ;;  %v300_v36 = vld [vmem:[%s1437_s14 + $0x3f0] sm:$0xff]  ;;  %v619_v40 = vsel %vm363_vm7, %v235_v23, %v491_v30  ;;  %vm396_vm8 = vcmp.ge.f32.partialorder %v268_v35, 0.0 }
  0xfc   : > { %v556_v46 = vmul.f32 0.2, %v300_v36  ;;  %vm428_vm9 = vcmp.ge.f32.partialorder %v300_v36, 0.0 }
  0xfd   : > { %1117 = vst [vmem:[%s1534_s30 + $0x50] sm:$0xff] %v754_v44  ;;  %800 = vmatmul.f32.gmra.mxu0 %v584_v42  ;;  %896 = vmatmul.f32.gmra.mxu1 %v616_v43  ;;  %v204_v43 = vld [vmem:[%s1437_s14 + $0xf0] sm:$0xff] }
  0xfe   : > { %1149 = vst [vmem:[%s1534_s30 + $0x150] sm:$0xff] %v850_v45  ;;  %v945_v50 = vpop.f32.mrf.mxu2  ;;  %v1041_v51 = vpop.f32.mrf.mxu3  ;;  %v236_v44 = vld [vmem:[%s1437_s14 + $0x1f0] sm:$0xff]  ;;  %v524_v45 = vmul.f32 0.2, %v268_v35  ;;  %v460_v49 = vmul.f32 0.2, %v204_v43 }
  0xff   : > { %v946_v54 = vadd.f32 %v1525_v24, %v945_v50  ;;  %v1042_v55 = vadd.f32 %v1525_v24, %v1041_v51  ;;  %v492_v50 = vmul.f32 0.2, %v236_v44  ;;  %vm332_vm10 = vcmp.ge.f32.partialorder %v204_v43, 0.0 }
 0x100   : > { %vm364_vm11 = vcmp.ge.f32.partialorder %v236_v44, 0.0  ;;  %v652_v53 = vsel %vm396_vm8, %v268_v35, %v524_v45  ;;  %v588_v59 = vsel %vm332_vm10, %v204_v43, %v460_v49 }
 0x101   : > { %1181 = vst [vmem:[%s1534_s30 + $0x250] sm:$0xff] %v946_v54  ;;  %v684_v54 = vsel %vm428_vm9, %v300_v36, %v556_v46 }
 0x102   : > { %1213 = vst [vmem:[%s1534_s30 + $0x350] sm:$0xff] %v1042_v55  ;;  %v756_v60 = vpop.f32.mrf.mxu0  ;;  %v852_v61 = vpop.f32.mrf.mxu1  ;;  %v269_v55 = vld [vmem:[%s1437_s14 + $0x2f8] sm:$0xff] }
 0x103   : > { %995 = vmatmul.f32.gmra.mxu2 %v649_v56  ;;  %1091 = vmatmul.f32.gmra.mxu3 %v681_v57  ;;  %v757_v0 = vadd.f32 %v1525_v24, %v756_v60  ;;  %v853_v1 = vadd.f32 %v1525_v24, %v852_v61  ;;  %v301_v56 = vld [vmem:[%s1437_s14 + $0x3f8] sm:$0xff]  ;;  %v620_v60 = vsel %vm364_vm11, %v236_v44, %v492_v50  ;;  %vm397_vm12 = vcmp.ge.f32.partialorder %v269_v55, 0.0 }
 0x104   : > { %v557_v2 = vmul.f32 0.2, %v301_v56  ;;  %vm429_vm13 = vcmp.ge.f32.partialorder %v301_v56, 0.0 }
 0x105   : > { %1118 = vst [vmem:[%s1534_s30 + $0x58] sm:$0xff] %v757_v0  ;;  %803 = vmatmul.f32.gmra.mxu0 %v585_v62  ;;  %899 = vmatmul.f32.gmra.mxu1 %v617_v63  ;;  %v205_v63 = vld [vmem:[%s1437_s14 + $0xf8] sm:$0xff] }
 0x106   : > { %1150 = vst [vmem:[%s1534_s30 + $0x158] sm:$0xff] %v853_v1  ;;  %v948_v6 = vpop.f32.mrf.mxu2  ;;  %v1044_v7 = vpop.f32.mrf.mxu3  ;;  %v237_v0 = vld [vmem:[%s1437_s14 + $0x1f8] sm:$0xff]  ;;  %v525_v1 = vmul.f32 0.2, %v269_v55  ;;  %v461_v5 = vmul.f32 0.2, %v205_v63 }
 0x107   : > { %v949_v10 = vadd.f32 %v1525_v24, %v948_v6  ;;  %v1045_v11 = vadd.f32 %v1525_v24, %v1044_v7  ;;  %v493_v6 = vmul.f32 0.2, %v237_v0  ;;  %vm333_vm14 = vcmp.ge.f32.partialorder %v205_v63, 0.0 }
 0x108   : > { %vm365_vm15 = vcmp.ge.f32.partialorder %v237_v0, 0.0  ;;  %v653_v9 = vsel %vm397_vm12, %v269_v55, %v525_v1 }
 0x109   : > { %1182 = vst [vmem:[%s1534_s30 + $0x258] sm:$0xff] %v949_v10  ;;  %v685_v10 = vsel %vm429_vm13, %v301_v56, %v557_v2  ;;  %v621_v14 = vsel %vm365_vm15, %v237_v0, %v493_v6 }
 0x10a   : > { %1214 = vst [vmem:[%s1534_s30 + $0x358] sm:$0xff] %v1045_v11  ;;  %v759_v16 = vpop.f32.mrf.mxu0  ;;  %v855_v17 = vpop.f32.mrf.mxu1 }
 0x10b   : > { %998 = vmatmul.f32.gmra.mxu2 %v650_v12  ;;  %1094 = vmatmul.f32.gmra.mxu3 %v682_v13  ;;  %v760_v20 = vadd.f32 %v1525_v24, %v759_v16  ;;  %v856_v21 = vadd.f32 %v1525_v24, %v855_v17  ;;  %v589_v13 = vsel %vm333_vm14, %v205_v63, %v461_v5 }
 0x10d   : > { %1119 = vst [vmem:[%s1534_s30 + $0x60] sm:$0xff] %v760_v20  ;;  %806 = vmatmul.f32.gmra.mxu0 %v586_v18  ;;  %902 = vmatmul.f32.gmra.mxu1 %v618_v19 }
 0x10e   : > { %1151 = vst [vmem:[%s1534_s30 + $0x160] sm:$0xff] %v856_v21  ;;  %v951_v27 = vpop.f32.mrf.mxu2  ;;  %v1047_v28 = vpop.f32.mrf.mxu3 }
 0x10f   : > { %v952_v31 = vadd.f32 %v1525_v24, %v951_v27  ;;  %v1048_v32 = vadd.f32 %v1525_v24, %v1047_v28  ;;  %v1729_v28 = vld [vmem:[%s1860_s2] ss:$0 sm:$0xff] }
 0x111   : > { %1183 = vst [vmem:[%s1534_s30 + $0x260] sm:$0xff] %v952_v31 }
 0x112   : > { %1215 = vst [vmem:[%s1534_s30 + $0x360] sm:$0xff] %v1048_v32  ;;  %v762_v37 = vpop.f32.mrf.mxu0  ;;  %v858_v38 = vpop.f32.mrf.mxu1 }
 0x113   : > { %1001 = vmatmul.f32.gmra.mxu2 %v651_v33  ;;  %1097 = vmatmul.f32.gmra.mxu3 %v683_v34  ;;  %v763_v41 = vadd.f32 %v1525_v24, %v762_v37  ;;  %v859_v42 = vadd.f32 %v1525_v24, %v858_v38 }
 0x115   : > { %1120 = vst [vmem:[%s1534_s30 + $0x68] sm:$0xff] %v763_v41  ;;  %809 = vmatmul.f32.gmra.mxu0 %v587_v39  ;;  %905 = vmatmul.f32.gmra.mxu1 %v619_v40 }
 0x116   : > { %1152 = vst [vmem:[%s1534_s30 + $0x168] sm:$0xff] %v859_v42  ;;  %v954_v47 = vpop.f32.mrf.mxu2  ;;  %v1050_v48 = vpop.f32.mrf.mxu3 }
 0x117   : > { %v955_v51 = vadd.f32 %v1525_v24, %v954_v47  ;;  %v1051_v52 = vadd.f32 %v1525_v24, %v1050_v48 }
 0x119   : > { %1184 = vst [vmem:[%s1534_s30 + $0x268] sm:$0xff] %v955_v51 }
 0x11a   : > { %1216 = vst [vmem:[%s1534_s30 + $0x368] sm:$0xff] %v1051_v52  ;;  %v765_v57 = vpop.f32.mrf.mxu0  ;;  %v861_v58 = vpop.f32.mrf.mxu1 }
 0x11b   : > { %1004 = vmatmul.f32.gmra.mxu2 %v652_v53  ;;  %1100 = vmatmul.f32.gmra.mxu3 %v684_v54  ;;  %v766_v61 = vadd.f32 %v1525_v24, %v765_v57  ;;  %v862_v62 = vadd.f32 %v1525_v24, %v861_v58 }
 0x11d   : > { %1121 = vst [vmem:[%s1534_s30 + $0x70] sm:$0xff] %v766_v61  ;;  %812 = vmatmul.f32.gmra.mxu0 %v588_v59  ;;  %908 = vmatmul.f32.gmra.mxu1 %v620_v60 }
 0x11e   : > { %1153 = vst [vmem:[%s1534_s30 + $0x170] sm:$0xff] %v862_v62  ;;  %v957_v3 = vpop.f32.mrf.mxu2  ;;  %v1053_v4 = vpop.f32.mrf.mxu3 }
 0x11f   : > { %v958_v7 = vadd.f32 %v1525_v24, %v957_v3  ;;  %v1054_v8 = vadd.f32 %v1525_v24, %v1053_v4 }
 0x121   : > { %1185 = vst [vmem:[%s1534_s30 + $0x270] sm:$0xff] %v958_v7 }
 0x122   : > { %1217 = vst [vmem:[%s1534_s30 + $0x370] sm:$0xff] %v1054_v8  ;;  %v768_v11 = vpop.f32.mrf.mxu0  ;;  %v864_v12 = vpop.f32.mrf.mxu1 }
 0x123   : > { %1007 = vmatmul.f32.gmra.mxu2 %v653_v9  ;;  %1103 = vmatmul.f32.gmra.mxu3 %v685_v10  ;;  %v769_v15 = vadd.f32 %v1525_v24, %v768_v11  ;;  %v865_v16 = vadd.f32 %v1525_v24, %v864_v12 }
 0x125   : > { %1122 = vst [vmem:[%s1534_s30 + $0x78] sm:$0xff] %v769_v15  ;;  %815 = vmatmul.f32.gmra.mxu0 %v589_v13  ;;  %911 = vmatmul.f32.gmra.mxu1 %v621_v14 }
 0x126   : > { %1154 = vst [vmem:[%s1534_s30 + $0x178] sm:$0xff] %v865_v16  ;;  %v960_v17 = vpop.f32.mrf.mxu2  ;;  %v1056_v18 = vpop.f32.mrf.mxu3 }
 0x127   : > { %v961_v19 = vadd.f32 %v1525_v24, %v960_v17  ;;  %v1057_v20 = vadd.f32 %v1525_v24, %v1056_v18 }
 0x129   : > { %1186 = vst [vmem:[%s1534_s30 + $0x278] sm:$0xff] %v961_v19 }
 0x12a   : > { %1218 = vst [vmem:[%s1534_s30 + $0x378] sm:$0xff] %v1057_v20  ;;  %v771_v21 = vpop.f32.mrf.mxu0  ;;  %v867_v22 = vpop.f32.mrf.mxu1 }
 0x12b   : > { %v772_v23 = vadd.f32 %v1525_v24, %v771_v21  ;;  %v868_v25 = vadd.f32 %v1525_v24, %v867_v22 }
 0x12d   : > { %1123 = vst [vmem:[%s1534_s30 + $0x80] sm:$0xff] %v772_v23 }
 0x12e   : > { %1155 = vst [vmem:[%s1534_s30 + $0x180] sm:$0xff] %v868_v25  ;;  %v963_v26 = vpop.f32.mrf.mxu2  ;;  %v1059_v27 = vpop.f32.mrf.mxu3 }
 0x12f   : > { %v964_v29 = vadd.f32 %v1729_v28, %v963_v26  ;;  %v1060_v30 = vadd.f32 %v1729_v28, %v1059_v27 }
 0x131   : > { %1187 = vst [vmem:[%s1534_s30 + $0x280] sm:$0xff] %v964_v29 }
 0x132   : > { %1219 = vst [vmem:[%s1534_s30 + $0x380] sm:$0xff] %v1060_v30  ;;  %v774_v31 = vpop.f32.mrf.mxu0  ;;  %v870_v24 = vpop.f32.mrf.mxu1 }
 0x133   : > { %v775_v32 = vadd.f32 %v1729_v28, %v774_v31  ;;  %v871_v33 = vadd.f32 %v1729_v28, %v870_v24 }
 0x135   : > { %1124 = vst [vmem:[%s1534_s30 + $0x88] sm:$0xff] %v775_v32 }
 0x136   : > { %1156 = vst [vmem:[%s1534_s30 + $0x188] sm:$0xff] %v871_v33  ;;  %v966_v34 = vpop.f32.mrf.mxu2  ;;  %v1062_v35 = vpop.f32.mrf.mxu3 }
 0x137   : > { %v967_v36 = vadd.f32 %v1729_v28, %v966_v34  ;;  %v1063_v37 = vadd.f32 %v1729_v28, %v1062_v35 }
 0x139   : > { %1188 = vst [vmem:[%s1534_s30 + $0x288] sm:$0xff] %v967_v36 }
 0x13a   : > { %1220 = vst [vmem:[%s1534_s30 + $0x388] sm:$0xff] %v1063_v37  ;;  %v777_v38 = vpop.f32.mrf.mxu0  ;;  %v873_v39 = vpop.f32.mrf.mxu1 }
 0x13b   : > { %v778_v40 = vadd.f32 %v1729_v28, %v777_v38  ;;  %v874_v41 = vadd.f32 %v1729_v28, %v873_v39 }
 0x13d   : > { %1125 = vst [vmem:[%s1534_s30 + $0x90] sm:$0xff] %v778_v40 }
 0x13e   : > { %1157 = vst [vmem:[%s1534_s30 + $0x190] sm:$0xff] %v874_v41  ;;  %v969_v42 = vpop.f32.mrf.mxu2  ;;  %v1065_v43 = vpop.f32.mrf.mxu3 }
 0x13f   : > { %v970_v44 = vadd.f32 %v1729_v28, %v969_v42  ;;  %v1066_v45 = vadd.f32 %v1729_v28, %v1065_v43 }
 0x141   : > { %1189 = vst [vmem:[%s1534_s30 + $0x290] sm:$0xff] %v970_v44 }
 0x142   : > { %1221 = vst [vmem:[%s1534_s30 + $0x390] sm:$0xff] %v1066_v45  ;;  %v780_v46 = vpop.f32.mrf.mxu0  ;;  %v876_v47 = vpop.f32.mrf.mxu1 }
 0x143   : > { %v781_v48 = vadd.f32 %v1729_v28, %v780_v46  ;;  %v877_v49 = vadd.f32 %v1729_v28, %v876_v47 }
 0x145   : > { %1126 = vst [vmem:[%s1534_s30 + $0x98] sm:$0xff] %v781_v48 }
 0x146   : > { %1158 = vst [vmem:[%s1534_s30 + $0x198] sm:$0xff] %v877_v49  ;;  %v972_v50 = vpop.f32.mrf.mxu2  ;;  %v1068_v51 = vpop.f32.mrf.mxu3 }
 0x147   : > { %v973_v52 = vadd.f32 %v1729_v28, %v972_v50  ;;  %v1069_v53 = vadd.f32 %v1729_v28, %v1068_v51 }
 0x149   : > { %1190 = vst [vmem:[%s1534_s30 + $0x298] sm:$0xff] %v973_v52 }
 0x14a   : > { %1222 = vst [vmem:[%s1534_s30 + $0x398] sm:$0xff] %v1069_v53  ;;  %v783_v54 = vpop.f32.mrf.mxu0  ;;  %v879_v55 = vpop.f32.mrf.mxu1 }
 0x14b   : > { %v784_v56 = vadd.f32 %v1729_v28, %v783_v54  ;;  %v880_v57 = vadd.f32 %v1729_v28, %v879_v55 }
 0x14d   : > { %1127 = vst [vmem:[%s1534_s30 + $0xa0] sm:$0xff] %v784_v56 }
 0x14e   : > { %1159 = vst [vmem:[%s1534_s30 + $0x1a0] sm:$0xff] %v880_v57  ;;  %v975_v58 = vpop.f32.mrf.mxu2  ;;  %v1071_v59 = vpop.f32.mrf.mxu3 }
 0x14f   : > { %v976_v60 = vadd.f32 %v1729_v28, %v975_v58  ;;  %v1072_v61 = vadd.f32 %v1729_v28, %v1071_v59 }
 0x151   : > { %1191 = vst [vmem:[%s1534_s30 + $0x2a0] sm:$0xff] %v976_v60 }
 0x152   : > { %1223 = vst [vmem:[%s1534_s30 + $0x3a0] sm:$0xff] %v1072_v61  ;;  %v786_v62 = vpop.f32.mrf.mxu0  ;;  %v882_v63 = vpop.f32.mrf.mxu1 }
 0x153   : > { %v787_v0 = vadd.f32 %v1729_v28, %v786_v62  ;;  %v883_v1 = vadd.f32 %v1729_v28, %v882_v63 }
 0x155   : > { %1128 = vst [vmem:[%s1534_s30 + $0xa8] sm:$0xff] %v787_v0 }
 0x156   : > { %1160 = vst [vmem:[%s1534_s30 + $0x1a8] sm:$0xff] %v883_v1  ;;  %v978_v2 = vpop.f32.mrf.mxu2  ;;  %v1074_v3 = vpop.f32.mrf.mxu3 }
 0x157   : > { %v979_v4 = vadd.f32 %v1729_v28, %v978_v2  ;;  %v1075_v5 = vadd.f32 %v1729_v28, %v1074_v3 }
 0x159   : > { %1192 = vst [vmem:[%s1534_s30 + $0x2a8] sm:$0xff] %v979_v4 }
 0x15a   : > { %1224 = vst [vmem:[%s1534_s30 + $0x3a8] sm:$0xff] %v1075_v5  ;;  %v789_v6 = vpop.f32.mrf.mxu0  ;;  %v885_v7 = vpop.f32.mrf.mxu1 }
 0x15b   : > { %v790_v8 = vadd.f32 %v1729_v28, %v789_v6  ;;  %v886_v9 = vadd.f32 %v1729_v28, %v885_v7 }
 0x15d   : > { %1129 = vst [vmem:[%s1534_s30 + $0xb0] sm:$0xff] %v790_v8 }
 0x15e   : > { %1161 = vst [vmem:[%s1534_s30 + $0x1b0] sm:$0xff] %v886_v9  ;;  %v981_v10 = vpop.f32.mrf.mxu2  ;;  %v1077_v11 = vpop.f32.mrf.mxu3 }
 0x15f   : > { %v982_v12 = vadd.f32 %v1729_v28, %v981_v10  ;;  %v1078_v13 = vadd.f32 %v1729_v28, %v1077_v11 }
 0x161   : > { %1193 = vst [vmem:[%s1534_s30 + $0x2b0] sm:$0xff] %v982_v12 }
 0x162   : > { %1225 = vst [vmem:[%s1534_s30 + $0x3b0] sm:$0xff] %v1078_v13  ;;  %v792_v14 = vpop.f32.mrf.mxu0  ;;  %v888_v15 = vpop.f32.mrf.mxu1 }
 0x163   : > { %v793_v16 = vadd.f32 %v1729_v28, %v792_v14  ;;  %v889_v17 = vadd.f32 %v1729_v28, %v888_v15 }
 0x165   : > { %1130 = vst [vmem:[%s1534_s30 + $0xb8] sm:$0xff] %v793_v16 }
 0x166   : > { %1162 = vst [vmem:[%s1534_s30 + $0x1b8] sm:$0xff] %v889_v17  ;;  %v984_v18 = vpop.f32.mrf.mxu2  ;;  %v1080_v19 = vpop.f32.mrf.mxu3 }
 0x167   : > { %v985_v20 = vadd.f32 %v1729_v28, %v984_v18  ;;  %v1081_v21 = vadd.f32 %v1729_v28, %v1080_v19 }
 0x169   : > { %1194 = vst [vmem:[%s1534_s30 + $0x2b8] sm:$0xff] %v985_v20 }
 0x16a   : > { %1226 = vst [vmem:[%s1534_s30 + $0x3b8] sm:$0xff] %v1081_v21  ;;  %v795_v22 = vpop.f32.mrf.mxu0  ;;  %v891_v23 = vpop.f32.mrf.mxu1 }
 0x16b   : > { %v796_v25 = vadd.f32 %v1729_v28, %v795_v22  ;;  %v892_v26 = vadd.f32 %v1729_v28, %v891_v23 }
 0x16d   : > { %1131 = vst [vmem:[%s1534_s30 + $0xc0] sm:$0xff] %v796_v25 }
 0x16e   : > { %1163 = vst [vmem:[%s1534_s30 + $0x1c0] sm:$0xff] %v892_v26  ;;  %v987_v27 = vpop.f32.mrf.mxu2  ;;  %v1083_v29 = vpop.f32.mrf.mxu3 }
 0x16f   : > { %v988_v30 = vadd.f32 %v1729_v28, %v987_v27  ;;  %v1084_v31 = vadd.f32 %v1729_v28, %v1083_v29 }
 0x171   : > { %1195 = vst [vmem:[%s1534_s30 + $0x2c0] sm:$0xff] %v988_v30 }
 0x172   : > { %1227 = vst [vmem:[%s1534_s30 + $0x3c0] sm:$0xff] %v1084_v31  ;;  %v798_v24 = vpop.f32.mrf.mxu0  ;;  %v894_v32 = vpop.f32.mrf.mxu1 }
 0x173   : > { %v799_v33 = vadd.f32 %v1729_v28, %v798_v24  ;;  %v895_v34 = vadd.f32 %v1729_v28, %v894_v32 }
 0x175   : > { %1132 = vst [vmem:[%s1534_s30 + $0xc8] sm:$0xff] %v799_v33 }
 0x176   : > { %1164 = vst [vmem:[%s1534_s30 + $0x1c8] sm:$0xff] %v895_v34  ;;  %v990_v35 = vpop.f32.mrf.mxu2  ;;  %v1086_v36 = vpop.f32.mrf.mxu3 }
 0x177   : > { %v991_v37 = vadd.f32 %v1729_v28, %v990_v35  ;;  %v1087_v38 = vadd.f32 %v1729_v28, %v1086_v36 }
 0x179   : > { %1196 = vst [vmem:[%s1534_s30 + $0x2c8] sm:$0xff] %v991_v37 }
 0x17a   : > { %1228 = vst [vmem:[%s1534_s30 + $0x3c8] sm:$0xff] %v1087_v38  ;;  %v801_v39 = vpop.f32.mrf.mxu0  ;;  %v897_v40 = vpop.f32.mrf.mxu1 }
 0x17b   : > { %v802_v41 = vadd.f32 %v1729_v28, %v801_v39  ;;  %v898_v42 = vadd.f32 %v1729_v28, %v897_v40 }
 0x17d   : > { %1133 = vst [vmem:[%s1534_s30 + $0xd0] sm:$0xff] %v802_v41 }
 0x17e   : > { %1165 = vst [vmem:[%s1534_s30 + $0x1d0] sm:$0xff] %v898_v42  ;;  %v993_v43 = vpop.f32.mrf.mxu2  ;;  %v1089_v44 = vpop.f32.mrf.mxu3 }
 0x17f   : > { %v994_v45 = vadd.f32 %v1729_v28, %v993_v43  ;;  %v1090_v46 = vadd.f32 %v1729_v28, %v1089_v44 }
 0x181   : > { %1197 = vst [vmem:[%s1534_s30 + $0x2d0] sm:$0xff] %v994_v45 }
 0x182   : > { %1229 = vst [vmem:[%s1534_s30 + $0x3d0] sm:$0xff] %v1090_v46  ;;  %v804_v47 = vpop.f32.mrf.mxu0  ;;  %v900_v48 = vpop.f32.mrf.mxu1 }
 0x183   : > { %v805_v49 = vadd.f32 %v1729_v28, %v804_v47  ;;  %v901_v50 = vadd.f32 %v1729_v28, %v900_v48 }
 0x185   : > { %1134 = vst [vmem:[%s1534_s30 + $0xd8] sm:$0xff] %v805_v49 }
 0x186   : > { %1166 = vst [vmem:[%s1534_s30 + $0x1d8] sm:$0xff] %v901_v50  ;;  %v996_v51 = vpop.f32.mrf.mxu2  ;;  %v1092_v52 = vpop.f32.mrf.mxu3 }
 0x187   : > { %v997_v53 = vadd.f32 %v1729_v28, %v996_v51  ;;  %v1093_v54 = vadd.f32 %v1729_v28, %v1092_v52 }
 0x189   : > { %1198 = vst [vmem:[%s1534_s30 + $0x2d8] sm:$0xff] %v997_v53 }
 0x18a   : > { %1230 = vst [vmem:[%s1534_s30 + $0x3d8] sm:$0xff] %v1093_v54  ;;  %v807_v55 = vpop.f32.mrf.mxu0  ;;  %v903_v56 = vpop.f32.mrf.mxu1 }
 0x18b   : > { %v808_v57 = vadd.f32 %v1729_v28, %v807_v55  ;;  %v904_v58 = vadd.f32 %v1729_v28, %v903_v56 }
 0x18d   : > { %1135 = vst [vmem:[%s1534_s30 + $0xe0] sm:$0xff] %v808_v57 }
 0x18e   : > { %1167 = vst [vmem:[%s1534_s30 + $0x1e0] sm:$0xff] %v904_v58  ;;  %v999_v59 = vpop.f32.mrf.mxu2  ;;  %v1095_v60 = vpop.f32.mrf.mxu3 }
 0x18f   : > { %v1000_v61 = vadd.f32 %v1729_v28, %v999_v59  ;;  %v1096_v62 = vadd.f32 %v1729_v28, %v1095_v60 }
 0x191   : > { %1199 = vst [vmem:[%s1534_s30 + $0x2e0] sm:$0xff] %v1000_v61 }
 0x192   : > { %1231 = vst [vmem:[%s1534_s30 + $0x3e0] sm:$0xff] %v1096_v62  ;;  %v810_v63 = vpop.f32.mrf.mxu0  ;;  %v906_v0 = vpop.f32.mrf.mxu1 }
 0x193   : > { %v811_v1 = vadd.f32 %v1729_v28, %v810_v63  ;;  %v907_v2 = vadd.f32 %v1729_v28, %v906_v0 }
 0x195   : > { %1136 = vst [vmem:[%s1534_s30 + $0xe8] sm:$0xff] %v811_v1 }
 0x196   : > { %1168 = vst [vmem:[%s1534_s30 + $0x1e8] sm:$0xff] %v907_v2  ;;  %v1002_v3 = vpop.f32.mrf.mxu2  ;;  %v1098_v4 = vpop.f32.mrf.mxu3 }
 0x197   : > { %v1003_v5 = vadd.f32 %v1729_v28, %v1002_v3  ;;  %v1099_v6 = vadd.f32 %v1729_v28, %v1098_v4 }
 0x199   : > { %1200 = vst [vmem:[%s1534_s30 + $0x2e8] sm:$0xff] %v1003_v5 }
 0x19a   : > { %1232 = vst [vmem:[%s1534_s30 + $0x3e8] sm:$0xff] %v1099_v6  ;;  %v813_v7 = vpop.f32.mrf.mxu0  ;;  %v909_v8 = vpop.f32.mrf.mxu1 }
 0x19b   : > { %v814_v9 = vadd.f32 %v1729_v28, %v813_v7  ;;  %v910_v10 = vadd.f32 %v1729_v28, %v909_v8 }
 0x19d   : > { %1137 = vst [vmem:[%s1534_s30 + $0xf0] sm:$0xff] %v814_v9 }
 0x19e   : > { %1169 = vst [vmem:[%s1534_s30 + $0x1f0] sm:$0xff] %v910_v10  ;;  %v1005_v11 = vpop.f32.mrf.mxu2  ;;  %v1101_v12 = vpop.f32.mrf.mxu3 }
 0x19f   : > { %v1006_v13 = vadd.f32 %v1729_v28, %v1005_v11  ;;  %v1102_v14 = vadd.f32 %v1729_v28, %v1101_v12 }
 0x1a1   : > { %1201 = vst [vmem:[%s1534_s30 + $0x2f0] sm:$0xff] %v1006_v13 }
 0x1a2   : > { %1233 = vst [vmem:[%s1534_s30 + $0x3f0] sm:$0xff] %v1102_v14  ;;  %v816_v15 = vpop.f32.mrf.mxu0  ;;  %v912_v16 = vpop.f32.mrf.mxu1 }
 0x1a3   : > { %v817_v17 = vadd.f32 %v1729_v28, %v816_v15  ;;  %v913_v18 = vadd.f32 %v1729_v28, %v912_v16 }
 0x1a5   : > { %1138 = vst [vmem:[%s1534_s30 + $0xf8] sm:$0xff] %v817_v17 }
 0x1a6   : > { %1170 = vst [vmem:[%s1534_s30 + $0x1f8] sm:$0xff] %v913_v18  ;;  %v1008_v19 = vpop.f32.mrf.mxu2  ;;  %v1104_v20 = vpop.f32.mrf.mxu3 }
 0x1a7   : > { %v1009_v21 = vadd.f32 %v1729_v28, %v1008_v19  ;;  %v1105_v22 = vadd.f32 %v1729_v28, %v1104_v20 }
 0x1a9   : > { %1202 = vst [vmem:[%s1534_s30 + $0x2f8] sm:$0xff] %v1009_v21 }
 0x1aa   : > { %1234 = vst [vmem:[%s1534_s30 + $0x3f8] sm:$0xff] %v1105_v22 }
 0x1ab PF: > { %s13_s12 = sadd.s32 1, %s1366_s12  }
 0x1ac   : > { %p10_p4 = scmp.ge.s32.totalorder %s13_s12, 4  }
 0x1ae   :  { %12 = sbr.rel (!%p10_p4) target bundleno = 1 (0x1), region = 62 }

// kernel: lvc_block_forward.12
= control target key start
LH: loop header
LB: loop body
LE: loop exit
PB: predicated region body
PF: predicated region fallthrough
CT: control target
= control target key end

     0   :  { %s2234_s12 = smov 0   ;;  %s2804_s0 = inlined_call_operand.vmem [shape: f32[2048,24], index: 0, kind: input, shape index: {}]   ;;  %s2805_s1 = inlined_call_operand.vmem [shape: f32[24,128], index: 1, kind: input, shape index: {}]   ;;  %s2806_s2 = inlined_call_operand.vmem [shape: f32[1,128], index: 2, kind: input, shape index: {}]   ;;  %s2807_s3 = inlined_call_operand.vmem [shape: f32[2048,128], index: 3, kind: output, shape index: {}]  }
   0x1 LB: > { %s2047_s13 = sadd.s32 4294967295, %s2212_s12   ;;  %p2051_p0 = scmp.ge.s32.totalorder %s2212_s12, 1  ;;  %s2212_s12 = sphi %s2234_s12, %s13_s12  }
   0x2   : > { %p138_p1 = scmp.lt.s32.totalorder %s2212_s12, 3 }
   0x4   : > { %p139_p2 = pnand %p2051_p0, %p138_p1 }
   0x5   : > { %s2052_s18 = sshll.u32 (!%p139_p2), %s2047_s13, 7 }
   0x6   : > { %142 = sbr.rel (%p139_p2) target bundleno = 405 (0x195), region = 32  ;;  %p163_p3 = scmp.lt.s32.totalorder (!%p139_p2), %s2052_s18, 255 }
   0xb   : > { %v688_v0 = vld [vmem:[%s2805_s1 + $0x10] sm:$0xff]  ;;  %v687_v1 = vld [vmem:[%s2805_s1 + $0x8] sm:$0xff]  ;;  %v686_v2 = vld [vmem:[%s2805_s1] sm:$0xff]  ;;  %s2809_s18 = smov (!%p163_p3, %s2052_s18), 255  ;;  %vm693_vm0 = vcmask 195584  }
   0xc   : > { %2187 = vmatpush.msra.mxu2 %v688_v0  ;;  %2188 = vmatpush.msra.mxu3 %v688_v0  ;;  %s2053_s21 = sshll.u32 %s2809_s18, 3 }
   0xd   : > { %1091 = vmatpush.msra.mxu0 %v688_v0  ;;  %2186 = vmatpush.msra.mxu1 %v688_v0  ;;  %s2259_s24 = scalar_lea.vmem %s2804_s0, %s2053_s21  ;;  %s2411_s29 = scalar_lea.vmem %s2807_s3, %s2053_s21 }
   0xe   : > { %2190 = vmatpush.msra.mxu2 %v687_v1  ;;  %2191 = vmatpush.msra.mxu3 %v687_v1  ;;  %v238_v3 = vld [vmem:[%s2259_s24 + $0x200] sm:$0xff]  ;;  %v239_v10 = vld [vmem:[%s2259_s24 + $0x208] sm:$0xff]  ;;  %v240_v26 = vld [vmem:[%s2259_s24 + $0x210] sm:$0xff] }
   0xf   : > { %1092 = vmatpush.msra.mxu0 %v687_v1  ;;  %2189 = vmatpush.msra.mxu1 %v687_v1  ;;  %v270_v4 = vld [vmem:[%s2259_s24 + $0x300] sm:$0xff]  ;;  %vm366_vm1 = vcmp.ge.f32.partialorder %v238_v3, 0.0  ;;  %v494_v6 = vmul.f32 0.2, %v238_v3  ;;  %v271_v11 = vld [vmem:[%s2259_s24 + $0x308] sm:$0xff]  ;;  %vm367_vm5 = vcmp.ge.f32.partialorder %v239_v10, 0.0 }
  0x10   : > { %2193 = vmatpush.msra.mxu2 %v686_v2  ;;  %2194 = vmatpush.msra.mxu3 %v686_v2  ;;  %v174_v5 = vld [vmem:[%s2259_s24] sm:$0xff]  ;;  %vm398_vm2 = vcmp.ge.f32.partialorder %v270_v4, 0.0  ;;  %v526_v7 = vmul.f32 0.2, %v270_v4  ;;  %v175_v15 = vld [vmem:[%s2259_s24 + $0x8] sm:$0xff]  ;;  %vm399_vm6 = vcmp.ge.f32.partialorder %v271_v11, 0.0 }
  0x11   : > { %1093 = vmatpush.msra.mxu0 %v686_v2  ;;  %2192 = vmatpush.msra.mxu1 %v686_v2  ;;  %vm302_vm3 = vcmp.ge.f32.partialorder %v174_v5, 0.0  ;;  %v430_v8 = vmul.f32 0.2, %v174_v5  ;;  %v206_v9 = vld [vmem:[%s2259_s24 + $0x100] sm:$0xff]  ;;  %v622_v12 = vsel %vm366_vm1, %v238_v3, %v494_v6  ;;  %v207_v17 = vld [vmem:[%s2259_s24 + $0x108] sm:$0xff]  ;;  %vm303_vm7 = vcmp.ge.f32.partialorder %v175_v15, 0.0 }
  0x12   : > { %v654_v13 = vsel %vm398_vm2, %v270_v4, %v526_v7  ;;  %vm334_vm4 = vcmp.ge.f32.partialorder %v206_v9, 0.0  ;;  %v462_v14 = vmul.f32 0.2, %v206_v9  ;;  %2120 = vmatmul.msk.f32.vlgmr.msra.gmra.mxu2 %vm693_vm0, %v622_v12  ;;  %v495_v19 = vmul.f32 0.2, %v239_v10  ;;  %v272_v27 = vld [vmem:[%s2259_s24 + $0x310] sm:$0xff] }
  0x13   : > { %2152 = vmatmul.msk.f32.vlgmr.msra.gmra.mxu3 %vm693_vm0, %v654_v13  ;;  %v558_v16 = vsel %vm302_vm3, %v174_v5, %v430_v8  ;;  %v527_v20 = vmul.f32 0.2, %v271_v11  ;;  %v431_v21 = vmul.f32 0.2, %v175_v15  ;;  %v463_v22 = vmul.f32 0.2, %v207_v17 }
  0x14   : > { %2056 = vmatmul.msk.f32.vlgmr.msra.gmra.mxu0 %vm693_vm0, %v558_v16  ;;  %v590_v18 = vsel %vm334_vm4, %v206_v9, %v462_v14  ;;  %vm335_vm8 = vcmp.ge.f32.partialorder %v207_v17, 0.0  ;;  %v623_v23 = vsel %vm367_vm5, %v239_v10, %v495_v19  ;;  %v176_v29 = vld [vmem:[%s2259_s24 + $0x10] sm:$0xff]  ;;  %v496_v31 = vmul.f32 0.2, %v240_v26  ;;  %v241_v38 = vld [vmem:[%s2259_s24 + $0x218] sm:$0xff]  ;;  %v242_v50 = vld [vmem:[%s2259_s24 + $0x220] sm:$0xff] }
  0x15   : > { %2088 = vmatmul.msk.f32.vlgmr.msra.gmra.mxu1 %vm693_vm0, %v590_v18  ;;  %v655_v24 = vsel %vm399_vm6, %v271_v11, %v527_v20  ;;  %v559_v25 = vsel %vm303_vm7, %v175_v15, %v431_v21  ;;  %v591_v28 = vsel %vm335_vm8, %v207_v17, %v463_v22  ;;  %v208_v30 = vld [vmem:[%s2259_s24 + $0x110] sm:$0xff]  ;;  %v528_v32 = vmul.f32 0.2, %v272_v27  ;;  %v273_v39 = vld [vmem:[%s2259_s24 + $0x318] sm:$0xff]  ;;  %v274_v51 = vld [vmem:[%s2259_s24 + $0x320] sm:$0xff] }
  0x16   : > { %vm368_vm9 = vcmp.ge.f32.partialorder %v240_v26, 0.0  ;;  %vm400_vm10 = vcmp.ge.f32.partialorder %v272_v27, 0.0  ;;  %v432_v33 = vmul.f32 0.2, %v176_v29  ;;  %vm304_vm11 = vcmp.ge.f32.partialorder %v176_v29, 0.0  ;;  %v177_v41 = vld [vmem:[%s2259_s24 + $0x18] sm:$0xff] }
  0x17   : > { %v464_v34 = vmul.f32 0.2, %v208_v30  ;;  %vm336_vm12 = vcmp.ge.f32.partialorder %v208_v30, 0.0  ;;  %v624_v35 = vsel %vm368_vm9, %v240_v26, %v496_v31  ;;  %v656_v36 = vsel %vm400_vm10, %v272_v27, %v528_v32  ;;  %v209_v42 = vld [vmem:[%s2259_s24 + $0x118] sm:$0xff]  ;;  %v178_v53 = vld [vmem:[%s2259_s24 + $0x20] sm:$0xff]  ;;  %v243_v62 = vld [vmem:[%s2259_s24 + $0x228] sm:$0xff] }
  0x18   : > { %v560_v37 = vsel %vm304_vm11, %v176_v29, %v432_v33  ;;  %v497_v43 = vmul.f32 0.2, %v241_v38  ;;  %v529_v44 = vmul.f32 0.2, %v273_v39  ;;  %vm369_vm13 = vcmp.ge.f32.partialorder %v241_v38, 0.0  ;;  %v210_v54 = vld [vmem:[%s2259_s24 + $0x120] sm:$0xff] }
  0x19   : > { %v592_v40 = vsel %vm336_vm12, %v208_v30, %v464_v34  ;;  %vm401_vm14 = vcmp.ge.f32.partialorder %v273_v39, 0.0  ;;  %v433_v45 = vmul.f32 0.2, %v177_v41  ;;  %vm305_vm15 = vcmp.ge.f32.partialorder %v177_v41, 0.0  ;;  %v275_v63 = vld [vmem:[%s2259_s24 + $0x328] sm:$0xff]  ;;  %v244_v10 = vld [vmem:[%s2259_s24 + $0x230] sm:$0xff] }
  0x1a   : > { %2121 = vmatmul.msk.f32.gmra.mxu2 %vm693_vm0, %v623_v23  ;;  %v465_v46 = vmul.f32 0.2, %v209_v42  ;;  %vm337_vm1 = vcmp.ge.f32.partialorder %v209_v42, 0.0  ;;  %v625_v47 = vsel %vm369_vm13, %v241_v38, %v497_v43  ;;  %v657_v48 = vsel %vm401_vm14, %v273_v39, %v529_v44  ;;  %v179_v1 = vld [vmem:[%s2259_s24 + $0x28] sm:$0xff]  ;;  %v276_v11 = vld [vmem:[%s2259_s24 + $0x330] sm:$0xff]  ;;  %v245_v22 = vld [vmem:[%s2259_s24 + $0x238] sm:$0xff] }
  0x1b   : > { %2153 = vmatmul.msk.f32.gmra.mxu3 %vm693_vm0, %v655_v24  ;;  %v561_v49 = vsel %vm305_vm15, %v177_v41, %v433_v45  ;;  %v498_v55 = vmul.f32 0.2, %v242_v50  ;;  %v530_v56 = vmul.f32 0.2, %v274_v51  ;;  %vm370_vm2 = vcmp.ge.f32.partialorder %v242_v50, 0.0  ;;  %v211_v2 = vld [vmem:[%s2259_s24 + $0x128] sm:$0xff] }
  0x1c   : > { %2057 = vmatmul.msk.f32.gmra.mxu0 %vm693_vm0, %v559_v25  ;;  %v593_v52 = vsel %vm337_vm1, %v209_v42, %v465_v46  ;;  %vm402_vm3 = vcmp.ge.f32.partialorder %v274_v51, 0.0  ;;  %v434_v57 = vmul.f32 0.2, %v178_v53  ;;  %vm306_vm4 = vcmp.ge.f32.partialorder %v178_v53, 0.0  ;;  %v180_v13 = vld [vmem:[%s2259_s24 + $0x30] sm:$0xff]  ;;  %v277_v23 = vld [vmem:[%s2259_s24 + $0x338] sm:$0xff] }
  0x1d   : > { %2089 = vmatmul.msk.f32.gmra.mxu1 %vm693_vm0, %v591_v28  ;;  %v466_v58 = vmul.f32 0.2, %v210_v54  ;;  %vm338_vm5 = vcmp.ge.f32.partialorder %v210_v54, 0.0  ;;  %v626_v59 = vsel %vm370_vm2, %v242_v50, %v498_v55  ;;  %v658_v60 = vsel %vm402_vm3, %v274_v51, %v530_v56  ;;  %v212_v14 = vld [vmem:[%s2259_s24 + $0x130] sm:$0xff]  ;;  %v181_v25 = vld [vmem:[%s2259_s24 + $0x38] sm:$0xff]  ;;  %v246_v34 = vld [vmem:[%s2259_s24 + $0x240] sm:$0xff] }
  0x1e   : > { %v562_v61 = vsel %vm306_vm4, %v178_v53, %v434_v57  ;;  %v499_v3 = vmul.f32 0.2, %v243_v62  ;;  %v531_v4 = vmul.f32 0.2, %v275_v63  ;;  %vm371_vm6 = vcmp.ge.f32.partialorder %v243_v62, 0.0  ;;  %v213_v26 = vld [vmem:[%s2259_s24 + $0x138] sm:$0xff] }
  0x1f   : > { %v594_v0 = vsel %vm338_vm5, %v210_v54, %v466_v58  ;;  %vm403_vm7 = vcmp.ge.f32.partialorder %v275_v63, 0.0  ;;  %v435_v5 = vmul.f32 0.2, %v179_v1  ;;  %vm307_vm8 = vcmp.ge.f32.partialorder %v179_v1, 0.0  ;;  %v214_v38 = vld [vmem:[%s2259_s24 + $0x140] sm:$0xff]  ;;  %v247_v46 = vld [vmem:[%s2259_s24 + $0x248] sm:$0xff] }
  0x20   : > { %v467_v6 = vmul.f32 0.2, %v211_v2  ;;  %vm339_vm9 = vcmp.ge.f32.partialorder %v211_v2, 0.0  ;;  %v627_v7 = vsel %vm371_vm6, %v243_v62, %v499_v3  ;;  %v659_v8 = vsel %vm403_vm7, %v275_v63, %v531_v4  ;;  %v215_v50 = vld [vmem:[%s2259_s24 + $0x148] sm:$0xff]  ;;  %v248_v58 = vld [vmem:[%s2259_s24 + $0x250] sm:$0xff] }
  0x21   : > { %v563_v9 = vsel %vm307_vm8, %v179_v1, %v435_v5  ;;  %v500_v15 = vmul.f32 0.2, %v244_v10  ;;  %v532_v16 = vmul.f32 0.2, %v276_v11  ;;  %vm372_vm10 = vcmp.ge.f32.partialorder %v244_v10, 0.0  ;;  %v216_v62 = vld [vmem:[%s2259_s24 + $0x150] sm:$0xff] }
  0x22   : > { %2122 = vmatmul.msk.f32.gmra.mxu2 %vm693_vm0, %v624_v35  ;;  %v595_v12 = vsel %vm339_vm9, %v211_v2, %v467_v6  ;;  %vm404_vm11 = vcmp.ge.f32.partialorder %v276_v11, 0.0  ;;  %v436_v17 = vmul.f32 0.2, %v180_v13  ;;  %vm308_vm12 = vcmp.ge.f32.partialorder %v180_v13, 0.0  ;;  %v278_v35 = vld [vmem:[%s2259_s24 + $0x340] sm:$0xff]  ;;  %v249_v6 = vld [vmem:[%s2259_s24 + $0x258] sm:$0xff] }
  0x23   : > { %2154 = vmatmul.msk.f32.gmra.mxu3 %vm693_vm0, %v656_v36  ;;  %v468_v18 = vmul.f32 0.2, %v212_v14  ;;  %vm340_vm13 = vcmp.ge.f32.partialorder %v212_v14, 0.0  ;;  %v628_v19 = vsel %vm372_vm10, %v244_v10, %v500_v15  ;;  %v660_v20 = vsel %vm404_vm11, %v276_v11, %v532_v16  ;;  %v217_v10 = vld [vmem:[%s2259_s24 + $0x158] sm:$0xff] }
  0x24   : > { %2058 = vmatmul.msk.f32.gmra.mxu0 %vm693_vm0, %v560_v37  ;;  %v564_v21 = vsel %vm308_vm12, %v180_v13, %v436_v17  ;;  %v501_v27 = vmul.f32 0.2, %v245_v22  ;;  %v533_v28 = vmul.f32 0.2, %v277_v23  ;;  %vm373_vm14 = vcmp.ge.f32.partialorder %v245_v22, 0.0  ;;  %v182_v37 = vld [vmem:[%s2259_s24 + $0x40] sm:$0xff] }
  0x25   : > { %2090 = vmatmul.msk.f32.gmra.mxu1 %vm693_vm0, %v592_v40  ;;  %v596_v24 = vsel %vm340_vm13, %v212_v14, %v468_v18  ;;  %vm405_vm15 = vcmp.ge.f32.partialorder %v277_v23, 0.0  ;;  %v437_v29 = vmul.f32 0.2, %v181_v25  ;;  %vm309_vm1 = vcmp.ge.f32.partialorder %v181_v25, 0.0  ;;  %v250_v18 = vld [vmem:[%s2259_s24 + $0x260] sm:$0xff] }
  0x26   : > { %v469_v30 = vmul.f32 0.2, %v213_v26  ;;  %vm341_vm2 = vcmp.ge.f32.partialorder %v213_v26, 0.0  ;;  %v629_v31 = vsel %vm373_vm14, %v245_v22, %v501_v27  ;;  %v661_v32 = vsel %vm405_vm15, %v277_v23, %v533_v28  ;;  %v218_v22 = vld [vmem:[%s2259_s24 + $0x160] sm:$0xff] }
  0x27   : > { %v565_v33 = vsel %vm309_vm1, %v181_v25, %v437_v29  ;;  %v502_v39 = vmul.f32 0.2, %v246_v34  ;;  %v534_v40 = vmul.f32 0.2, %v278_v35  ;;  %vm374_vm3 = vcmp.ge.f32.partialorder %v246_v34, 0.0 }
  0x28   : > { %v597_v36 = vsel %vm341_vm2, %v213_v26, %v469_v30  ;;  %vm406_vm4 = vcmp.ge.f32.partialorder %v278_v35, 0.0  ;;  %v438_v41 = vmul.f32 0.2, %v182_v37  ;;  %vm310_vm5 = vcmp.ge.f32.partialorder %v182_v37, 0.0  ;;  %v251_v30 = vld [vmem:[%s2259_s24 + $0x268] sm:$0xff] }
  0x29   : > { %v470_v42 = vmul.f32 0.2, %v214_v38  ;;  %vm342_vm6 = vcmp.ge.f32.partialorder %v214_v38, 0.0  ;;  %v630_v43 = vsel %vm374_vm3, %v246_v34, %v502_v39  ;;  %v662_v44 = vsel %vm406_vm4, %v278_v35, %v534_v40  ;;  %v219_v34 = vld [vmem:[%s2259_s24 + $0x168] sm:$0xff] }
  0x2a   : > { %2123 = vmatmul.msk.f32.gmra.mxu2 %vm693_vm0, %v625_v47  ;;  %v566_v45 = vsel %vm310_vm5, %v182_v37, %v438_v41  ;;  %v279_v47 = vld [vmem:[%s2259_s24 + $0x348] sm:$0xff]  ;;  %v503_v51 = vmul.f32 0.2, %v247_v46  ;;  %vm375_vm7 = vcmp.ge.f32.partialorder %v247_v46, 0.0  ;;  %v471_v54 = vmul.f32 0.2, %v215_v50 }
  0x2b   : > { %2155 = vmatmul.msk.f32.gmra.mxu3 %vm693_vm0, %v657_v48  ;;  %v598_v48 = vsel %vm342_vm6, %v214_v38, %v470_v42  ;;  %vm407_vm8 = vcmp.ge.f32.partialorder %v279_v47, 0.0  ;;  %vm343_vm10 = vcmp.ge.f32.partialorder %v215_v50, 0.0  ;;  %v504_v63 = vmul.f32 0.2, %v248_v58  ;;  %v252_v42 = vld [vmem:[%s2259_s24 + $0x270] sm:$0xff] }
  0x2c   : > { %2059 = vmatmul.msk.f32.gmra.mxu0 %vm693_vm0, %v561_v49  ;;  %v183_v49 = vld [vmem:[%s2259_s24 + $0x48] sm:$0xff]  ;;  %v631_v55 = vsel %vm375_vm7, %v247_v46, %v503_v51  ;;  %vm376_vm11 = vcmp.ge.f32.partialorder %v248_v58, 0.0  ;;  %v472_v2 = vmul.f32 0.2, %v216_v62  ;;  %vm344_vm14 = vcmp.ge.f32.partialorder %v216_v62, 0.0  ;;  %v220_v46 = vld [vmem:[%s2259_s24 + $0x170] sm:$0xff] }
  0x2d   : > { %2091 = vmatmul.msk.f32.gmra.mxu1 %vm693_vm0, %v593_v52  ;;  %v535_v52 = vmul.f32 0.2, %v279_v47  ;;  %v439_v53 = vmul.f32 0.2, %v183_v49  ;;  %vm311_vm9 = vcmp.ge.f32.partialorder %v183_v49, 0.0  ;;  %v632_v3 = vsel %vm376_vm11, %v248_v58, %v504_v63  ;;  %v221_v58 = vld [vmem:[%s2259_s24 + $0x178] sm:$0xff] }
  0x2e   : > { %v505_v11 = vmul.f32 0.2, %v249_v6  ;;  %vm377_vm15 = vcmp.ge.f32.partialorder %v249_v6, 0.0  ;;  %v473_v14 = vmul.f32 0.2, %v217_v10  ;;  %vm345_vm3 = vcmp.ge.f32.partialorder %v217_v10, 0.0 }
  0x2f   : > { %v663_v56 = vsel %vm407_vm8, %v279_v47, %v535_v52  ;;  %v567_v57 = vsel %vm311_vm9, %v183_v49, %v439_v53  ;;  %v506_v23 = vmul.f32 0.2, %v250_v18  ;;  %vm378_vm4 = vcmp.ge.f32.partialorder %v250_v18, 0.0 }
  0x30   : > { %v633_v15 = vsel %vm377_vm15, %v249_v6, %v505_v11  ;;  %v474_v26 = vmul.f32 0.2, %v218_v22  ;;  %vm346_vm7 = vcmp.ge.f32.partialorder %v218_v22, 0.0  ;;  %v507_v35 = vmul.f32 0.2, %v251_v30  ;;  %v222_v6 = vld [vmem:[%s2259_s24 + $0x180] sm:$0xff] }
  0x31   : > { %v634_v27 = vsel %vm378_vm4, %v250_v18, %v506_v23  ;;  %vm379_vm8 = vcmp.ge.f32.partialorder %v251_v30, 0.0  ;;  %v475_v38 = vmul.f32 0.2, %v219_v34  ;;  %vm347_vm11 = vcmp.ge.f32.partialorder %v219_v34, 0.0  ;;  %v191_v18 = vld [vmem:[%s2259_s24 + $0x88] sm:$0xff] }
  0x32   : > { %2124 = vmatmul.msk.f32.gmra.mxu2 %vm693_vm0, %v626_v59  ;;  %v280_v59 = vld [vmem:[%s2259_s24 + $0x350] sm:$0xff]  ;;  %v635_v39 = vsel %vm379_vm8, %v251_v30, %v507_v35  ;;  %v508_v47 = vmul.f32 0.2, %v252_v42  ;;  %vm348_vm15 = vcmp.ge.f32.partialorder %v220_v46, 0.0  ;;  %vm349_vm4 = vcmp.ge.f32.partialorder %v221_v58, 0.0 }
  0x33   : > { %2156 = vmatmul.msk.f32.gmra.mxu3 %vm693_vm0, %v658_v60  ;;  %v599_v60 = vsel %vm343_vm10, %v215_v50, %v471_v54  ;;  %vm408_vm12 = vcmp.ge.f32.partialorder %v280_v59, 0.0  ;;  %v476_v50 = vmul.f32 0.2, %v220_v46  ;;  %v253_v54 = vld [vmem:[%s2259_s24 + $0x278] sm:$0xff]  ;;  %v478_v11 = vmul.f32 0.2, %v222_v6 }
  0x34   : > { %2060 = vmatmul.msk.f32.gmra.mxu0 %vm693_vm0, %v562_v61  ;;  %v184_v61 = vld [vmem:[%s2259_s24 + $0x50] sm:$0xff]  ;;  %vm350_vm8 = vcmp.ge.f32.partialorder %v222_v6, 0.0 }
  0x35   : > { %2092 = vmatmul.msk.f32.gmra.mxu1 %vm693_vm0, %v594_v0  ;;  %v536_v0 = vmul.f32 0.2, %v280_v59  ;;  %v440_v1 = vmul.f32 0.2, %v184_v61  ;;  %vm312_vm13 = vcmp.ge.f32.partialorder %v184_v61, 0.0 }
  0x37   : > { %v664_v4 = vsel %vm408_vm12, %v280_v59, %v536_v0  ;;  %v568_v5 = vsel %vm312_vm13, %v184_v61, %v440_v1  ;;  %vm380_vm12 = vcmp.ge.f32.partialorder %v252_v42, 0.0  ;;  %v509_v59 = vmul.f32 0.2, %v253_v54 }
  0x38   : > { %v636_v51 = vsel %vm380_vm12, %v252_v42, %v508_v47 }
  0x3a   : > { %2125 = vmatmul.msk.f32.gmra.mxu2 %vm693_vm0, %v627_v7  ;;  %v281_v7 = vld [vmem:[%s2259_s24 + $0x358] sm:$0xff] }
  0x3b   : > { %2157 = vmatmul.msk.f32.gmra.mxu3 %vm693_vm0, %v659_v8  ;;  %v600_v8 = vsel %vm344_vm14, %v216_v62, %v472_v2  ;;  %vm409_vm1 = vcmp.ge.f32.partialorder %v281_v7, 0.0  ;;  %v477_v62 = vmul.f32 0.2, %v221_v58  ;;  %v254_v2 = vld [vmem:[%s2259_s24 + $0x280] sm:$0xff] }
  0x3c   : > { %2061 = vmatmul.msk.f32.gmra.mxu0 %vm693_vm0, %v563_v9  ;;  %v185_v9 = vld [vmem:[%s2259_s24 + $0x58] sm:$0xff] }
  0x3d   : > { %2093 = vmatmul.msk.f32.gmra.mxu1 %vm693_vm0, %v595_v12  ;;  %v537_v12 = vmul.f32 0.2, %v281_v7  ;;  %v441_v13 = vmul.f32 0.2, %v185_v9  ;;  %vm313_vm2 = vcmp.ge.f32.partialorder %v185_v9, 0.0 }
  0x3f   : > { %v665_v16 = vsel %vm409_vm1, %v281_v7, %v537_v12  ;;  %v569_v17 = vsel %vm313_vm2, %v185_v9, %v441_v13  ;;  %vm381_vm1 = vcmp.ge.f32.partialorder %v253_v54, 0.0  ;;  %v510_v7 = vmul.f32 0.2, %v254_v2 }
  0x40   : > { %v637_v63 = vsel %vm381_vm1, %v253_v54, %v509_v59 }
  0x42   : > { %2126 = vmatmul.msk.f32.gmra.mxu2 %vm693_vm0, %v628_v19  ;;  %v282_v19 = vld [vmem:[%s2259_s24 + $0x360] sm:$0xff] }
  0x43   : > { %2158 = vmatmul.msk.f32.gmra.mxu3 %vm693_vm0, %v660_v20  ;;  %v601_v20 = vsel %vm345_vm3, %v217_v10, %v473_v14  ;;  %vm410_vm5 = vcmp.ge.f32.partialorder %v282_v19, 0.0  ;;  %v2396_v10 = vld [vmem:[%s2806_s2] ss:$0 sm:$0xff]  ;;  %v255_v14 = vld [vmem:[%s2259_s24 + $0x288] sm:$0xff] }
  0x44   : > { %2062 = vmatmul.msk.f32.gmra.mxu0 %vm693_vm0, %v564_v21  ;;  %v186_v21 = vld [vmem:[%s2259_s24 + $0x60] sm:$0xff]  ;;  %v511_v23 = vmul.f32 0.2, %v255_v14 }
  0x45   : > { %2094 = vmatmul.msk.f32.gmra.mxu1 %vm693_vm0, %v596_v24  ;;  %v538_v24 = vmul.f32 0.2, %v282_v19  ;;  %v442_v25 = vmul.f32 0.2, %v186_v21  ;;  %vm314_vm6 = vcmp.ge.f32.partialorder %v186_v21, 0.0 }
  0x47   : > { %v666_v28 = vsel %vm410_vm5, %v282_v19, %v538_v24  ;;  %v570_v29 = vsel %vm314_vm6, %v186_v21, %v442_v25  ;;  %vm382_vm5 = vcmp.ge.f32.partialorder %v254_v2, 0.0  ;;  %v606_v21 = vsel %vm350_vm8, %v222_v6, %v478_v11  ;;  %v223_v25 = vld [vmem:[%s2259_s24 + $0x188] sm:$0xff] }
  0x48   : > { %v638_v12 = vsel %vm382_vm5, %v254_v2, %v510_v7 }
  0x4a   : > { %2127 = vmatmul.msk.f32.gmra.mxu2 %vm693_vm0, %v629_v31  ;;  %v283_v31 = vld [vmem:[%s2259_s24 + $0x368] sm:$0xff] }
  0x4b   : > { %2159 = vmatmul.msk.f32.gmra.mxu3 %vm693_vm0, %v661_v32  ;;  %v602_v32 = vsel %vm346_vm7, %v218_v22, %v474_v26  ;;  %vm411_vm9 = vcmp.ge.f32.partialorder %v283_v31, 0.0 }
  0x4c   : > { %2063 = vmatmul.msk.f32.gmra.mxu0 %vm693_vm0, %v565_v33  ;;  %v187_v33 = vld [vmem:[%s2259_s24 + $0x68] sm:$0xff] }
  0x4d   : > { %2095 = vmatmul.msk.f32.gmra.mxu1 %vm693_vm0, %v597_v36  ;;  %v539_v36 = vmul.f32 0.2, %v283_v31  ;;  %v443_v37 = vmul.f32 0.2, %v187_v33  ;;  %vm315_vm10 = vcmp.ge.f32.partialorder %v187_v33, 0.0 }
  0x4f   : > { %v667_v40 = vsel %vm411_vm9, %v283_v31, %v539_v36  ;;  %v571_v41 = vsel %vm315_vm10, %v187_v33, %v443_v37  ;;  %vm383_vm10 = vcmp.ge.f32.partialorder %v255_v14, 0.0  ;;  %v256_v36 = vld [vmem:[%s2259_s24 + $0x290] sm:$0xff] }
  0x50   : > { %v288_v37 = vld [vmem:[%s2259_s24 + $0x390] sm:$0xff] }
  0x51   : > { %vm416_vm5 = vcmp.ge.f32.partialorder %v288_v37, 0.0 }
  0x52   : > { %2128 = vmatmul.msk.f32.gmra.mxu2 %vm693_vm0, %v630_v43  ;;  %v284_v43 = vld [vmem:[%s2259_s24 + $0x370] sm:$0xff] }
  0x53   : > { %2160 = vmatmul.msk.f32.gmra.mxu3 %vm693_vm0, %v662_v44  ;;  %v603_v44 = vsel %vm347_vm11, %v219_v34, %v475_v38  ;;  %vm412_vm13 = vcmp.ge.f32.partialorder %v284_v43, 0.0  ;;  %v639_v38 = vsel %vm383_vm10, %v255_v14, %v511_v23 }
  0x54   : > { %2064 = vmatmul.msk.f32.gmra.mxu0 %vm693_vm0, %v566_v45  ;;  %v188_v45 = vld [vmem:[%s2259_s24 + $0x70] sm:$0xff] }
  0x55   : > { %2096 = vmatmul.msk.f32.gmra.mxu1 %vm693_vm0, %v598_v48  ;;  %v540_v48 = vmul.f32 0.2, %v284_v43  ;;  %v444_v49 = vmul.f32 0.2, %v188_v45  ;;  %vm316_vm14 = vcmp.ge.f32.partialorder %v188_v45, 0.0 }
  0x57   : > { %v668_v52 = vsel %vm412_vm13, %v284_v43, %v540_v48  ;;  %v572_v53 = vsel %vm316_vm14, %v188_v45, %v444_v49  ;;  %vm319_vm13 = vcmp.ge.f32.partialorder %v191_v18, 0.0  ;;  %vm351_vm14 = vcmp.ge.f32.partialorder %v223_v25, 0.0 }
  0x58   : > { %v512_v48 = vmul.f32 0.2, %v256_v36  ;;  %v544_v49 = vmul.f32 0.2, %v288_v37 }
  0x5a   : > { %2129 = vmatmul.msk.f32.gmra.mxu2 %vm693_vm0, %v631_v55  ;;  %v285_v55 = vld [vmem:[%s2259_s24 + $0x378] sm:$0xff] }
  0x5b   : > { %2161 = vmatmul.msk.f32.gmra.mxu3 %vm693_vm0, %v663_v56  ;;  %v604_v56 = vsel %vm348_vm15, %v220_v46, %v476_v50  ;;  %vm413_vm2 = vcmp.ge.f32.partialorder %v285_v55, 0.0 }
  0x5c   : > { %2065 = vmatmul.msk.f32.gmra.mxu0 %vm693_vm0, %v567_v57  ;;  %v189_v57 = vld [vmem:[%s2259_s24 + $0x78] sm:$0xff] }
  0x5d   : > { %2097 = vmatmul.msk.f32.gmra.mxu1 %vm693_vm0, %v599_v60  ;;  %v541_v60 = vmul.f32 0.2, %v285_v55  ;;  %v445_v61 = vmul.f32 0.2, %v189_v57  ;;  %vm317_vm3 = vcmp.ge.f32.partialorder %v189_v57, 0.0 }
  0x5f   : > { %v669_v0 = vsel %vm413_vm2, %v285_v55, %v541_v60  ;;  %v573_v1 = vsel %vm317_vm3, %v189_v57, %v445_v61  ;;  %vm384_vm2 = vcmp.ge.f32.partialorder %v256_v36, 0.0 }
  0x60   : > { %v640_v2 = vsel %vm384_vm2, %v256_v36, %v512_v48 }
  0x62   : > { %2130 = vmatmul.msk.f32.gmra.mxu2 %vm693_vm0, %v632_v3  ;;  %v286_v3 = vld [vmem:[%s2259_s24 + $0x380] sm:$0xff] }
  0x63   : > { %2162 = vmatmul.msk.f32.gmra.mxu3 %vm693_vm0, %v664_v4  ;;  %v605_v4 = vsel %vm349_vm4, %v221_v58, %v477_v62  ;;  %vm414_vm6 = vcmp.ge.f32.partialorder %v286_v3, 0.0 }
  0x64   : > { %2066 = vmatmul.msk.f32.gmra.mxu0 %vm693_vm0, %v568_v5  ;;  %v190_v5 = vld [vmem:[%s2259_s24 + $0x80] sm:$0xff] }
  0x65   : > { %2098 = vmatmul.msk.f32.gmra.mxu1 %vm693_vm0, %v600_v8  ;;  %v542_v8 = vmul.f32 0.2, %v286_v3  ;;  %v446_v9 = vmul.f32 0.2, %v190_v5  ;;  %vm318_vm7 = vcmp.ge.f32.partialorder %v190_v5, 0.0 }
  0x67   : > { %v670_v13 = vsel %vm414_vm6, %v286_v3, %v542_v8  ;;  %v672_v3 = vsel %vm416_vm5, %v288_v37, %v544_v49 }
  0x6a   : > { %2131 = vmatmul.msk.f32.gmra.mxu2 %vm693_vm0, %v633_v15  ;;  %v287_v15 = vld [vmem:[%s2259_s24 + $0x388] sm:$0xff] }
  0x6b   : > { %2163 = vmatmul.msk.f32.gmra.mxu3 %vm693_vm0, %v665_v16  ;;  %v543_v24 = vmul.f32 0.2, %v287_v15  ;;  %vm415_vm12 = vcmp.ge.f32.partialorder %v287_v15, 0.0 }
  0x6c   : > { %2067 = vmatmul.msk.f32.gmra.mxu0 %vm693_vm0, %v569_v17  ;;  %v574_v17 = vsel %vm318_vm7, %v190_v5, %v446_v9  ;;  %v193_v5 = vld [vmem:[%s2259_s24 + $0x98] sm:$0xff] }
  0x6d   : > { %2099 = vmatmul.msk.f32.gmra.mxu1 %vm693_vm0, %v601_v20 }
  0x72   : > { %2132 = vmatmul.msk.f32.gmra.mxu2 %vm693_vm0, %v634_v27  ;;  %v447_v27 = vmul.f32 0.2, %v191_v18 }
  0x73   : > { %2164 = vmatmul.msk.f32.gmra.mxu3 %vm693_vm0, %v666_v28 }
  0x74   : > { %2068 = vmatmul.msk.f32.gmra.mxu0 %vm693_vm0, %v570_v29 }
  0x75   : > { %2100 = vmatmul.msk.f32.gmra.mxu1 %vm693_vm0, %v602_v32  ;;  %v479_v32 = vmul.f32 0.2, %v223_v25 }
  0x77   : > { %v607_v47 = vsel %vm351_vm14, %v223_v25, %v479_v32  ;;  %vm321_vm14 = vcmp.ge.f32.partialorder %v193_v5, 0.0 }
  0x7a   : > { %2133 = vmatmul.msk.f32.gmra.mxu2 %vm693_vm0, %v635_v39  ;;  %v671_v39 = vsel %vm415_vm12, %v287_v15, %v543_v24 }
  0x7b   : > { %2165 = vmatmul.msk.f32.gmra.mxu3 %vm693_vm0, %v667_v40  ;;  %v575_v40 = vsel %vm319_vm13, %v191_v18, %v447_v27  ;;  %v225_v18 = vld [vmem:[%s2259_s24 + $0x198] sm:$0xff] }
  0x7c   : > { %2069 = vmatmul.msk.f32.gmra.mxu0 %vm693_vm0, %v571_v41  ;;  %v192_v41 = vld [vmem:[%s2259_s24 + $0x90] sm:$0xff]  ;;  %v481_v25 = vmul.f32 0.2, %v225_v18 }
  0x7d   : > { %2101 = vmatmul.msk.f32.gmra.mxu1 %vm693_vm0, %v603_v44  ;;  %v448_v55 = vmul.f32 0.2, %v192_v41  ;;  %vm320_vm6 = vcmp.ge.f32.partialorder %v192_v41, 0.0 }
  0x82   : > { %2134 = vmatmul.msk.f32.gmra.mxu2 %vm693_vm0, %v636_v51 }
  0x83   : > { %2166 = vmatmul.msk.f32.gmra.mxu3 %vm693_vm0, %v668_v52 }
  0x84   : > { %2070 = vmatmul.msk.f32.gmra.mxu0 %vm693_vm0, %v572_v53  ;;  %v224_v53 = vld [vmem:[%s2259_s24 + $0x190] sm:$0xff] }
  0x85   : > { %2102 = vmatmul.msk.f32.gmra.mxu1 %vm693_vm0, %v604_v56  ;;  %v480_v60 = vmul.f32 0.2, %v224_v53  ;;  %vm352_vm7 = vcmp.ge.f32.partialorder %v224_v53, 0.0 }
  0x8a   : > { %2135 = vmatmul.msk.f32.gmra.mxu2 %vm693_vm0, %v637_v63 }
  0x8b   : > { %2167 = vmatmul.msk.f32.gmra.mxu3 %vm693_vm0, %v669_v0  ;;  %v257_v0 = vld [vmem:[%s2259_s24 + $0x298] sm:$0xff] }
  0x8c   : > { %2071 = vmatmul.msk.f32.gmra.mxu0 %vm693_vm0, %v573_v1  ;;  %v289_v1 = vld [vmem:[%s2259_s24 + $0x398] sm:$0xff]  ;;  %vm385_vm10 = vcmp.ge.f32.partialorder %v257_v0, 0.0 }
  0x8d   : > { %2103 = vmatmul.msk.f32.gmra.mxu1 %vm693_vm0, %v605_v4  ;;  %v576_v4 = vsel %vm320_vm6, %v192_v41, %v448_v55  ;;  %v545_v14 = vmul.f32 0.2, %v289_v1  ;;  %vm417_vm13 = vcmp.ge.f32.partialorder %v289_v1, 0.0 }
  0x8f   : > { %v673_v32 = vsel %vm417_vm13, %v289_v1, %v545_v14 }
  0x91   : > { %v1095_v16 = vpop.f32.mrf.mxu0 }
  0x92   : > { %v1096_v19 = vadd.f32 %v2396_v10, %v1095_v16  ;;  %v1191_v20 = vpop.f32.mrf.mxu1  ;;  %2136 = vmatmul.msk.f32.gmra.mxu2 %vm693_vm0, %v638_v12  ;;  %v608_v12 = vsel %vm352_vm7, %v224_v53, %v480_v60 }
  0x93   : > { %2168 = vmatmul.msk.f32.gmra.mxu3 %vm693_vm0, %v670_v13  ;;  %v1192_v22 = vadd.f32 %v2396_v10, %v1191_v20  ;;  %v513_v13 = vmul.f32 0.2, %v257_v0  ;;  %v449_v20 = vmul.f32 0.2, %v193_v5 }
  0x94   : > { %vm1479_vm9 = vcmp.ge.f32.partialorder %v1096_v19, 0.0  ;;  %v1607_v26 = vmul.f32 0.2, %v1096_v19  ;;  %2072 = vmatmul.msk.f32.gmra.mxu0 %vm693_vm0, %v574_v17 }
  0x95   : > { %vm1511_vm11 = vcmp.ge.f32.partialorder %v1192_v22, 0.0  ;;  %v1639_v28 = vmul.f32 0.2, %v1192_v22  ;;  %2104 = vmatmul.msk.f32.gmra.mxu1 %vm693_vm0, %v606_v21  ;;  %v1287_v30 = vpop.f32.mrf.mxu2 }
  0x96   : > { %v1735_v29 = vsel %vm1479_vm9, %v1096_v19, %v1607_v26  ;;  %v1383_v31 = vpop.f32.mrf.mxu3  ;;  %v1288_v34 = vadd.f32 %v2396_v10, %v1287_v30  ;;  %v290_v30 = vld [vmem:[%s2259_s24 + $0x3a0] sm:$0xff] }
  0x97   : > { %1863 = vst [vmem:[%s2411_s29] sm:$0xff] %v1735_v29  ;;  %v1767_v33 = vsel %vm1511_vm11, %v1192_v22, %v1639_v28  ;;  %v1384_v35 = vadd.f32 %v2396_v10, %v1383_v31  ;;  %v258_v29 = vld [vmem:[%s2259_s24 + $0x2a0] sm:$0xff]  ;;  %v641_v31 = vsel %vm385_vm10, %v257_v0, %v513_v13  ;;  %vm418_vm6 = vcmp.ge.f32.partialorder %v290_v30, 0.0 }
  0x98   : > { %1895 = vst [vmem:[%s2411_s29 + $0x100] sm:$0xff] %v1767_v33  ;;  %vm1543_vm15 = vcmp.ge.f32.partialorder %v1288_v34, 0.0  ;;  %v1671_v42 = vmul.f32 0.2, %v1288_v34  ;;  %v577_v33 = vsel %vm321_vm14, %v193_v5, %v449_v20  ;;  %v514_v41 = vmul.f32 0.2, %v258_v29 }
  0x99   : > { %vm1575_vm1 = vcmp.ge.f32.partialorder %v1384_v35, 0.0  ;;  %v1703_v43 = vmul.f32 0.2, %v1384_v35  ;;  %v1098_v44 = vpop.f32.mrf.mxu0 }
  0x9a   : > { %v1099_v45 = vadd.f32 %v2396_v10, %v1098_v44  ;;  %v1194_v46 = vpop.f32.mrf.mxu1  ;;  %v1799_v50 = vsel %vm1543_vm15, %v1288_v34, %v1671_v42  ;;  %2137 = vmatmul.msk.f32.gmra.mxu2 %vm693_vm0, %v639_v38  ;;  %vm353_vm15 = vcmp.ge.f32.partialorder %v225_v18, 0.0  ;;  %v194_v34 = vld [vmem:[%s2259_s24 + $0xa0] sm:$0xff]  ;;  %v546_v42 = vmul.f32 0.2, %v290_v30 }
  0x9b   : > { %v1831_v51 = vsel %vm1575_vm1, %v1384_v35, %v1703_v43  ;;  %2169 = vmatmul.msk.f32.gmra.mxu3 %vm693_vm0, %v671_v39  ;;  %v1195_v52 = vadd.f32 %v2396_v10, %v1194_v46  ;;  %1927 = vst [vmem:[%s2411_s29 + $0x200] sm:$0xff] %v1799_v50  ;;  %v226_v46 = vld [vmem:[%s2259_s24 + $0x1a0] sm:$0xff]  ;;  %v450_v48 = vmul.f32 0.2, %v194_v34  ;;  %vm322_vm7 = vcmp.ge.f32.partialorder %v194_v34, 0.0 }
  0x9c   : > { %vm1480_vm3 = vcmp.ge.f32.partialorder %v1099_v45, 0.0  ;;  %v1608_v54 = vmul.f32 0.2, %v1099_v45  ;;  %2073 = vmatmul.msk.f32.gmra.mxu0 %vm693_vm0, %v575_v40  ;;  %1959 = vst [vmem:[%s2411_s29 + $0x300] sm:$0xff] %v1831_v51  ;;  %v609_v40 = vsel %vm353_vm15, %v225_v18, %v481_v25  ;;  %v482_v53 = vmul.f32 0.2, %v226_v46 }
  0x9d   : > { %vm1512_vm4 = vcmp.ge.f32.partialorder %v1195_v52, 0.0  ;;  %v1640_v56 = vmul.f32 0.2, %v1195_v52  ;;  %2105 = vmatmul.msk.f32.gmra.mxu1 %vm693_vm0, %v607_v47  ;;  %v1290_v58 = vpop.f32.mrf.mxu2  ;;  %v578_v60 = vsel %vm322_vm7, %v194_v34, %v450_v48 }
  0x9e   : > { %v1736_v57 = vsel %vm1480_vm3, %v1099_v45, %v1608_v54  ;;  %v1386_v59 = vpop.f32.mrf.mxu3  ;;  %v1291_v62 = vadd.f32 %v2396_v10, %v1290_v58  ;;  %vm386_vm3 = vcmp.ge.f32.partialorder %v258_v29, 0.0 }
  0x9f   : > { %1864 = vst [vmem:[%s2411_s29 + $0x8] sm:$0xff] %v1736_v57  ;;  %v1768_v61 = vsel %vm1512_vm4, %v1195_v52, %v1640_v56  ;;  %v1387_v63 = vadd.f32 %v2396_v10, %v1386_v59  ;;  %v259_v57 = vld [vmem:[%s2259_s24 + $0x2a8] sm:$0xff]  ;;  %v642_v58 = vsel %vm386_vm3, %v258_v29, %v514_v41  ;;  %v674_v59 = vsel %vm418_vm6, %v290_v30, %v546_v42 }
  0xa0   : > { %1896 = vst [vmem:[%s2411_s29 + $0x108] sm:$0xff] %v1768_v61  ;;  %vm1544_vm8 = vcmp.ge.f32.partialorder %v1291_v62, 0.0  ;;  %v1672_v6 = vmul.f32 0.2, %v1291_v62  ;;  %v291_v61 = vld [vmem:[%s2259_s24 + $0x3a8] sm:$0xff] }
  0xa1   : > { %vm1576_vm9 = vcmp.ge.f32.partialorder %v1387_v63, 0.0  ;;  %v1704_v7 = vmul.f32 0.2, %v1387_v63  ;;  %v1101_v8 = vpop.f32.mrf.mxu0  ;;  %v515_v5 = vmul.f32 0.2, %v259_v57  ;;  %vm419_vm14 = vcmp.ge.f32.partialorder %v291_v61, 0.0 }
  0xa2   : > { %v1102_v9 = vadd.f32 %v2396_v10, %v1101_v8  ;;  %v1197_v11 = vpop.f32.mrf.mxu1  ;;  %v1800_v15 = vsel %vm1544_vm8, %v1291_v62, %v1672_v6  ;;  %2138 = vmatmul.msk.f32.gmra.mxu2 %vm693_vm0, %v640_v2  ;;  %vm354_vm8 = vcmp.ge.f32.partialorder %v226_v46, 0.0  ;;  %v195_v62 = vld [vmem:[%s2259_s24 + $0xa8] sm:$0xff] }
  0xa3   : > { %v1832_v16 = vsel %vm1576_vm9, %v1387_v63, %v1704_v7  ;;  %2170 = vmatmul.msk.f32.gmra.mxu3 %vm693_vm0, %v672_v3  ;;  %v1198_v17 = vadd.f32 %v2396_v10, %v1197_v11  ;;  %1928 = vst [vmem:[%s2411_s29 + $0x208] sm:$0xff] %v1800_v15  ;;  %v227_v11 = vld [vmem:[%s2259_s24 + $0x1a8] sm:$0xff]  ;;  %v451_v13 = vmul.f32 0.2, %v195_v62  ;;  %vm323_vm15 = vcmp.ge.f32.partialorder %v195_v62, 0.0 }
  0xa4   : > { %vm1481_vm11 = vcmp.ge.f32.partialorder %v1102_v9, 0.0  ;;  %v1609_v19 = vmul.f32 0.2, %v1102_v9  ;;  %2074 = vmatmul.msk.f32.gmra.mxu0 %vm693_vm0, %v576_v4  ;;  %1960 = vst [vmem:[%s2411_s29 + $0x308] sm:$0xff] %v1832_v16  ;;  %v610_v4 = vsel %vm354_vm8, %v226_v46, %v482_v53  ;;  %v483_v18 = vmul.f32 0.2, %v227_v11 }
  0xa5   : > { %vm1513_vm12 = vcmp.ge.f32.partialorder %v1198_v17, 0.0  ;;  %v1641_v21 = vmul.f32 0.2, %v1198_v17  ;;  %2106 = vmatmul.msk.f32.gmra.mxu1 %vm693_vm0, %v608_v12  ;;  %v1293_v23 = vpop.f32.mrf.mxu2  ;;  %v579_v25 = vsel %vm323_vm15, %v195_v62, %v451_v13 }
  0xa6   : > { %v1737_v22 = vsel %vm1481_vm11, %v1102_v9, %v1609_v19  ;;  %v1389_v24 = vpop.f32.mrf.mxu3  ;;  %v1294_v27 = vadd.f32 %v2396_v10, %v1293_v23  ;;  %vm387_vm11 = vcmp.ge.f32.partialorder %v259_v57, 0.0  ;;  %v547_v9 = vmul.f32 0.2, %v291_v61 }
  0xa7   : > { %1865 = vst [vmem:[%s2411_s29 + $0x10] sm:$0xff] %v1737_v22  ;;  %v1769_v26 = vsel %vm1513_vm12, %v1198_v17, %v1641_v21  ;;  %v1390_v28 = vadd.f32 %v2396_v10, %v1389_v24  ;;  %v260_v22 = vld [vmem:[%s2259_s24 + $0x2b0] sm:$0xff]  ;;  %v643_v23 = vsel %vm387_vm11, %v259_v57, %v515_v5 }
  0xa8   : > { %1897 = vst [vmem:[%s2411_s29 + $0x110] sm:$0xff] %v1769_v26  ;;  %vm1545_vm1 = vcmp.ge.f32.partialorder %v1294_v27, 0.0  ;;  %v1673_v35 = vmul.f32 0.2, %v1294_v27  ;;  %v675_v24 = vsel %vm419_vm14, %v291_v61, %v547_v9  ;;  %v292_v26 = vld [vmem:[%s2259_s24 + $0x3b0] sm:$0xff] }
  0xa9   : > { %vm1577_vm2 = vcmp.ge.f32.partialorder %v1390_v28, 0.0  ;;  %v1705_v36 = vmul.f32 0.2, %v1390_v28  ;;  %v1104_v37 = vpop.f32.mrf.mxu0  ;;  %v516_v34 = vmul.f32 0.2, %v260_v22  ;;  %vm420_vm7 = vcmp.ge.f32.partialorder %v292_v26, 0.0 }
  0xaa   : > { %v1105_v38 = vadd.f32 %v2396_v10, %v1104_v37  ;;  %v1200_v39 = vpop.f32.mrf.mxu1  ;;  %v1801_v43 = vsel %vm1545_vm1, %v1294_v27, %v1673_v35  ;;  %2139 = vmatmul.msk.f32.gmra.mxu2 %vm693_vm0, %v641_v31  ;;  %vm355_vm1 = vcmp.ge.f32.partialorder %v227_v11, 0.0  ;;  %v196_v27 = vld [vmem:[%s2259_s24 + $0xb0] sm:$0xff] }
  0xab   : > { %v1833_v44 = vsel %vm1577_vm2, %v1390_v28, %v1705_v36  ;;  %2171 = vmatmul.msk.f32.gmra.mxu3 %vm693_vm0, %v673_v32  ;;  %v1201_v45 = vadd.f32 %v2396_v10, %v1200_v39  ;;  %1929 = vst [vmem:[%s2411_s29 + $0x210] sm:$0xff] %v1801_v43  ;;  %v228_v39 = vld [vmem:[%s2259_s24 + $0x1b0] sm:$0xff]  ;;  %v452_v41 = vmul.f32 0.2, %v196_v27  ;;  %vm324_vm8 = vcmp.ge.f32.partialorder %v196_v27, 0.0 }
  0xac   : > { %vm1482_vm4 = vcmp.ge.f32.partialorder %v1105_v38, 0.0  ;;  %v1610_v47 = vmul.f32 0.2, %v1105_v38  ;;  %2075 = vmatmul.msk.f32.gmra.mxu0 %vm693_vm0, %v577_v33  ;;  %1961 = vst [vmem:[%s2411_s29 + $0x310] sm:$0xff] %v1833_v44  ;;  %v611_v33 = vsel %vm355_vm1, %v227_v11, %v483_v18  ;;  %v484_v46 = vmul.f32 0.2, %v228_v39 }
  0xad   : > { %vm1514_vm5 = vcmp.ge.f32.partialorder %v1201_v45, 0.0  ;;  %v1642_v49 = vmul.f32 0.2, %v1201_v45  ;;  %2107 = vmatmul.msk.f32.gmra.mxu1 %vm693_vm0, %v609_v40  ;;  %v1296_v51 = vpop.f32.mrf.mxu2  ;;  %v580_v53 = vsel %vm324_vm8, %v196_v27, %v452_v41 }
  0xae   : > { %v1738_v50 = vsel %vm1482_vm4, %v1105_v38, %v1610_v47  ;;  %v1392_v52 = vpop.f32.mrf.mxu3  ;;  %v1297_v55 = vadd.f32 %v2396_v10, %v1296_v51  ;;  %vm388_vm4 = vcmp.ge.f32.partialorder %v260_v22, 0.0  ;;  %v548_v38 = vmul.f32 0.2, %v292_v26 }
  0xaf   : > { %1866 = vst [vmem:[%s2411_s29 + $0x18] sm:$0xff] %v1738_v50  ;;  %v1770_v54 = vsel %vm1514_vm5, %v1201_v45, %v1642_v49  ;;  %v1393_v56 = vadd.f32 %v2396_v10, %v1392_v52  ;;  %v261_v50 = vld [vmem:[%s2259_s24 + $0x2b8] sm:$0xff]  ;;  %v644_v51 = vsel %vm388_vm4, %v260_v22, %v516_v34 }
  0xb0   : > { %1898 = vst [vmem:[%s2411_s29 + $0x118] sm:$0xff] %v1770_v54  ;;  %vm1546_vm9 = vcmp.ge.f32.partialorder %v1297_v55, 0.0  ;;  %v1674_v63 = vmul.f32 0.2, %v1297_v55  ;;  %v676_v52 = vsel %vm420_vm7, %v292_v26, %v548_v38  ;;  %v293_v54 = vld [vmem:[%s2259_s24 + $0x3b8] sm:$0xff] }
  0xb1   : > { %vm1578_vm10 = vcmp.ge.f32.partialorder %v1393_v56, 0.0  ;;  %v1706_v0 = vmul.f32 0.2, %v1393_v56  ;;  %v1107_v1 = vpop.f32.mrf.mxu0  ;;  %v517_v62 = vmul.f32 0.2, %v261_v50  ;;  %vm421_vm15 = vcmp.ge.f32.partialorder %v293_v54, 0.0 }
  0xb2   : > { %v1108_v2 = vadd.f32 %v2396_v10, %v1107_v1  ;;  %v1203_v3 = vpop.f32.mrf.mxu1  ;;  %v1802_v6 = vsel %vm1546_vm9, %v1297_v55, %v1674_v63  ;;  %2140 = vmatmul.msk.f32.gmra.mxu2 %vm693_vm0, %v642_v58  ;;  %vm356_vm9 = vcmp.ge.f32.partialorder %v228_v39, 0.0  ;;  %v197_v55 = vld [vmem:[%s2259_s24 + $0xb8] sm:$0xff] }
  0xb3   : > { %v1834_v7 = vsel %vm1578_vm10, %v1393_v56, %v1706_v0  ;;  %2172 = vmatmul.msk.f32.gmra.mxu3 %vm693_vm0, %v674_v59  ;;  %v1204_v8 = vadd.f32 %v2396_v10, %v1203_v3  ;;  %1930 = vst [vmem:[%s2411_s29 + $0x218] sm:$0xff] %v1802_v6  ;;  %v612_v61 = vsel %vm356_vm9, %v228_v39, %v484_v46  ;;  %v229_v3 = vld [vmem:[%s2259_s24 + $0x1b8] sm:$0xff]  ;;  %v453_v5 = vmul.f32 0.2, %v197_v55 }
  0xb4   : > { %vm1483_vm12 = vcmp.ge.f32.partialorder %v1108_v2, 0.0  ;;  %v1611_v12 = vmul.f32 0.2, %v1108_v2  ;;  %2076 = vmatmul.msk.f32.gmra.mxu0 %vm693_vm0, %v578_v60  ;;  %1962 = vst [vmem:[%s2411_s29 + $0x318] sm:$0xff] %v1834_v7  ;;  %vm325_vm1 = vcmp.ge.f32.partialorder %v197_v55, 0.0 }
  0xb5   : > { %vm1515_vm13 = vcmp.ge.f32.partialorder %v1204_v8, 0.0  ;;  %v1643_v14 = vmul.f32 0.2, %v1204_v8  ;;  %2108 = vmatmul.msk.f32.gmra.mxu1 %vm693_vm0, %v610_v4  ;;  %v1299_v16 = vpop.f32.mrf.mxu2  ;;  %v485_v11 = vmul.f32 0.2, %v229_v3  ;;  %v581_v18 = vsel %vm325_vm1, %v197_v55, %v453_v5 }
  0xb6   : > { %v1739_v15 = vsel %vm1483_vm12, %v1108_v2, %v1611_v12  ;;  %v1395_v17 = vpop.f32.mrf.mxu3  ;;  %v1300_v20 = vadd.f32 %v2396_v10, %v1299_v16  ;;  %vm389_vm12 = vcmp.ge.f32.partialorder %v261_v50, 0.0  ;;  %v549_v2 = vmul.f32 0.2, %v293_v54 }
  0xb7   : > { %1867 = vst [vmem:[%s2411_s29 + $0x20] sm:$0xff] %v1739_v15  ;;  %v1771_v19 = vsel %vm1515_vm13, %v1204_v8, %v1643_v14  ;;  %v1396_v21 = vadd.f32 %v2396_v10, %v1395_v17  ;;  %v262_v15 = vld [vmem:[%s2259_s24 + $0x2c0] sm:$0xff]  ;;  %v645_v16 = vsel %vm389_vm12, %v261_v50, %v517_v62 }
  0xb8   : > { %1899 = vst [vmem:[%s2411_s29 + $0x120] sm:$0xff] %v1771_v19  ;;  %vm1547_vm2 = vcmp.ge.f32.partialorder %v1300_v20, 0.0  ;;  %v1675_v28 = vmul.f32 0.2, %v1300_v20  ;;  %v677_v17 = vsel %vm421_vm15, %v293_v54, %v549_v2  ;;  %v294_v19 = vld [vmem:[%s2259_s24 + $0x3c0] sm:$0xff] }
  0xb9   : > { %vm1579_vm3 = vcmp.ge.f32.partialorder %v1396_v21, 0.0  ;;  %v1707_v29 = vmul.f32 0.2, %v1396_v21  ;;  %v1110_v30 = vpop.f32.mrf.mxu0  ;;  %v518_v27 = vmul.f32 0.2, %v262_v15  ;;  %vm422_vm8 = vcmp.ge.f32.partialorder %v294_v19, 0.0 }
  0xba   : > { %v1111_v31 = vadd.f32 %v2396_v10, %v1110_v30  ;;  %v1206_v32 = vpop.f32.mrf.mxu1  ;;  %v1803_v35 = vsel %vm1547_vm2, %v1300_v20, %v1675_v28  ;;  %2141 = vmatmul.msk.f32.gmra.mxu2 %vm693_vm0, %v643_v23  ;;  %vm357_vm2 = vcmp.ge.f32.partialorder %v229_v3, 0.0  ;;  %v198_v20 = vld [vmem:[%s2259_s24 + $0xc0] sm:$0xff] }
  0xbb   : > { %v1835_v36 = vsel %vm1579_vm3, %v1396_v21, %v1707_v29  ;;  %2173 = vmatmul.msk.f32.gmra.mxu3 %vm693_vm0, %v675_v24  ;;  %v1207_v37 = vadd.f32 %v2396_v10, %v1206_v32  ;;  %1931 = vst [vmem:[%s2411_s29 + $0x220] sm:$0xff] %v1803_v35  ;;  %v613_v26 = vsel %vm357_vm2, %v229_v3, %v485_v11  ;;  %v230_v32 = vld [vmem:[%s2259_s24 + $0x1c0] sm:$0xff]  ;;  %v454_v34 = vmul.f32 0.2, %v198_v20 }
  0xbc   : > { %vm1484_vm5 = vcmp.ge.f32.partialorder %v1111_v31, 0.0  ;;  %v1612_v40 = vmul.f32 0.2, %v1111_v31  ;;  %2077 = vmatmul.msk.f32.gmra.mxu0 %vm693_vm0, %v579_v25  ;;  %1963 = vst [vmem:[%s2411_s29 + $0x320] sm:$0xff] %v1835_v36  ;;  %vm326_vm9 = vcmp.ge.f32.partialorder %v198_v20, 0.0 }
  0xbd   : > { %vm1516_vm6 = vcmp.ge.f32.partialorder %v1207_v37, 0.0  ;;  %v1644_v42 = vmul.f32 0.2, %v1207_v37  ;;  %2109 = vmatmul.msk.f32.gmra.mxu1 %vm693_vm0, %v611_v33  ;;  %v1302_v44 = vpop.f32.mrf.mxu2  ;;  %v486_v39 = vmul.f32 0.2, %v230_v32  ;;  %v582_v46 = vsel %vm326_vm9, %v198_v20, %v454_v34 }
  0xbe   : > { %v1740_v43 = vsel %vm1484_vm5, %v1111_v31, %v1612_v40  ;;  %v1398_v45 = vpop.f32.mrf.mxu3  ;;  %v1303_v48 = vadd.f32 %v2396_v10, %v1302_v44  ;;  %vm390_vm5 = vcmp.ge.f32.partialorder %v262_v15, 0.0  ;;  %v550_v31 = vmul.f32 0.2, %v294_v19 }
  0xbf   : > { %1868 = vst [vmem:[%s2411_s29 + $0x28] sm:$0xff] %v1740_v43  ;;  %v1772_v47 = vsel %vm1516_vm6, %v1207_v37, %v1644_v42  ;;  %v1399_v49 = vadd.f32 %v2396_v10, %v1398_v45  ;;  %v263_v43 = vld [vmem:[%s2259_s24 + $0x2c8] sm:$0xff]  ;;  %v646_v44 = vsel %vm390_vm5, %v262_v15, %v518_v27 }
  0xc0   : > { %1900 = vst [vmem:[%s2411_s29 + $0x128] sm:$0xff] %v1772_v47  ;;  %vm1548_vm10 = vcmp.ge.f32.partialorder %v1303_v48, 0.0  ;;  %v1676_v56 = vmul.f32 0.2, %v1303_v48  ;;  %v678_v45 = vsel %vm422_vm8, %v294_v19, %v550_v31  ;;  %v295_v47 = vld [vmem:[%s2259_s24 + $0x3c8] sm:$0xff] }
  0xc1   : > { %vm1580_vm11 = vcmp.ge.f32.partialorder %v1399_v49, 0.0  ;;  %v1708_v57 = vmul.f32 0.2, %v1399_v49  ;;  %v1113_v58 = vpop.f32.mrf.mxu0  ;;  %v519_v55 = vmul.f32 0.2, %v263_v43  ;;  %vm423_vm1 = vcmp.ge.f32.partialorder %v295_v47, 0.0 }
  0xc2   : > { %v1114_v59 = vadd.f32 %v2396_v10, %v1113_v58  ;;  %v1209_v60 = vpop.f32.mrf.mxu1  ;;  %v1804_v63 = vsel %vm1548_vm10, %v1303_v48, %v1676_v56  ;;  %2142 = vmatmul.msk.f32.gmra.mxu2 %vm693_vm0, %v644_v51  ;;  %vm358_vm10 = vcmp.ge.f32.partialorder %v230_v32, 0.0  ;;  %v199_v48 = vld [vmem:[%s2259_s24 + $0xc8] sm:$0xff] }
  0xc3   : > { %v1836_v0 = vsel %vm1580_vm11, %v1399_v49, %v1708_v57  ;;  %2174 = vmatmul.msk.f32.gmra.mxu3 %vm693_vm0, %v676_v52  ;;  %v1210_v1 = vadd.f32 %v2396_v10, %v1209_v60  ;;  %1932 = vst [vmem:[%s2411_s29 + $0x228] sm:$0xff] %v1804_v63  ;;  %v614_v54 = vsel %vm358_vm10, %v230_v32, %v486_v39  ;;  %v231_v60 = vld [vmem:[%s2259_s24 + $0x1c8] sm:$0xff]  ;;  %v455_v62 = vmul.f32 0.2, %v199_v48 }
  0xc4   : > { %vm1485_vm13 = vcmp.ge.f32.partialorder %v1114_v59, 0.0  ;;  %v1613_v4 = vmul.f32 0.2, %v1114_v59  ;;  %2078 = vmatmul.msk.f32.gmra.mxu0 %vm693_vm0, %v580_v53  ;;  %1964 = vst [vmem:[%s2411_s29 + $0x328] sm:$0xff] %v1836_v0  ;;  %vm327_vm2 = vcmp.ge.f32.partialorder %v199_v48, 0.0 }
  0xc5   : > { %vm1517_vm14 = vcmp.ge.f32.partialorder %v1210_v1, 0.0  ;;  %v1645_v6 = vmul.f32 0.2, %v1210_v1  ;;  %2110 = vmatmul.msk.f32.gmra.mxu1 %vm693_vm0, %v612_v61  ;;  %v1305_v8 = vpop.f32.mrf.mxu2  ;;  %v487_v3 = vmul.f32 0.2, %v231_v60  ;;  %v583_v11 = vsel %vm327_vm2, %v199_v48, %v455_v62 }
  0xc6   : > { %v1741_v7 = vsel %vm1485_vm13, %v1114_v59, %v1613_v4  ;;  %v1401_v9 = vpop.f32.mrf.mxu3  ;;  %v1306_v13 = vadd.f32 %v2396_v10, %v1305_v8  ;;  %vm391_vm13 = vcmp.ge.f32.partialorder %v263_v43, 0.0  ;;  %v551_v59 = vmul.f32 0.2, %v295_v47 }
  0xc7   : > { %1869 = vst [vmem:[%s2411_s29 + $0x30] sm:$0xff] %v1741_v7  ;;  %v1773_v12 = vsel %vm1517_vm14, %v1210_v1, %v1645_v6  ;;  %v1402_v14 = vadd.f32 %v2396_v10, %v1401_v9  ;;  %v264_v7 = vld [vmem:[%s2259_s24 + $0x2d0] sm:$0xff]  ;;  %v647_v8 = vsel %vm391_vm13, %v263_v43, %v519_v55 }
  0xc8   : > { %1901 = vst [vmem:[%s2411_s29 + $0x130] sm:$0xff] %v1773_v12  ;;  %vm1549_vm3 = vcmp.ge.f32.partialorder %v1306_v13, 0.0  ;;  %v1677_v21 = vmul.f32 0.2, %v1306_v13  ;;  %v679_v9 = vsel %vm423_vm1, %v295_v47, %v551_v59  ;;  %v296_v12 = vld [vmem:[%s2259_s24 + $0x3d0] sm:$0xff] }
  0xc9   : > { %vm1581_vm4 = vcmp.ge.f32.partialorder %v1402_v14, 0.0  ;;  %v1709_v22 = vmul.f32 0.2, %v1402_v14  ;;  %v1116_v23 = vpop.f32.mrf.mxu0  ;;  %v520_v20 = vmul.f32 0.2, %v264_v7  ;;  %vm424_vm9 = vcmp.ge.f32.partialorder %v296_v12, 0.0 }
  0xca   : > { %v1117_v24 = vadd.f32 %v2396_v10, %v1116_v23  ;;  %v1212_v25 = vpop.f32.mrf.mxu1  ;;  %v1805_v28 = vsel %vm1549_vm3, %v1306_v13, %v1677_v21  ;;  %2143 = vmatmul.msk.f32.gmra.mxu2 %vm693_vm0, %v645_v16  ;;  %vm359_vm3 = vcmp.ge.f32.partialorder %v231_v60, 0.0  ;;  %v200_v13 = vld [vmem:[%s2259_s24 + $0xd0] sm:$0xff] }
  0xcb   : > { %v1837_v29 = vsel %vm1581_vm4, %v1402_v14, %v1709_v22  ;;  %2175 = vmatmul.msk.f32.gmra.mxu3 %vm693_vm0, %v677_v17  ;;  %v1213_v30 = vadd.f32 %v2396_v10, %v1212_v25  ;;  %1933 = vst [vmem:[%s2411_s29 + $0x230] sm:$0xff] %v1805_v28  ;;  %v615_v19 = vsel %vm359_vm3, %v231_v60, %v487_v3  ;;  %v232_v25 = vld [vmem:[%s2259_s24 + $0x1d0] sm:$0xff]  ;;  %v456_v27 = vmul.f32 0.2, %v200_v13 }
  0xcc   : > { %vm1486_vm6 = vcmp.ge.f32.partialorder %v1117_v24, 0.0  ;;  %v1614_v33 = vmul.f32 0.2, %v1117_v24  ;;  %2079 = vmatmul.msk.f32.gmra.mxu0 %vm693_vm0, %v581_v18  ;;  %1965 = vst [vmem:[%s2411_s29 + $0x330] sm:$0xff] %v1837_v29  ;;  %vm328_vm10 = vcmp.ge.f32.partialorder %v200_v13, 0.0 }
  0xcd   : > { %vm1518_vm7 = vcmp.ge.f32.partialorder %v1213_v30, 0.0  ;;  %v1646_v35 = vmul.f32 0.2, %v1213_v30  ;;  %2111 = vmatmul.msk.f32.gmra.mxu1 %vm693_vm0, %v613_v26  ;;  %v1308_v37 = vpop.f32.mrf.mxu2  ;;  %v488_v32 = vmul.f32 0.2, %v232_v25  ;;  %v584_v39 = vsel %vm328_vm10, %v200_v13, %v456_v27 }
  0xce   : > { %v1742_v36 = vsel %vm1486_vm6, %v1117_v24, %v1614_v33  ;;  %v1404_v38 = vpop.f32.mrf.mxu3  ;;  %v1309_v41 = vadd.f32 %v2396_v10, %v1308_v37  ;;  %vm392_vm6 = vcmp.ge.f32.partialorder %v264_v7, 0.0  ;;  %v552_v24 = vmul.f32 0.2, %v296_v12 }
  0xcf   : > { %1870 = vst [vmem:[%s2411_s29 + $0x38] sm:$0xff] %v1742_v36  ;;  %v1774_v40 = vsel %vm1518_vm7, %v1213_v30, %v1646_v35  ;;  %v1405_v42 = vadd.f32 %v2396_v10, %v1404_v38  ;;  %v265_v36 = vld [vmem:[%s2259_s24 + $0x2d8] sm:$0xff]  ;;  %v648_v37 = vsel %vm392_vm6, %v264_v7, %v520_v20 }
  0xd0   : > { %1902 = vst [vmem:[%s2411_s29 + $0x138] sm:$0xff] %v1774_v40  ;;  %vm1550_vm11 = vcmp.ge.f32.partialorder %v1309_v41, 0.0  ;;  %v1678_v49 = vmul.f32 0.2, %v1309_v41  ;;  %v680_v38 = vsel %vm424_vm9, %v296_v12, %v552_v24  ;;  %v297_v40 = vld [vmem:[%s2259_s24 + $0x3d8] sm:$0xff] }
  0xd1   : > { %vm1582_vm12 = vcmp.ge.f32.partialorder %v1405_v42, 0.0  ;;  %v1710_v50 = vmul.f32 0.2, %v1405_v42  ;;  %v1119_v51 = vpop.f32.mrf.mxu0  ;;  %v521_v48 = vmul.f32 0.2, %v265_v36  ;;  %vm425_vm2 = vcmp.ge.f32.partialorder %v297_v40, 0.0 }
  0xd2   : > { %v1120_v52 = vadd.f32 %v2396_v10, %v1119_v51  ;;  %v1215_v53 = vpop.f32.mrf.mxu1  ;;  %v1806_v56 = vsel %vm1550_vm11, %v1309_v41, %v1678_v49  ;;  %2144 = vmatmul.msk.f32.gmra.mxu2 %vm693_vm0, %v646_v44  ;;  %vm360_vm11 = vcmp.ge.f32.partialorder %v232_v25, 0.0  ;;  %v201_v41 = vld [vmem:[%s2259_s24 + $0xd8] sm:$0xff] }
  0xd3   : > { %v1838_v57 = vsel %vm1582_vm12, %v1405_v42, %v1710_v50  ;;  %2176 = vmatmul.msk.f32.gmra.mxu3 %vm693_vm0, %v678_v45  ;;  %v1216_v58 = vadd.f32 %v2396_v10, %v1215_v53  ;;  %1934 = vst [vmem:[%s2411_s29 + $0x238] sm:$0xff] %v1806_v56  ;;  %v616_v47 = vsel %vm360_vm11, %v232_v25, %v488_v32  ;;  %v233_v53 = vld [vmem:[%s2259_s24 + $0x1d8] sm:$0xff]  ;;  %v457_v55 = vmul.f32 0.2, %v201_v41 }
  0xd4   : > { %vm1487_vm14 = vcmp.ge.f32.partialorder %v1120_v52, 0.0  ;;  %v1615_v61 = vmul.f32 0.2, %v1120_v52  ;;  %2080 = vmatmul.msk.f32.gmra.mxu0 %vm693_vm0, %v582_v46  ;;  %1966 = vst [vmem:[%s2411_s29 + $0x338] sm:$0xff] %v1838_v57  ;;  %vm329_vm3 = vcmp.ge.f32.partialorder %v201_v41, 0.0 }
  0xd5   : > { %vm1519_vm15 = vcmp.ge.f32.partialorder %v1216_v58, 0.0  ;;  %v1647_v63 = vmul.f32 0.2, %v1216_v58  ;;  %2112 = vmatmul.msk.f32.gmra.mxu1 %vm693_vm0, %v614_v54  ;;  %v1311_v1 = vpop.f32.mrf.mxu2  ;;  %v489_v60 = vmul.f32 0.2, %v233_v53  ;;  %v585_v3 = vsel %vm329_vm3, %v201_v41, %v457_v55 }
  0xd6   : > { %v1743_v0 = vsel %vm1487_vm14, %v1120_v52, %v1615_v61  ;;  %v1407_v2 = vpop.f32.mrf.mxu3  ;;  %v1312_v5 = vadd.f32 %v2396_v10, %v1311_v1  ;;  %vm393_vm14 = vcmp.ge.f32.partialorder %v265_v36, 0.0  ;;  %v553_v52 = vmul.f32 0.2, %v297_v40 }
  0xd7   : > { %1871 = vst [vmem:[%s2411_s29 + $0x40] sm:$0xff] %v1743_v0  ;;  %v1775_v4 = vsel %vm1519_vm15, %v1216_v58, %v1647_v63  ;;  %v1408_v6 = vadd.f32 %v2396_v10, %v1407_v2  ;;  %v266_v0 = vld [vmem:[%s2259_s24 + $0x2e0] sm:$0xff]  ;;  %v649_v1 = vsel %vm393_vm14, %v265_v36, %v521_v48 }
  0xd8   : > { %1903 = vst [vmem:[%s2411_s29 + $0x140] sm:$0xff] %v1775_v4  ;;  %vm1551_vm4 = vcmp.ge.f32.partialorder %v1312_v5, 0.0  ;;  %v1679_v14 = vmul.f32 0.2, %v1312_v5  ;;  %v681_v2 = vsel %vm425_vm2, %v297_v40, %v553_v52  ;;  %v298_v4 = vld [vmem:[%s2259_s24 + $0x3e0] sm:$0xff] }
  0xd9   : > { %vm1583_vm5 = vcmp.ge.f32.partialorder %v1408_v6, 0.0  ;;  %v1711_v15 = vmul.f32 0.2, %v1408_v6  ;;  %v1122_v16 = vpop.f32.mrf.mxu0  ;;  %v522_v13 = vmul.f32 0.2, %v266_v0  ;;  %vm426_vm10 = vcmp.ge.f32.partialorder %v298_v4, 0.0 }
  0xda   : > { %v1123_v17 = vadd.f32 %v2396_v10, %v1122_v16  ;;  %v1218_v18 = vpop.f32.mrf.mxu1  ;;  %v1807_v21 = vsel %vm1551_vm4, %v1312_v5, %v1679_v14  ;;  %2145 = vmatmul.msk.f32.gmra.mxu2 %vm693_vm0, %v647_v8  ;;  %vm361_vm4 = vcmp.ge.f32.partialorder %v233_v53, 0.0  ;;  %v202_v5 = vld [vmem:[%s2259_s24 + $0xe0] sm:$0xff] }
  0xdb   : > { %v1839_v22 = vsel %vm1583_vm5, %v1408_v6, %v1711_v15  ;;  %2177 = vmatmul.msk.f32.gmra.mxu3 %vm693_vm0, %v679_v9  ;;  %v1219_v23 = vadd.f32 %v2396_v10, %v1218_v18  ;;  %1935 = vst [vmem:[%s2411_s29 + $0x240] sm:$0xff] %v1807_v21  ;;  %v617_v12 = vsel %vm361_vm4, %v233_v53, %v489_v60  ;;  %v234_v18 = vld [vmem:[%s2259_s24 + $0x1e0] sm:$0xff]  ;;  %v458_v20 = vmul.f32 0.2, %v202_v5 }
  0xdc   : > { %vm1488_vm7 = vcmp.ge.f32.partialorder %v1123_v17, 0.0  ;;  %v1616_v26 = vmul.f32 0.2, %v1123_v17  ;;  %2081 = vmatmul.msk.f32.gmra.mxu0 %vm693_vm0, %v583_v11  ;;  %1967 = vst [vmem:[%s2411_s29 + $0x340] sm:$0xff] %v1839_v22  ;;  %vm330_vm11 = vcmp.ge.f32.partialorder %v202_v5, 0.0 }
  0xdd   : > { %vm1520_vm8 = vcmp.ge.f32.partialorder %v1219_v23, 0.0  ;;  %v1648_v28 = vmul.f32 0.2, %v1219_v23  ;;  %2113 = vmatmul.msk.f32.gmra.mxu1 %vm693_vm0, %v615_v19  ;;  %v1314_v30 = vpop.f32.mrf.mxu2  ;;  %v490_v24 = vmul.f32 0.2, %v234_v18  ;;  %v586_v32 = vsel %vm330_vm11, %v202_v5, %v458_v20 }
  0xde   : > { %v1744_v29 = vsel %vm1488_vm7, %v1123_v17, %v1616_v26  ;;  %v1410_v31 = vpop.f32.mrf.mxu3  ;;  %v1315_v34 = vadd.f32 %v2396_v10, %v1314_v30  ;;  %vm394_vm7 = vcmp.ge.f32.partialorder %v266_v0, 0.0  ;;  %v554_v17 = vmul.f32 0.2, %v298_v4  ;;  %v2606_v26 = vld [vmem:[%s2806_s2] ss:$0 sm:$0xff] }
  0xdf   : > { %1872 = vst [vmem:[%s2411_s29 + $0x48] sm:$0xff] %v1744_v29  ;;  %v1776_v33 = vsel %vm1520_vm8, %v1219_v23, %v1648_v28  ;;  %v1411_v35 = vadd.f32 %v2396_v10, %v1410_v31  ;;  %v267_v29 = vld [vmem:[%s2259_s24 + $0x2e8] sm:$0xff]  ;;  %v650_v30 = vsel %vm394_vm7, %v266_v0, %v522_v13 }
  0xe0   : > { %1904 = vst [vmem:[%s2411_s29 + $0x148] sm:$0xff] %v1776_v33  ;;  %vm1552_vm12 = vcmp.ge.f32.partialorder %v1315_v34, 0.0  ;;  %v1680_v42 = vmul.f32 0.2, %v1315_v34  ;;  %v682_v31 = vsel %vm426_vm10, %v298_v4, %v554_v17  ;;  %v299_v33 = vld [vmem:[%s2259_s24 + $0x3e8] sm:$0xff] }
  0xe1   : > { %vm1584_vm13 = vcmp.ge.f32.partialorder %v1411_v35, 0.0  ;;  %v1712_v43 = vmul.f32 0.2, %v1411_v35  ;;  %v1125_v44 = vpop.f32.mrf.mxu0  ;;  %v523_v41 = vmul.f32 0.2, %v267_v29  ;;  %vm427_vm3 = vcmp.ge.f32.partialorder %v299_v33, 0.0 }
  0xe2   : > { %v1126_v45 = vadd.f32 %v2396_v10, %v1125_v44  ;;  %v1221_v46 = vpop.f32.mrf.mxu1  ;;  %v1808_v49 = vsel %vm1552_vm12, %v1315_v34, %v1680_v42  ;;  %2146 = vmatmul.msk.f32.gmra.mxu2 %vm693_vm0, %v648_v37  ;;  %vm362_vm12 = vcmp.ge.f32.partialorder %v234_v18, 0.0  ;;  %v203_v34 = vld [vmem:[%s2259_s24 + $0xe8] sm:$0xff] }
  0xe3   : > { %v1840_v50 = vsel %vm1584_vm13, %v1411_v35, %v1712_v43  ;;  %2178 = vmatmul.msk.f32.gmra.mxu3 %vm693_vm0, %v680_v38  ;;  %v1222_v51 = vadd.f32 %v2396_v10, %v1221_v46  ;;  %1936 = vst [vmem:[%s2411_s29 + $0x248] sm:$0xff] %v1808_v49  ;;  %v618_v40 = vsel %vm362_vm12, %v234_v18, %v490_v24  ;;  %v235_v46 = vld [vmem:[%s2259_s24 + $0x1e8] sm:$0xff]  ;;  %v459_v48 = vmul.f32 0.2, %v203_v34 }
  0xe4   : > { %vm1489_vm15 = vcmp.ge.f32.partialorder %v1126_v45, 0.0  ;;  %v1617_v54 = vmul.f32 0.2, %v1126_v45  ;;  %2082 = vmatmul.msk.f32.gmra.mxu0 %vm693_vm0, %v584_v39  ;;  %1968 = vst [vmem:[%s2411_s29 + $0x348] sm:$0xff] %v1840_v50  ;;  %vm331_vm4 = vcmp.ge.f32.partialorder %v203_v34, 0.0 }
  0xe5   : > { %vm1521_vm1 = vcmp.ge.f32.partialorder %v1222_v51, 0.0  ;;  %v1649_v56 = vmul.f32 0.2, %v1222_v51  ;;  %2114 = vmatmul.msk.f32.gmra.mxu1 %vm693_vm0, %v616_v47  ;;  %v1317_v58 = vpop.f32.mrf.mxu2  ;;  %v491_v53 = vmul.f32 0.2, %v235_v46  ;;  %v587_v60 = vsel %vm331_vm4, %v203_v34, %v459_v48 }
  0xe6   : > { %v1745_v57 = vsel %vm1489_vm15, %v1126_v45, %v1617_v54  ;;  %v1413_v59 = vpop.f32.mrf.mxu3  ;;  %v1318_v62 = vadd.f32 %v2396_v10, %v1317_v58  ;;  %vm395_vm15 = vcmp.ge.f32.partialorder %v267_v29, 0.0  ;;  %v555_v45 = vmul.f32 0.2, %v299_v33 }
  0xe7   : > { %1873 = vst [vmem:[%s2411_s29 + $0x50] sm:$0xff] %v1745_v57  ;;  %v1777_v61 = vsel %vm1521_vm1, %v1222_v51, %v1649_v56  ;;  %v1414_v63 = vadd.f32 %v2396_v10, %v1413_v59  ;;  %v268_v57 = vld [vmem:[%s2259_s24 + $0x2f0] sm:$0xff]  ;;  %v651_v58 = vsel %vm395_vm15, %v267_v29, %v523_v41 }
  0xe8   : > { %1905 = vst [vmem:[%s2411_s29 + $0x150] sm:$0xff] %v1777_v61  ;;  %vm1553_vm5 = vcmp.ge.f32.partialorder %v1318_v62, 0.0  ;;  %v1681_v6 = vmul.f32 0.2, %v1318_v62  ;;  %v683_v59 = vsel %vm427_vm3, %v299_v33, %v555_v45  ;;  %v300_v61 = vld [vmem:[%s2259_s24 + $0x3f0] sm:$0xff] }
  0xe9   : > { %vm1585_vm6 = vcmp.ge.f32.partialorder %v1414_v63, 0.0  ;;  %v1713_v7 = vmul.f32 0.2, %v1414_v63  ;;  %v1128_v8 = vpop.f32.mrf.mxu0  ;;  %v524_v5 = vmul.f32 0.2, %v268_v57  ;;  %vm428_vm11 = vcmp.ge.f32.partialorder %v300_v61, 0.0 }
  0xea   : > { %v1129_v9 = vadd.f32 %v2396_v10, %v1128_v8  ;;  %v1224_v11 = vpop.f32.mrf.mxu1  ;;  %v1809_v14 = vsel %vm1553_vm5, %v1318_v62, %v1681_v6  ;;  %2147 = vmatmul.msk.f32.gmra.mxu2 %vm693_vm0, %v649_v1  ;;  %vm363_vm5 = vcmp.ge.f32.partialorder %v235_v46, 0.0  ;;  %v204_v62 = vld [vmem:[%s2259_s24 + $0xf0] sm:$0xff] }
  0xeb   : > { %v1841_v15 = vsel %vm1585_vm6, %v1414_v63, %v1713_v7  ;;  %2179 = vmatmul.msk.f32.gmra.mxu3 %vm693_vm0, %v681_v2  ;;  %v1225_v16 = vadd.f32 %v2396_v10, %v1224_v11  ;;  %1937 = vst [vmem:[%s2411_s29 + $0x250] sm:$0xff] %v1809_v14  ;;  %v619_v4 = vsel %vm363_vm5, %v235_v46, %v491_v53  ;;  %v236_v11 = vld [vmem:[%s2259_s24 + $0x1f0] sm:$0xff]  ;;  %v460_v13 = vmul.f32 0.2, %v204_v62 }
  0xec   : > { %vm1490_vm8 = vcmp.ge.f32.partialorder %v1129_v9, 0.0  ;;  %v1618_v19 = vmul.f32 0.2, %v1129_v9  ;;  %2083 = vmatmul.msk.f32.gmra.mxu0 %vm693_vm0, %v585_v3  ;;  %1969 = vst [vmem:[%s2411_s29 + $0x350] sm:$0xff] %v1841_v15  ;;  %vm332_vm12 = vcmp.ge.f32.partialorder %v204_v62, 0.0 }
  0xed   : > { %vm1522_vm9 = vcmp.ge.f32.partialorder %v1225_v16, 0.0  ;;  %v1650_v21 = vmul.f32 0.2, %v1225_v16  ;;  %2115 = vmatmul.msk.f32.gmra.mxu1 %vm693_vm0, %v617_v12  ;;  %v1320_v22 = vpop.f32.mrf.mxu2  ;;  %v492_v18 = vmul.f32 0.2, %v236_v11  ;;  %v588_v24 = vsel %vm332_vm12, %v204_v62, %v460_v13 }
  0xee   : > { %v1746_v10 = vsel %vm1490_vm8, %v1129_v9, %v1618_v19  ;;  %v1416_v23 = vpop.f32.mrf.mxu3  ;;  %v1321_v27 = vadd.f32 %v2606_v26, %v1320_v22  ;;  %vm396_vm8 = vcmp.ge.f32.partialorder %v268_v57, 0.0  ;;  %v556_v9 = vmul.f32 0.2, %v300_v61 }
  0xef   : > { %1874 = vst [vmem:[%s2411_s29 + $0x58] sm:$0xff] %v1746_v10  ;;  %v1778_v25 = vsel %vm1522_vm9, %v1225_v16, %v1650_v21  ;;  %v1417_v28 = vadd.f32 %v2606_v26, %v1416_v23  ;;  %v269_v10 = vld [vmem:[%s2259_s24 + $0x2f8] sm:$0xff]  ;;  %v652_v22 = vsel %vm396_vm8, %v268_v57, %v524_v5 }
  0xf0   : > { %1906 = vst [vmem:[%s2411_s29 + $0x158] sm:$0xff] %v1778_v25  ;;  %vm1554_vm13 = vcmp.ge.f32.partialorder %v1321_v27, 0.0  ;;  %v1682_v35 = vmul.f32 0.2, %v1321_v27  ;;  %v684_v23 = vsel %vm428_vm11, %v300_v61, %v556_v9  ;;  %v301_v25 = vld [vmem:[%s2259_s24 + $0x3f8] sm:$0xff] }
  0xf1   : > { %vm1586_vm14 = vcmp.ge.f32.partialorder %v1417_v28, 0.0  ;;  %v1714_v36 = vmul.f32 0.2, %v1417_v28  ;;  %v1131_v37 = vpop.f32.mrf.mxu0  ;;  %v525_v34 = vmul.f32 0.2, %v269_v10  ;;  %vm429_vm4 = vcmp.ge.f32.partialorder %v301_v25, 0.0 }
  0xf2   : > { %v1132_v38 = vadd.f32 %v2606_v26, %v1131_v37  ;;  %v1227_v39 = vpop.f32.mrf.mxu1  ;;  %v1810_v42 = vsel %vm1554_vm13, %v1321_v27, %v1682_v35  ;;  %2148 = vmatmul.msk.f32.gmra.mxu2 %vm693_vm0, %v650_v30  ;;  %vm364_vm13 = vcmp.ge.f32.partialorder %v236_v11, 0.0  ;;  %v205_v27 = vld [vmem:[%s2259_s24 + $0xf8] sm:$0xff] }
  0xf3   : > { %v1842_v43 = vsel %vm1586_vm14, %v1417_v28, %v1714_v36  ;;  %2180 = vmatmul.msk.f32.gmra.mxu3 %vm693_vm0, %v682_v31  ;;  %v1228_v44 = vadd.f32 %v2606_v26, %v1227_v39  ;;  %1938 = vst [vmem:[%s2411_s29 + $0x258] sm:$0xff] %v1810_v42  ;;  %v620_v33 = vsel %vm364_vm13, %v236_v11, %v492_v18  ;;  %v237_v39 = vld [vmem:[%s2259_s24 + $0x1f8] sm:$0xff]  ;;  %v461_v41 = vmul.f32 0.2, %v205_v27 }
  0xf4   : > { %vm1491_vm1 = vcmp.ge.f32.partialorder %v1132_v38, 0.0  ;;  %v1619_v47 = vmul.f32 0.2, %v1132_v38  ;;  %2084 = vmatmul.msk.f32.gmra.mxu0 %vm693_vm0, %v586_v32  ;;  %1970 = vst [vmem:[%s2411_s29 + $0x358] sm:$0xff] %v1842_v43  ;;  %vm333_vm5 = vcmp.ge.f32.partialorder %v205_v27, 0.0 }
  0xf5   : > { %vm1523_vm2 = vcmp.ge.f32.partialorder %v1228_v44, 0.0  ;;  %v1651_v49 = vmul.f32 0.2, %v1228_v44  ;;  %2116 = vmatmul.msk.f32.gmra.mxu1 %vm693_vm0, %v618_v40  ;;  %v1323_v51 = vpop.f32.mrf.mxu2  ;;  %v493_v46 = vmul.f32 0.2, %v237_v39 }
  0xf6   : > { %v1747_v50 = vsel %vm1491_vm1, %v1132_v38, %v1619_v47  ;;  %v1419_v52 = vpop.f32.mrf.mxu3  ;;  %v1324_v55 = vadd.f32 %v2606_v26, %v1323_v51  ;;  %vm397_vm1 = vcmp.ge.f32.partialorder %v269_v10, 0.0  ;;  %v557_v38 = vmul.f32 0.2, %v301_v25 }
  0xf7   : > { %1875 = vst [vmem:[%s2411_s29 + $0x60] sm:$0xff] %v1747_v50  ;;  %v1779_v54 = vsel %vm1523_vm2, %v1228_v44, %v1651_v49  ;;  %v1420_v56 = vadd.f32 %v2606_v26, %v1419_v52  ;;  %v653_v50 = vsel %vm397_vm1, %v269_v10, %v525_v34  ;;  %v589_v52 = vsel %vm333_vm5, %v205_v27, %v461_v41 }
  0xf8   : > { %1907 = vst [vmem:[%s2411_s29 + $0x160] sm:$0xff] %v1779_v54  ;;  %vm1555_vm6 = vcmp.ge.f32.partialorder %v1324_v55, 0.0  ;;  %v1683_v63 = vmul.f32 0.2, %v1324_v55  ;;  %v685_v51 = vsel %vm429_vm4, %v301_v25, %v557_v38 }
  0xf9   : > { %vm1587_vm7 = vcmp.ge.f32.partialorder %v1420_v56, 0.0  ;;  %v1715_v0 = vmul.f32 0.2, %v1420_v56  ;;  %v1134_v1 = vpop.f32.mrf.mxu0 }
  0xfa   : > { %v1135_v2 = vadd.f32 %v2606_v26, %v1134_v1  ;;  %v1230_v3 = vpop.f32.mrf.mxu1  ;;  %v1811_v6 = vsel %vm1555_vm6, %v1324_v55, %v1683_v63  ;;  %2149 = vmatmul.msk.f32.gmra.mxu2 %vm693_vm0, %v651_v58  ;;  %vm365_vm6 = vcmp.ge.f32.partialorder %v237_v39, 0.0 }
  0xfb   : > { %v1843_v7 = vsel %vm1587_vm7, %v1420_v56, %v1715_v0  ;;  %2181 = vmatmul.msk.f32.gmra.mxu3 %vm693_vm0, %v683_v59  ;;  %v1231_v8 = vadd.f32 %v2606_v26, %v1230_v3  ;;  %1939 = vst [vmem:[%s2411_s29 + $0x260] sm:$0xff] %v1811_v6  ;;  %v621_v58 = vsel %vm365_vm6, %v237_v39, %v493_v46 }
  0xfc   : > { %vm1492_vm9 = vcmp.ge.f32.partialorder %v1135_v2, 0.0  ;;  %v1620_v12 = vmul.f32 0.2, %v1135_v2  ;;  %2085 = vmatmul.msk.f32.gmra.mxu0 %vm693_vm0, %v587_v60  ;;  %1971 = vst [vmem:[%s2411_s29 + $0x360] sm:$0xff] %v1843_v7 }
  0xfd   : > { %vm1524_vm10 = vcmp.ge.f32.partialorder %v1231_v8, 0.0  ;;  %v1652_v14 = vmul.f32 0.2, %v1231_v8  ;;  %2117 = vmatmul.msk.f32.gmra.mxu1 %vm693_vm0, %v619_v4  ;;  %v1326_v16 = vpop.f32.mrf.mxu2 }
  0xfe   : > { %v1748_v15 = vsel %vm1492_vm9, %v1135_v2, %v1620_v12  ;;  %v1422_v17 = vpop.f32.mrf.mxu3  ;;  %v1327_v20 = vadd.f32 %v2606_v26, %v1326_v16 }
  0xff   : > { %1876 = vst [vmem:[%s2411_s29 + $0x68] sm:$0xff] %v1748_v15  ;;  %v1780_v19 = vsel %vm1524_vm10, %v1231_v8, %v1652_v14  ;;  %v1423_v21 = vadd.f32 %v2606_v26, %v1422_v17 }
 0x100   : > { %1908 = vst [vmem:[%s2411_s29 + $0x168] sm:$0xff] %v1780_v19  ;;  %vm1556_vm14 = vcmp.ge.f32.partialorder %v1327_v20, 0.0  ;;  %v1684_v28 = vmul.f32 0.2, %v1327_v20 }
 0x101   : > { %vm1588_vm15 = vcmp.ge.f32.partialorder %v1423_v21, 0.0  ;;  %v1716_v29 = vmul.f32 0.2, %v1423_v21  ;;  %v1137_v30 = vpop.f32.mrf.mxu0 }
 0x102   : > { %v1138_v31 = vadd.f32 %v2606_v26, %v1137_v30  ;;  %v1233_v32 = vpop.f32.mrf.mxu1  ;;  %v1812_v35 = vsel %vm1556_vm14, %v1327_v20, %v1684_v28  ;;  %2150 = vmatmul.msk.f32.gmra.mxu2 %vm693_vm0, %v652_v22 }
 0x103   : > { %v1844_v36 = vsel %vm1588_vm15, %v1423_v21, %v1716_v29  ;;  %2182 = vmatmul.msk.f32.gmra.mxu3 %vm693_vm0, %v684_v23  ;;  %v1234_v37 = vadd.f32 %v2606_v26, %v1233_v32  ;;  %1940 = vst [vmem:[%s2411_s29 + $0x268] sm:$0xff] %v1812_v35 }
 0x104   : > { %vm1493_vm2 = vcmp.ge.f32.partialorder %v1138_v31, 0.0  ;;  %v1621_v40 = vmul.f32 0.2, %v1138_v31  ;;  %2086 = vmatmul.msk.f32.gmra.mxu0 %vm693_vm0, %v588_v24  ;;  %1972 = vst [vmem:[%s2411_s29 + $0x368] sm:$0xff] %v1844_v36 }
 0x105   : > { %vm1525_vm3 = vcmp.ge.f32.partialorder %v1234_v37, 0.0  ;;  %v1653_v42 = vmul.f32 0.2, %v1234_v37  ;;  %2118 = vmatmul.msk.f32.gmra.mxu1 %vm693_vm0, %v620_v33  ;;  %v1329_v44 = vpop.f32.mrf.mxu2 }
 0x106   : > { %v1749_v43 = vsel %vm1493_vm2, %v1138_v31, %v1621_v40  ;;  %v1425_v45 = vpop.f32.mrf.mxu3  ;;  %v1330_v48 = vadd.f32 %v2606_v26, %v1329_v44 }
 0x107   : > { %1877 = vst [vmem:[%s2411_s29 + $0x70] sm:$0xff] %v1749_v43  ;;  %v1781_v47 = vsel %vm1525_vm3, %v1234_v37, %v1653_v42  ;;  %v1426_v49 = vadd.f32 %v2606_v26, %v1425_v45 }
 0x108   : > { %1909 = vst [vmem:[%s2411_s29 + $0x170] sm:$0xff] %v1781_v47  ;;  %vm1557_vm7 = vcmp.ge.f32.partialorder %v1330_v48, 0.0  ;;  %v1685_v53 = vmul.f32 0.2, %v1330_v48 }
 0x109   : > { %vm1589_vm8 = vcmp.ge.f32.partialorder %v1426_v49, 0.0  ;;  %v1717_v54 = vmul.f32 0.2, %v1426_v49  ;;  %v1140_v55 = vpop.f32.mrf.mxu0 }
 0x10a   : > { %v1141_v56 = vadd.f32 %v2606_v26, %v1140_v55  ;;  %v1236_v57 = vpop.f32.mrf.mxu1  ;;  %v1813_v59 = vsel %vm1557_vm7, %v1330_v48, %v1685_v53  ;;  %2151 = vmatmul.msk.f32.gmra.mxu2 %vm693_vm0, %v653_v50 }
 0x10b   : > { %v1845_v60 = vsel %vm1589_vm8, %v1426_v49, %v1717_v54  ;;  %2183 = vmatmul.msk.f32.gmra.mxu3 %vm693_vm0, %v685_v51  ;;  %v1237_v61 = vadd.f32 %v2606_v26, %v1236_v57  ;;  %1941 = vst [vmem:[%s2411_s29 + $0x270] sm:$0xff] %v1813_v59 }
 0x10c   : > { %vm1494_vm9 = vcmp.ge.f32.partialorder %v1141_v56, 0.0  ;;  %v1622_v62 = vmul.f32 0.2, %v1141_v56  ;;  %2087 = vmatmul.msk.f32.gmra.mxu0 %vm693_vm0, %v589_v52  ;;  %1973 = vst [vmem:[%s2411_s29 + $0x370] sm:$0xff] %v1845_v60 }
 0x10d   : > { %vm1526_vm10 = vcmp.ge.f32.partialorder %v1237_v61, 0.0  ;;  %v1654_v63 = vmul.f32 0.2, %v1237_v61  ;;  %2119 = vmatmul.msk.f32.gmra.mxu1 %vm693_vm0, %v621_v58  ;;  %v1332_v1 = vpop.f32.mrf.mxu2 }
 0x10e   : > { %v1750_v0 = vsel %vm1494_vm9, %v1141_v56, %v1622_v62  ;;  %v1428_v2 = vpop.f32.mrf.mxu3  ;;  %v1333_v4 = vadd.f32 %v2606_v26, %v1332_v1 }
 0x10f   : > { %1878 = vst [vmem:[%s2411_s29 + $0x78] sm:$0xff] %v1750_v0  ;;  %v1782_v3 = vsel %vm1526_vm10, %v1237_v61, %v1654_v63  ;;  %v1429_v5 = vadd.f32 %v2606_v26, %v1428_v2 }
 0x110   : > { %1910 = vst [vmem:[%s2411_s29 + $0x178] sm:$0xff] %v1782_v3  ;;  %vm1558_vm11 = vcmp.ge.f32.partialorder %v1333_v4, 0.0  ;;  %v1686_v6 = vmul.f32 0.2, %v1333_v4 }
 0x111   : > { %vm1590_vm12 = vcmp.ge.f32.partialorder %v1429_v5, 0.0  ;;  %v1718_v7 = vmul.f32 0.2, %v1429_v5  ;;  %v1143_v8 = vpop.f32.mrf.mxu0 }
 0x112   : > { %v1144_v9 = vadd.f32 %v2606_v26, %v1143_v8  ;;  %v1239_v11 = vpop.f32.mrf.mxu1  ;;  %v1814_v12 = vsel %vm1558_vm11, %v1333_v4, %v1686_v6 }
 0x113   : > { %v1846_v13 = vsel %vm1590_vm12, %v1429_v5, %v1718_v7  ;;  %v1240_v14 = vadd.f32 %v2606_v26, %v1239_v11  ;;  %1942 = vst [vmem:[%s2411_s29 + $0x278] sm:$0xff] %v1814_v12 }
 0x114   : > { %vm1495_vm0 = vcmp.ge.f32.partialorder %v1144_v9, 0.0  ;;  %v1623_v15 = vmul.f32 0.2, %v1144_v9  ;;  %1974 = vst [vmem:[%s2411_s29 + $0x378] sm:$0xff] %v1846_v13 }
 0x115   : > { %vm1527_vm13 = vcmp.ge.f32.partialorder %v1240_v14, 0.0  ;;  %v1655_v16 = vmul.f32 0.2, %v1240_v14  ;;  %v1335_v18 = vpop.f32.mrf.mxu2 }
 0x116   : > { %v1751_v17 = vsel %vm1495_vm0, %v1144_v9, %v1623_v15  ;;  %v1431_v19 = vpop.f32.mrf.mxu3  ;;  %v1336_v21 = vadd.f32 %v2606_v26, %v1335_v18 }
 0x117   : > { %1879 = vst [vmem:[%s2411_s29 + $0x80] sm:$0xff] %v1751_v17  ;;  %v1783_v20 = vsel %vm1527_vm13, %v1240_v14, %v1655_v16  ;;  %v1432_v10 = vadd.f32 %v2606_v26, %v1431_v19 }
 0x118   : > { %1911 = vst [vmem:[%s2411_s29 + $0x180] sm:$0xff] %v1783_v20  ;;  %vm1559_vm14 = vcmp.ge.f32.partialorder %v1336_v21, 0.0  ;;  %v1687_v22 = vmul.f32 0.2, %v1336_v21 }
 0x119   : > { %vm1591_vm15 = vcmp.ge.f32.partialorder %v1432_v10, 0.0  ;;  %v1719_v23 = vmul.f32 0.2, %v1432_v10  ;;  %v1146_v24 = vpop.f32.mrf.mxu0 }
 0x11a   : > { %v1147_v25 = vadd.f32 %v2606_v26, %v1146_v24  ;;  %v1242_v27 = vpop.f32.mrf.mxu1  ;;  %v1815_v28 = vsel %vm1559_vm14, %v1336_v21, %v1687_v22 }
 0x11b   : > { %v1847_v29 = vsel %vm1591_vm15, %v1432_v10, %v1719_v23  ;;  %v1243_v30 = vadd.f32 %v2606_v26, %v1242_v27  ;;  %1943 = vst [vmem:[%s2411_s29 + $0x280] sm:$0xff] %v1815_v28 }
 0x11c   : > { %vm1496_vm1 = vcmp.ge.f32.partialorder %v1147_v25, 0.0  ;;  %v1624_v31 = vmul.f32 0.2, %v1147_v25  ;;  %1975 = vst [vmem:[%s2411_s29 + $0x380] sm:$0xff] %v1847_v29 }
 0x11d   : > { %vm1528_vm2 = vcmp.ge.f32.partialorder %v1243_v30, 0.0  ;;  %v1656_v32 = vmul.f32 0.2, %v1243_v30  ;;  %v1338_v34 = vpop.f32.mrf.mxu2 }
 0x11e   : > { %v1752_v33 = vsel %vm1496_vm1, %v1147_v25, %v1624_v31  ;;  %v1434_v35 = vpop.f32.mrf.mxu3  ;;  %v1339_v37 = vadd.f32 %v2606_v26, %v1338_v34 }
 0x11f   : > { %1880 = vst [vmem:[%s2411_s29 + $0x88] sm:$0xff] %v1752_v33  ;;  %v1784_v36 = vsel %vm1528_vm2, %v1243_v30, %v1656_v32  ;;  %v1435_v38 = vadd.f32 %v2606_v26, %v1434_v35 }
 0x120   : > { %1912 = vst [vmem:[%s2411_s29 + $0x188] sm:$0xff] %v1784_v36  ;;  %vm1560_vm3 = vcmp.ge.f32.partialorder %v1339_v37, 0.0  ;;  %v1688_v39 = vmul.f32 0.2, %v1339_v37 }
 0x121   : > { %vm1592_vm4 = vcmp.ge.f32.partialorder %v1435_v38, 0.0  ;;  %v1720_v40 = vmul.f32 0.2, %v1435_v38  ;;  %v1149_v41 = vpop.f32.mrf.mxu0 }
 0x122   : > { %v1150_v42 = vadd.f32 %v2606_v26, %v1149_v41  ;;  %v1245_v43 = vpop.f32.mrf.mxu1  ;;  %v1816_v44 = vsel %vm1560_vm3, %v1339_v37, %v1688_v39 }
 0x123   : > { %v1848_v45 = vsel %vm1592_vm4, %v1435_v38, %v1720_v40  ;;  %v1246_v46 = vadd.f32 %v2606_v26, %v1245_v43  ;;  %1944 = vst [vmem:[%s2411_s29 + $0x288] sm:$0xff] %v1816_v44 }
 0x124   : > { %vm1497_vm5 = vcmp.ge.f32.partialorder %v1150_v42, 0.0  ;;  %v1625_v47 = vmul.f32 0.2, %v1150_v42  ;;  %1976 = vst [vmem:[%s2411_s29 + $0x388] sm:$0xff] %v1848_v45 }
 0x125   : > { %vm1529_vm6 = vcmp.ge.f32.partialorder %v1246_v46, 0.0  ;;  %v1657_v48 = vmul.f32 0.2, %v1246_v46  ;;  %v1341_v50 = vpop.f32.mrf.mxu2 }
 0x126   : > { %v1753_v49 = vsel %vm1497_vm5, %v1150_v42, %v1625_v47  ;;  %v1437_v51 = vpop.f32.mrf.mxu3  ;;  %v1342_v53 = vadd.f32 %v2606_v26, %v1341_v50 }
 0x127   : > { %1881 = vst [vmem:[%s2411_s29 + $0x90] sm:$0xff] %v1753_v49  ;;  %v1785_v52 = vsel %vm1529_vm6, %v1246_v46, %v1657_v48  ;;  %v1438_v54 = vadd.f32 %v2606_v26, %v1437_v51 }
 0x128   : > { %1913 = vst [vmem:[%s2411_s29 + $0x190] sm:$0xff] %v1785_v52  ;;  %vm1561_vm7 = vcmp.ge.f32.partialorder %v1342_v53, 0.0  ;;  %v1689_v55 = vmul.f32 0.2, %v1342_v53 }
 0x129   : > { %vm1593_vm8 = vcmp.ge.f32.partialorder %v1438_v54, 0.0  ;;  %v1721_v56 = vmul.f32 0.2, %v1438_v54  ;;  %v1152_v57 = vpop.f32.mrf.mxu0 }
 0x12a   : > { %v1153_v58 = vadd.f32 %v2606_v26, %v1152_v57  ;;  %v1248_v59 = vpop.f32.mrf.mxu1  ;;  %v1817_v60 = vsel %vm1561_vm7, %v1342_v53, %v1689_v55 }
 0x12b   : > { %v1849_v61 = vsel %vm1593_vm8, %v1438_v54, %v1721_v56  ;;  %v1249_v62 = vadd.f32 %v2606_v26, %v1248_v59  ;;  %1945 = vst [vmem:[%s2411_s29 + $0x290] sm:$0xff] %v1817_v60 }
 0x12c   : > { %vm1498_vm9 = vcmp.ge.f32.partialorder %v1153_v58, 0.0  ;;  %v1626_v63 = vmul.f32 0.2, %v1153_v58  ;;  %1977 = vst [vmem:[%s2411_s29 + $0x390] sm:$0xff] %v1849_v61 }
 0x12d   : > { %vm1530_vm10 = vcmp.ge.f32.partialorder %v1249_v62, 0.0  ;;  %v1658_v0 = vmul.f32 0.2, %v1249_v62  ;;  %v1344_v2 = vpop.f32.mrf.mxu2 }
 0x12e   : > { %v1754_v1 = vsel %vm1498_vm9, %v1153_v58, %v1626_v63  ;;  %v1440_v3 = vpop.f32.mrf.mxu3  ;;  %v1345_v5 = vadd.f32 %v2606_v26, %v1344_v2 }
 0x12f   : > { %1882 = vst [vmem:[%s2411_s29 + $0x98] sm:$0xff] %v1754_v1  ;;  %v1786_v4 = vsel %vm1530_vm10, %v1249_v62, %v1658_v0  ;;  %v1441_v6 = vadd.f32 %v2606_v26, %v1440_v3 }
 0x130   : > { %1914 = vst [vmem:[%s2411_s29 + $0x198] sm:$0xff] %v1786_v4  ;;  %vm1562_vm11 = vcmp.ge.f32.partialorder %v1345_v5, 0.0  ;;  %v1690_v7 = vmul.f32 0.2, %v1345_v5 }
 0x131   : > { %vm1594_vm12 = vcmp.ge.f32.partialorder %v1441_v6, 0.0  ;;  %v1722_v8 = vmul.f32 0.2, %v1441_v6  ;;  %v1155_v9 = vpop.f32.mrf.mxu0 }
 0x132   : > { %v1156_v11 = vadd.f32 %v2606_v26, %v1155_v9  ;;  %v1251_v12 = vpop.f32.mrf.mxu1  ;;  %v1818_v13 = vsel %vm1562_vm11, %v1345_v5, %v1690_v7 }
 0x133   : > { %v1850_v14 = vsel %vm1594_vm12, %v1441_v6, %v1722_v8  ;;  %v1252_v15 = vadd.f32 %v2606_v26, %v1251_v12  ;;  %1946 = vst [vmem:[%s2411_s29 + $0x298] sm:$0xff] %v1818_v13 }
 0x134   : > { %vm1499_vm0 = vcmp.ge.f32.partialorder %v1156_v11, 0.0  ;;  %v1627_v16 = vmul.f32 0.2, %v1156_v11  ;;  %1978 = vst [vmem:[%s2411_s29 + $0x398] sm:$0xff] %v1850_v14 }
 0x135   : > { %vm1531_vm13 = vcmp.ge.f32.partialorder %v1252_v15, 0.0  ;;  %v1659_v17 = vmul.f32 0.2, %v1252_v15  ;;  %v1347_v19 = vpop.f32.mrf.mxu2 }
 0x136   : > { %v1755_v18 = vsel %vm1499_vm0, %v1156_v11, %v1627_v16  ;;  %v1443_v20 = vpop.f32.mrf.mxu3  ;;  %v1348_v10 = vadd.f32 %v2606_v26, %v1347_v19 }
 0x137   : > { %1883 = vst [vmem:[%s2411_s29 + $0xa0] sm:$0xff] %v1755_v18  ;;  %v1787_v21 = vsel %vm1531_vm13, %v1252_v15, %v1659_v17  ;;  %v1444_v22 = vadd.f32 %v2606_v26, %v1443_v20 }
 0x138   : > { %1915 = vst [vmem:[%s2411_s29 + $0x1a0] sm:$0xff] %v1787_v21  ;;  %vm1563_vm14 = vcmp.ge.f32.partialorder %v1348_v10, 0.0  ;;  %v1691_v23 = vmul.f32 0.2, %v1348_v10 }
 0x139   : > { %vm1595_vm15 = vcmp.ge.f32.partialorder %v1444_v22, 0.0  ;;  %v1723_v24 = vmul.f32 0.2, %v1444_v22  ;;  %v1158_v25 = vpop.f32.mrf.mxu0 }
 0x13a   : > { %v1159_v27 = vadd.f32 %v2606_v26, %v1158_v25  ;;  %v1254_v28 = vpop.f32.mrf.mxu1  ;;  %v1819_v29 = vsel %vm1563_vm14, %v1348_v10, %v1691_v23 }
 0x13b   : > { %v1851_v30 = vsel %vm1595_vm15, %v1444_v22, %v1723_v24  ;;  %v1255_v31 = vadd.f32 %v2606_v26, %v1254_v28  ;;  %1947 = vst [vmem:[%s2411_s29 + $0x2a0] sm:$0xff] %v1819_v29 }
 0x13c   : > { %vm1500_vm1 = vcmp.ge.f32.partialorder %v1159_v27, 0.0  ;;  %v1628_v32 = vmul.f32 0.2, %v1159_v27  ;;  %1979 = vst [vmem:[%s2411_s29 + $0x3a0] sm:$0xff] %v1851_v30 }
 0x13d   : > { %vm1532_vm2 = vcmp.ge.f32.partialorder %v1255_v31, 0.0  ;;  %v1660_v33 = vmul.f32 0.2, %v1255_v31  ;;  %v1350_v35 = vpop.f32.mrf.mxu2 }
 0x13e   : > { %v1756_v34 = vsel %vm1500_vm1, %v1159_v27, %v1628_v32  ;;  %v1446_v36 = vpop.f32.mrf.mxu3  ;;  %v1351_v38 = vadd.f32 %v2606_v26, %v1350_v35 }
 0x13f   : > { %1884 = vst [vmem:[%s2411_s29 + $0xa8] sm:$0xff] %v1756_v34  ;;  %v1788_v37 = vsel %vm1532_vm2, %v1255_v31, %v1660_v33  ;;  %v1447_v39 = vadd.f32 %v2606_v26, %v1446_v36 }
 0x140   : > { %1916 = vst [vmem:[%s2411_s29 + $0x1a8] sm:$0xff] %v1788_v37  ;;  %vm1564_vm3 = vcmp.ge.f32.partialorder %v1351_v38, 0.0  ;;  %v1692_v40 = vmul.f32 0.2, %v1351_v38 }
 0x141   : > { %vm1596_vm4 = vcmp.ge.f32.partialorder %v1447_v39, 0.0  ;;  %v1724_v41 = vmul.f32 0.2, %v1447_v39  ;;  %v1161_v42 = vpop.f32.mrf.mxu0 }
 0x142   : > { %v1162_v43 = vadd.f32 %v2606_v26, %v1161_v42  ;;  %v1257_v44 = vpop.f32.mrf.mxu1  ;;  %v1820_v45 = vsel %vm1564_vm3, %v1351_v38, %v1692_v40 }
 0x143   : > { %v1852_v46 = vsel %vm1596_vm4, %v1447_v39, %v1724_v41  ;;  %v1258_v47 = vadd.f32 %v2606_v26, %v1257_v44  ;;  %1948 = vst [vmem:[%s2411_s29 + $0x2a8] sm:$0xff] %v1820_v45 }
 0x144   : > { %vm1501_vm5 = vcmp.ge.f32.partialorder %v1162_v43, 0.0  ;;  %v1629_v48 = vmul.f32 0.2, %v1162_v43  ;;  %1980 = vst [vmem:[%s2411_s29 + $0x3a8] sm:$0xff] %v1852_v46 }
 0x145   : > { %vm1533_vm6 = vcmp.ge.f32.partialorder %v1258_v47, 0.0  ;;  %v1661_v49 = vmul.f32 0.2, %v1258_v47  ;;  %v1353_v51 = vpop.f32.mrf.mxu2 }
 0x146   : > { %v1757_v50 = vsel %vm1501_vm5, %v1162_v43, %v1629_v48  ;;  %v1449_v52 = vpop.f32.mrf.mxu3  ;;  %v1354_v54 = vadd.f32 %v2606_v26, %v1353_v51 }
 0x147   : > { %1885 = vst [vmem:[%s2411_s29 + $0xb0] sm:$0xff] %v1757_v50  ;;  %v1789_v53 = vsel %vm1533_vm6, %v1258_v47, %v1661_v49  ;;  %v1450_v55 = vadd.f32 %v2606_v26, %v1449_v52 }
 0x148   : > { %1917 = vst [vmem:[%s2411_s29 + $0x1b0] sm:$0xff] %v1789_v53  ;;  %vm1565_vm7 = vcmp.ge.f32.partialorder %v1354_v54, 0.0  ;;  %v1693_v56 = vmul.f32 0.2, %v1354_v54 }
 0x149   : > { %vm1597_vm8 = vcmp.ge.f32.partialorder %v1450_v55, 0.0  ;;  %v1725_v57 = vmul.f32 0.2, %v1450_v55  ;;  %v1164_v58 = vpop.f32.mrf.mxu0 }
 0x14a   : > { %v1165_v59 = vadd.f32 %v2606_v26, %v1164_v58  ;;  %v1260_v60 = vpop.f32.mrf.mxu1  ;;  %v1821_v61 = vsel %vm1565_vm7, %v1354_v54, %v1693_v56 }
 0x14b   : > { %v1853_v62 = vsel %vm1597_vm8, %v1450_v55, %v1725_v57  ;;  %v1261_v63 = vadd.f32 %v2606_v26, %v1260_v60  ;;  %1949 = vst [vmem:[%s2411_s29 + $0x2b0] sm:$0xff] %v1821_v61 }
 0x14c   : > { %vm1502_vm9 = vcmp.ge.f32.partialorder %v1165_v59, 0.0  ;;  %v1630_v0 = vmul.f32 0.2, %v1165_v59  ;;  %1981 = vst [vmem:[%s2411_s29 + $0x3b0] sm:$0xff] %v1853_v62 }
 0x14d   : > { %vm1534_vm10 = vcmp.ge.f32.partialorder %v1261_v63, 0.0  ;;  %v1662_v1 = vmul.f32 0.2, %v1261_v63  ;;  %v1356_v3 = vpop.f32.mrf.mxu2 }
 0x14e   : > { %v1758_v2 = vsel %vm1502_vm9, %v1165_v59, %v1630_v0  ;;  %v1452_v4 = vpop.f32.mrf.mxu3  ;;  %v1357_v6 = vadd.f32 %v2606_v26, %v1356_v3 }
 0x14f   : > { %1886 = vst [vmem:[%s2411_s29 + $0xb8] sm:$0xff] %v1758_v2  ;;  %v1790_v5 = vsel %vm1534_vm10, %v1261_v63, %v1662_v1  ;;  %v1453_v7 = vadd.f32 %v2606_v26, %v1452_v4 }
 0x150   : > { %1918 = vst [vmem:[%s2411_s29 + $0x1b8] sm:$0xff] %v1790_v5  ;;  %vm1566_vm11 = vcmp.ge.f32.partialorder %v1357_v6, 0.0  ;;  %v1694_v8 = vmul.f32 0.2, %v1357_v6 }
 0x151   : > { %vm1598_vm12 = vcmp.ge.f32.partialorder %v1453_v7, 0.0  ;;  %v1726_v9 = vmul.f32 0.2, %v1453_v7  ;;  %v1167_v11 = vpop.f32.mrf.mxu0 }
 0x152   : > { %v1168_v12 = vadd.f32 %v2606_v26, %v1167_v11  ;;  %v1263_v13 = vpop.f32.mrf.mxu1  ;;  %v1822_v14 = vsel %vm1566_vm11, %v1357_v6, %v1694_v8 }
 0x153   : > { %v1854_v15 = vsel %vm1598_vm12, %v1453_v7, %v1726_v9  ;;  %v1264_v16 = vadd.f32 %v2606_v26, %v1263_v13  ;;  %1950 = vst [vmem:[%s2411_s29 + $0x2b8] sm:$0xff] %v1822_v14 }
 0x154   : > { %vm1503_vm0 = vcmp.ge.f32.partialorder %v1168_v12, 0.0  ;;  %v1631_v17 = vmul.f32 0.2, %v1168_v12  ;;  %1982 = vst [vmem:[%s2411_s29 + $0x3b8] sm:$0xff] %v1854_v15 }
 0x155   : > { %vm1535_vm13 = vcmp.ge.f32.partialorder %v1264_v16, 0.0  ;;  %v1663_v18 = vmul.f32 0.2, %v1264_v16  ;;  %v1359_v20 = vpop.f32.mrf.mxu2 }
 0x156   : > { %v1759_v19 = vsel %vm1503_vm0, %v1168_v12, %v1631_v17  ;;  %v1455_v21 = vpop.f32.mrf.mxu3  ;;  %v1360_v22 = vadd.f32 %v2606_v26, %v1359_v20 }
 0x157   : > { %1887 = vst [vmem:[%s2411_s29 + $0xc0] sm:$0xff] %v1759_v19  ;;  %v1791_v10 = vsel %vm1535_vm13, %v1264_v16, %v1663_v18  ;;  %v1456_v23 = vadd.f32 %v2606_v26, %v1455_v21 }
 0x158   : > { %1919 = vst [vmem:[%s2411_s29 + $0x1c0] sm:$0xff] %v1791_v10  ;;  %vm1567_vm14 = vcmp.ge.f32.partialorder %v1360_v22, 0.0  ;;  %v1695_v24 = vmul.f32 0.2, %v1360_v22 }
 0x159   : > { %vm1599_vm15 = vcmp.ge.f32.partialorder %v1456_v23, 0.0  ;;  %v1727_v25 = vmul.f32 0.2, %v1456_v23  ;;  %v1170_v27 = vpop.f32.mrf.mxu0 }
 0x15a   : > { %v1171_v28 = vadd.f32 %v2606_v26, %v1170_v27  ;;  %v1266_v29 = vpop.f32.mrf.mxu1  ;;  %v1823_v30 = vsel %vm1567_vm14, %v1360_v22, %v1695_v24 }
 0x15b   : > { %v1855_v31 = vsel %vm1599_vm15, %v1456_v23, %v1727_v25  ;;  %v1267_v32 = vadd.f32 %v2606_v26, %v1266_v29  ;;  %1951 = vst [vmem:[%s2411_s29 + $0x2c0] sm:$0xff] %v1823_v30 }
 0x15c   : > { %vm1504_vm1 = vcmp.ge.f32.partialorder %v1171_v28, 0.0  ;;  %v1632_v33 = vmul.f32 0.2, %v1171_v28  ;;  %1983 = vst [vmem:[%s2411_s29 + $0x3c0] sm:$0xff] %v1855_v31 }
 0x15d   : > { %vm1536_vm2 = vcmp.ge.f32.partialorder %v1267_v32, 0.0  ;;  %v1664_v34 = vmul.f32 0.2, %v1267_v32  ;;  %v1362_v36 = vpop.f32.mrf.mxu2 }
 0x15e   : > { %v1760_v35 = vsel %vm1504_vm1, %v1171_v28, %v1632_v33  ;;  %v1458_v37 = vpop.f32.mrf.mxu3  ;;  %v1363_v39 = vadd.f32 %v2606_v26, %v1362_v36 }
 0x15f   : > { %1888 = vst [vmem:[%s2411_s29 + $0xc8] sm:$0xff] %v1760_v35  ;;  %v1792_v38 = vsel %vm1536_vm2, %v1267_v32, %v1664_v34  ;;  %v1459_v40 = vadd.f32 %v2606_v26, %v1458_v37 }
 0x160   : > { %1920 = vst [vmem:[%s2411_s29 + $0x1c8] sm:$0xff] %v1792_v38  ;;  %vm1568_vm3 = vcmp.ge.f32.partialorder %v1363_v39, 0.0  ;;  %v1696_v41 = vmul.f32 0.2, %v1363_v39 }
 0x161   : > { %vm1600_vm4 = vcmp.ge.f32.partialorder %v1459_v40, 0.0  ;;  %v1728_v42 = vmul.f32 0.2, %v1459_v40  ;;  %v1173_v43 = vpop.f32.mrf.mxu0 }
 0x162   : > { %v1174_v44 = vadd.f32 %v2606_v26, %v1173_v43  ;;  %v1269_v45 = vpop.f32.mrf.mxu1  ;;  %v1824_v46 = vsel %vm1568_vm3, %v1363_v39, %v1696_v41 }
 0x163   : > { %v1856_v47 = vsel %vm1600_vm4, %v1459_v40, %v1728_v42  ;;  %v1270_v48 = vadd.f32 %v2606_v26, %v1269_v45  ;;  %1952 = vst [vmem:[%s2411_s29 + $0x2c8] sm:$0xff] %v1824_v46 }
 0x164   : > { %vm1505_vm5 = vcmp.ge.f32.partialorder %v1174_v44, 0.0  ;;  %v1633_v49 = vmul.f32 0.2, %v1174_v44  ;;  %1984 = vst [vmem:[%s2411_s29 + $0x3c8] sm:$0xff] %v1856_v47 }
 0x165   : > { %vm1537_vm6 = vcmp.ge.f32.partialorder %v1270_v48, 0.0  ;;  %v1665_v50 = vmul.f32 0.2, %v1270_v48  ;;  %v1365_v52 = vpop.f32.mrf.mxu2 }
 0x166   : > { %v1761_v51 = vsel %vm1505_vm5, %v1174_v44, %v1633_v49  ;;  %v1461_v53 = vpop.f32.mrf.mxu3  ;;  %v1366_v55 = vadd.f32 %v2606_v26, %v1365_v52  ;;  %v2205_v49 = vld [vmem:[%s2806_s2] ss:$0 sm:$0xff] }
 0x167   : > { %1889 = vst [vmem:[%s2411_s29 + $0xd0] sm:$0xff] %v1761_v51  ;;  %v1793_v54 = vsel %vm1537_vm6, %v1270_v48, %v1665_v50  ;;  %v1462_v56 = vadd.f32 %v2606_v26, %v1461_v53 }
 0x168   : > { %1921 = vst [vmem:[%s2411_s29 + $0x1d0] sm:$0xff] %v1793_v54  ;;  %vm1569_vm7 = vcmp.ge.f32.partialorder %v1366_v55, 0.0  ;;  %v1697_v57 = vmul.f32 0.2, %v1366_v55 }
 0x169   : > { %vm1601_vm8 = vcmp.ge.f32.partialorder %v1462_v56, 0.0  ;;  %v1729_v58 = vmul.f32 0.2, %v1462_v56  ;;  %v1176_v59 = vpop.f32.mrf.mxu0 }
 0x16a   : > { %v1177_v60 = vadd.f32 %v2606_v26, %v1176_v59  ;;  %v1272_v61 = vpop.f32.mrf.mxu1  ;;  %v1825_v62 = vsel %vm1569_vm7, %v1366_v55, %v1697_v57 }
 0x16b   : > { %v1857_v63 = vsel %vm1601_vm8, %v1462_v56, %v1729_v58  ;;  %v1273_v0 = vadd.f32 %v2606_v26, %v1272_v61  ;;  %1953 = vst [vmem:[%s2411_s29 + $0x2d0] sm:$0xff] %v1825_v62 }
 0x16c   : > { %vm1506_vm9 = vcmp.ge.f32.partialorder %v1177_v60, 0.0  ;;  %v1634_v1 = vmul.f32 0.2, %v1177_v60  ;;  %1985 = vst [vmem:[%s2411_s29 + $0x3d0] sm:$0xff] %v1857_v63 }
 0x16d   : > { %vm1538_vm10 = vcmp.ge.f32.partialorder %v1273_v0, 0.0  ;;  %v1666_v2 = vmul.f32 0.2, %v1273_v0  ;;  %v1368_v4 = vpop.f32.mrf.mxu2 }
 0x16e   : > { %v1762_v3 = vsel %vm1506_vm9, %v1177_v60, %v1634_v1  ;;  %v1464_v5 = vpop.f32.mrf.mxu3  ;;  %v1369_v7 = vadd.f32 %v2606_v26, %v1368_v4 }
 0x16f   : > { %1890 = vst [vmem:[%s2411_s29 + $0xd8] sm:$0xff] %v1762_v3  ;;  %v1794_v6 = vsel %vm1538_vm10, %v1273_v0, %v1666_v2  ;;  %v1465_v8 = vadd.f32 %v2606_v26, %v1464_v5 }
 0x170   : > { %1922 = vst [vmem:[%s2411_s29 + $0x1d8] sm:$0xff] %v1794_v6  ;;  %vm1570_vm11 = vcmp.ge.f32.partialorder %v1369_v7, 0.0  ;;  %v1698_v9 = vmul.f32 0.2, %v1369_v7 }
 0x171   : > { %vm1602_vm12 = vcmp.ge.f32.partialorder %v1465_v8, 0.0  ;;  %v1730_v11 = vmul.f32 0.2, %v1465_v8  ;;  %v1179_v12 = vpop.f32.mrf.mxu0 }
 0x172   : > { %v1180_v13 = vadd.f32 %v2606_v26, %v1179_v12  ;;  %v1275_v14 = vpop.f32.mrf.mxu1  ;;  %v1826_v15 = vsel %vm1570_vm11, %v1369_v7, %v1698_v9 }
 0x173   : > { %v1858_v16 = vsel %vm1602_vm12, %v1465_v8, %v1730_v11  ;;  %v1276_v17 = vadd.f32 %v2606_v26, %v1275_v14  ;;  %1954 = vst [vmem:[%s2411_s29 + $0x2d8] sm:$0xff] %v1826_v15 }
 0x174   : > { %vm1507_vm0 = vcmp.ge.f32.partialorder %v1180_v13, 0.0  ;;  %v1635_v18 = vmul.f32 0.2, %v1180_v13  ;;  %1986 = vst [vmem:[%s2411_s29 + $0x3d8] sm:$0xff] %v1858_v16 }
 0x175   : > { %vm1539_vm13 = vcmp.ge.f32.partialorder %v1276_v17, 0.0  ;;  %v1667_v19 = vmul.f32 0.2, %v1276_v17  ;;  %v1371_v21 = vpop.f32.mrf.mxu2 }
 0x176   : > { %v1763_v20 = vsel %vm1507_vm0, %v1180_v13, %v1635_v18  ;;  %v1467_v10 = vpop.f32.mrf.mxu3  ;;  %v1372_v23 = vadd.f32 %v2606_v26, %v1371_v21 }
 0x177   : > { %1891 = vst [vmem:[%s2411_s29 + $0xe0] sm:$0xff] %v1763_v20  ;;  %v1795_v22 = vsel %vm1539_vm13, %v1276_v17, %v1667_v19  ;;  %v1468_v24 = vadd.f32 %v2606_v26, %v1467_v10 }
 0x178   : > { %1923 = vst [vmem:[%s2411_s29 + $0x1e0] sm:$0xff] %v1795_v22  ;;  %vm1571_vm14 = vcmp.ge.f32.partialorder %v1372_v23, 0.0  ;;  %v1699_v25 = vmul.f32 0.2, %v1372_v23 }
 0x179   : > { %vm1603_vm15 = vcmp.ge.f32.partialorder %v1468_v24, 0.0  ;;  %v1731_v27 = vmul.f32 0.2, %v1468_v24  ;;  %v1182_v28 = vpop.f32.mrf.mxu0 }
 0x17a   : > { %v1183_v29 = vadd.f32 %v2606_v26, %v1182_v28  ;;  %v1278_v30 = vpop.f32.mrf.mxu1  ;;  %v1827_v31 = vsel %vm1571_vm14, %v1372_v23, %v1699_v25 }
 0x17b   : > { %v1859_v32 = vsel %vm1603_vm15, %v1468_v24, %v1731_v27  ;;  %v1279_v33 = vadd.f32 %v2606_v26, %v1278_v30  ;;  %1955 = vst [vmem:[%s2411_s29 + $0x2e0] sm:$0xff] %v1827_v31 }
 0x17c   : > { %vm1508_vm1 = vcmp.ge.f32.partialorder %v1183_v29, 0.0  ;;  %v1636_v34 = vmul.f32 0.2, %v1183_v29  ;;  %1987 = vst [vmem:[%s2411_s29 + $0x3e0] sm:$0xff] %v1859_v32 }
 0x17d   : > { %vm1540_vm2 = vcmp.ge.f32.partialorder %v1279_v33, 0.0  ;;  %v1668_v35 = vmul.f32 0.2, %v1279_v33  ;;  %v1374_v37 = vpop.f32.mrf.mxu2 }
 0x17e   : > { %v1764_v36 = vsel %vm1508_vm1, %v1183_v29, %v1636_v34  ;;  %v1470_v38 = vpop.f32.mrf.mxu3  ;;  %v1375_v40 = vadd.f32 %v2606_v26, %v1374_v37 }
 0x17f   : > { %1892 = vst [vmem:[%s2411_s29 + $0xe8] sm:$0xff] %v1764_v36  ;;  %v1796_v39 = vsel %vm1540_vm2, %v1279_v33, %v1668_v35  ;;  %v1471_v41 = vadd.f32 %v2606_v26, %v1470_v38 }
 0x180   : > { %1924 = vst [vmem:[%s2411_s29 + $0x1e8] sm:$0xff] %v1796_v39  ;;  %vm1572_vm3 = vcmp.ge.f32.partialorder %v1375_v40, 0.0  ;;  %v1700_v42 = vmul.f32 0.2, %v1375_v40 }
 0x181   : > { %vm1604_vm4 = vcmp.ge.f32.partialorder %v1471_v41, 0.0  ;;  %v1732_v43 = vmul.f32 0.2, %v1471_v41  ;;  %v1185_v44 = vpop.f32.mrf.mxu0 }
 0x182   : > { %v1186_v45 = vadd.f32 %v2606_v26, %v1185_v44  ;;  %v1281_v46 = vpop.f32.mrf.mxu1  ;;  %v1828_v47 = vsel %vm1572_vm3, %v1375_v40, %v1700_v42 }
 0x183   : > { %v1860_v48 = vsel %vm1604_vm4, %v1471_v41, %v1732_v43  ;;  %v1282_v50 = vadd.f32 %v2205_v49, %v1281_v46  ;;  %1956 = vst [vmem:[%s2411_s29 + $0x2e8] sm:$0xff] %v1828_v47 }
 0x184   : > { %vm1509_vm5 = vcmp.ge.f32.partialorder %v1186_v45, 0.0  ;;  %v1637_v51 = vmul.f32 0.2, %v1186_v45  ;;  %1988 = vst [vmem:[%s2411_s29 + $0x3e8] sm:$0xff] %v1860_v48 }
 0x185   : > { %vm1541_vm6 = vcmp.ge.f32.partialorder %v1282_v50, 0.0  ;;  %v1669_v52 = vmul.f32 0.2, %v1282_v50  ;;  %v1377_v54 = vpop.f32.mrf.mxu2 }
 0x186   : > { %v1765_v53 = vsel %vm1509_vm5, %v1186_v45, %v1637_v51  ;;  %v1473_v55 = vpop.f32.mrf.mxu3  ;;  %v1378_v56 = vadd.f32 %v2205_v49, %v1377_v54 }
 0x187   : > { %1893 = vst [vmem:[%s2411_s29 + $0xf0] sm:$0xff] %v1765_v53  ;;  %v1797_v26 = vsel %vm1541_vm6, %v1282_v50, %v1669_v52  ;;  %v1474_v57 = vadd.f32 %v2205_v49, %v1473_v55 }
 0x188   : > { %1925 = vst [vmem:[%s2411_s29 + $0x1f0] sm:$0xff] %v1797_v26  ;;  %vm1573_vm7 = vcmp.ge.f32.partialorder %v1378_v56, 0.0  ;;  %v1701_v58 = vmul.f32 0.2, %v1378_v56 }
 0x189   : > { %vm1605_vm8 = vcmp.ge.f32.partialorder %v1474_v57, 0.0  ;;  %v1733_v59 = vmul.f32 0.2, %v1474_v57  ;;  %v1188_v60 = vpop.f32.mrf.mxu0 }
 0x18a   : > { %v1189_v61 = vadd.f32 %v2205_v49, %v1188_v60  ;;  %v1284_v62 = vpop.f32.mrf.mxu1  ;;  %v1829_v63 = vsel %vm1573_vm7, %v1378_v56, %v1701_v58 }
 0x18b   : > { %v1861_v0 = vsel %vm1605_vm8, %v1474_v57, %v1733_v59  ;;  %v1285_v1 = vadd.f32 %v2205_v49, %v1284_v62  ;;  %1957 = vst [vmem:[%s2411_s29 + $0x2f0] sm:$0xff] %v1829_v63 }
 0x18c   : > { %vm1510_vm9 = vcmp.ge.f32.partialorder %v1189_v61, 0.0  ;;  %v1638_v2 = vmul.f32 0.2, %v1189_v61  ;;  %1989 = vst [vmem:[%s2411_s29 + $0x3f0] sm:$0xff] %v1861_v0 }
 0x18d   : > { %vm1542_vm10 = vcmp.ge.f32.partialorder %v1285_v1, 0.0  ;;  %v1670_v3 = vmul.f32 0.2, %v1285_v1  ;;  %v1380_v5 = vpop.f32.mrf.mxu2 }
 0x18e   : > { %v1766_v4 = vsel %vm1510_vm9, %v1189_v61, %v1638_v2  ;;  %v1476_v6 = vpop.f32.mrf.mxu3  ;;  %v1381_v8 = vadd.f32 %v2205_v49, %v1380_v5 }
 0x18f   : > { %1894 = vst [vmem:[%s2411_s29 + $0xf8] sm:$0xff] %v1766_v4  ;;  %v1798_v7 = vsel %vm1542_vm10, %v1285_v1, %v1670_v3  ;;  %v1477_v9 = vadd.f32 %v2205_v49, %v1476_v6 }
 0x190   : > { %1926 = vst [vmem:[%s2411_s29 + $0x1f8] sm:$0xff] %v1798_v7  ;;  %vm1574_vm11 = vcmp.ge.f32.partialorder %v1381_v8, 0.0  ;;  %v1702_v11 = vmul.f32 0.2, %v1381_v8 }
 0x191   : > { %vm1606_vm12 = vcmp.ge.f32.partialorder %v1477_v9, 0.0  ;;  %v1734_v12 = vmul.f32 0.2, %v1477_v9 }
 0x192   : > { %v1830_v13 = vsel %vm1574_vm11, %v1381_v8, %v1702_v11 }
 0x193   : > { %v1862_v14 = vsel %vm1606_vm12, %v1477_v9, %v1734_v12  ;;  %1958 = vst [vmem:[%s2411_s29 + $0x2f8] sm:$0xff] %v1830_v13 }
 0x194   : > { %1990 = vst [vmem:[%s2411_s29 + $0x3f8] sm:$0xff] %v1862_v14 }
 0x195 PF: > { %s13_s12 = sadd.s32 1, %s2212_s12  }
 0x196   : > { %p10_p4 = scmp.ge.s32.totalorder %s13_s12, 4  }
 0x198   :  { %12 = sbr.rel (!%p10_p4) target bundleno = 1 (0x1), region = 62 }

// kernel: lvc_block_forward.10
= control target key start
LH: loop header
LB: loop body
LE: loop exit
PB: predicated region body
PF: predicated region fallthrough
CT: control target
= control target key end

     0   :  { %s2842_s24 = smov 0   ;;  %s4459_s0 = inlined_call_operand.vmem [shape: f32[2,4,16], index: 0, kind: input, shape index: {}]   ;;  %s4460_s1 = inlined_call_operand.vmem [shape: f32[5,16,64], index: 1, kind: input, shape index: {}]   ;;  %s4461_s2 = inlined_call_operand.vmem [shape: f32[1,64], index: 2, kind: input, shape index: {}]   ;;  %s4462_s3 = inlined_call_operand.vmem [shape: f32[6,3,64,64], index: 3, kind: input, shape index: {}]   ;;  %s4463_s4 = inlined_call_operand.vmem [shape: f32[6,1,64], index: 4, kind: input, shape index: {}]   ;;  %s4464_s5 = inlined_call_operand.vmem [shape: f32[3,64,1664], index: 5, kind: input, shape index: {}]   ;;  %s4465_s6 = inlined_call_operand.vmem [shape: f32[1,1664], index: 6, kind: input, shape index: {}]   ;;  %s4466_s7 = inlined_call_operand.vmem [shape: f32[2,4,1664], index: 7, kind: output, shape index: {}]  }
   0x1 LB: > { %s2350_s25 = sadd.s32 4294967295, %s2800_s24   ;;  %p2354_p0 = scmp.ge.s32.totalorder %s2800_s24, 1  ;;  %s2800_s24 = sphi %s2842_s24, %s17_s24  }
   0x2   : > { %p236_p1 = scmp.lt.s32.totalorder %s2800_s24, 3 }
   0x4   : > { %p237_p2 = pnand %p2354_p0, %p236_p1 }
   0x5   : > { %p267_p3 = scmp.lt.s32.totalorder (!%p237_p2), %s2350_s25, 1 }
   0x6   : > { %240 = sbr.rel (%p237_p2) target bundleno = 1336 (0x538), region = 48 }
   0xb   : > { %v286_v0 = vld [vmem:[%s4460_s1 + $0x8] sm:$0xff]  ;;  %v285_v1 = vld [vmem:[%s4460_s1] sm:$0xff]  ;;  %v2358_v2 = vld [vmem:[%s4460_s1 + $0x18] sm:$0xff]  ;;  %s4468_s25 = smov (!%p267_p3, %s2350_s25), 1  ;;  %vm281_vm0 = vcmask 1041408   ;;  %vm283_vm1 = vcmask 1045504  }
   0xc   : > { %331 = vmatpush.msra.mxu2 %v286_v0  ;;  %v2357_v3 = vld [vmem:[%s4460_s1 + $0x10] sm:$0xff]  ;;  %v2362_v4 = vld [vmem:[%s4460_s1 + $0x28] sm:$0xff]  ;;  %309 = vmatpush.msra.mxu0 %v2358_v2  ;;  %v2365_v5 = vld [vmem:[%s4460_s1 + $0x38] sm:$0xff]  ;;  %s2355_s21 = sshll.u32 %s4468_s25, 2  ;;  %vm292_vm2 = vcmask 130048   ;;  %vm429_vm4 = vcmask 1040384  }
   0xd   : > { %v2364_v6 = vld [vmem:[%s4460_s1 + $0x30] sm:$0xff]  ;;  %v2361_v7 = vld [vmem:[%s4460_s1 + $0x20] sm:$0xff]  ;;  %384 = vmatpush.msra.mxu3 %v2365_v5  ;;  %v2368_v8 = vld [vmem:[%s4460_s1 + $0x48] sm:$0xff]  ;;  %s270_s28 = scalar_lea.vmem %s4459_s0, %s2355_s21  ;;  %vm431_vm5 = vcmask 1044480   ;;  %vm452_vm6 = vcmask 523264   ;;  %s2778_s10 = smul.u32 52, %s4468_s25 }
   0xe   : > { %332 = vmatpush.msra.mxu2 %v285_v1  ;;  %310 = vmatpush.msra.mxu0 %v2357_v3  ;;  %v2367_v9 = vld [vmem:[%s4460_s1 + $0x40] sm:$0xff]  ;;  %v440_v18 = vld [vmem:[%s4462_s3 + $0x38] sm:$0xff]  ;;  %v439_v20 = vld [vmem:[%s4462_s3 + $0x30] sm:$0xff]  ;;  %vm2275_vm13 = vcmask 1043456  }
   0xf   : > { %385 = vmatpush.msra.mxu3 %v2364_v6  ;;  %v276_v10 = vld [vmem:[%s270_s28] sm:$0xf]  ;;  %v2377_v19 = vld [vmem:[%s4462_s3 + $0x78] sm:$0xff]  ;;  %v2376_v22 = vld [vmem:[%s4462_s3 + $0x70] sm:$0xff]  ;;  %s4424_s13 = scalar_lea.vmem %s4466_s7, %s2778_s10 }
  0x10   : > { %357 = vmatpush.msrb.mxu2 %v2362_v4  ;;  %411 = vmatpush.msrb.mxu0 %v2368_v8  ;;  %v279_v11 = vrot.slane %v276_v10, 6  ;;  %v2387_v21 = vld [vmem:[%s4462_s3 + $0xb8] sm:$0xff]  ;;  %v438_v23 = vld [vmem:[%s4462_s3 + $0x28] sm:$0xff]  ;;  %v2386_v24 = vld [vmem:[%s4462_s3 + $0xb0] sm:$0xff] }
  0x11   : > { %463 = vmatpush.msra.mxu1 %v2377_v19  ;;  %517 = vmatpush.msrb.mxu3 %v2387_v21  ;;  %v2375_v25 = vld [vmem:[%s4462_s3 + $0x68] sm:$0xff]  ;;  %v437_v26 = vld [vmem:[%s4462_s3 + $0x20] sm:$0xff]  ;;  %v436_v29 = vld [vmem:[%s4462_s3 + $0x18] sm:$0xff] }
  0x12   : > { %358 = vmatpush.msrb.mxu2 %v2361_v7  ;;  %412 = vmatpush.msrb.mxu0 %v2367_v9  ;;  %v282_v12 = vsel %vm281_vm0, 0.0, %v279_v11  ;;  %v2385_v27 = vld [vmem:[%s4462_s3 + $0xa8] sm:$0xff]  ;;  %v2374_v28 = vld [vmem:[%s4462_s3 + $0x60] sm:$0xff]  ;;  %v2373_v31 = vld [vmem:[%s4462_s3 + $0x58] sm:$0xff] }
  0x13   : > { %v284_v13 = vsel %vm283_vm1, %v282_v12, 0.0  ;;  %464 = vmatpush.msra.mxu1 %v2376_v22  ;;  %518 = vmatpush.msrb.mxu3 %v2386_v24  ;;  %v2384_v30 = vld [vmem:[%s4462_s3 + $0xa0] sm:$0xff]  ;;  %v435_v32 = vld [vmem:[%s4462_s3 + $0x10] sm:$0xff]  ;;  %v2383_v33 = vld [vmem:[%s4462_s3 + $0x98] sm:$0xff] }
  0x14   : > { %2360 = vmatmul.msk.f32.vlgmr.msra.gmra.mxu2 %vm292_vm2, %v284_v13  ;;  %v291_v14 = vrot.slane %v284_v13, 1  ;;  %v367_v15 = vrot.slane %v284_v13, 3  ;;  %v340_v16 = vrot.slane %v284_v13, 2  ;;  %v394_v17 = vrot.slane %v284_v13, 4  ;;  %v2372_v34 = vld [vmem:[%s4462_s3 + $0x50] sm:$0xff]  ;;  %v434_v35 = vld [vmem:[%s4462_s3 + $0x8] sm:$0xff] }
  0x15   : > { %485 = vmatpush.msra.mxu2 %v440_v18  ;;  %465 = vmatpush.msra.mxu1 %v2375_v25  ;;  %v2382_v36 = vld [vmem:[%s4462_s3 + $0x90] sm:$0xff]  ;;  %v2371_v37 = vld [vmem:[%s4462_s3 + $0x48] sm:$0xff]  ;;  %v433_v38 = vld [vmem:[%s4462_s3] sm:$0xff] }
  0x16   : > { %2359 = vmatmul.msk.f32.vlgmr.msra.gmra.mxu0 %vm292_vm2, %v291_v14  ;;  %2366 = vmatmul.msk.f32.vlgmr.msra.gmra.mxu3 %vm292_vm2, %v367_v15  ;;  %v2381_v39 = vld [vmem:[%s4462_s3 + $0x88] sm:$0xff]  ;;  %v2370_v40 = vld [vmem:[%s4462_s3 + $0x40] sm:$0xff]  ;;  %v2397_v60 = vld [vmem:[%s4462_s3 + $0xf8] sm:$0xff] }
  0x17   : > { %486 = vmatpush.msra.mxu2 %v439_v20  ;;  %519 = vmatpush.msrb.mxu3 %v2385_v27  ;;  %v2380_v41 = vld [vmem:[%s4462_s3 + $0x80] sm:$0xff]  ;;  %v2405_v61 = vld [vmem:[%s4462_s3 + $0x138] sm:$0xff]  ;;  %v2396_v62 = vld [vmem:[%s4462_s3 + $0xf0] sm:$0xff] }
  0x18   : > { %466 = vmatpush.msra.mxu1 %v2374_v28  ;;  %v2787_v50 = vld [vmem:[%s4461_s2] ss:$0 sm:$0xff]  ;;  %v2415_v63 = vld [vmem:[%s4462_s3 + $0x178] sm:$0xff]  ;;  %574 = vmatpush.msra.mxu0 %v2405_v61  ;;  %v2404_v0 = vld [vmem:[%s4462_s3 + $0x130] sm:$0xff] }
  0x19   : > { %487 = vmatpush.msra.mxu2 %v438_v23  ;;  %520 = vmatpush.msrb.mxu3 %v2384_v30  ;;  %v2395_v1 = vld [vmem:[%s4462_s3 + $0xe8] sm:$0xff]  ;;  %v2414_v2 = vld [vmem:[%s4462_s3 + $0x170] sm:$0xff]  ;;  %v2394_v4 = vld [vmem:[%s4462_s3 + $0xe0] sm:$0xff] }
  0x1a   : > { %467 = vmatpush.msra.mxu1 %v2373_v31  ;;  %575 = vmatpush.msra.mxu0 %v2404_v0  ;;  %v2403_v3 = vld [vmem:[%s4462_s3 + $0x128] sm:$0xff]  ;;  %v2402_v6 = vld [vmem:[%s4462_s3 + $0x120] sm:$0xff]  ;;  %v2393_v7 = vld [vmem:[%s4462_s3 + $0xd8] sm:$0xff] }
  0x1b   : > { %488 = vmatpush.msra.mxu2 %v437_v26  ;;  %521 = vmatpush.msrb.mxu3 %v2383_v33  ;;  %v2413_v5 = vld [vmem:[%s4462_s3 + $0x168] sm:$0xff]  ;;  %v2412_v8 = vld [vmem:[%s4462_s3 + $0x160] sm:$0xff]  ;;  %v2401_v9 = vld [vmem:[%s4462_s3 + $0x118] sm:$0xff] }
  0x1c   : > { %2363 = vmatmul.msk.f32.vlgmr.msrb.gmra.mxu2 %vm292_vm2, %v340_v16  ;;  %468 = vmatpush.msra.mxu1 %v2372_v34  ;;  %v2392_v10 = vld [vmem:[%s4462_s3 + $0xd0] sm:$0xff]  ;;  %v2411_v11 = vld [vmem:[%s4462_s3 + $0x158] sm:$0xff]  ;;  %v2391_v13 = vld [vmem:[%s4462_s3 + $0xc8] sm:$0xff] }
  0x1d   : > { %489 = vmatpush.msra.mxu2 %v436_v29  ;;  %522 = vmatpush.msrb.mxu3 %v2382_v36  ;;  %v2400_v12 = vld [vmem:[%s4462_s3 + $0x110] sm:$0xff]  ;;  %v2399_v15 = vld [vmem:[%s4462_s3 + $0x108] sm:$0xff]  ;;  %v2390_v16 = vld [vmem:[%s4462_s3 + $0xc0] sm:$0xff] }
  0x1e   : > { %2369 = vmatmul.msk.f32.vlgmr.msrb.gmra.mxu0 %vm292_vm2, %v394_v17  ;;  %469 = vmatpush.msra.mxu1 %v2371_v37  ;;  %v2410_v14 = vld [vmem:[%s4462_s3 + $0x150] sm:$0xff]  ;;  %v2409_v17 = vld [vmem:[%s4462_s3 + $0x148] sm:$0xff]  ;;  %v2398_v18 = vld [vmem:[%s4462_s3 + $0x100] sm:$0xff] }
  0x1f   : > { %490 = vmatpush.msra.mxu2 %v435_v32  ;;  %523 = vmatpush.msrb.mxu3 %v2381_v39  ;;  %v2408_v19 = vld [vmem:[%s4462_s3 + $0x140] sm:$0xff]  ;;  %v2425_v34 = vld [vmem:[%s4462_s3 + $0x1b8] sm:$0xff]  ;;  %v2424_v36 = vld [vmem:[%s4462_s3 + $0x1b0] sm:$0xff] }
  0x20   : > { %470 = vmatpush.msra.mxu1 %v2370_v40  ;;  %576 = vmatpush.msra.mxu0 %v2403_v3  ;;  %v2788_v23 = vld [vmem:[%s4463_s4] ss:$0 sm:$0xff]  ;;  %v2443_v37 = vld [vmem:[%s4462_s3 + $0x238] sm:$0xff]  ;;  %v2423_v39 = vld [vmem:[%s4462_s3 + $0x1a8] sm:$0xff] }
  0x21   : > { %491 = vmatpush.msra.mxu2 %v434_v35  ;;  %524 = vmatpush.msrb.mxu3 %v2380_v41  ;;  %v2433_v35 = vld [vmem:[%s4462_s3 + $0x1f8] sm:$0xff]  ;;  %v2442_v40 = vld [vmem:[%s4462_s3 + $0x230] sm:$0xff]  ;;  %v2431_v41 = vld [vmem:[%s4462_s3 + $0x1e8] sm:$0xff] }
  0x22   : > { %596 = vmatpush.msrb.mxu1 %v2397_v60  ;;  %577 = vmatpush.msra.mxu0 %v2402_v6 }
  0x23   : > { %492 = vmatpush.msra.mxu2 %v433_v38  ;;  %685 = vmatpush.msra.mxu3 %v2433_v35  ;;  %v2432_v38 = vld [vmem:[%s4462_s3 + $0x1f0] sm:$0xff] }
  0x24   : > { %597 = vmatpush.msrb.mxu1 %v2396_v62  ;;  %578 = vmatpush.msra.mxu0 %v2401_v9  ;;  %v2789_v62 = vld [vmem:[%s4463_s4 + $0x1] ss:$0 sm:$0xff]  ;;  %v2453_v9 = vld [vmem:[%s4462_s3 + $0x278] sm:$0xff] }
  0x25   : > { %628 = vmatpush.msrb.mxu2 %v2415_v63  ;;  %686 = vmatpush.msra.mxu3 %v2432_v38 }
  0x26   : > { %598 = vmatpush.msrb.mxu1 %v2395_v1  ;;  %579 = vmatpush.msra.mxu0 %v2400_v12  ;;  %v2471_v12 = vld [vmem:[%s4462_s3 + $0x2f8] sm:$0xff] }
  0x27   : > { %629 = vmatpush.msrb.mxu2 %v2414_v2  ;;  %687 = vmatpush.msra.mxu3 %v2431_v41 }
  0x28   : > { %599 = vmatpush.msrb.mxu1 %v2394_v4  ;;  %580 = vmatpush.msra.mxu0 %v2399_v15  ;;  %v2470_v15 = vld [vmem:[%s4462_s3 + $0x2f0] sm:$0xff] }
  0x29   : > { %630 = vmatpush.msrb.mxu2 %v2413_v5 }
  0x2a   : > { %600 = vmatpush.msrb.mxu1 %v2393_v7  ;;  %581 = vmatpush.msra.mxu0 %v2398_v18  ;;  %v2469_v18 = vld [vmem:[%s4462_s3 + $0x2e8] sm:$0xff] }
  0x2b   : > { %631 = vmatpush.msrb.mxu2 %v2412_v8 }
  0x2c   : > { %601 = vmatpush.msrb.mxu1 %v2392_v10  ;;  %707 = vmatpush.msrb.mxu0 %v2425_v34  ;;  %v2461_v10 = vld [vmem:[%s4462_s3 + $0x2b8] sm:$0xff] }
  0x2d   : > { %632 = vmatpush.msrb.mxu2 %v2411_v11  ;;  %v2452_v11 = vld [vmem:[%s4462_s3 + $0x270] sm:$0xff] }
  0x2e   : > { %602 = vmatpush.msrb.mxu1 %v2391_v13  ;;  %708 = vmatpush.msrb.mxu0 %v2424_v36  ;;  %v2460_v13 = vld [vmem:[%s4462_s3 + $0x2b0] sm:$0xff]  ;;  %v2790_v36 = vld [vmem:[%s4463_s4 + $0x2] ss:$0 sm:$0xff] }
  0x2f   : > { %633 = vmatpush.msrb.mxu2 %v2410_v14  ;;  %v2451_v14 = vld [vmem:[%s4462_s3 + $0x268] sm:$0xff] }
  0x30   : > { %603 = vmatpush.msrb.mxu1 %v2390_v16  ;;  %709 = vmatpush.msrb.mxu0 %v2423_v39  ;;  %v2459_v16 = vld [vmem:[%s4462_s3 + $0x2a8] sm:$0xff] }
  0x31   : > { %634 = vmatpush.msrb.mxu2 %v2409_v17  ;;  %v2450_v17 = vld [vmem:[%s4462_s3 + $0x260] sm:$0xff] }
  0x33   : > { %635 = vmatpush.msrb.mxu2 %v2408_v19  ;;  %v2458_v19 = vld [vmem:[%s4462_s3 + $0x2a0] sm:$0xff] }
  0x93   : > { %v312_v43 = vpop.f32.mrf.mxu0 }
  0x97   : > { %v334_v42 = vpop.f32.mrf.mxu2 }
  0x98   : > { %v335_v44 = vadd.f32 %v334_v42, %v312_v43  ;;  %v2422_v42 = vld [vmem:[%s4462_s3 + $0x1a0] sm:$0xff]  ;;  %v2441_v43 = vld [vmem:[%s4462_s3 + $0x228] sm:$0xff] }
  0x99   : > { %v387_v46 = vpop.f32.mrf.mxu3  ;;  %710 = vmatpush.msrb.mxu0 %v2422_v42 }
  0x9b   : > { %v414_v48 = vpop.f32.mrf.mxu0 }
  0x9f   : > { %v360_v45 = vpop.f32.mrf.mxu2 }
  0xa0   : > { %v363_v47 = vadd.f32 %v360_v45, %v335_v44  ;;  %v2430_v44 = vld [vmem:[%s4462_s3 + $0x1e0] sm:$0xff]  ;;  %v2421_v45 = vld [vmem:[%s4462_s3 + $0x198] sm:$0xff] }
  0xa1   : > { %688 = vmatpush.msra.mxu3 %v2430_v44  ;;  %711 = vmatpush.msrb.mxu0 %v2421_v45 }
  0xa2   : > { %v390_v49 = vadd.f32 %v387_v46, %v363_v47  ;;  %v2440_v46 = vld [vmem:[%s4462_s3 + $0x220] sm:$0xff]  ;;  %v2429_v47 = vld [vmem:[%s4462_s3 + $0x1d8] sm:$0xff] }
  0xa3   : > { %689 = vmatpush.msra.mxu3 %v2429_v47  ;;  %v2481_v47 = vld [vmem:[%s4462_s3 + $0x338] sm:$0xff] }
  0xa4   : > { %v417_v51 = vadd.f32 %v414_v48, %v390_v49  ;;  %v2420_v48 = vld [vmem:[%s4462_s3 + $0x190] sm:$0xff]  ;;  %v2439_v49 = vld [vmem:[%s4462_s3 + $0x218] sm:$0xff] }
  0xa5   : > { %712 = vmatpush.msrb.mxu0 %v2420_v48  ;;  %v2489_v48 = vld [vmem:[%s4462_s3 + $0x378] sm:$0xff] }
  0xa6   : > { %v421_v52 = vadd.f32 %v2787_v50, %v417_v51  ;;  %v2428_v50 = vld [vmem:[%s4462_s3 + $0x1d0] sm:$0xff]  ;;  %v2419_v51 = vld [vmem:[%s4462_s3 + $0x188] sm:$0xff] }
  0xa7   : > { %690 = vmatpush.msra.mxu3 %v2428_v50  ;;  %713 = vmatpush.msrb.mxu0 %v2419_v51  ;;  %v2499_v50 = vld [vmem:[%s4462_s3 + $0x3b8] sm:$0xff]  ;;  %v2488_v51 = vld [vmem:[%s4462_s3 + $0x370] sm:$0xff] }
  0xa8   : > { %vm422_vm3 = vcmp.ge.f32.partialorder %v421_v52, 0.0  ;;  %v423_v53 = vmul.f32 0.1, %v421_v52 }
  0xaa   : > { %v2961_v54 = vsel %vm422_vm3, %v421_v52, %v423_v53  ;;  %v2438_v52 = vld [vmem:[%s4462_s3 + $0x210] sm:$0xff]  ;;  %v2427_v53 = vld [vmem:[%s4462_s3 + $0x1c8] sm:$0xff] }
  0xab   : > { %v427_v55 = vrot.slane %v2961_v54, 7  ;;  %691 = vmatpush.msra.mxu3 %v2427_v53  ;;  %v2498_v53 = vld [vmem:[%s4462_s3 + $0x3b0] sm:$0xff] }
  0xad   : > { %v430_v56 = vsel %vm429_vm4, 0.0, %v427_v55  ;;  %v2418_v55 = vld [vmem:[%s4462_s3 + $0x180] sm:$0xff] }
  0xae   : > { %v432_v57 = vsel %vm431_vm5, %v430_v56, 0.0  ;;  %v2437_v56 = vld [vmem:[%s4462_s3 + $0x208] sm:$0xff]  ;;  %714 = vmatpush.msrb.mxu0 %v2418_v55 }
  0xaf   : > { %2379 = vmatmul.msk.f32.vlgmr.msra.gmra.mxu2 %vm452_vm6, %v432_v57  ;;  %v451_v58 = vrot.slane %v432_v57, 1  ;;  %v506_v59 = vrot.slane %v432_v57, 2  ;;  %v2426_v57 = vld [vmem:[%s4462_s3 + $0x1c0] sm:$0xff]  ;;  %v2487_v55 = vld [vmem:[%s4462_s3 + $0x368] sm:$0xff] }
  0xb0   : > { %692 = vmatpush.msra.mxu3 %v2426_v57  ;;  %796 = vmatpush.msra.mxu2 %v2461_v10  ;;  %v2497_v57 = vld [vmem:[%s4462_s3 + $0x3a8] sm:$0xff] }
  0xb1   : > { %2378 = vmatmul.msk.f32.vlgmr.msra.gmra.mxu1 %vm452_vm6, %v451_v58  ;;  %2388 = vmatmul.msk.f32.vlgmr.msrb.gmra.mxu3 %vm452_vm6, %v506_v59  ;;  %v2436_v58 = vld [vmem:[%s4462_s3 + $0x200] sm:$0xff] }
  0xb2   : > { %739 = vmatpush.msra.mxu1 %v2443_v37  ;;  %818 = vmatpush.msrb.mxu3 %v2453_v9 }
  0xb3   : > { %797 = vmatpush.msra.mxu2 %v2460_v13 }
  0xb4   : > { %740 = vmatpush.msra.mxu1 %v2442_v40  ;;  %819 = vmatpush.msrb.mxu3 %v2452_v11  ;;  %v2791_v11 = vld [vmem:[%s4463_s4 + $0x3] ss:$0 sm:$0xff] }
  0xb5   : > { %798 = vmatpush.msra.mxu2 %v2459_v16 }
  0xb6   : > { %741 = vmatpush.msra.mxu1 %v2441_v43  ;;  %820 = vmatpush.msrb.mxu3 %v2451_v14 }
  0xb7   : > { %799 = vmatpush.msra.mxu2 %v2458_v19 }
  0xb8   : > { %742 = vmatpush.msra.mxu1 %v2440_v46  ;;  %821 = vmatpush.msrb.mxu3 %v2450_v17 }
  0xba   : > { %743 = vmatpush.msra.mxu1 %v2439_v49  ;;  %v2480_v49 = vld [vmem:[%s4462_s3 + $0x330] sm:$0xff] }
  0xbc   : > { %744 = vmatpush.msra.mxu1 %v2438_v52  ;;  %v2479_v52 = vld [vmem:[%s4462_s3 + $0x328] sm:$0xff] }
  0xbe   : > { %745 = vmatpush.msra.mxu1 %v2437_v56  ;;  %v2478_v56 = vld [vmem:[%s4462_s3 + $0x320] sm:$0xff] }
  0xc0   : > { %746 = vmatpush.msra.mxu1 %v2436_v58  ;;  %v2486_v58 = vld [vmem:[%s4462_s3 + $0x360] sm:$0xff] }
 0x12e   : > { %v472_v20 = vpop.f32.mrf.mxu1 }
 0x132   : > { %v494_v21 = vpop.f32.mrf.mxu2 }
 0x133   : > { %v495_v22 = vadd.f32 %v494_v21, %v472_v20  ;;  %v2449_v20 = vld [vmem:[%s4462_s3 + $0x258] sm:$0xff]  ;;  %v2468_v21 = vld [vmem:[%s4462_s3 + $0x2e0] sm:$0xff] }
 0x134   : > { %v526_v24 = vpop.f32.mrf.mxu3  ;;  %822 = vmatpush.msrb.mxu3 %v2449_v20 }
 0x135   : > { %v529_v25 = vadd.f32 %v526_v24, %v495_v22  ;;  %v2457_v22 = vld [vmem:[%s4462_s3 + $0x298] sm:$0xff] }
 0x136   : > { %v2467_v24 = vld [vmem:[%s4462_s3 + $0x2d8] sm:$0xff]  ;;  %800 = vmatpush.msra.mxu2 %v2457_v22 }
 0x137   : > { %v533_v26 = vadd.f32 %v2788_v23, %v529_v25  ;;  %v2448_v23 = vld [vmem:[%s4462_s3 + $0x250] sm:$0xff]  ;;  %v2509_v22 = vld [vmem:[%s4462_s3 + $0x3f8] sm:$0xff] }
 0x138   : > { %v2456_v25 = vld [vmem:[%s4462_s3 + $0x290] sm:$0xff]  ;;  %823 = vmatpush.msrb.mxu3 %v2448_v23  ;;  %v2517_v23 = vld [vmem:[%s4462_s3 + $0x438] sm:$0xff] }
 0x139   : > { %vm534_vm7 = vcmp.ge.f32.partialorder %v533_v26, 0.0  ;;  %v535_v27 = vmul.f32 0.1, %v533_v26  ;;  %801 = vmatpush.msra.mxu2 %v2456_v25  ;;  %v2527_v25 = vld [vmem:[%s4462_s3 + $0x478] sm:$0xff] }
 0x13b   : > { %v536_v28 = vsel %vm534_vm7, %v533_v26, %v535_v27  ;;  %v2447_v26 = vld [vmem:[%s4462_s3 + $0x248] sm:$0xff]  ;;  %v2466_v27 = vld [vmem:[%s4462_s3 + $0x2d0] sm:$0xff] }
 0x13c   : > { %v540_v29 = vrot.slane %v536_v28, 7  ;;  %v2455_v28 = vld [vmem:[%s4462_s3 + $0x288] sm:$0xff]  ;;  %824 = vmatpush.msrb.mxu3 %v2447_v26  ;;  %v2516_v26 = vld [vmem:[%s4462_s3 + $0x430] sm:$0xff] }
 0x13d   : > { %802 = vmatpush.msra.mxu2 %v2455_v28  ;;  %v2526_v28 = vld [vmem:[%s4462_s3 + $0x470] sm:$0xff] }
 0x13e   : > { %v542_v30 = vsel %vm429_vm4, 0.0, %v540_v29  ;;  %v2446_v29 = vld [vmem:[%s4462_s3 + $0x240] sm:$0xff] }
 0x13f   : > { %v543_v31 = vsel %vm431_vm5, %v542_v30, 0.0  ;;  %v2465_v30 = vld [vmem:[%s4462_s3 + $0x2c8] sm:$0xff]  ;;  %825 = vmatpush.msrb.mxu3 %v2446_v29 }
 0x140   : > { %v563_v32 = vrot.slane %v543_v31, 1  ;;  %2407 = vmatmul.msk.f32.vlgmr.msrb.gmra.mxu1 %vm452_vm6, %v543_v31  ;;  %v617_v33 = vrot.slane %v543_v31, 2  ;;  %v2454_v31 = vld [vmem:[%s4462_s3 + $0x280] sm:$0xff]  ;;  %v2515_v29 = vld [vmem:[%s4462_s3 + $0x428] sm:$0xff] }
 0x141   : > { %803 = vmatpush.msra.mxu2 %v2454_v31  ;;  %907 = vmatpush.msrb.mxu1 %v2489_v48  ;;  %v2525_v31 = vld [vmem:[%s4462_s3 + $0x468] sm:$0xff] }
 0x142   : > { %2406 = vmatmul.msk.f32.vlgmr.msra.gmra.mxu0 %vm452_vm6, %v563_v32  ;;  %2416 = vmatmul.msk.f32.vlgmr.msrb.gmra.mxu2 %vm452_vm6, %v617_v33  ;;  %v2464_v32 = vld [vmem:[%s4462_s3 + $0x2c0] sm:$0xff]  ;;  %v2622_v48 = vld [vmem:[%s4464_s5 + $0x628] sm:$0xff] }
 0x143   : > { %850 = vmatpush.msra.mxu0 %v2471_v12  ;;  %929 = vmatpush.msrb.mxu2 %v2481_v47  ;;  %v2621_v47 = vld [vmem:[%s4464_s5 + $0x620] sm:$0xff] }
 0x144   : > { %908 = vmatpush.msrb.mxu1 %v2488_v51  ;;  %v2608_v51 = vld [vmem:[%s4464_s5 + $0x5b8] sm:$0xff] }
 0x145   : > { %851 = vmatpush.msra.mxu0 %v2470_v15  ;;  %930 = vmatpush.msrb.mxu2 %v2480_v49  ;;  %v2623_v49 = vld [vmem:[%s4464_s5 + $0x630] sm:$0xff] }
 0x146   : > { %909 = vmatpush.msrb.mxu1 %v2487_v55  ;;  %v2594_v55 = vld [vmem:[%s4464_s5 + $0x548] sm:$0xff] }
 0x147   : > { %852 = vmatpush.msra.mxu0 %v2469_v18  ;;  %931 = vmatpush.msrb.mxu2 %v2479_v52  ;;  %v2609_v52 = vld [vmem:[%s4464_s5 + $0x5c0] sm:$0xff] }
 0x148   : > { %910 = vmatpush.msrb.mxu1 %v2486_v58  ;;  %v2597_v58 = vld [vmem:[%s4464_s5 + $0x560] sm:$0xff] }
 0x149   : > { %853 = vmatpush.msra.mxu0 %v2468_v21  ;;  %932 = vmatpush.msrb.mxu2 %v2478_v56  ;;  %v2595_v56 = vld [vmem:[%s4464_s5 + $0x550] sm:$0xff] }
 0x14b   : > { %854 = vmatpush.msra.mxu0 %v2467_v24  ;;  %v2508_v24 = vld [vmem:[%s4462_s3 + $0x3f0] sm:$0xff] }
 0x14d   : > { %855 = vmatpush.msra.mxu0 %v2466_v27  ;;  %v2507_v27 = vld [vmem:[%s4462_s3 + $0x3e8] sm:$0xff] }
 0x14f   : > { %856 = vmatpush.msra.mxu0 %v2465_v30  ;;  %v2506_v30 = vld [vmem:[%s4462_s3 + $0x3e0] sm:$0xff] }
 0x151   : > { %857 = vmatpush.msra.mxu0 %v2464_v32  ;;  %v2514_v32 = vld [vmem:[%s4462_s3 + $0x420] sm:$0xff] }
 0x1bd   : > { %v605_v60 = vpop.f32.mrf.mxu1 }
 0x1bf   : > { %v583_v59 = vpop.f32.mrf.mxu0 }
 0x1c0   : > { %v606_v61 = vadd.f32 %v605_v60, %v583_v59  ;;  %v2477_v59 = vld [vmem:[%s4462_s3 + $0x318] sm:$0xff]  ;;  %v2496_v60 = vld [vmem:[%s4462_s3 + $0x3a0] sm:$0xff] }
 0x1c1   : > { %933 = vmatpush.msrb.mxu2 %v2477_v59 }
 0x1c5   : > { %v637_v63 = vpop.f32.mrf.mxu2 }
 0x1c6   : > { %v640_v0 = vadd.f32 %v637_v63, %v606_v61  ;;  %v2485_v61 = vld [vmem:[%s4462_s3 + $0x358] sm:$0xff] }
 0x1c7   : > { %v2495_v63 = vld [vmem:[%s4462_s3 + $0x398] sm:$0xff]  ;;  %911 = vmatpush.msrb.mxu1 %v2485_v61 }
 0x1c8   : > { %v644_v1 = vadd.f32 %v2789_v62, %v640_v0  ;;  %v2476_v62 = vld [vmem:[%s4462_s3 + $0x310] sm:$0xff] }
 0x1c9   : > { %v2484_v0 = vld [vmem:[%s4462_s3 + $0x350] sm:$0xff]  ;;  %934 = vmatpush.msrb.mxu2 %v2476_v62  ;;  %v2792_v62 = vld [vmem:[%s4463_s4 + $0x4] ss:$0 sm:$0xff] }
 0x1ca   : > { %vm645_vm8 = vcmp.ge.f32.partialorder %v644_v1, 0.0  ;;  %v646_v2 = vmul.f32 0.1, %v644_v1  ;;  %912 = vmatpush.msrb.mxu1 %v2484_v0 }
 0x1cc   : > { %v647_v3 = vsel %vm645_vm8, %v644_v1, %v646_v2  ;;  %v2475_v1 = vld [vmem:[%s4462_s3 + $0x308] sm:$0xff]  ;;  %v2494_v2 = vld [vmem:[%s4462_s3 + $0x390] sm:$0xff] }
 0x1cd   : > { %v651_v4 = vrot.slane %v647_v3, 7  ;;  %v2483_v3 = vld [vmem:[%s4462_s3 + $0x348] sm:$0xff]  ;;  %935 = vmatpush.msrb.mxu2 %v2475_v1 }
 0x1ce   : > { %913 = vmatpush.msrb.mxu1 %v2483_v3 }
 0x1cf   : > { %v653_v5 = vsel %vm429_vm4, 0.0, %v651_v4  ;;  %v2474_v4 = vld [vmem:[%s4462_s3 + $0x300] sm:$0xff] }
 0x1d0   : > { %v654_v6 = vsel %vm431_vm5, %v653_v5, 0.0  ;;  %v2493_v5 = vld [vmem:[%s4462_s3 + $0x388] sm:$0xff]  ;;  %936 = vmatpush.msrb.mxu2 %v2474_v4 }
 0x1d1   : > { %v674_v7 = vrot.slane %v654_v6, 1  ;;  %2435 = vmatmul.msk.f32.vlgmr.msrb.gmra.mxu0 %vm452_vm6, %v654_v6  ;;  %v728_v8 = vrot.slane %v654_v6, 2  ;;  %v2482_v6 = vld [vmem:[%s4462_s3 + $0x340] sm:$0xff] }
 0x1d2   : > { %914 = vmatpush.msrb.mxu1 %v2482_v6  ;;  %1018 = vmatpush.msrb.mxu0 %v2517_v23  ;;  %v2544_v23 = vld [vmem:[%s4464_s5 + $0x3b8] sm:$0xff] }
 0x1d3   : > { %2434 = vmatmul.msk.f32.vlgmr.msra.gmra.mxu3 %vm452_vm6, %v674_v7  ;;  %2444 = vmatmul.msk.f32.vlgmr.msra.gmra.mxu1 %vm452_vm6, %v728_v8  ;;  %v2492_v7 = vld [vmem:[%s4462_s3 + $0x380] sm:$0xff] }
 0x1d4   : > { %961 = vmatpush.msra.mxu3 %v2499_v50  ;;  %1040 = vmatpush.msra.mxu1 %v2509_v22  ;;  %v2607_v50 = vld [vmem:[%s4464_s5 + $0x5b0] sm:$0xff] }
 0x1d5   : > { %1019 = vmatpush.msrb.mxu0 %v2516_v26  ;;  %v2543_v22 = vld [vmem:[%s4464_s5 + $0x3b0] sm:$0xff]  ;;  %v2530_v26 = vld [vmem:[%s4464_s5 + $0x348] sm:$0xff] }
 0x1d6   : > { %962 = vmatpush.msra.mxu3 %v2498_v53  ;;  %1041 = vmatpush.msra.mxu1 %v2508_v24  ;;  %v2610_v53 = vld [vmem:[%s4464_s5 + $0x5c8] sm:$0xff]  ;;  %v2545_v24 = vld [vmem:[%s4464_s5 + $0x3c0] sm:$0xff] }
 0x1d7   : > { %1020 = vmatpush.msrb.mxu0 %v2515_v29  ;;  %v2624_v29 = vld [vmem:[%s4464_s5 + $0x638] sm:$0xff] }
 0x1d8   : > { %963 = vmatpush.msra.mxu3 %v2497_v57  ;;  %1042 = vmatpush.msra.mxu1 %v2507_v27  ;;  %v2596_v57 = vld [vmem:[%s4464_s5 + $0x558] sm:$0xff]  ;;  %v2531_v27 = vld [vmem:[%s4464_s5 + $0x350] sm:$0xff] }
 0x1d9   : > { %1021 = vmatpush.msrb.mxu0 %v2514_v32  ;;  %v2627_v32 = vld [vmem:[%s4464_s5 + $0x650] sm:$0xff] }
 0x1da   : > { %964 = vmatpush.msra.mxu3 %v2496_v60  ;;  %1043 = vmatpush.msra.mxu1 %v2506_v30  ;;  %v2625_v30 = vld [vmem:[%s4464_s5 + $0x640] sm:$0xff] }
 0x1dc   : > { %965 = vmatpush.msra.mxu3 %v2495_v63 }
 0x1de   : > { %966 = vmatpush.msra.mxu3 %v2494_v2 }
 0x1e0   : > { %967 = vmatpush.msra.mxu3 %v2493_v5 }
 0x1e2   : > { %968 = vmatpush.msra.mxu3 %v2492_v7 }
 0x24e   : > { %v716_v33 = vpop.f32.mrf.mxu0 }
 0x250   : > { %v748_v37 = vpop.f32.mrf.mxu1 }
 0x256   : > { %v694_v34 = vpop.f32.mrf.mxu3 }
 0x257   : > { %v717_v35 = vadd.f32 %v716_v33, %v694_v34  ;;  %v2505_v33 = vld [vmem:[%s4462_s3 + $0x3d8] sm:$0xff]  ;;  %v2524_v34 = vld [vmem:[%s4462_s3 + $0x460] sm:$0xff] }
 0x258   : > { %1044 = vmatpush.msra.mxu1 %v2505_v33  ;;  %v2611_v33 = vld [vmem:[%s4464_s5 + $0x5d0] sm:$0xff] }
 0x259   : > { %v751_v38 = vadd.f32 %v748_v37, %v717_v35  ;;  %v2513_v35 = vld [vmem:[%s4462_s3 + $0x418] sm:$0xff] }
 0x25a   : > { %v2523_v37 = vld [vmem:[%s4462_s3 + $0x458] sm:$0xff]  ;;  %1022 = vmatpush.msrb.mxu0 %v2513_v35  ;;  %v2613_v35 = vld [vmem:[%s4464_s5 + $0x5e0] sm:$0xff] }
 0x25b   : > { %v755_v39 = vadd.f32 %v2790_v36, %v751_v38  ;;  %v2504_v36 = vld [vmem:[%s4462_s3 + $0x3d0] sm:$0xff] }
 0x25c   : > { %1045 = vmatpush.msra.mxu1 %v2504_v36  ;;  %v2512_v38 = vld [vmem:[%s4462_s3 + $0x410] sm:$0xff]  ;;  %v2614_v36 = vld [vmem:[%s4464_s5 + $0x5e8] sm:$0xff] }
 0x25d   : > { %vm756_vm9 = vcmp.ge.f32.partialorder %v755_v39, 0.0  ;;  %v757_v40 = vmul.f32 0.1, %v755_v39  ;;  %1023 = vmatpush.msrb.mxu0 %v2512_v38  ;;  %v2599_v38 = vld [vmem:[%s4464_s5 + $0x570] sm:$0xff] }
 0x25f   : > { %v758_v41 = vsel %vm756_vm9, %v755_v39, %v757_v40  ;;  %v2503_v39 = vld [vmem:[%s4462_s3 + $0x3c8] sm:$0xff]  ;;  %v2522_v40 = vld [vmem:[%s4462_s3 + $0x450] sm:$0xff] }
 0x260   : > { %v762_v42 = vrot.slane %v758_v41, 7  ;;  %1046 = vmatpush.msra.mxu1 %v2503_v39  ;;  %v2511_v41 = vld [vmem:[%s4462_s3 + $0x408] sm:$0xff]  ;;  %v2600_v39 = vld [vmem:[%s4464_s5 + $0x578] sm:$0xff] }
 0x261   : > { %1024 = vmatpush.msrb.mxu0 %v2511_v41  ;;  %v2585_v41 = vld [vmem:[%s4464_s5 + $0x500] sm:$0xff] }
 0x262   : > { %v764_v43 = vsel %vm429_vm4, 0.0, %v762_v42  ;;  %v2502_v42 = vld [vmem:[%s4462_s3 + $0x3c0] sm:$0xff] }
 0x263   : > { %v765_v44 = vsel %vm431_vm5, %v764_v43, 0.0  ;;  %v2521_v43 = vld [vmem:[%s4462_s3 + $0x448] sm:$0xff]  ;;  %1047 = vmatpush.msra.mxu1 %v2502_v42 }
 0x264   : > { %v785_v45 = vrot.slane %v765_v44, 1  ;;  %2463 = vmatmul.msk.f32.vlgmr.msrb.gmra.mxu3 %vm452_vm6, %v765_v44  ;;  %v839_v46 = vrot.slane %v765_v44, 2  ;;  %v2510_v44 = vld [vmem:[%s4462_s3 + $0x400] sm:$0xff]  ;;  %v2586_v42 = vld [vmem:[%s4464_s5 + $0x508] sm:$0xff] }
 0x265   : > { %1025 = vmatpush.msrb.mxu0 %v2510_v44  ;;  %v2588_v44 = vld [vmem:[%s4464_s5 + $0x518] sm:$0xff] }
 0x266   : > { %2462 = vmatmul.msk.f32.vlgmr.msra.gmra.mxu2 %vm452_vm6, %v785_v45  ;;  %2472 = vmatmul.msk.f32.vlgmr.msra.gmra.mxu0 %vm452_vm6, %v839_v46  ;;  %v2520_v45 = vld [vmem:[%s4462_s3 + $0x440] sm:$0xff]  ;;  %v2620_v46 = vld [vmem:[%s4464_s5 + $0x618] sm:$0xff] }
 0x267   : > { %1072 = vmatpush.msra.mxu2 %v2527_v25  ;;  %1321 = vmatpush.msrb.mxu3 %v2620_v46  ;;  %v2529_v25 = vld [vmem:[%s4464_s5 + $0x340] sm:$0xff] }
 0x268   : > { %1341 = vmatpush.msra.mxu0 %v2621_v47  ;;  %v2573_v46 = vld [vmem:[%s4464_s5 + $0x4a0] sm:$0xff]  ;;  %v2574_v47 = vld [vmem:[%s4464_s5 + $0x4a8] sm:$0xff] }
 0x269   : > { %1073 = vmatpush.msra.mxu2 %v2526_v28  ;;  %1322 = vmatpush.msrb.mxu3 %v2607_v50  ;;  %v2532_v28 = vld [vmem:[%s4464_s5 + $0x358] sm:$0xff] }
 0x26a   : > { %1342 = vmatpush.msra.mxu0 %v2608_v51  ;;  %v2560_v50 = vld [vmem:[%s4464_s5 + $0x438] sm:$0xff]  ;;  %v2561_v51 = vld [vmem:[%s4464_s5 + $0x440] sm:$0xff] }
 0x26b   : > { %1074 = vmatpush.msra.mxu2 %v2525_v31  ;;  %1323 = vmatpush.msrb.mxu3 %v2594_v55  ;;  %v2626_v31 = vld [vmem:[%s4464_s5 + $0x648] sm:$0xff]  ;;  %v2547_v55 = vld [vmem:[%s4464_s5 + $0x3d0] sm:$0xff] }
 0x26c   : > { %1343 = vmatpush.msra.mxu0 %v2595_v56  ;;  %v2548_v56 = vld [vmem:[%s4464_s5 + $0x3d8] sm:$0xff] }
 0x26d   : > { %1075 = vmatpush.msra.mxu2 %v2524_v34  ;;  %v2612_v34 = vld [vmem:[%s4464_s5 + $0x5d8] sm:$0xff] }
 0x26f   : > { %1076 = vmatpush.msra.mxu2 %v2523_v37  ;;  %v2598_v37 = vld [vmem:[%s4464_s5 + $0x568] sm:$0xff] }
 0x271   : > { %1077 = vmatpush.msra.mxu2 %v2522_v40  ;;  %v2601_v40 = vld [vmem:[%s4464_s5 + $0x580] sm:$0xff] }
 0x273   : > { %1078 = vmatpush.msra.mxu2 %v2521_v43  ;;  %v2587_v43 = vld [vmem:[%s4464_s5 + $0x510] sm:$0xff] }
 0x275   : > { %1079 = vmatpush.msra.mxu2 %v2520_v45  ;;  %v2572_v45 = vld [vmem:[%s4464_s5 + $0x498] sm:$0xff] }
 0x2e3   : > { %v859_v12 = vpop.f32.mrf.mxu0 }
 0x2e7   : > { %v827_v8 = vpop.f32.mrf.mxu3 }
 0x2e9   : > { %v805_v9 = vpop.f32.mrf.mxu2 }
 0x2ea   : > { %v828_v10 = vadd.f32 %v827_v8, %v805_v9  ;;  %v2581_v9 = vld [vmem:[%s4464_s5 + $0x4e0] sm:$0xff] }
 0x2eb   : > { %1324 = vmatpush.msrb.mxu3 %v2581_v9 }
 0x2ec   : > { %v862_v13 = vadd.f32 %v859_v12, %v828_v10  ;;  %v2582_v10 = vld [vmem:[%s4464_s5 + $0x4e8] sm:$0xff]  ;;  %v2584_v12 = vld [vmem:[%s4464_s5 + $0x4f8] sm:$0xff] }
 0x2ed   : > { %1344 = vmatpush.msra.mxu0 %v2582_v10 }
 0x2ee   : > { %v866_v14 = vadd.f32 %v2791_v11, %v862_v13  ;;  %v2583_v11 = vld [vmem:[%s4464_s5 + $0x4f0] sm:$0xff]  ;;  %v2568_v13 = vld [vmem:[%s4464_s5 + $0x478] sm:$0xff] }
 0x2ef   : > { %1325 = vmatpush.msrb.mxu3 %v2568_v13  ;;  %v2629_v13 = vld [vmem:[%s4464_s5 + $0x660] sm:$0xff] }
 0x2f0   : > { %vm867_vm10 = vcmp.ge.f32.partialorder %v866_v14, 0.0  ;;  %v868_v15 = vmul.f32 0.1, %v866_v14 }
 0x2f2   : > { %v869_v16 = vsel %vm867_vm10, %v866_v14, %v868_v15  ;;  %v2569_v14 = vld [vmem:[%s4464_s5 + $0x480] sm:$0xff]  ;;  %v2570_v15 = vld [vmem:[%s4464_s5 + $0x488] sm:$0xff] }
 0x2f3   : > { %v873_v17 = vrot.slane %v869_v16, 7  ;;  %1345 = vmatpush.msra.mxu0 %v2569_v14  ;;  %v2571_v16 = vld [vmem:[%s4464_s5 + $0x490] sm:$0xff] }
 0x2f4   : > { %v2631_v14 = vld [vmem:[%s4464_s5 + $0x670] sm:$0xff] }
 0x2f5   : > { %v875_v18 = vsel %vm429_vm4, 0.0, %v873_v17  ;;  %v2555_v17 = vld [vmem:[%s4464_s5 + $0x410] sm:$0xff] }
 0x2f6   : > { %v876_v19 = vsel %vm431_vm5, %v875_v18, 0.0  ;;  %v2556_v18 = vld [vmem:[%s4464_s5 + $0x418] sm:$0xff]  ;;  %1326 = vmatpush.msrb.mxu3 %v2555_v17  ;;  %v2617_v17 = vld [vmem:[%s4464_s5 + $0x600] sm:$0xff] }
 0x2f7   : > { %v896_v20 = vrot.slane %v876_v19, 1  ;;  %2491 = vmatmul.msk.f32.vlgmr.msrb.gmra.mxu2 %vm452_vm6, %v876_v19  ;;  %v950_v21 = vrot.slane %v876_v19, 2  ;;  %v2557_v19 = vld [vmem:[%s4464_s5 + $0x420] sm:$0xff]  ;;  %1346 = vmatpush.msra.mxu0 %v2556_v18  ;;  %v2618_v18 = vld [vmem:[%s4464_s5 + $0x608] sm:$0xff] }
 0x2f8   : > { %1381 = vmatpush.msrb.mxu2 %v2623_v49  ;;  %v2559_v49 = vld [vmem:[%s4464_s5 + $0x430] sm:$0xff] }
 0x2f9   : > { %2490 = vmatmul.msk.f32.vlgmr.msrb.gmra.mxu1 %vm452_vm6, %v896_v20  ;;  %2500 = vmatmul.msk.f32.vlgmr.msra.gmra.mxu3 %vm452_vm6, %v950_v21  ;;  %v2558_v20 = vld [vmem:[%s4464_s5 + $0x428] sm:$0xff] }
 0x2fa   : > { %1361 = vmatpush.msrb.mxu1 %v2622_v48  ;;  %1382 = vmatpush.msrb.mxu2 %v2610_v53  ;;  %v2542_v21 = vld [vmem:[%s4464_s5 + $0x3a8] sm:$0xff]  ;;  %v2575_v48 = vld [vmem:[%s4464_s5 + $0x4b0] sm:$0xff] }
 0x2fb   : > { %1327 = vmatpush.msrb.mxu3 %v2542_v21  ;;  %1347 = vmatpush.msra.mxu0 %v2543_v22  ;;  %v2546_v53 = vld [vmem:[%s4464_s5 + $0x3c8] sm:$0xff]  ;;  %v2604_v21 = vld [vmem:[%s4464_s5 + $0x598] sm:$0xff]  ;;  %v2605_v22 = vld [vmem:[%s4464_s5 + $0x5a0] sm:$0xff] }
 0x2fc   : > { %1362 = vmatpush.msrb.mxu1 %v2609_v52  ;;  %1383 = vmatpush.msrb.mxu2 %v2597_v58  ;;  %v2562_v52 = vld [vmem:[%s4464_s5 + $0x448] sm:$0xff]  ;;  %v2533_v58 = vld [vmem:[%s4464_s5 + $0x360] sm:$0xff] }
 0x2fd   : > { %1328 = vmatpush.msrb.mxu3 %v2529_v25  ;;  %1348 = vmatpush.msra.mxu0 %v2530_v26  ;;  %v2591_v25 = vld [vmem:[%s4464_s5 + $0x530] sm:$0xff]  ;;  %v2592_v26 = vld [vmem:[%s4464_s5 + $0x538] sm:$0xff] }
 0x2fe   : > { %1363 = vmatpush.msrb.mxu1 %v2596_v57  ;;  %1384 = vmatpush.msrb.mxu2 %v2584_v12  ;;  %v2549_v57 = vld [vmem:[%s4464_s5 + $0x3e0] sm:$0xff]  ;;  %v2628_v12 = vld [vmem:[%s4464_s5 + $0x658] sm:$0xff] }
 0x2ff   : > { %1401 = vmatpush.msra.mxu3 %v2624_v29  ;;  %v2578_v29 = vld [vmem:[%s4464_s5 + $0x4c8] sm:$0xff] }
 0x300   : > { %1364 = vmatpush.msrb.mxu1 %v2583_v11  ;;  %1385 = vmatpush.msrb.mxu2 %v2571_v16  ;;  %v2616_v16 = vld [vmem:[%s4464_s5 + $0x5f8] sm:$0xff] }
 0x301   : > { %1402 = vmatpush.msra.mxu3 %v2611_v33  ;;  %v2565_v33 = vld [vmem:[%s4464_s5 + $0x460] sm:$0xff] }
 0x302   : > { %1365 = vmatpush.msrb.mxu1 %v2570_v15  ;;  %1386 = vmatpush.msrb.mxu2 %v2558_v20  ;;  %v2615_v15 = vld [vmem:[%s4464_s5 + $0x5f0] sm:$0xff] }
 0x303   : > { %1403 = vmatpush.msra.mxu3 %v2598_v37  ;;  %v2603_v20 = vld [vmem:[%s4464_s5 + $0x590] sm:$0xff]  ;;  %v2552_v37 = vld [vmem:[%s4464_s5 + $0x3f8] sm:$0xff] }
 0x304   : > { %1366 = vmatpush.msrb.mxu1 %v2557_v19  ;;  %1387 = vmatpush.msrb.mxu2 %v2545_v24  ;;  %v2602_v19 = vld [vmem:[%s4464_s5 + $0x588] sm:$0xff] }
 0x305   : > { %1404 = vmatpush.msra.mxu3 %v2585_v41  ;;  %v2590_v24 = vld [vmem:[%s4464_s5 + $0x528] sm:$0xff]  ;;  %v2539_v41 = vld [vmem:[%s4464_s5 + $0x390] sm:$0xff] }
 0x306   : > { %1367 = vmatpush.msrb.mxu1 %v2544_v23  ;;  %1388 = vmatpush.msrb.mxu2 %v2532_v28  ;;  %v2589_v23 = vld [vmem:[%s4464_s5 + $0x520] sm:$0xff] }
 0x307   : > { %1405 = vmatpush.msra.mxu3 %v2572_v45  ;;  %v2577_v28 = vld [vmem:[%s4464_s5 + $0x4c0] sm:$0xff] }
 0x308   : > { %1368 = vmatpush.msrb.mxu1 %v2531_v27  ;;  %v2576_v27 = vld [vmem:[%s4464_s5 + $0x4b8] sm:$0xff]  ;;  %v1192_v45 = vld [vmem:[%s4464_s5 + $0x2e0] sm:$0xff] }
 0x309   : > { %1406 = vmatpush.msra.mxu3 %v2559_v49  ;;  %v1179_v49 = vld [vmem:[%s4464_s5 + $0x278] sm:$0xff] }
 0x30b   : > { %1407 = vmatpush.msra.mxu3 %v2546_v53  ;;  %v1166_v53 = vld [vmem:[%s4464_s5 + $0x210] sm:$0xff] }
 0x30d   : > { %1408 = vmatpush.msra.mxu3 %v2533_v58  ;;  %v1153_v58 = vld [vmem:[%s4464_s5 + $0x1a8] sm:$0xff] }
 0x376   : > { %v916_v59 = vpop.f32.mrf.mxu1 }
 0x37a   : > { %v938_v60 = vpop.f32.mrf.mxu2 }
 0x37b   : > { %v939_v61 = vadd.f32 %v938_v60, %v916_v59  ;;  %v2534_v59 = vld [vmem:[%s4464_s5 + $0x368] sm:$0xff]  ;;  %v2535_v60 = vld [vmem:[%s4464_s5 + $0x370] sm:$0xff] }
 0x37c   : > { %v970_v63 = vpop.f32.mrf.mxu3 }
 0x37d   : > { %v973_v0 = vadd.f32 %v970_v63, %v939_v61  ;;  %v2536_v61 = vld [vmem:[%s4464_s5 + $0x378] sm:$0xff] }
 0x37f   : > { %v977_v1 = vadd.f32 %v2792_v62, %v973_v0 }
 0x381   : > { %vm978_vm11 = vcmp.ge.f32.partialorder %v977_v1, 0.0  ;;  %v979_v2 = vmul.f32 0.1, %v977_v1 }
 0x383   : > { %v980_v3 = vsel %vm978_vm11, %v977_v1, %v979_v2  ;;  %v2793_v1 = vld [vmem:[%s4463_s4 + $0x5] ss:$0 sm:$0xff] }
 0x384   : > { %v984_v4 = vrot.slane %v980_v3, 7 }
 0x386   : > { %v986_v5 = vsel %vm429_vm4, 0.0, %v984_v4 }
 0x387   : > { %v987_v6 = vsel %vm431_vm5, %v986_v5, 0.0 }
 0x388   : > { %v1007_v7 = vrot.slane %v987_v6, 1  ;;  %2519 = vmatmul.msk.f32.vlgmr.msra.gmra.mxu1 %vm452_vm6, %v987_v6  ;;  %v1061_v8 = vrot.slane %v987_v6, 2 }
 0x389   : > { %1441 = vmatpush.msra.mxu1 %v2626_v31  ;;  %v2563_v31 = vld [vmem:[%s4464_s5 + $0x450] sm:$0xff] }
 0x38a   : > { %2518 = vmatmul.msk.f32.vlgmr.msrb.gmra.mxu0 %vm452_vm6, %v1007_v7  ;;  %2528 = vmatmul.msk.f32.vlgmr.msra.gmra.mxu2 %vm452_vm6, %v1061_v8 }
 0x38b   : > { %1421 = vmatpush.msrb.mxu0 %v2625_v30  ;;  %1461 = vmatpush.msra.mxu2 %v2627_v32  ;;  %v2579_v30 = vld [vmem:[%s4464_s5 + $0x4d0] sm:$0xff]  ;;  %v2564_v32 = vld [vmem:[%s4464_s5 + $0x458] sm:$0xff] }
 0x38c   : > { %1442 = vmatpush.msra.mxu1 %v2613_v35  ;;  %v2550_v35 = vld [vmem:[%s4464_s5 + $0x3e8] sm:$0xff] }
 0x38d   : > { %1422 = vmatpush.msrb.mxu0 %v2612_v34  ;;  %1462 = vmatpush.msra.mxu2 %v2614_v36  ;;  %v2566_v34 = vld [vmem:[%s4464_s5 + $0x468] sm:$0xff]  ;;  %v2551_v36 = vld [vmem:[%s4464_s5 + $0x3f0] sm:$0xff] }
 0x38e   : > { %1443 = vmatpush.msra.mxu1 %v2600_v39  ;;  %v2537_v39 = vld [vmem:[%s4464_s5 + $0x380] sm:$0xff] }
 0x38f   : > { %1423 = vmatpush.msrb.mxu0 %v2599_v38  ;;  %1463 = vmatpush.msra.mxu2 %v2601_v40  ;;  %v2553_v38 = vld [vmem:[%s4464_s5 + $0x400] sm:$0xff]  ;;  %v2538_v40 = vld [vmem:[%s4464_s5 + $0x388] sm:$0xff] }
 0x390   : > { %1444 = vmatpush.msra.mxu1 %v2587_v43  ;;  %v2632_v43 = vld [vmem:[%s4464_s5 + $0x678] sm:$0xff] }
 0x391   : > { %1424 = vmatpush.msrb.mxu0 %v2586_v42  ;;  %1464 = vmatpush.msra.mxu2 %v2588_v44  ;;  %v2540_v42 = vld [vmem:[%s4464_s5 + $0x398] sm:$0xff] }
 0x392   : > { %1445 = vmatpush.msra.mxu1 %v2574_v47  ;;  %v1191_v44 = vld [vmem:[%s4464_s5 + $0x2d8] sm:$0xff]  ;;  %v2619_v47 = vld [vmem:[%s4464_s5 + $0x610] sm:$0xff] }
 0x393   : > { %1425 = vmatpush.msrb.mxu0 %v2573_v46  ;;  %1465 = vmatpush.msra.mxu2 %v2575_v48  ;;  %v1193_v46 = vld [vmem:[%s4464_s5 + $0x2e8] sm:$0xff]  ;;  %v1178_v48 = vld [vmem:[%s4464_s5 + $0x270] sm:$0xff] }
 0x394   : > { %1446 = vmatpush.msra.mxu1 %v2561_v51  ;;  %v2606_v51 = vld [vmem:[%s4464_s5 + $0x5a8] sm:$0xff] }
 0x395   : > { %1426 = vmatpush.msrb.mxu0 %v2560_v50  ;;  %1466 = vmatpush.msra.mxu2 %v2562_v52  ;;  %v1180_v50 = vld [vmem:[%s4464_s5 + $0x280] sm:$0xff]  ;;  %v1165_v52 = vld [vmem:[%s4464_s5 + $0x208] sm:$0xff] }
 0x396   : > { %1447 = vmatpush.msra.mxu1 %v2548_v56  ;;  %v2593_v56 = vld [vmem:[%s4464_s5 + $0x540] sm:$0xff] }
 0x397   : > { %1427 = vmatpush.msrb.mxu0 %v2547_v55  ;;  %1467 = vmatpush.msra.mxu2 %v2549_v57  ;;  %v1167_v55 = vld [vmem:[%s4464_s5 + $0x218] sm:$0xff]  ;;  %v1152_v57 = vld [vmem:[%s4464_s5 + $0x1a0] sm:$0xff] }
 0x398   : > { %1448 = vmatpush.msra.mxu1 %v2535_v60  ;;  %v2580_v60 = vld [vmem:[%s4464_s5 + $0x4d8] sm:$0xff] }
 0x399   : > { %1428 = vmatpush.msrb.mxu0 %v2534_v59  ;;  %1468 = vmatpush.msra.mxu2 %v2536_v61  ;;  %v1154_v59 = vld [vmem:[%s4464_s5 + $0x1b0] sm:$0xff]  ;;  %v1139_v61 = vld [vmem:[%s4464_s5 + $0x138] sm:$0xff] }
 0x405   : > { %v1049_v63 = vpop.f32.mrf.mxu1 }
 0x407   : > { %v1027_v62 = vpop.f32.mrf.mxu0 }
 0x408   : > { %v1050_v0 = vadd.f32 %v1049_v63, %v1027_v62  ;;  %v1140_v62 = vld [vmem:[%s4464_s5 + $0x140] sm:$0xff]  ;;  %v1141_v63 = vld [vmem:[%s4464_s5 + $0x148] sm:$0xff] }
 0x40d   : > { %v1081_v2 = vpop.f32.mrf.mxu2 }
 0x40e   : > { %v1084_v3 = vadd.f32 %v1081_v2, %v1050_v0  ;;  %v2567_v0 = vld [vmem:[%s4464_s5 + $0x470] sm:$0xff]  ;;  %v1127_v2 = vld [vmem:[%s4464_s5 + $0xd8] sm:$0xff] }
 0x410   : > { %v1088_v4 = vadd.f32 %v2793_v1, %v1084_v3  ;;  %v1126_v1 = vld [vmem:[%s4464_s5 + $0xd0] sm:$0xff]  ;;  %v1128_v3 = vld [vmem:[%s4464_s5 + $0xe0] sm:$0xff] }
 0x412   : > { %vm1089_vm12 = vcmp.ge.f32.partialorder %v1088_v4, 0.0  ;;  %v1090_v5 = vmul.f32 0.1, %v1088_v4 }
 0x414   : > { %v1091_v6 = vsel %vm1089_vm12, %v1088_v4, %v1090_v5  ;;  %v2554_v4 = vld [vmem:[%s4464_s5 + $0x408] sm:$0xff] }
 0x415   : > { %v1092_v7 = vadd.f32 %v1091_v6, %v2961_v54  ;;  %v2630_v54 = vld [vmem:[%s4464_s5 + $0x668] sm:$0xff]  ;;  %v1114_v6 = vld [vmem:[%s4464_s5 + $0x70] sm:$0xff] }
 0x416   : > { %v1113_v5 = vld [vmem:[%s4464_s5 + $0x68] sm:$0xff] }
 0x417   : > { %v1096_v8 = vrot.slane %v1092_v7, 7  ;;  %v1115_v7 = vld [vmem:[%s4464_s5 + $0x78] sm:$0xff] }
 0x419   : > { %v1098_v9 = vsel %vm429_vm4, 0.0, %v1096_v8  ;;  %v2541_v8 = vld [vmem:[%s4464_s5 + $0x3a0] sm:$0xff] }
 0x41a   : > { %v3567_v10 = vsel %vm431_vm5, %v1098_v9, 0.0  ;;  %v1100_v9 = vld [vmem:[%s4464_s5] sm:$0xff] }
 0x41b   : > { %v3570_v11 = vrot.slane %v3567_v10, 1 }
 0x41d   : > { %2633 = vmatmul.msk.f32.vlgmr.msrb.gmra.mxu3 %vm452_vm6, %v3570_v11  ;;  %2634 = vmatmul.msk.f32.vlgmr.msra.gmra.mxu0 %vm452_vm6, %v3570_v11 }
 0x41e   : > { %2635 = vmatmul.msk.f32.vlgmr.msrb.gmra.mxu1 %vm452_vm6, %v3570_v11  ;;  %2636 = vmatmul.msk.f32.vlgmr.msrb.gmra.mxu2 %vm452_vm6, %v3570_v11 }
 0x41f   : > { %1481 = vmatpush.msrb.mxu3 %v2628_v12  ;;  %1501 = vmatpush.msra.mxu0 %v2629_v13  ;;  %v1101_v12 = vld [vmem:[%s4464_s5 + $0x8] sm:$0xff]  ;;  %v1102_v13 = vld [vmem:[%s4464_s5 + $0x10] sm:$0xff] }
 0x420   : > { %1521 = vmatpush.msrb.mxu1 %v2630_v54  ;;  %1541 = vmatpush.msrb.mxu2 %v2631_v14  ;;  %v1194_v54 = vld [vmem:[%s4464_s5 + $0x2f0] sm:$0xff]  ;;  %v1195_v14 = vld [vmem:[%s4464_s5 + $0x2f8] sm:$0xff] }
 0x421   : > { %1482 = vmatpush.msrb.mxu3 %v2615_v15  ;;  %1502 = vmatpush.msra.mxu0 %v2616_v16  ;;  %v1196_v15 = vld [vmem:[%s4464_s5 + $0x300] sm:$0xff]  ;;  %v1197_v16 = vld [vmem:[%s4464_s5 + $0x308] sm:$0xff] }
 0x422   : > { %1522 = vmatpush.msrb.mxu1 %v2617_v17  ;;  %1542 = vmatpush.msrb.mxu2 %v2618_v18  ;;  %v1182_v17 = vld [vmem:[%s4464_s5 + $0x290] sm:$0xff]  ;;  %v1183_v18 = vld [vmem:[%s4464_s5 + $0x298] sm:$0xff] }
 0x423   : > { %1483 = vmatpush.msrb.mxu3 %v2602_v19  ;;  %1503 = vmatpush.msra.mxu0 %v2603_v20  ;;  %v1184_v19 = vld [vmem:[%s4464_s5 + $0x2a0] sm:$0xff] }
 0x424   : > { %1523 = vmatpush.msrb.mxu1 %v2604_v21  ;;  %1543 = vmatpush.msrb.mxu2 %v2605_v22  ;;  %v1168_v20 = vld [vmem:[%s4464_s5 + $0x220] sm:$0xff]  ;;  %v1169_v21 = vld [vmem:[%s4464_s5 + $0x228] sm:$0xff]  ;;  %v1170_v22 = vld [vmem:[%s4464_s5 + $0x230] sm:$0xff] }
 0x425   : > { %1484 = vmatpush.msrb.mxu3 %v2589_v23  ;;  %1504 = vmatpush.msra.mxu0 %v2590_v24  ;;  %v1171_v23 = vld [vmem:[%s4464_s5 + $0x238] sm:$0xff] }
 0x426   : > { %1524 = vmatpush.msrb.mxu1 %v2591_v25  ;;  %1544 = vmatpush.msrb.mxu2 %v2592_v26  ;;  %v1155_v24 = vld [vmem:[%s4464_s5 + $0x1b8] sm:$0xff]  ;;  %v1156_v25 = vld [vmem:[%s4464_s5 + $0x1c0] sm:$0xff]  ;;  %v1157_v26 = vld [vmem:[%s4464_s5 + $0x1c8] sm:$0xff] }
 0x427   : > { %2637 = vmatmul.msk.f32.vlgmr.msra.gmra.mxu3 %vm452_vm6, %v3570_v11  ;;  %2638 = vmatmul.msk.f32.vlgmr.msrb.gmra.mxu0 %vm452_vm6, %v3570_v11 }
 0x428   : > { %2639 = vmatmul.msk.f32.vlgmr.msra.gmra.mxu1 %vm452_vm6, %v3570_v11  ;;  %2640 = vmatmul.msk.f32.vlgmr.msra.gmra.mxu2 %vm452_vm6, %v3570_v11 }
 0x429   : > { %1485 = vmatpush.msrb.mxu3 %v2576_v27  ;;  %1505 = vmatpush.msra.mxu0 %v2577_v28  ;;  %v1158_v27 = vld [vmem:[%s4464_s5 + $0x1d0] sm:$0xff] }
 0x42a   : > { %1525 = vmatpush.msrb.mxu1 %v2578_v29  ;;  %1545 = vmatpush.msrb.mxu2 %v2579_v30  ;;  %v1142_v28 = vld [vmem:[%s4464_s5 + $0x150] sm:$0xff]  ;;  %v1143_v29 = vld [vmem:[%s4464_s5 + $0x158] sm:$0xff]  ;;  %v1144_v30 = vld [vmem:[%s4464_s5 + $0x160] sm:$0xff] }
 0x42b   : > { %1486 = vmatpush.msrb.mxu3 %v2563_v31  ;;  %1506 = vmatpush.msra.mxu0 %v2564_v32  ;;  %v1145_v31 = vld [vmem:[%s4464_s5 + $0x168] sm:$0xff] }
 0x42c   : > { %1526 = vmatpush.msrb.mxu1 %v2565_v33  ;;  %1546 = vmatpush.msrb.mxu2 %v2566_v34  ;;  %v1129_v32 = vld [vmem:[%s4464_s5 + $0xe8] sm:$0xff]  ;;  %v1130_v33 = vld [vmem:[%s4464_s5 + $0xf0] sm:$0xff]  ;;  %v1131_v34 = vld [vmem:[%s4464_s5 + $0xf8] sm:$0xff] }
 0x42d   : > { %1487 = vmatpush.msrb.mxu3 %v2550_v35  ;;  %1507 = vmatpush.msra.mxu0 %v2551_v36  ;;  %v1132_v35 = vld [vmem:[%s4464_s5 + $0x100] sm:$0xff] }
 0x42e   : > { %1527 = vmatpush.msrb.mxu1 %v2552_v37  ;;  %1547 = vmatpush.msrb.mxu2 %v2553_v38  ;;  %v1116_v36 = vld [vmem:[%s4464_s5 + $0x80] sm:$0xff]  ;;  %v1117_v37 = vld [vmem:[%s4464_s5 + $0x88] sm:$0xff]  ;;  %v1118_v38 = vld [vmem:[%s4464_s5 + $0x90] sm:$0xff] }
 0x42f   : > { %1488 = vmatpush.msrb.mxu3 %v2537_v39  ;;  %1508 = vmatpush.msra.mxu0 %v2538_v40  ;;  %v1119_v39 = vld [vmem:[%s4464_s5 + $0x98] sm:$0xff] }
 0x430   : > { %1528 = vmatpush.msrb.mxu1 %v2539_v41  ;;  %1548 = vmatpush.msrb.mxu2 %v2540_v42  ;;  %v1103_v40 = vld [vmem:[%s4464_s5 + $0x18] sm:$0xff]  ;;  %v1104_v41 = vld [vmem:[%s4464_s5 + $0x20] sm:$0xff]  ;;  %v1105_v42 = vld [vmem:[%s4464_s5 + $0x28] sm:$0xff] }
 0x431   : > { %1561 = vmatpush.msra.mxu3 %v2632_v43  ;;  %1583 = vmatpush.msrb.mxu0 %v1191_v44  ;;  %v1106_v43 = vld [vmem:[%s4464_s5 + $0x30] sm:$0xff] }
 0x432   : > { %1603 = vmatpush.msra.mxu1 %v1192_v45  ;;  %1623 = vmatpush.msra.mxu2 %v1193_v46  ;;  %v1198_v44 = vld [vmem:[%s4464_s5 + $0x310] sm:$0xff]  ;;  %v1199_v45 = vld [vmem:[%s4464_s5 + $0x318] sm:$0xff]  ;;  %v1200_v46 = vld [vmem:[%s4464_s5 + $0x320] sm:$0xff] }
 0x433   : > { %2641 = vmatmul.msk.f32.vlgmr.msrb.gmra.mxu3 %vm452_vm6, %v3570_v11  ;;  %2642 = vmatmul.msk.f32.vlgmr.msra.gmra.mxu0 %vm452_vm6, %v3570_v11 }
 0x434   : > { %2643 = vmatmul.msk.f32.vlgmr.msrb.gmra.mxu1 %vm452_vm6, %v3570_v11  ;;  %2644 = vmatmul.msk.f32.vlgmr.msrb.gmra.mxu2 %vm452_vm6, %v3570_v11 }
 0x435   : > { %1562 = vmatpush.msra.mxu3 %v2619_v47  ;;  %1584 = vmatpush.msrb.mxu0 %v1178_v48  ;;  %v1201_v47 = vld [vmem:[%s4464_s5 + $0x328] sm:$0xff] }
 0x436   : > { %1604 = vmatpush.msra.mxu1 %v1179_v49  ;;  %1624 = vmatpush.msra.mxu2 %v1180_v50  ;;  %v1185_v48 = vld [vmem:[%s4464_s5 + $0x2a8] sm:$0xff]  ;;  %v1186_v49 = vld [vmem:[%s4464_s5 + $0x2b0] sm:$0xff]  ;;  %v1187_v50 = vld [vmem:[%s4464_s5 + $0x2b8] sm:$0xff] }
 0x437   : > { %1563 = vmatpush.msra.mxu3 %v2606_v51  ;;  %1585 = vmatpush.msrb.mxu0 %v1165_v52  ;;  %v1188_v51 = vld [vmem:[%s4464_s5 + $0x2c0] sm:$0xff] }
 0x438   : > { %1605 = vmatpush.msra.mxu1 %v1166_v53  ;;  %1625 = vmatpush.msra.mxu2 %v1167_v55  ;;  %v1172_v52 = vld [vmem:[%s4464_s5 + $0x240] sm:$0xff]  ;;  %v1173_v53 = vld [vmem:[%s4464_s5 + $0x248] sm:$0xff]  ;;  %v1174_v55 = vld [vmem:[%s4464_s5 + $0x250] sm:$0xff] }
 0x439   : > { %1564 = vmatpush.msra.mxu3 %v2593_v56  ;;  %1586 = vmatpush.msrb.mxu0 %v1152_v57  ;;  %v1175_v56 = vld [vmem:[%s4464_s5 + $0x258] sm:$0xff] }
 0x43a   : > { %1606 = vmatpush.msra.mxu1 %v1153_v58  ;;  %1626 = vmatpush.msra.mxu2 %v1154_v59  ;;  %v1159_v57 = vld [vmem:[%s4464_s5 + $0x1d8] sm:$0xff]  ;;  %v1160_v58 = vld [vmem:[%s4464_s5 + $0x1e0] sm:$0xff]  ;;  %v1161_v59 = vld [vmem:[%s4464_s5 + $0x1e8] sm:$0xff] }
 0x43b   : > { %1565 = vmatpush.msra.mxu3 %v2580_v60  ;;  %1587 = vmatpush.msrb.mxu0 %v1139_v61  ;;  %v1162_v60 = vld [vmem:[%s4464_s5 + $0x1f0] sm:$0xff] }
 0x43c   : > { %1607 = vmatpush.msra.mxu1 %v1140_v62  ;;  %1627 = vmatpush.msra.mxu2 %v1141_v63  ;;  %v1146_v61 = vld [vmem:[%s4464_s5 + $0x170] sm:$0xff]  ;;  %v1147_v62 = vld [vmem:[%s4464_s5 + $0x178] sm:$0xff]  ;;  %v1148_v63 = vld [vmem:[%s4464_s5 + $0x180] sm:$0xff] }
 0x43d   : > { %1566 = vmatpush.msra.mxu3 %v2567_v0  ;;  %1588 = vmatpush.msrb.mxu0 %v1126_v1  ;;  %v1149_v0 = vld [vmem:[%s4464_s5 + $0x188] sm:$0xff] }
 0x43e   : > { %1608 = vmatpush.msra.mxu1 %v1127_v2  ;;  %1628 = vmatpush.msra.mxu2 %v1128_v3  ;;  %v1133_v1 = vld [vmem:[%s4464_s5 + $0x108] sm:$0xff]  ;;  %v1134_v2 = vld [vmem:[%s4464_s5 + $0x110] sm:$0xff]  ;;  %v1135_v3 = vld [vmem:[%s4464_s5 + $0x118] sm:$0xff] }
 0x43f   : > { %1567 = vmatpush.msra.mxu3 %v2554_v4  ;;  %1589 = vmatpush.msrb.mxu0 %v1113_v5  ;;  %v1136_v4 = vld [vmem:[%s4464_s5 + $0x120] sm:$0xff] }
 0x440   : > { %1609 = vmatpush.msra.mxu1 %v1114_v6  ;;  %1629 = vmatpush.msra.mxu2 %v1115_v7  ;;  %v1120_v5 = vld [vmem:[%s4464_s5 + $0xa0] sm:$0xff]  ;;  %v1121_v6 = vld [vmem:[%s4464_s5 + $0xa8] sm:$0xff]  ;;  %v1122_v7 = vld [vmem:[%s4464_s5 + $0xb0] sm:$0xff] }
 0x441   : > { %1568 = vmatpush.msra.mxu3 %v2541_v8  ;;  %1590 = vmatpush.msrb.mxu0 %v1100_v9  ;;  %v1123_v8 = vld [vmem:[%s4464_s5 + $0xb8] sm:$0xff] }
 0x442   : > { %1610 = vmatpush.msra.mxu1 %v1101_v12  ;;  %1630 = vmatpush.msra.mxu2 %v1102_v13  ;;  %v1107_v9 = vld [vmem:[%s4464_s5 + $0x38] sm:$0xff]  ;;  %v1108_v12 = vld [vmem:[%s4464_s5 + $0x40] sm:$0xff]  ;;  %v1109_v13 = vld [vmem:[%s4464_s5 + $0x48] sm:$0xff] }
 0x443   : > { %2645 = vmatmul.msk.f32.vlgmr.msra.gmra.mxu3 %vm452_vm6, %v3570_v11  ;;  %2646 = vmatmul.msk.f32.vlgmr.msrb.gmra.mxu0 %vm452_vm6, %v3567_v10  ;;  %v1181_v11 = vld [vmem:[%s4464_s5 + $0x288] sm:$0xff] }
 0x444   : > { %2647 = vmatmul.msk.f32.vlgmr.msra.gmra.mxu1 %vm452_vm6, %v3567_v10  ;;  %2648 = vmatmul.msk.f32.vlgmr.msra.gmra.mxu2 %vm452_vm6, %v3567_v10 }
 0x445   : > { %1643 = vmatpush.msrb.mxu3 %v1194_v54  ;;  %1663 = vmatpush.msra.mxu0 %v1195_v14  ;;  %v1110_v54 = vld [vmem:[%s4464_s5 + $0x50] sm:$0xff] }
 0x446   : > { %1683 = vmatpush.msrb.mxu1 %v1196_v15  ;;  %1703 = vmatpush.msrb.mxu2 %v1197_v16  ;;  %v1202_v14 = vld [vmem:[%s4464_s5 + $0x330] sm:$0xff]  ;;  %v1203_v15 = vld [vmem:[%s4464_s5 + $0x338] sm:$0xff] }
 0x447   : > { %1644 = vmatpush.msrb.mxu3 %v1181_v11  ;;  %1664 = vmatpush.msra.mxu0 %v1182_v17  ;;  %v2750_v16 = vld [vmem:[%s4464_s5 + $0x958] sm:$0xff]  ;;  %v2751_v11 = vld [vmem:[%s4464_s5 + $0x960] sm:$0xff]  ;;  %v1189_v17 = vld [vmem:[%s4464_s5 + $0x2c8] sm:$0xff] }
 0x448   : > { %1684 = vmatpush.msrb.mxu1 %v1183_v18  ;;  %1704 = vmatpush.msrb.mxu2 %v1184_v19  ;;  %v1190_v18 = vld [vmem:[%s4464_s5 + $0x2d0] sm:$0xff] }
 0x449   : > { %1645 = vmatpush.msrb.mxu3 %v1168_v20  ;;  %1665 = vmatpush.msra.mxu0 %v1169_v21  ;;  %v2737_v19 = vld [vmem:[%s4464_s5 + $0x8f0] sm:$0xff]  ;;  %v2738_v20 = vld [vmem:[%s4464_s5 + $0x8f8] sm:$0xff]  ;;  %v1176_v21 = vld [vmem:[%s4464_s5 + $0x260] sm:$0xff] }
 0x44a   : > { %1685 = vmatpush.msrb.mxu1 %v1170_v22  ;;  %1705 = vmatpush.msrb.mxu2 %v1171_v23  ;;  %v1177_v22 = vld [vmem:[%s4464_s5 + $0x268] sm:$0xff] }
 0x44b   : > { %1646 = vmatpush.msrb.mxu3 %v1155_v24  ;;  %1666 = vmatpush.msra.mxu0 %v1156_v25  ;;  %v2724_v23 = vld [vmem:[%s4464_s5 + $0x888] sm:$0xff]  ;;  %v2725_v24 = vld [vmem:[%s4464_s5 + $0x890] sm:$0xff]  ;;  %v1163_v25 = vld [vmem:[%s4464_s5 + $0x1f8] sm:$0xff] }
 0x44c   : > { %1686 = vmatpush.msrb.mxu1 %v1157_v26  ;;  %1706 = vmatpush.msrb.mxu2 %v1158_v27  ;;  %v1164_v26 = vld [vmem:[%s4464_s5 + $0x200] sm:$0xff] }
 0x44d   : > { %1647 = vmatpush.msrb.mxu3 %v1142_v28  ;;  %1667 = vmatpush.msra.mxu0 %v1143_v29  ;;  %v2711_v27 = vld [vmem:[%s4464_s5 + $0x820] sm:$0xff]  ;;  %v2712_v28 = vld [vmem:[%s4464_s5 + $0x828] sm:$0xff]  ;;  %v1150_v29 = vld [vmem:[%s4464_s5 + $0x190] sm:$0xff] }
 0x44e   : > { %1687 = vmatpush.msrb.mxu1 %v1144_v30  ;;  %1707 = vmatpush.msrb.mxu2 %v1145_v31  ;;  %v1151_v30 = vld [vmem:[%s4464_s5 + $0x198] sm:$0xff] }
 0x44f   : > { %1648 = vmatpush.msrb.mxu3 %v1129_v32  ;;  %1668 = vmatpush.msra.mxu0 %v1130_v33  ;;  %v2698_v31 = vld [vmem:[%s4464_s5 + $0x7b8] sm:$0xff]  ;;  %v2699_v32 = vld [vmem:[%s4464_s5 + $0x7c0] sm:$0xff]  ;;  %v1137_v33 = vld [vmem:[%s4464_s5 + $0x128] sm:$0xff] }
 0x450   : > { %1688 = vmatpush.msrb.mxu1 %v1131_v34  ;;  %1708 = vmatpush.msrb.mxu2 %v1132_v35  ;;  %v1138_v34 = vld [vmem:[%s4464_s5 + $0x130] sm:$0xff] }
 0x451   : > { %1649 = vmatpush.msrb.mxu3 %v1116_v36  ;;  %1669 = vmatpush.msra.mxu0 %v1117_v37  ;;  %v2685_v35 = vld [vmem:[%s4464_s5 + $0x750] sm:$0xff]  ;;  %v2686_v36 = vld [vmem:[%s4464_s5 + $0x758] sm:$0xff]  ;;  %v1124_v37 = vld [vmem:[%s4464_s5 + $0xc0] sm:$0xff] }
 0x452   : > { %1689 = vmatpush.msrb.mxu1 %v1118_v38  ;;  %1709 = vmatpush.msrb.mxu2 %v1119_v39  ;;  %v1125_v38 = vld [vmem:[%s4464_s5 + $0xc8] sm:$0xff] }
 0x453   : > { %1650 = vmatpush.msrb.mxu3 %v1103_v40  ;;  %1670 = vmatpush.msra.mxu0 %v1104_v41  ;;  %v2672_v39 = vld [vmem:[%s4464_s5 + $0x6e8] sm:$0xff]  ;;  %v2673_v40 = vld [vmem:[%s4464_s5 + $0x6f0] sm:$0xff]  ;;  %v1111_v41 = vld [vmem:[%s4464_s5 + $0x58] sm:$0xff] }
 0x454   : > { %1690 = vmatpush.msrb.mxu1 %v1105_v42  ;;  %1710 = vmatpush.msrb.mxu2 %v1106_v43  ;;  %v1112_v42 = vld [vmem:[%s4464_s5 + $0x60] sm:$0xff] }
 0x455   : > { %2649 = vmatmul.msk.f32.vlgmr.msrb.gmra.mxu3 %vm452_vm6, %v3567_v10  ;;  %2650 = vmatmul.msk.f32.vlgmr.msra.gmra.mxu0 %vm452_vm6, %v3567_v10  ;;  %v2659_v43 = vld [vmem:[%s4464_s5 + $0x680] sm:$0xff] }
 0x456   : > { %2651 = vmatmul.msk.f32.vlgmr.msrb.gmra.mxu1 %vm452_vm6, %v3567_v10  ;;  %2652 = vmatmul.msk.f32.vlgmr.msrb.gmra.mxu2 %vm452_vm6, %v3567_v10 }
 0x457   : > { %1723 = vmatpush.msra.mxu3 %v1198_v44  ;;  %1743 = vmatpush.msrb.mxu0 %v1199_v45  ;;  %v2660_v44 = vld [vmem:[%s4464_s5 + $0x688] sm:$0xff]  ;;  %v4101_v45 = vrot.slane %v3567_v10, 2 }
 0x458   : > { %1763 = vmatpush.msra.mxu1 %v1200_v46  ;;  %1783 = vmatpush.msra.mxu2 %v1201_v47  ;;  %v2752_v46 = vld [vmem:[%s4464_s5 + $0x968] sm:$0xff]  ;;  %v2753_v47 = vld [vmem:[%s4464_s5 + $0x970] sm:$0xff] }
 0x459   : > { %1724 = vmatpush.msra.mxu3 %v1185_v48  ;;  %1744 = vmatpush.msrb.mxu0 %v1186_v49  ;;  %v2754_v48 = vld [vmem:[%s4464_s5 + $0x978] sm:$0xff]  ;;  %v2755_v49 = vld [vmem:[%s4464_s5 + $0x980] sm:$0xff] }
 0x45a   : > { %1764 = vmatpush.msra.mxu1 %v1187_v50  ;;  %1784 = vmatpush.msra.mxu2 %v1188_v51  ;;  %v2739_v50 = vld [vmem:[%s4464_s5 + $0x900] sm:$0xff]  ;;  %v2741_v51 = vld [vmem:[%s4464_s5 + $0x910] sm:$0xff] }
 0x45b   : > { %1725 = vmatpush.msra.mxu3 %v1172_v52  ;;  %1745 = vmatpush.msrb.mxu0 %v1173_v53  ;;  %v2742_v52 = vld [vmem:[%s4464_s5 + $0x918] sm:$0xff] }
 0x45c   : > { %1765 = vmatpush.msra.mxu1 %v1174_v55  ;;  %1785 = vmatpush.msra.mxu2 %v1175_v56  ;;  %v2726_v53 = vld [vmem:[%s4464_s5 + $0x898] sm:$0xff]  ;;  %v2727_v55 = vld [vmem:[%s4464_s5 + $0x8a0] sm:$0xff]  ;;  %v2728_v56 = vld [vmem:[%s4464_s5 + $0x8a8] sm:$0xff] }
 0x45d   : > { %1726 = vmatpush.msra.mxu3 %v1159_v57  ;;  %1746 = vmatpush.msrb.mxu0 %v1160_v58  ;;  %v2729_v57 = vld [vmem:[%s4464_s5 + $0x8b0] sm:$0xff] }
 0x45e   : > { %1766 = vmatpush.msra.mxu1 %v1161_v59  ;;  %1786 = vmatpush.msra.mxu2 %v1162_v60  ;;  %v2713_v58 = vld [vmem:[%s4464_s5 + $0x830] sm:$0xff]  ;;  %v2714_v59 = vld [vmem:[%s4464_s5 + $0x838] sm:$0xff]  ;;  %v2715_v60 = vld [vmem:[%s4464_s5 + $0x840] sm:$0xff] }
 0x45f   : > { %1727 = vmatpush.msra.mxu3 %v1146_v61  ;;  %1747 = vmatpush.msrb.mxu0 %v1147_v62  ;;  %v2716_v61 = vld [vmem:[%s4464_s5 + $0x848] sm:$0xff] }
 0x460   : > { %1767 = vmatpush.msra.mxu1 %v1148_v63  ;;  %1787 = vmatpush.msra.mxu2 %v1149_v0  ;;  %v2700_v62 = vld [vmem:[%s4464_s5 + $0x7c8] sm:$0xff]  ;;  %v2701_v63 = vld [vmem:[%s4464_s5 + $0x7d0] sm:$0xff]  ;;  %v2702_v0 = vld [vmem:[%s4464_s5 + $0x7d8] sm:$0xff] }
 0x461   : > { %1728 = vmatpush.msra.mxu3 %v1133_v1  ;;  %1748 = vmatpush.msrb.mxu0 %v1134_v2  ;;  %v2703_v1 = vld [vmem:[%s4464_s5 + $0x7e0] sm:$0xff] }
 0x462   : > { %1768 = vmatpush.msra.mxu1 %v1135_v3  ;;  %1788 = vmatpush.msra.mxu2 %v1136_v4  ;;  %v2687_v2 = vld [vmem:[%s4464_s5 + $0x760] sm:$0xff]  ;;  %v2688_v3 = vld [vmem:[%s4464_s5 + $0x768] sm:$0xff]  ;;  %v2689_v4 = vld [vmem:[%s4464_s5 + $0x770] sm:$0xff] }
 0x463   : > { %1729 = vmatpush.msra.mxu3 %v1120_v5  ;;  %1749 = vmatpush.msrb.mxu0 %v1121_v6  ;;  %v2690_v5 = vld [vmem:[%s4464_s5 + $0x778] sm:$0xff] }
 0x464   : > { %1769 = vmatpush.msra.mxu1 %v1122_v7  ;;  %1789 = vmatpush.msra.mxu2 %v1123_v8  ;;  %v2674_v6 = vld [vmem:[%s4464_s5 + $0x6f8] sm:$0xff]  ;;  %v2675_v7 = vld [vmem:[%s4464_s5 + $0x700] sm:$0xff]  ;;  %v2676_v8 = vld [vmem:[%s4464_s5 + $0x708] sm:$0xff] }
 0x465   : > { %1730 = vmatpush.msra.mxu3 %v1107_v9  ;;  %1750 = vmatpush.msrb.mxu0 %v1108_v12  ;;  %v2677_v9 = vld [vmem:[%s4464_s5 + $0x710] sm:$0xff] }
 0x466   : > { %1770 = vmatpush.msra.mxu1 %v1109_v13  ;;  %1790 = vmatpush.msra.mxu2 %v1110_v54  ;;  %v2661_v12 = vld [vmem:[%s4464_s5 + $0x690] sm:$0xff]  ;;  %v2662_v13 = vld [vmem:[%s4464_s5 + $0x698] sm:$0xff]  ;;  %v2663_v54 = vld [vmem:[%s4464_s5 + $0x6a0] sm:$0xff] }
 0x467   : > { %2653 = vmatmul.msk.f32.vlgmr.msra.gmra.mxu3 %vm452_vm6, %v3567_v10  ;;  %2654 = vmatmul.msk.f32.vlgmr.msrb.gmra.mxu0 %vm452_vm6, %v3567_v10 }
 0x468   : > { %2655 = vmatmul.msk.f32.vlgmr.msra.gmra.mxu1 %vm452_vm6, %v3567_v10  ;;  %2656 = vmatmul.msk.f32.vlgmr.msra.gmra.mxu2 %vm452_vm6, %v3567_v10 }
 0x469   : > { %1803 = vmatpush.msrb.mxu3 %v1202_v14  ;;  %1823 = vmatpush.msra.mxu0 %v1203_v15  ;;  %v2664_v14 = vld [vmem:[%s4464_s5 + $0x6a8] sm:$0xff] }
 0x46a   : > { %1951 = vmatpush.msrb.mxu1 %v2750_v16  ;;  %1971 = vmatpush.msrb.mxu2 %v2751_v11  ;;  %v2756_v15 = vld [vmem:[%s4464_s5 + $0x988] sm:$0xff]  ;;  %v2757_v16 = vld [vmem:[%s4464_s5 + $0x990] sm:$0xff]  ;;  %v2758_v11 = vld [vmem:[%s4464_s5 + $0x998] sm:$0xff] }
 0x46b   : > { %1804 = vmatpush.msrb.mxu3 %v1189_v17  ;;  %1824 = vmatpush.msra.mxu0 %v1190_v18  ;;  %v2759_v17 = vld [vmem:[%s4464_s5 + $0x9a0] sm:$0xff] }
 0x46c   : > { %1952 = vmatpush.msrb.mxu1 %v2737_v19  ;;  %1972 = vmatpush.msrb.mxu2 %v2738_v20  ;;  %v2743_v18 = vld [vmem:[%s4464_s5 + $0x920] sm:$0xff]  ;;  %v2744_v19 = vld [vmem:[%s4464_s5 + $0x928] sm:$0xff]  ;;  %v2745_v20 = vld [vmem:[%s4464_s5 + $0x930] sm:$0xff] }
 0x46d   : > { %1805 = vmatpush.msrb.mxu3 %v1176_v21  ;;  %1825 = vmatpush.msra.mxu0 %v1177_v22  ;;  %v2746_v21 = vld [vmem:[%s4464_s5 + $0x938] sm:$0xff] }
 0x46e   : > { %1953 = vmatpush.msrb.mxu1 %v2724_v23  ;;  %1973 = vmatpush.msrb.mxu2 %v2725_v24  ;;  %v2730_v22 = vld [vmem:[%s4464_s5 + $0x8b8] sm:$0xff]  ;;  %v2731_v23 = vld [vmem:[%s4464_s5 + $0x8c0] sm:$0xff]  ;;  %v2732_v24 = vld [vmem:[%s4464_s5 + $0x8c8] sm:$0xff] }
 0x46f   : > { %1806 = vmatpush.msrb.mxu3 %v1163_v25  ;;  %1826 = vmatpush.msra.mxu0 %v1164_v26  ;;  %v2733_v25 = vld [vmem:[%s4464_s5 + $0x8d0] sm:$0xff] }
 0x470   : > { %1954 = vmatpush.msrb.mxu1 %v2711_v27  ;;  %1974 = vmatpush.msrb.mxu2 %v2712_v28  ;;  %v2717_v26 = vld [vmem:[%s4464_s5 + $0x850] sm:$0xff]  ;;  %v2718_v27 = vld [vmem:[%s4464_s5 + $0x858] sm:$0xff]  ;;  %v2719_v28 = vld [vmem:[%s4464_s5 + $0x860] sm:$0xff] }
 0x471   : > { %1807 = vmatpush.msrb.mxu3 %v1150_v29  ;;  %1827 = vmatpush.msra.mxu0 %v1151_v30  ;;  %v2720_v29 = vld [vmem:[%s4464_s5 + $0x868] sm:$0xff] }
 0x472   : > { %1955 = vmatpush.msrb.mxu1 %v2698_v31  ;;  %1975 = vmatpush.msrb.mxu2 %v2699_v32  ;;  %v2704_v30 = vld [vmem:[%s4464_s5 + $0x7e8] sm:$0xff]  ;;  %v2705_v31 = vld [vmem:[%s4464_s5 + $0x7f0] sm:$0xff]  ;;  %v2706_v32 = vld [vmem:[%s4464_s5 + $0x7f8] sm:$0xff] }
 0x473   : > { %1808 = vmatpush.msrb.mxu3 %v1137_v33  ;;  %1828 = vmatpush.msra.mxu0 %v1138_v34  ;;  %v2707_v33 = vld [vmem:[%s4464_s5 + $0x800] sm:$0xff] }
 0x474   : > { %1956 = vmatpush.msrb.mxu1 %v2685_v35  ;;  %1976 = vmatpush.msrb.mxu2 %v2686_v36  ;;  %v2691_v34 = vld [vmem:[%s4464_s5 + $0x780] sm:$0xff]  ;;  %v2692_v35 = vld [vmem:[%s4464_s5 + $0x788] sm:$0xff]  ;;  %v2693_v36 = vld [vmem:[%s4464_s5 + $0x790] sm:$0xff] }
 0x475   : > { %1809 = vmatpush.msrb.mxu3 %v1124_v37  ;;  %1829 = vmatpush.msra.mxu0 %v1125_v38  ;;  %v2694_v37 = vld [vmem:[%s4464_s5 + $0x798] sm:$0xff] }
 0x476   : > { %1957 = vmatpush.msrb.mxu1 %v2672_v39  ;;  %1977 = vmatpush.msrb.mxu2 %v2673_v40  ;;  %v2678_v38 = vld [vmem:[%s4464_s5 + $0x718] sm:$0xff]  ;;  %v2679_v39 = vld [vmem:[%s4464_s5 + $0x720] sm:$0xff]  ;;  %v2680_v40 = vld [vmem:[%s4464_s5 + $0x728] sm:$0xff] }
 0x477   : > { %1810 = vmatpush.msrb.mxu3 %v1111_v41  ;;  %1830 = vmatpush.msra.mxu0 %v1112_v42  ;;  %v2681_v41 = vld [vmem:[%s4464_s5 + $0x730] sm:$0xff] }
 0x478   : > { %1958 = vmatpush.msrb.mxu1 %v2659_v43  ;;  %1978 = vmatpush.msrb.mxu2 %v2660_v44  ;;  %v2665_v42 = vld [vmem:[%s4464_s5 + $0x6b0] sm:$0xff]  ;;  %v2666_v43 = vld [vmem:[%s4464_s5 + $0x6b8] sm:$0xff]  ;;  %v2667_v44 = vld [vmem:[%s4464_s5 + $0x6c0] sm:$0xff] }
 0x479   : > { %2657 = vmatmul.msk.f32.vlgmr.msrb.gmra.mxu3 %vm452_vm6, %v3567_v10  ;;  %2658 = vmatmul.msk.f32.vlgmr.msra.gmra.mxu0 %vm452_vm6, %v3567_v10  ;;  %v2740_v10 = vld [vmem:[%s4464_s5 + $0x908] sm:$0xff] }
 0x47a   : > { %2763 = vmatmul.msk.f32.vlgmr.msrb.gmra.mxu1 %vm452_vm6, %v4101_v45  ;;  %2764 = vmatmul.msk.f32.vlgmr.msrb.gmra.mxu2 %vm452_vm6, %v4101_v45 }
 0x47b   : > { %1991 = vmatpush.msra.mxu3 %v2752_v46  ;;  %2011 = vmatpush.msrb.mxu0 %v2753_v47  ;;  %v2668_v46 = vld [vmem:[%s4464_s5 + $0x6c8] sm:$0xff] }
 0x47c   : > { %2031 = vmatpush.msra.mxu1 %v2754_v48  ;;  %2051 = vmatpush.msra.mxu2 %v2755_v49  ;;  %v2760_v47 = vld [vmem:[%s4464_s5 + $0x9a8] sm:$0xff]  ;;  %v2761_v48 = vld [vmem:[%s4464_s5 + $0x9b0] sm:$0xff]  ;;  %v2762_v49 = vld [vmem:[%s4464_s5 + $0x9b8] sm:$0xff] }
 0x47d   : > { %1992 = vmatpush.msra.mxu3 %v2739_v50  ;;  %2012 = vmatpush.msrb.mxu0 %v2740_v10  ;;  %v2747_v50 = vld [vmem:[%s4464_s5 + $0x940] sm:$0xff]  ;;  %v2748_v10 = vld [vmem:[%s4464_s5 + $0x948] sm:$0xff] }
 0x47e   : > { %2032 = vmatpush.msra.mxu1 %v2741_v51  ;;  %2052 = vmatpush.msra.mxu2 %v2742_v52  ;;  %v2749_v51 = vld [vmem:[%s4464_s5 + $0x950] sm:$0xff]  ;;  %v2734_v52 = vld [vmem:[%s4464_s5 + $0x8d8] sm:$0xff] }
 0x47f   : > { %1993 = vmatpush.msra.mxu3 %v2726_v53  ;;  %2013 = vmatpush.msrb.mxu0 %v2727_v55  ;;  %v2735_v53 = vld [vmem:[%s4464_s5 + $0x8e0] sm:$0xff]  ;;  %v2736_v55 = vld [vmem:[%s4464_s5 + $0x8e8] sm:$0xff] }
 0x480   : > { %2033 = vmatpush.msra.mxu1 %v2728_v56  ;;  %2053 = vmatpush.msra.mxu2 %v2729_v57  ;;  %v2721_v56 = vld [vmem:[%s4464_s5 + $0x870] sm:$0xff]  ;;  %v2722_v57 = vld [vmem:[%s4464_s5 + $0x878] sm:$0xff] }
 0x481   : > { %1994 = vmatpush.msra.mxu3 %v2713_v58  ;;  %2014 = vmatpush.msrb.mxu0 %v2714_v59  ;;  %v2723_v58 = vld [vmem:[%s4464_s5 + $0x880] sm:$0xff]  ;;  %v2708_v59 = vld [vmem:[%s4464_s5 + $0x808] sm:$0xff] }
 0x482   : > { %2034 = vmatpush.msra.mxu1 %v2715_v60  ;;  %2054 = vmatpush.msra.mxu2 %v2716_v61  ;;  %v2709_v60 = vld [vmem:[%s4464_s5 + $0x810] sm:$0xff]  ;;  %v2710_v61 = vld [vmem:[%s4464_s5 + $0x818] sm:$0xff] }
 0x483   : > { %1995 = vmatpush.msra.mxu3 %v2700_v62  ;;  %2015 = vmatpush.msrb.mxu0 %v2701_v63  ;;  %v2695_v62 = vld [vmem:[%s4464_s5 + $0x7a0] sm:$0xff]  ;;  %v2696_v63 = vld [vmem:[%s4464_s5 + $0x7a8] sm:$0xff] }
 0x484   : > { %2035 = vmatpush.msra.mxu1 %v2702_v0  ;;  %2055 = vmatpush.msra.mxu2 %v2703_v1  ;;  %v2697_v0 = vld [vmem:[%s4464_s5 + $0x7b0] sm:$0xff]  ;;  %v2682_v1 = vld [vmem:[%s4464_s5 + $0x738] sm:$0xff] }
 0x485   : > { %1996 = vmatpush.msra.mxu3 %v2687_v2  ;;  %2016 = vmatpush.msrb.mxu0 %v2688_v3  ;;  %v2683_v2 = vld [vmem:[%s4464_s5 + $0x740] sm:$0xff]  ;;  %v2684_v3 = vld [vmem:[%s4464_s5 + $0x748] sm:$0xff] }
 0x486   : > { %2036 = vmatpush.msra.mxu1 %v2689_v4  ;;  %2056 = vmatpush.msra.mxu2 %v2690_v5  ;;  %v2669_v4 = vld [vmem:[%s4464_s5 + $0x6d0] sm:$0xff]  ;;  %v2670_v5 = vld [vmem:[%s4464_s5 + $0x6d8] sm:$0xff] }
 0x487   : > { %1997 = vmatpush.msra.mxu3 %v2674_v6  ;;  %2017 = vmatpush.msrb.mxu0 %v2675_v7  ;;  %v2671_v6 = vld [vmem:[%s4464_s5 + $0x6e0] sm:$0xff] }
 0x488   : > { %2037 = vmatpush.msra.mxu1 %v2676_v8  ;;  %2057 = vmatpush.msra.mxu2 %v2677_v9 }
 0x489   : > { %1998 = vmatpush.msra.mxu3 %v2661_v12  ;;  %2018 = vmatpush.msrb.mxu0 %v2662_v13 }
 0x48a   : > { %2038 = vmatpush.msra.mxu1 %v2663_v54  ;;  %2058 = vmatpush.msra.mxu2 %v2664_v14 }
 0x48b   : > { %2765 = vmatmul.msk.f32.vlgmr.msra.gmra.mxu3 %vm452_vm6, %v4101_v45  ;;  %2766 = vmatmul.msk.f32.vlgmr.msrb.gmra.mxu0 %vm452_vm6, %v4101_v45 }
 0x48c   : > { %2767 = vmatmul.msk.f32.vlgmr.msra.gmra.mxu1 %vm452_vm6, %v4101_v45  ;;  %2768 = vmatmul.msk.f32.vlgmr.msra.gmra.mxu2 %vm452_vm6, %v4101_v45 }
 0x48d   : > { %2071 = vmatpush.msrb.mxu3 %v2756_v15  ;;  %2091 = vmatpush.msra.mxu0 %v2757_v16 }
 0x48e   : > { %2111 = vmatpush.msrb.mxu1 %v2758_v11  ;;  %2131 = vmatpush.msrb.mxu2 %v2759_v17 }
 0x48f   : > { %2072 = vmatpush.msrb.mxu3 %v2743_v18  ;;  %2092 = vmatpush.msra.mxu0 %v2744_v19 }
 0x490   : > { %2112 = vmatpush.msrb.mxu1 %v2745_v20  ;;  %2132 = vmatpush.msrb.mxu2 %v2746_v21 }
 0x491   : > { %2073 = vmatpush.msrb.mxu3 %v2730_v22  ;;  %2093 = vmatpush.msra.mxu0 %v2731_v23 }
 0x492   : > { %2113 = vmatpush.msrb.mxu1 %v2732_v24  ;;  %2133 = vmatpush.msrb.mxu2 %v2733_v25 }
 0x493   : > { %2074 = vmatpush.msrb.mxu3 %v2717_v26  ;;  %2094 = vmatpush.msra.mxu0 %v2718_v27 }
 0x494   : > { %2114 = vmatpush.msrb.mxu1 %v2719_v28  ;;  %2134 = vmatpush.msrb.mxu2 %v2720_v29  ;;  %v4416_v29 = vld [vmem:[%s4465_s6] sm:$0xff] }
 0x495   : > { %2075 = vmatpush.msrb.mxu3 %v2704_v30  ;;  %2095 = vmatpush.msra.mxu0 %v2705_v31 }
 0x496   : > { %2115 = vmatpush.msrb.mxu1 %v2706_v32  ;;  %2135 = vmatpush.msrb.mxu2 %v2707_v33  ;;  %v2219_v33 = vperm.slane %v4416_v29, 1 }
 0x497   : > { %2076 = vmatpush.msrb.mxu3 %v2691_v34  ;;  %2096 = vmatpush.msra.mxu0 %v2692_v35 }
 0x498   : > { %2116 = vmatpush.msrb.mxu1 %v2693_v36  ;;  %2136 = vmatpush.msrb.mxu2 %v2694_v37  ;;  %v2218_v37 = vperm.slane %v4416_v29, 0 }
 0x499   : > { %2077 = vmatpush.msrb.mxu3 %v2678_v38  ;;  %2097 = vmatpush.msra.mxu0 %v2679_v39 }
 0x49a   : > { %2117 = vmatpush.msrb.mxu1 %v2680_v40  ;;  %2137 = vmatpush.msrb.mxu2 %v2681_v41  ;;  %v1350_v9 = vpop.f32.mrf.mxu0 }
 0x49b   : > { %2078 = vmatpush.msrb.mxu3 %v2665_v42  ;;  %2098 = vmatpush.msra.mxu0 %v2666_v43  ;;  %v1370_v7 = vpop.f32.mrf.mxu1 }
 0x49c   : > { %2118 = vmatpush.msrb.mxu1 %v2667_v44  ;;  %2138 = vmatpush.msrb.mxu2 %v2668_v46 }
 0x49d   : > { %2769 = vmatmul.msk.f32.vlgmr.msrb.gmra.mxu3 %vm452_vm6, %v4101_v45  ;;  %2770 = vmatmul.msk.f32.vlgmr.msra.gmra.mxu0 %vm452_vm6, %v4101_v45 }
 0x49e   : > { %2771 = vmatmul.msk.f32.vlgmr.msrb.gmra.mxu1 %vm452_vm6, %v4101_v45  ;;  %2772 = vmatmul.msk.f32.vlgmr.msrb.gmra.mxu2 %vm452_vm6, %v4101_v45 }
 0x49f   : > { %2151 = vmatpush.msra.mxu3 %v2760_v47  ;;  %2171 = vmatpush.msrb.mxu0 %v2761_v48 }
 0x4a0   : > { %2191 = vmatpush.msra.mxu1 %v2762_v49  ;;  %v1330_v13 = vpop.f32.mrf.mxu3  ;;  %v2221_v49 = vperm.slane %v4416_v29, 3 }
 0x4a1   : > { %2152 = vmatpush.msra.mxu3 %v2747_v50  ;;  %2172 = vmatpush.msrb.mxu0 %v2748_v10  ;;  %v1390_v8 = vpop.f32.mrf.mxu2 }
 0x4a2   : > { %2192 = vmatpush.msra.mxu1 %v2749_v51 }
 0x4a3   : > { %2153 = vmatpush.msra.mxu3 %v2734_v52  ;;  %2173 = vmatpush.msrb.mxu0 %v2735_v53  ;;  %v2220_v52 = vperm.slane %v4416_v29, 2 }
 0x4a4   : > { %2193 = vmatpush.msra.mxu1 %v2736_v55  ;;  %v1430_v14 = vpop.f32.mrf.mxu0 }
 0x4a5   : > { %2154 = vmatpush.msra.mxu3 %v2721_v56  ;;  %2174 = vmatpush.msrb.mxu0 %v2722_v57  ;;  %v4397_v12 = vpop.f32.mrf.mxu1  ;;  %v2223_v57 = vperm.slane %v4416_v29, 5 }
 0x4a6   : > { %2194 = vmatpush.msra.mxu1 %v2723_v58 }
 0x4a7   : > { %2155 = vmatpush.msra.mxu3 %v2708_v59  ;;  %2175 = vmatpush.msrb.mxu0 %v2709_v60 }
 0x4a8   : > { %2195 = vmatpush.msra.mxu1 %v2710_v61  ;;  %v2222_v61 = vperm.slane %v4416_v29, 4 }
 0x4a9   : > { %2156 = vmatpush.msra.mxu3 %v2695_v62  ;;  %2176 = vmatpush.msrb.mxu0 %v2696_v63 }
 0x4aa   : > { %2196 = vmatpush.msra.mxu1 %v2697_v0  ;;  %v1410_v16 = vpop.f32.mrf.mxu3 }
 0x4ab   : > { %2157 = vmatpush.msra.mxu3 %v2682_v1  ;;  %2177 = vmatpush.msrb.mxu0 %v2683_v2  ;;  %v4399_v54 = vpop.f32.mrf.mxu2 }
 0x4ac   : > { %2197 = vmatpush.msra.mxu1 %v2684_v3 }
 0x4ad   : > { %2158 = vmatpush.msra.mxu3 %v2669_v4  ;;  %2178 = vmatpush.msrb.mxu0 %v2670_v5 }
 0x4ae   : > { %2198 = vmatpush.msra.mxu1 %v2671_v6  ;;  %2773 = vmatmul.msk.f32.vlgmr.msra.gmra.mxu3 %vm452_vm6, %v4101_v45 }
 0x4af   : > { %2774 = vmatmul.msk.f32.vlgmr.msrb.gmra.mxu0 %vm452_vm6, %v4101_v45  ;;  %2775 = vmatmul.msk.f32.vlgmr.msra.gmra.mxu1 %vm452_vm6, %v4101_v45 }
 0x4b0   : > { %v4405_v17 = vpop.f32.mrf.mxu0 }
 0x4b1   : > { %v4401_v15 = vpop.f32.mrf.mxu1 }
 0x4b6   : > { %v4407_v20 = vpop.f32.mrf.mxu3 }
 0x4b7   : > { %v4403_v11 = vpop.f32.mrf.mxu2 }
 0x4c0   : > { %v1592_v45 = vpop.f32.mrf.mxu0 }
 0x4c1   : > { %v1612_v18 = vpop.f32.mrf.mxu1  ;;  %v1593_v31 = vadd.f32 %v1592_v45, %v1330_v13 }
 0x4c2   : > { %v1613_v32 = vadd.f32 %v1612_v18, %v1350_v9  ;;  %v2225_v9 = vperm.slane %v4416_v29, 7 }
 0x4c6   : > { %v4409_v23 = vpop.f32.mrf.mxu3 }
 0x4c7   : > { %v1632_v19 = vpop.f32.mrf.mxu2 }
 0x4c8   : > { %v1633_v50 = vadd.f32 %v1632_v19, %v1370_v7  ;;  %v2224_v19 = vperm.slane %v4416_v29, 6 }
 0x4d2   : > { %v1672_v24 = vpop.f32.mrf.mxu0 }
 0x4d3   : > { %v1692_v21 = vpop.f32.mrf.mxu1  ;;  %v1673_v53 = vadd.f32 %v1672_v24, %v1410_v16  ;;  %v1094_v16 = vld [vmem:[%s4465_s6 + $0x8] sm:$0x1f] }
 0x4d4   : > { %v1693_v55 = vadd.f32 %v1692_v21, %v1430_v14  ;;  %v2227_v24 = vperm.slane %v1094_v16, 1 }
 0x4d8   : > { %v1652_v27 = vpop.f32.mrf.mxu3 }
 0x4d9   : > { %v1712_v22 = vpop.f32.mrf.mxu2  ;;  %v1653_v46 = vadd.f32 %v1652_v27, %v1390_v8 }
 0x4da   : > { %v1713_v13 = vadd.f32 %v1712_v22, %v4397_v12  ;;  %v2226_v12 = vperm.slane %v1094_v16, 0 }
 0x4e4   : > { %v1752_v28 = vpop.f32.mrf.mxu0 }
 0x4e5   : > { %v1772_v25 = vpop.f32.mrf.mxu1  ;;  %v1753_v45 = vadd.f32 %v1752_v28, %v4407_v20  ;;  %v2230_v28 = vperm.slane %v1094_v16, 4 }
 0x4e6   : > { %v1773_v21 = vadd.f32 %v1772_v25, %v4405_v17 }
 0x4ea   : > { %v1732_v35 = vpop.f32.mrf.mxu3 }
 0x4eb   : > { %v4411_v26 = vpop.f32.mrf.mxu2  ;;  %v1733_v6 = vadd.f32 %v1732_v35, %v4399_v54 }
 0x4f6   : > { %v1832_v39 = vpop.f32.mrf.mxu0 }
 0x4f7   : > { %v1960_v30 = vpop.f32.mrf.mxu1  ;;  %v1833_v17 = vadd.f32 %v1832_v39, %v4409_v23 }
 0x4f8   : > { %v2203_v36 = vadd.f32 %v1960_v30, %v1593_v31 }
 0x4fa   : > { %v2244_v41 = vadd.f32 %v2218_v37, %v2203_v36 }
 0x4fc   : > { %v1812_v44 = vpop.f32.mrf.mxu3 }
 0x4fd   : > { %v1980_v34 = vpop.f32.mrf.mxu2  ;;  %v1813_v25 = vadd.f32 %v1812_v44, %v4403_v11 }
 0x4fe   : > { %v2204_v38 = vadd.f32 %v1980_v34, %v1613_v32 }
 0x500   : > { %v2245_v40 = vadd.f32 %v2219_v33, %v2204_v38  ;;  %v2229_v38 = vperm.slane %v1094_v16, 3 }
 0x502   : > { %v2269_v42 = vrot.slane %v2245_v40, 4 }
 0x504   : > { %v2276_v43 = vsel %vm2275_vm13, %v2244_v41, %v2269_v42 }
 0x505   : > { %2288 = vst [vmem:[%s4424_s13] sm:$0xff] %v2276_v43 }
 0x508   : > { %v2020_v47 = vpop.f32.mrf.mxu0 }
 0x509   : > { %v2206_v48 = vadd.f32 %v2020_v47, %v1653_v46  ;;  %v2040_v51 = vpop.f32.mrf.mxu1  ;;  %v1793_v46 = vadd.f32 %v4411_v26, %v4401_v15 }
 0x50a   : > { %v2207_v60 = vadd.f32 %v2040_v51, %v1673_v53 }
 0x50b   : > { %v2247_v10 = vadd.f32 %v2221_v49, %v2206_v48  ;;  %v2228_v48 = vperm.slane %v1094_v16, 2 }
 0x50c   : > { %v2248_v3 = vadd.f32 %v2222_v61, %v2207_v60 }
 0x50d   : > { %v2270_v63 = vrot.slane %v2247_v10, 4 }
 0x50e   : > { %v2000_v56 = vpop.f32.mrf.mxu3 }
 0x50f   : > { %v2205_v58 = vadd.f32 %v2000_v56, %v1633_v50  ;;  %v2060_v59 = vpop.f32.mrf.mxu2 }
 0x510   : > { %v2208_v62 = vadd.f32 %v2060_v59, %v1693_v55 }
 0x511   : > { %v2246_v0 = vadd.f32 %v2220_v52, %v2205_v58 }
 0x512   : > { %v2249_v1 = vadd.f32 %v2223_v57, %v2208_v62 }
 0x513   : > { %v2277_v2 = vsel %vm2275_vm13, %v2246_v0, %v2270_v63 }
 0x514   : > { %2289 = vst [vmem:[%s4424_s13 + $0x8] sm:$0xff] %v2277_v2  ;;  %v2271_v4 = vrot.slane %v2249_v1, 4 }
 0x516   : > { %v2278_v5 = vsel %vm2275_vm13, %v2248_v3, %v2271_v4 }
 0x517   : > { %2290 = vst [vmem:[%s4424_s13 + $0x10] sm:$0xff] %v2278_v5 }
 0x51a   : > { %v2100_v7 = vpop.f32.mrf.mxu0 }
 0x51b   : > { %v2210_v8 = vadd.f32 %v2100_v7, %v1733_v6  ;;  %v2120_v18 = vpop.f32.mrf.mxu1 }
 0x51c   : > { %v2211_v31 = vadd.f32 %v2120_v18, %v1753_v45 }
 0x51d   : > { %v2251_v14 = vadd.f32 %v2225_v9, %v2210_v8 }
 0x51e   : > { %v2252_v36 = vadd.f32 %v2226_v12, %v2211_v31 }
 0x51f   : > { %v2272_v32 = vrot.slane %v2251_v14, 4 }
 0x520   : > { %v2080_v54 = vpop.f32.mrf.mxu3 }
 0x521   : > { %v2209_v27 = vadd.f32 %v2080_v54, %v1713_v13  ;;  %v2140_v30 = vpop.f32.mrf.mxu2 }
 0x522   : > { %v2212_v22 = vadd.f32 %v2140_v30, %v1773_v21 }
 0x523   : > { %v2250_v33 = vadd.f32 %v2224_v19, %v2209_v27 }
 0x524   : > { %v2253_v34 = vadd.f32 %v2227_v24, %v2212_v22 }
 0x525   : > { %v2279_v35 = vsel %vm2275_vm13, %v2250_v33, %v2272_v32 }
 0x526   : > { %2291 = vst [vmem:[%s4424_s13 + $0x18] sm:$0xff] %v2279_v35  ;;  %v2273_v29 = vrot.slane %v2253_v34, 4 }
 0x528   : > { %v2280_v20 = vsel %vm2275_vm13, %v2252_v36, %v2273_v29 }
 0x529   : > { %2292 = vst [vmem:[%s4424_s13 + $0x20] sm:$0xff] %v2280_v20 }
 0x52c   : > { %v2180_v37 = vpop.f32.mrf.mxu0  ;;  %v2200_v40 = vpop.f32.mrf.mxu1 }
 0x52d   : > { %v2214_v41 = vadd.f32 %v2180_v37, %v1813_v25  ;;  %v2215_v42 = vadd.f32 %v2200_v40, %v1833_v17 }
 0x52f   : > { %v2256_v43 = vadd.f32 %v2230_v28, %v2215_v42  ;;  %v2255_v47 = vadd.f32 %v2229_v38, %v2214_v41 }
 0x531   : > { %2294 = vst [vmem:[%s4424_s13 + $0x30] sm:$0xf] %v2256_v43  ;;  %v2160_v49 = vpop.f32.mrf.mxu3  ;;  %v2274_v10 = vrot.slane %v2255_v47, 4 }
 0x532   : > { %v2213_v50 = vadd.f32 %v2160_v49, %v1793_v46 }
 0x534   : > { %v2254_v23 = vadd.f32 %v2228_v48, %v2213_v50 }
 0x536   : > { %v2281_v11 = vsel %vm2275_vm13, %v2254_v23, %v2274_v10 }
 0x537   : > { %2293 = vst [vmem:[%s4424_s13 + $0x28] sm:$0xff] %v2281_v11 }
 0x538 PF: > { %s17_s24 = sadd.s32 1, %s2800_s24  }
 0x539   : > { %p14_p4 = scmp.ge.s32.totalorder %s17_s24, 4  }
 0x53b   :  { %16 = sbr.rel (!%p14_p4) target bundleno = 1 (0x1), region = 106 }

// kernel: lvc_block_forward.13
= control target key start
LH: loop header
LB: loop body
LE: loop exit
PB: predicated region body
PF: predicated region fallthrough
CT: control target
= control target key end

     0   :  { %s1835_s15 = smov 0   ;;  %s2702_s0 = inlined_call_operand.vmem [shape: f32[8,256,24], index: 0, kind: input, shape index: {}]   ;;  %s2703_s1 = inlined_call_operand.vmem [shape: f32[8,24,256], index: 1, kind: input, shape index: {}]   ;;  %s2704_s2 = inlined_call_operand.vmem [shape: f32[8,1,256], index: 2, kind: input, shape index: {}]   ;;  %s2705_s3 = inlined_call_operand.vmem [shape: f32[8,256,128], index: 3, kind: input, shape index: {}]   ;;  %s2706_s4 = inlined_call_operand.vmem [shape: f32[8,256,128], index: 4, kind: output, shape index: {}]  }
   0x1 LB: > { %s1481_s16 = sadd.s32 4294967295, %s1808_s15   ;;  %p1485_p0 = scmp.ge.s32.totalorder %s1808_s15, 1  ;;  %s1808_s15 = sphi %s1835_s15, %s14_s15  }
   0x2   : > { %p191_p1 = scmp.lt.s32.totalorder %s1808_s15, 9 }
   0x4   : > { %p192_p2 = pnand %p1485_p0, %p191_p1 }
   0x5   : > { %p231_p3 = scmp.lt.s32.totalorder (!%p192_p2), %s1481_s16, 7 }
   0x6   : > { %195 = sbr.rel (%p192_p2) target bundleno = 340 (0x154), region = 36 }
   0xb   : > { %s2764_s16 = smov (!%p231_p3, %s1481_s16), 7  ;;  %vm299_vm0 = vcmask 195584  }
   0xc   : > { %s1846_s17 = sshll.u32 %s2764_s16, 8  ;;  %s1601_s18 = smul.u32 48, %s2764_s16 }
   0xd   : > { %s1856_s24 = scalar_lea.vmem %s2702_s0, %s1846_s17  ;;  %s1489_s25 = sshll.u32 %s2764_s16, 1 }
   0xe   : > { %s240_s21 = scalar_lea.vmem %s2703_s1, %s1601_s18  ;;  %v255_v4 = vld [vmem:[%s1856_s24] sm:$0xff]  ;;  %v256_v8 = vld [vmem:[%s1856_s24 + $0x8] sm:$0xff]  ;;  %v257_v10 = vld [vmem:[%s1856_s24 + $0x10] sm:$0xff]  ;;  %s244_s28 = scalar_lea.vmem %s2704_s2, %s1489_s25 }
   0xf   : > { %v291_v0 = vld [vmem:[%s240_s21 + $0x20] sm:$0xff]  ;;  %v289_v1 = vld [vmem:[%s240_s21 + $0x10] sm:$0xff]  ;;  %v292_v3 = vld [vmem:[%s240_s21 + $0x28] sm:$0xff]  ;;  %s2008_s5 = scalar_lea.vmem %s2705_s3, %s1846_s17  ;;  %s2046_s8 = scalar_lea.vmem %s2706_s4, %s1846_s17 }
  0x10   : > { %409 = vmatpush.msra.mxu0 %v291_v0  ;;  %1595 = vmatpush.msra.mxu2 %v291_v0  ;;  %v287_v2 = vld [vmem:[%s240_s21] sm:$0xff]  ;;  %v290_v6 = vld [vmem:[%s240_s21 + $0x18] sm:$0xff]  ;;  %v288_v7 = vld [vmem:[%s240_s21 + $0x8] sm:$0xff] }
  0x11   : > { %v271_v5 = vld [vmem:[%s1856_s24 + $0x80] sm:$0xff]  ;;  %522 = vmatpush.msra.mxu1 %v292_v3  ;;  %1598 = vmatpush.msra.mxu3 %v292_v3  ;;  %v272_v9 = vld [vmem:[%s1856_s24 + $0x88] sm:$0xff]  ;;  %v273_v11 = vld [vmem:[%s1856_s24 + $0x90] sm:$0xff] }
  0x12   : > { %410 = vmatpush.msra.mxu0 %v289_v1  ;;  %1596 = vmatpush.msra.mxu2 %v289_v1  ;;  %v258_v12 = vld [vmem:[%s1856_s24 + $0x18] sm:$0xff]  ;;  %v259_v14 = vld [vmem:[%s1856_s24 + $0x20] sm:$0xff]  ;;  %v260_v16 = vld [vmem:[%s1856_s24 + $0x28] sm:$0xff] }
  0x13   : > { %523 = vmatpush.msra.mxu1 %v290_v6  ;;  %1599 = vmatpush.msra.mxu3 %v290_v6  ;;  %v274_v13 = vld [vmem:[%s1856_s24 + $0x98] sm:$0xff]  ;;  %v275_v15 = vld [vmem:[%s1856_s24 + $0xa0] sm:$0xff]  ;;  %v276_v17 = vld [vmem:[%s1856_s24 + $0xa8] sm:$0xff] }
  0x14   : > { %411 = vmatpush.msra.mxu0 %v287_v2  ;;  %1597 = vmatpush.msra.mxu2 %v287_v2  ;;  %v261_v18 = vld [vmem:[%s1856_s24 + $0x30] sm:$0xff]  ;;  %v262_v20 = vld [vmem:[%s1856_s24 + $0x38] sm:$0xff]  ;;  %v263_v22 = vld [vmem:[%s1856_s24 + $0x40] sm:$0xff] }
  0x15   : > { %1494 = vmatmul.msk.f32.vlgmr.msra.gmra.mxu0 %vm299_vm0, %v255_v4  ;;  %1510 = vmatmul.msk.f32.vlgmr.msra.gmra.mxu2 %vm299_vm0, %v271_v5  ;;  %v277_v19 = vld [vmem:[%s1856_s24 + $0xb0] sm:$0xff]  ;;  %v278_v21 = vld [vmem:[%s1856_s24 + $0xb8] sm:$0xff]  ;;  %v279_v23 = vld [vmem:[%s1856_s24 + $0xc0] sm:$0xff] }
  0x16   : > { %524 = vmatpush.msra.mxu1 %v288_v7  ;;  %1600 = vmatpush.msra.mxu3 %v288_v7  ;;  %v264_v24 = vld [vmem:[%s1856_s24 + $0x48] sm:$0xff]  ;;  %v265_v26 = vld [vmem:[%s1856_s24 + $0x50] sm:$0xff]  ;;  %v266_v28 = vld [vmem:[%s1856_s24 + $0x58] sm:$0xff] }
  0x17   : > { %1526 = vmatmul.msk.f32.vlgmr.msra.gmra.mxu1 %vm299_vm0, %v255_v4  ;;  %1542 = vmatmul.msk.f32.vlgmr.msra.gmra.mxu3 %vm299_vm0, %v271_v5  ;;  %v280_v25 = vld [vmem:[%s1856_s24 + $0xc8] sm:$0xff]  ;;  %v281_v27 = vld [vmem:[%s1856_s24 + $0xd0] sm:$0xff]  ;;  %v282_v29 = vld [vmem:[%s1856_s24 + $0xd8] sm:$0xff] }
  0x18   : > { %v267_v30 = vld [vmem:[%s1856_s24 + $0x60] sm:$0xff]  ;;  %v268_v32 = vld [vmem:[%s1856_s24 + $0x68] sm:$0xff]  ;;  %v269_v34 = vld [vmem:[%s1856_s24 + $0x70] sm:$0xff] }
  0x19   : > { %v283_v31 = vld [vmem:[%s1856_s24 + $0xe0] sm:$0xff]  ;;  %v284_v33 = vld [vmem:[%s1856_s24 + $0xe8] sm:$0xff]  ;;  %v285_v35 = vld [vmem:[%s1856_s24 + $0xf0] sm:$0xff] }
  0x1a   : > { %v270_v36 = vld [vmem:[%s1856_s24 + $0x78] sm:$0xff]  ;;  %v293_v38 = vld [vmem:[%s244_s28] sm:$0x3] }
  0x1b   : > { %v286_v37 = vld [vmem:[%s1856_s24 + $0xf8] sm:$0xff]  ;;  %v1956_v39 = vperm.slane %v293_v38, 0  ;;  %v1963_v49 = vperm.slane %v293_v38, 1 }
  0x1d   : > { %1495 = vmatmul.msk.f32.gmra.mxu0 %vm299_vm0, %v256_v8  ;;  %1511 = vmatmul.msk.f32.gmra.mxu2 %vm299_vm0, %v272_v9 }
  0x1f   : > { %1527 = vmatmul.msk.f32.gmra.mxu1 %vm299_vm0, %v256_v8  ;;  %1543 = vmatmul.msk.f32.gmra.mxu3 %vm299_vm0, %v272_v9 }
  0x25   : > { %1496 = vmatmul.msk.f32.gmra.mxu0 %vm299_vm0, %v257_v10  ;;  %1512 = vmatmul.msk.f32.gmra.mxu2 %vm299_vm0, %v273_v11 }
  0x27   : > { %1528 = vmatmul.msk.f32.gmra.mxu1 %vm299_vm0, %v257_v10  ;;  %1544 = vmatmul.msk.f32.gmra.mxu3 %vm299_vm0, %v273_v11 }
  0x2d   : > { %1497 = vmatmul.msk.f32.gmra.mxu0 %vm299_vm0, %v258_v12  ;;  %1513 = vmatmul.msk.f32.gmra.mxu2 %vm299_vm0, %v274_v13 }
  0x2f   : > { %1529 = vmatmul.msk.f32.gmra.mxu1 %vm299_vm0, %v258_v12  ;;  %1545 = vmatmul.msk.f32.gmra.mxu3 %vm299_vm0, %v274_v13 }
  0x35   : > { %1498 = vmatmul.msk.f32.gmra.mxu0 %vm299_vm0, %v259_v14  ;;  %1514 = vmatmul.msk.f32.gmra.mxu2 %vm299_vm0, %v275_v15 }
  0x37   : > { %1530 = vmatmul.msk.f32.gmra.mxu1 %vm299_vm0, %v259_v14  ;;  %1546 = vmatmul.msk.f32.gmra.mxu3 %vm299_vm0, %v275_v15 }
  0x3d   : > { %1499 = vmatmul.msk.f32.gmra.mxu0 %vm299_vm0, %v260_v16  ;;  %1515 = vmatmul.msk.f32.gmra.mxu2 %vm299_vm0, %v276_v17 }
  0x3f   : > { %1531 = vmatmul.msk.f32.gmra.mxu1 %vm299_vm0, %v260_v16  ;;  %1547 = vmatmul.msk.f32.gmra.mxu3 %vm299_vm0, %v276_v17 }
  0x45   : > { %1500 = vmatmul.msk.f32.gmra.mxu0 %vm299_vm0, %v261_v18  ;;  %1516 = vmatmul.msk.f32.gmra.mxu2 %vm299_vm0, %v277_v19 }
  0x47   : > { %1532 = vmatmul.msk.f32.gmra.mxu1 %vm299_vm0, %v261_v18  ;;  %1548 = vmatmul.msk.f32.gmra.mxu3 %vm299_vm0, %v277_v19 }
  0x4d   : > { %1501 = vmatmul.msk.f32.gmra.mxu0 %vm299_vm0, %v262_v20  ;;  %1517 = vmatmul.msk.f32.gmra.mxu2 %vm299_vm0, %v278_v21 }
  0x4f   : > { %1533 = vmatmul.msk.f32.gmra.mxu1 %vm299_vm0, %v262_v20  ;;  %1549 = vmatmul.msk.f32.gmra.mxu3 %vm299_vm0, %v278_v21 }
  0x55   : > { %1502 = vmatmul.msk.f32.gmra.mxu0 %vm299_vm0, %v263_v22  ;;  %1518 = vmatmul.msk.f32.gmra.mxu2 %vm299_vm0, %v279_v23 }
  0x57   : > { %1534 = vmatmul.msk.f32.gmra.mxu1 %vm299_vm0, %v263_v22  ;;  %1550 = vmatmul.msk.f32.gmra.mxu3 %vm299_vm0, %v279_v23 }
  0x5d   : > { %1503 = vmatmul.msk.f32.gmra.mxu0 %vm299_vm0, %v264_v24  ;;  %1519 = vmatmul.msk.f32.gmra.mxu2 %vm299_vm0, %v280_v25 }
  0x5f   : > { %1535 = vmatmul.msk.f32.gmra.mxu1 %vm299_vm0, %v264_v24  ;;  %1551 = vmatmul.msk.f32.gmra.mxu3 %vm299_vm0, %v280_v25 }
  0x65   : > { %1504 = vmatmul.msk.f32.gmra.mxu0 %vm299_vm0, %v265_v26  ;;  %1520 = vmatmul.msk.f32.gmra.mxu2 %vm299_vm0, %v281_v27 }
  0x67   : > { %1536 = vmatmul.msk.f32.gmra.mxu1 %vm299_vm0, %v265_v26  ;;  %1552 = vmatmul.msk.f32.gmra.mxu3 %vm299_vm0, %v281_v27 }
  0x6d   : > { %1505 = vmatmul.msk.f32.gmra.mxu0 %vm299_vm0, %v266_v28  ;;  %1521 = vmatmul.msk.f32.gmra.mxu2 %vm299_vm0, %v282_v29 }
  0x6f   : > { %1537 = vmatmul.msk.f32.gmra.mxu1 %vm299_vm0, %v266_v28  ;;  %1553 = vmatmul.msk.f32.gmra.mxu3 %vm299_vm0, %v282_v29 }
  0x75   : > { %1506 = vmatmul.msk.f32.gmra.mxu0 %vm299_vm0, %v267_v30  ;;  %1522 = vmatmul.msk.f32.gmra.mxu2 %vm299_vm0, %v283_v31 }
  0x77   : > { %1538 = vmatmul.msk.f32.gmra.mxu1 %vm299_vm0, %v267_v30  ;;  %1554 = vmatmul.msk.f32.gmra.mxu3 %vm299_vm0, %v283_v31 }
  0x7d   : > { %1507 = vmatmul.msk.f32.gmra.mxu0 %vm299_vm0, %v268_v32  ;;  %1523 = vmatmul.msk.f32.gmra.mxu2 %vm299_vm0, %v284_v33 }
  0x7f   : > { %1539 = vmatmul.msk.f32.gmra.mxu1 %vm299_vm0, %v268_v32  ;;  %1555 = vmatmul.msk.f32.gmra.mxu3 %vm299_vm0, %v284_v33 }
  0x85   : > { %1508 = vmatmul.msk.f32.gmra.mxu0 %vm299_vm0, %v269_v34  ;;  %1524 = vmatmul.msk.f32.gmra.mxu2 %vm299_vm0, %v285_v35 }
  0x87   : > { %1540 = vmatmul.msk.f32.gmra.mxu1 %vm299_vm0, %v269_v34  ;;  %1556 = vmatmul.msk.f32.gmra.mxu3 %vm299_vm0, %v285_v35 }
  0x8d   : > { %1509 = vmatmul.msk.f32.gmra.mxu0 %vm299_vm0, %v270_v36  ;;  %1525 = vmatmul.msk.f32.gmra.mxu2 %vm299_vm0, %v286_v37 }
  0x8f   : > { %1541 = vmatmul.msk.f32.gmra.mxu1 %vm299_vm0, %v270_v36  ;;  %1557 = vmatmul.msk.f32.gmra.mxu3 %vm299_vm0, %v286_v37 }
  0x92   : > { %v413_v40 = vpop.f32.mrf.mxu0 }
  0x93   : > { %v414_v41 = vadd.f32 %v413_v40, %v1956_v39 }
  0x94   : > { %v526_v43 = vpop.f32.mrf.mxu1 }
  0x95   : > { %v1558_v42 = vmul.f32 -1.442695, %v414_v41  ;;  %v527_v55 = vadd.f32 %v526_v43, %v1963_v49 }
  0x97   : > { %1610 = vpow2.f32 %v1558_v42 }
  0x98   : > { %v461_v44 = vpop.f32.mrf.mxu2 }
  0x99   : > { %v462_v45 = vadd.f32 %v461_v44, %v1956_v39 }
  0x9a   : > { %v416_v46 = vpop.f32.mrf.mxu0  ;;  %v574_v50 = vpop.f32.mrf.mxu3 }
  0x9b   : > { %v1574_v47 = vmul.f32 -1.442695, %v462_v45  ;;  %v417_v48 = vadd.f32 %v416_v46, %v1956_v39  ;;  %v575_v57 = vadd.f32 %v574_v50, %v1963_v49  ;;  %v1294_v45 = vld [vmem:[%s2008_s5] sm:$0xff] }
  0x9c   : > { %v529_v54 = vpop.f32.mrf.mxu1 }
  0x9d   : > { %v1611_v51 = vpop.eup %1610  ;;  %1612 = vpow2.f32 %v1574_v47  ;;  %v1559_v52 = vmul.f32 -1.442695, %v417_v48  ;;  %v530_v5 = vadd.f32 %v529_v54, %v1963_v49 }
  0x9e   : > { %v1965_v53 = vadd.f32 1.0, %v1611_v51 }
  0x9f   : > { %1614 = vpow2.f32 %v1559_v52 }
  0xa0   : > { %1616 = vrcp.f32 %v1965_v53  ;;  %v464_v56 = vpop.f32.mrf.mxu2  ;;  %v759_v0 = vand.u32 2147483647, %v1965_v53  ;;  %v761_v1 = vand.u32 2147483648, %v1965_v53  ;;  %vm755_vm1 = vweird.f32 %v1965_v53 }
  0xa1   : > { %v465_v58 = vadd.f32 %v464_v56, %v1956_v39  ;;  %1618 = vtanh.f32 %v527_v55 }
  0xa2   : > { %v419_v59 = vpop.f32.mrf.mxu0  ;;  %1620 = vtanh.f32 %v575_v57  ;;  %v577_v2 = vpop.f32.mrf.mxu3  ;;  %vm1984_vm2 = vcmp.eq.f32.partialorder %v759_v0, 8.507059e+37  ;;  %v762_v12 = vor.u32 1.1754944e-38, %v761_v1 }
  0xa3   : > { %v1613_v60 = vpop.eup %1612  ;;  %v1575_v61 = vmul.f32 -1.442695, %v465_v58  ;;  %v420_v62 = vadd.f32 %v419_v59, %v1956_v39  ;;  %v578_v9 = vadd.f32 %v577_v2, %v1963_v49 }
  0xa4   : > { %v1972_v63 = vadd.f32 1.0, %v1613_v60  ;;  %v532_v10 = vpop.f32.mrf.mxu1 }
  0xa5   : > { %v1615_v3 = vpop.eup %1614  ;;  %1622 = vpow2.f32 %v1575_v61  ;;  %v1560_v4 = vmul.f32 -1.442695, %v420_v62  ;;  %v533_v22 = vadd.f32 %v532_v10, %v1963_v49 }
  0xa6   : > { %v1617_v6 = vpop.eup %1616  ;;  %1624 = vrcp.f32 %v1972_v63  ;;  %v1978_v7 = vadd.f32 1.0, %v1615_v3  ;;  %v999_v17 = vand.u32 2147483647, %v1972_v63  ;;  %v1001_v20 = vand.u32 2147483648, %v1972_v63 }
  0xa7   : > { %v751_v8 = vmul.f32 %v1617_v6, %v1965_v53  ;;  %1626 = vpow2.f32 %v1560_v4  ;;  %v1619_v14 = vpop.eup %1618  ;;  %vm756_vm3 = vweird.f32 %v1617_v6  ;;  %vm995_vm4 = vweird.f32 %v1972_v63 }
  0xa8   : > { %1628 = vrcp.f32 %v1978_v7  ;;  %v467_v13 = vpop.f32.mrf.mxu2  ;;  %v1990_v18 = vpop.eup %1620  ;;  %v774_v21 = vand.u32 2147483647, %v1978_v7  ;;  %v776_v29 = vand.u32 2147483648, %v1978_v7  ;;  %vm2010_vm5 = vcmp.eq.f32.partialorder %v999_v17, 8.507059e+37  ;;  %vm757_vm6 = vmor %vm755_vm1, %vm756_vm3 }
  0xa9   : > { %v752_v15 = vsub.f32 1.0, %v751_v8  ;;  %v468_v16 = vadd.f32 %v467_v13, %v1956_v39  ;;  %1630 = vtanh.f32 %v530_v5  ;;  %v1002_v37 = vor.u32 1.1754944e-38, %v1001_v20 }
  0xaa   : > { %v422_v19 = vpop.f32.mrf.mxu0  ;;  %1632 = vtanh.f32 %v578_v9  ;;  %vm770_vm7 = vweird.f32 %v1978_v7  ;;  %vm2027_vm8 = vcmp.eq.f32.partialorder %v774_v21, 8.507059e+37  ;;  %v777_v46 = vor.u32 1.1754944e-38, %v776_v29  ;;  %v580_v21 = vpop.f32.mrf.mxu3 }
  0xab   : > { %v1623_v23 = vpop.eup %1622  ;;  %v753_v24 = vmul.f32 %v1617_v6, %v752_v15  ;;  %v1576_v25 = vmul.f32 -1.442695, %v468_v16  ;;  %v423_v26 = vadd.f32 %v422_v19, %v1956_v39  ;;  %1634 = vtanh.f32 %v533_v22  ;;  %v1295_v22 = vld [vmem:[%s2008_s5 + $0x8] sm:$0xff] }
  0xac   : > { %v1996_v27 = vpop.eup %1624  ;;  %v1998_v28 = vadd.f32 1.0, %v1623_v23 }
  0xad   : > { %v1627_v30 = vpop.eup %1626  ;;  %v991_v31 = vmul.f32 %v1996_v27, %v1972_v63  ;;  %v754_v32 = vadd.f32 %v1617_v6, %v753_v24  ;;  %1636 = vpow2.f32 %v1576_v25  ;;  %v1561_v33 = vmul.f32 -1.442695, %v423_v26 }
  0xae   : > { %v2014_v35 = vpop.eup %1628  ;;  %1638 = vrcp.f32 %v1998_v28  ;;  %v2017_v36 = vadd.f32 1.0, %v1627_v30  ;;  %vm996_vm9 = vweird.f32 %v1996_v27  ;;  %v1014_v56 = vand.u32 2147483647, %v1998_v28 }
  0xaf   : > { %v2023_v38 = vpop.eup %1630  ;;  %v992_v40 = vsub.f32 1.0, %v991_v31  ;;  %v766_v41 = vmul.f32 %v2014_v35, %v1978_v7  ;;  %v758_v42 = vsel %vm757_vm6, %v1617_v6, %v754_v32  ;;  %1640 = vpow2.f32 %v1561_v33  ;;  %vm997_vm11 = vmor %vm995_vm4, %vm996_vm9 }
  0xb0   : > { %1642 = vrcp.f32 %v2017_v36  ;;  %v763_v44 = vsel %vm1984_vm2, %v762_v12, %v758_v42  ;;  %v470_v47 = vpop.f32.mrf.mxu2  ;;  %v2036_v48 = vpop.eup %1632  ;;  %vm771_vm10 = vweird.f32 %v2014_v35  ;;  %v1016_v57 = vand.u32 2147483648, %v1998_v28  ;;  %v1310_v12 = vld [vmem:[%s2008_s5 + $0x80] sm:$0xff] }
  0xb1   : > { %v767_v50 = vsub.f32 1.0, %v766_v41  ;;  %v1262_v51 = vmul.f32 %v1619_v14, %v763_v44  ;;  %v993_v52 = vmul.f32 %v1996_v27, %v992_v40  ;;  %v471_v53 = vadd.f32 %v470_v47, %v1956_v39  ;;  %v2040_v54 = vpop.eup %1634  ;;  %vm772_vm14 = vmor %vm770_vm7, %vm771_vm10 }
  0xb2   : > { %v425_v55 = vpop.f32.mrf.mxu0  ;;  %v789_v58 = vand.u32 2147483647, %v2017_v36  ;;  %vm1010_vm12 = vweird.f32 %v1998_v28  ;;  %v2064_v4 = vor.u32 1.1754944e-38, %v1016_v57  ;;  %vm785_vm13 = vweird.f32 %v2017_v36 }
  0xb3   : > { %v1637_v59 = vpop.eup %1636  ;;  %v1326_v60 = vadd.f32 %v1294_v45, %v1262_v51  ;;  %v994_v61 = vadd.f32 %v1996_v27, %v993_v52  ;;  %v768_v62 = vmul.f32 %v2014_v35, %v767_v50  ;;  %v1577_v0 = vmul.f32 -1.442695, %v471_v53 }
  0xb4   : > { %v2054_v1 = vpop.eup %1638  ;;  %v2056_v2 = vadd.f32 1.0, %v1637_v59  ;;  %v426_v3 = vadd.f32 %v425_v55, %v1956_v39  ;;  %vm2082_vm15 = vcmp.eq.f32.partialorder %v1014_v56, 8.507059e+37  ;;  %vm2089_vm0 = vcmp.eq.f32.partialorder %v789_v58, 8.507059e+37  ;;  %v1311_v56 = vld [vmem:[%s2008_s5 + $0x88] sm:$0xff] }
  0xb5   : > { %v1641_v5 = vpop.eup %1640  ;;  %v1006_v6 = vmul.f32 %v2054_v1, %v1998_v28  ;;  %1358 = vst [vmem:[%s2046_s8] sm:$0xff] %v1326_v60  ;;  %v998_v8 = vsel %vm997_vm11, %v1996_v27, %v994_v61  ;;  %v769_v9 = vadd.f32 %v2014_v35, %v768_v62  ;;  %1644 = vpow2.f32 %v1577_v0  ;;  %v1296_v60 = vld [vmem:[%s2008_s5 + $0x10] sm:$0xff]  ;;  %v535_v61 = vpop.f32.mrf.mxu1 }
  0xb6   : > { %v1643_v63 = vpop.eup %1642  ;;  %1646 = vrcp.f32 %v2056_v2  ;;  %v2073_v10 = vadd.f32 1.0, %v1641_v5  ;;  %v1003_v11 = vsel %vm2010_vm5, %v1002_v37, %v998_v8  ;;  %v1562_v13 = vmul.f32 -1.442695, %v426_v3 }
  0xb7   : > { %v1007_v15 = vsub.f32 1.0, %v1006_v6  ;;  %v781_v16 = vmul.f32 %v1643_v63, %v2017_v36  ;;  %v1278_v17 = vmul.f32 %v1990_v18, %v1003_v11  ;;  %v773_v19 = vsel %vm772_vm14, %v2014_v35, %v769_v9 }
  0xb8   : > { %1648 = vrcp.f32 %v2073_v10  ;;  %v778_v7 = vsel %vm2027_vm8, %v777_v46, %v773_v19  ;;  %vm1011_vm1 = vweird.f32 %v2054_v1  ;;  %vm786_vm2 = vweird.f32 %v1643_v63  ;;  %v473_v23 = vpop.f32.mrf.mxu2 }
  0xb9   : > { %v782_v24 = vsub.f32 1.0, %v781_v16  ;;  %v1342_v18 = vadd.f32 %v1310_v12, %v1278_v17  ;;  %v1263_v25 = vmul.f32 %v2023_v38, %v778_v7  ;;  %1650 = vpow2.f32 %v1562_v13  ;;  %vm1012_vm4 = vmor %vm1010_vm12, %vm1011_vm1  ;;  %v583_v16 = vpop.f32.mrf.mxu3 }
  0xba   : > { %v1008_v26 = vmul.f32 %v2054_v1, %v1007_v15  ;;  %v791_v27 = vand.u32 2147483648, %v2017_v36  ;;  %v474_v29 = vadd.f32 %v473_v23, %v1956_v39  ;;  %v428_v30 = vpop.f32.mrf.mxu0  ;;  %v581_v31 = vadd.f32 %v580_v21, %v1963_v49  ;;  %vm787_vm6 = vmor %vm785_vm13, %vm786_vm2 }
  0xbb   : > { %v1645_v32 = vpop.eup %1644  ;;  %1374 = vst [vmem:[%s2046_s8 + $0x80] sm:$0xff] %v1342_v18  ;;  %v1327_v33 = vadd.f32 %v1295_v22, %v1263_v25  ;;  %v783_v34 = vmul.f32 %v1643_v63, %v782_v24  ;;  %v429_v35 = vadd.f32 %v428_v30, %v1956_v39  ;;  %vm1025_vm3 = vweird.f32 %v2056_v2 }
  0xbc   : > { %v1647_v37 = vpop.eup %1646  ;;  %v2106_v38 = vadd.f32 1.0, %v1645_v32  ;;  %v1009_v40 = vadd.f32 %v2054_v1, %v1008_v26  ;;  %v792_v41 = vor.u32 1.1754944e-38, %v791_v27  ;;  %v1578_v42 = vmul.f32 -1.442695, %v474_v29 }
  0xbd   : > { %v1021_v43 = vmul.f32 %v1647_v37, %v2056_v2  ;;  %1359 = vst [vmem:[%s2046_s8 + $0x8] sm:$0xff] %v1327_v33  ;;  %v784_v44 = vadd.f32 %v1643_v63, %v783_v34  ;;  %v1563_v45 = vmul.f32 -1.442695, %v429_v35  ;;  %vm1026_vm5 = vweird.f32 %v1647_v37 }
  0xbe   : > { %v2115_v46 = vpop.eup %1648  ;;  %1652 = vrcp.f32 %v2106_v38  ;;  %v1013_v47 = vsel %vm1012_vm4, %v2054_v1, %v1009_v40  ;;  %v1029_v50 = vand.u32 2147483647, %v2056_v2  ;;  %v1031_v51 = vand.u32 2147483648, %v2056_v2  ;;  %vm1027_vm8 = vmor %vm1025_vm3, %vm1026_vm5  ;;  %v538_v40 = vpop.f32.mrf.mxu1 }
  0xbf   : > { %v1651_v28 = vpop.eup %1650  ;;  %v1022_v52 = vsub.f32 1.0, %v1021_v43  ;;  %v796_v53 = vmul.f32 %v2115_v46, %v2073_v10  ;;  %v1018_v55 = vsel %vm2082_vm15, %v2064_v4, %v1013_v47  ;;  %v788_v57 = vsel %vm787_vm6, %v1643_v63, %v784_v44  ;;  %v1297_v43 = vld [vmem:[%s2008_s5 + $0x18] sm:$0xff] }
  0xc0   : > { %v2130_v58 = vadd.f32 1.0, %v1651_v28  ;;  %v1279_v36 = vmul.f32 %v2036_v48, %v1018_v55  ;;  %v793_v59 = vsel %vm2089_vm0, %v792_v41, %v788_v57  ;;  %1654 = vpow2.f32 %v1578_v42  ;;  %v476_v9 = vpop.f32.mrf.mxu2 }
  0xc1   : > { %v797_v62 = vsub.f32 1.0, %v796_v53  ;;  %v1264_v0 = vmul.f32 %v2040_v54, %v793_v59  ;;  %1656 = vpow2.f32 %v1563_v45  ;;  %v1023_v1 = vmul.f32 %v1647_v37, %v1022_v52 }
  0xc2   : > { %1658 = vrcp.f32 %v2130_v58  ;;  %v1343_v3 = vadd.f32 %v1311_v56, %v1279_v36  ;;  %vm2138_vm7 = vcmp.eq.f32.partialorder %v1029_v50, 8.507059e+37  ;;  %v1032_v48 = vor.u32 1.1754944e-38, %v1031_v51  ;;  %v431_v12 = vpop.f32.mrf.mxu0  ;;  %v1315_v51 = vld [vmem:[%s2008_s5 + $0xa8] sm:$0xff] }
  0xc3   : > { %v1328_v5 = vadd.f32 %v1296_v60, %v1264_v0  ;;  %v1024_v6 = vadd.f32 %v1647_v37, %v1023_v1  ;;  %1660 = vtanh.f32 %v581_v31  ;;  %v536_v8 = vadd.f32 %v535_v61, %v1963_v49 }
  0xc4   : > { %v2143_v63 = vpop.eup %1652  ;;  %1375 = vst [vmem:[%s2046_s8 + $0x88] sm:$0xff] %v1343_v3  ;;  %v798_v54 = vmul.f32 %v2115_v46, %v797_v62  ;;  %vm800_vm9 = vweird.f32 %v2073_v10  ;;  %vm801_vm10 = vweird.f32 %v2115_v46  ;;  %v804_v11 = vand.u32 2147483647, %v2073_v10  ;;  %v586_v62 = vpop.f32.mrf.mxu3 }
  0xc5   : > { %v1036_v13 = vmul.f32 %v2143_v63, %v2106_v38  ;;  %1360 = vst [vmem:[%s2046_s8 + $0x10] sm:$0xff] %v1328_v5  ;;  %v1028_v14 = vsel %vm1027_vm8, %v1647_v37, %v1024_v6  ;;  %v806_v15 = vand.u32 2147483648, %v2073_v10  ;;  %1662 = vtanh.f32 %v536_v8  ;;  %vm802_vm12 = vmor %vm800_vm9, %vm801_vm10  ;;  %v1312_v10 = vld [vmem:[%s2008_s5 + $0x90] sm:$0xff] }
  0xc6   : > { %v1655_v2 = vpop.eup %1654  ;;  %v1033_v17 = vsel %vm2138_vm7, %v1032_v48, %v1028_v14  ;;  %v799_v19 = vadd.f32 %v2115_v46, %v798_v54  ;;  %vm2160_vm11 = vcmp.eq.f32.partialorder %v804_v11, 8.507059e+37  ;;  %v477_v21 = vadd.f32 %v476_v9, %v1956_v39 }
  0xc7   : > { %v1657_v7 = vpop.eup %1656  ;;  %v1037_v22 = vsub.f32 1.0, %v1036_v13  ;;  %v2165_v23 = vadd.f32 1.0, %v1655_v2  ;;  %v807_v24 = vor.u32 1.1754944e-38, %v806_v15  ;;  %v432_v18 = vadd.f32 %v431_v12, %v1956_v39 }
  0xc8   : > { %v2172_v25 = vpop.eup %1658  ;;  %v2174_v26 = vadd.f32 1.0, %v1657_v7  ;;  %v803_v27 = vsel %vm802_vm12, %v2115_v46, %v799_v19  ;;  %v1579_v29 = vmul.f32 -1.442695, %v477_v21  ;;  %v584_v30 = vadd.f32 %v583_v16, %v1963_v49  ;;  %v479_v53 = vpop.f32.mrf.mxu2  ;;  %v1313_v16 = vld [vmem:[%s2008_s5 + $0x98] sm:$0xff] }
  0xc9   : > { %v1661_v31 = vpop.eup %1660  ;;  %v811_v32 = vmul.f32 %v2172_v25, %v2130_v58  ;;  %1664 = vrcp.f32 %v2165_v23  ;;  %v808_v33 = vsel %vm2160_vm11, %v807_v24, %v803_v27  ;;  %v1564_v34 = vmul.f32 -1.442695, %v432_v18  ;;  %v541_v21 = vpop.f32.mrf.mxu1  ;;  %v1298_v18 = vld [vmem:[%s2008_s5 + $0x20] sm:$0xff] }
  0xca   : > { %1666 = vrcp.f32 %v2174_v26  ;;  %v1280_v35 = vmul.f32 %v1661_v31, %v1033_v17  ;;  %v1038_v37 = vmul.f32 %v2143_v63, %v1037_v22  ;;  %vm1040_vm13 = vweird.f32 %v2106_v38  ;;  %v434_v36 = vpop.f32.mrf.mxu0 }
  0xcb   : > { %v1663_v41 = vpop.eup %1662  ;;  %v812_v42 = vsub.f32 1.0, %v811_v32  ;;  %1668 = vpow2.f32 %v1579_v29  ;;  %vm1041_vm14 = vweird.f32 %v2143_v63  ;;  %v1044_v44 = vand.u32 2147483647, %v2106_v38 }
  0xcc   : > { %v1344_v45 = vadd.f32 %v1312_v10, %v1280_v35  ;;  %v1265_v46 = vmul.f32 %v1663_v41, %v808_v33  ;;  %1670 = vpow2.f32 %v1564_v34  ;;  %v1039_v47 = vadd.f32 %v2143_v63, %v1038_v37  ;;  %vm2191_vm15 = vmor %vm1040_vm13, %vm1041_vm14 }
  0xcd   : > { %vm2195_vm0 = vcmp.eq.f32.partialorder %v1044_v44, 8.507059e+37  ;;  %v1046_v28 = vand.u32 2147483648, %v2106_v38  ;;  %1672 = vtanh.f32 %v584_v30  ;;  %v539_v52 = vadd.f32 %v538_v40, %v1963_v49 }
  0xce   : > { %1376 = vst [vmem:[%s2046_s8 + $0x90] sm:$0xff] %v1344_v45  ;;  %v1329_v55 = vadd.f32 %v1297_v43, %v1265_v46  ;;  %v1043_v56 = vsel %vm2191_vm15, %v2143_v63, %v1039_v47  ;;  %v813_v57 = vmul.f32 %v2172_v25, %v812_v42  ;;  %vm815_vm1 = vweird.f32 %v2130_v58 }
  0xcf   : > { %v2207_v59 = vpop.eup %1664  ;;  %v1047_v60 = vor.u32 1.1754944e-38, %v1046_v28  ;;  %vm816_vm2 = vweird.f32 %v2172_v25  ;;  %v819_v38 = vand.u32 2147483647, %v2130_v58  ;;  %v821_v61 = vand.u32 2147483648, %v2130_v58 }
  0xd0   : > { %v2212_v0 = vpop.eup %1666  ;;  %v1051_v1 = vmul.f32 %v2207_v59, %v2165_v23  ;;  %1361 = vst [vmem:[%s2046_s8 + $0x18] sm:$0xff] %v1329_v55  ;;  %v814_v3 = vadd.f32 %v2172_v25, %v813_v57  ;;  %1674 = vtanh.f32 %v539_v52  ;;  %v480_v4 = vadd.f32 %v479_v53, %v1956_v39  ;;  %vm817_vm3 = vmor %vm815_vm1, %vm816_vm2  ;;  %v482_v35 = vpop.f32.mrf.mxu2 }
  0xd1   : > { %v1669_v48 = vpop.eup %1668  ;;  %v826_v5 = vmul.f32 %v2212_v0, %v2174_v26  ;;  %v1048_v6 = vsel %vm2195_vm0, %v1047_v60, %v1043_v56  ;;  %vm820_vm4 = vcmp.eq.f32.partialorder %v819_v38, 8.507059e+37  ;;  %v822_v8 = vor.u32 1.1754944e-38, %v821_v61 }
  0xd2   : > { %v1671_v9 = vpop.eup %1670  ;;  %v1052_v63 = vsub.f32 1.0, %v1051_v1  ;;  %v2225_v54 = vadd.f32 1.0, %v1669_v48  ;;  %v818_v11 = vsel %vm817_vm3, %v2172_v25, %v814_v3  ;;  %v1580_v12 = vmul.f32 -1.442695, %v480_v4  ;;  %v437_v37 = vpop.f32.mrf.mxu0  ;;  %v1314_v3 = vld [vmem:[%s2008_s5 + $0xa0] sm:$0xff] }
  0xd3   : > { %v1673_v13 = vpop.eup %1672  ;;  %v827_v14 = vsub.f32 1.0, %v826_v5  ;;  %v2228_v15 = vadd.f32 1.0, %v1671_v9  ;;  %v823_v2 = vsel %vm820_vm4, %v822_v8, %v818_v11  ;;  %v435_v17 = vadd.f32 %v434_v36, %v1956_v39  ;;  %v544_v5 = vpop.f32.mrf.mxu1  ;;  %v1299_v9 = vld [vmem:[%s2008_s5 + $0x28] sm:$0xff] }
  0xd4   : > { %1676 = vrcp.f32 %v2225_v54  ;;  %v1281_v58 = vmul.f32 %v1673_v13, %v1048_v6  ;;  %v587_v19 = vadd.f32 %v586_v62, %v1963_v49  ;;  %v1053_v20 = vmul.f32 %v2207_v59, %v1052_v63 }
  0xd5   : > { %1678 = vrcp.f32 %v2228_v15  ;;  %v1565_v7 = vmul.f32 -1.442695, %v435_v17  ;;  %vm1055_vm5 = vweird.f32 %v2165_v23  ;;  %vm1056_vm6 = vweird.f32 %v2207_v59 }
  0xd6   : > { %v1675_v22 = vpop.eup %1674  ;;  %v1345_v24 = vadd.f32 %v1313_v16, %v1281_v58  ;;  %1680 = vpow2.f32 %v1580_v12  ;;  %v1054_v25 = vadd.f32 %v2207_v59, %v1053_v20  ;;  %v1059_v27 = vand.u32 2147483647, %v2165_v23  ;;  %vm2241_vm7 = vmor %vm1055_vm5, %vm1056_vm6 }
  0xd7   : > { %v1266_v29 = vmul.f32 %v1675_v22, %v823_v2  ;;  %1682 = vpow2.f32 %v1565_v7  ;;  %v1061_v31 = vand.u32 2147483648, %v2165_v23  ;;  %v542_v32 = vadd.f32 %v541_v21, %v1963_v49  ;;  %v589_v23 = vpop.f32.mrf.mxu3 }
  0xd8   : > { %1377 = vst [vmem:[%s2046_s8 + $0x98] sm:$0xff] %v1345_v24  ;;  %v1058_v10 = vsel %vm2241_vm7, %v2207_v59, %v1054_v25  ;;  %vm2251_vm8 = vcmp.eq.f32.partialorder %v1059_v27, 8.507059e+37  ;;  %1684 = vtanh.f32 %v587_v19  ;;  %v828_v34 = vmul.f32 %v2212_v0, %v827_v14  ;;  %v485_v17 = vpop.f32.mrf.mxu2 }
  0xd9   : > { %v1330_v40 = vadd.f32 %v1298_v18, %v1266_v29  ;;  %v1062_v41 = vor.u32 1.1754944e-38, %v1061_v31  ;;  %vm830_vm9 = vweird.f32 %v2174_v26  ;;  %vm831_vm10 = vweird.f32 %v2212_v0 }
  0xda   : > { %v1677_v42 = vpop.eup %1676  ;;  %v829_v43 = vadd.f32 %v2212_v0, %v828_v34  ;;  %v834_v44 = vand.u32 2147483647, %v2174_v26  ;;  %v836_v45 = vand.u32 2147483648, %v2174_v26  ;;  %1686 = vtanh.f32 %v542_v32  ;;  %vm2267_vm11 = vmor %vm830_vm9, %vm831_vm10  ;;  %v440_v21 = vpop.f32.mrf.mxu0 }
  0xdb   : > { %v2261_v46 = vpop.eup %1678  ;;  %v1066_v47 = vmul.f32 %v1677_v42, %v2225_v54  ;;  %1362 = vst [vmem:[%s2046_s8 + $0x20] sm:$0xff] %v1330_v40  ;;  %v1063_v50 = vsel %vm2251_vm8, %v1062_v41, %v1058_v10  ;;  %v483_v28 = vadd.f32 %v482_v35, %v1956_v39  ;;  %v438_v52 = vadd.f32 %v437_v37, %v1956_v39 }
  0xdc   : > { %v1681_v53 = vpop.eup %1680  ;;  %v841_v26 = vmul.f32 %v2261_v46, %v2228_v15  ;;  %v833_v55 = vsel %vm2267_vm11, %v2212_v0, %v829_v43  ;;  %vm835_vm12 = vcmp.eq.f32.partialorder %v834_v44, 8.507059e+37  ;;  %v837_v56 = vor.u32 1.1754944e-38, %v836_v45  ;;  %v547_v44 = vpop.f32.mrf.mxu1 }
  0xdd   : > { %v1683_v57 = vpop.eup %1682  ;;  %v1067_v36 = vsub.f32 1.0, %v1066_v47  ;;  %v2278_v59 = vadd.f32 1.0, %v1681_v53  ;;  %v1581_v60 = vmul.f32 -1.442695, %v483_v28  ;;  %v1566_v38 = vmul.f32 -1.442695, %v438_v52 }
  0xde   : > { %v1685_v61 = vpop.eup %1684  ;;  %v842_v62 = vsub.f32 1.0, %v841_v26  ;;  %v2280_v1 = vadd.f32 1.0, %v1683_v57  ;;  %v838_v4 = vsel %vm835_vm12, %v837_v56, %v833_v55  ;;  %v590_v48 = vadd.f32 %v589_v23, %v1963_v49  ;;  %v1300_v26 = vld [vmem:[%s2008_s5 + $0x30] sm:$0xff] }
  0xdf   : > { %1688 = vrcp.f32 %v2278_v59  ;;  %v1282_v0 = vmul.f32 %v1685_v61, %v1063_v50  ;;  %v1068_v6 = vmul.f32 %v1677_v42, %v1067_v36  ;;  %vm1070_vm13 = vweird.f32 %v2225_v54 }
  0xe0   : > { %v1687_v8 = vpop.eup %1686  ;;  %1690 = vrcp.f32 %v2280_v1  ;;  %vm1071_vm14 = vweird.f32 %v1677_v42  ;;  %v1074_v63 = vand.u32 2147483647, %v2225_v54  ;;  %v1076_v11 = vand.u32 2147483648, %v2225_v54  ;;  %v592_v54 = vpop.f32.mrf.mxu3 }
  0xe1   : > { %v1346_v12 = vadd.f32 %v1314_v3, %v1282_v0  ;;  %v1267_v13 = vmul.f32 %v1687_v8, %v838_v4  ;;  %1692 = vpow2.f32 %v1581_v60  ;;  %v1069_v14 = vadd.f32 %v1677_v42, %v1068_v6  ;;  %vm1072_vm15 = vmor %vm1070_vm13, %vm1071_vm14  ;;  %v488_v3 = vpop.f32.mrf.mxu2 }
  0xe2   : > { %1694 = vpow2.f32 %v1566_v38  ;;  %vm1075_vm0 = vcmp.eq.f32.partialorder %v1074_v63, 8.507059e+37  ;;  %v1077_v16 = vor.u32 1.1754944e-38, %v1076_v11  ;;  %v545_v2 = vadd.f32 %v544_v5, %v1963_v49  ;;  %v443_v4 = vpop.f32.mrf.mxu0 }
  0xe3   : > { %1378 = vst [vmem:[%s2046_s8 + $0xa0] sm:$0xff] %v1346_v12  ;;  %v1331_v58 = vadd.f32 %v1299_v9, %v1267_v13  ;;  %v1073_v19 = vsel %vm1072_vm15, %v1677_v42, %v1069_v14  ;;  %1696 = vtanh.f32 %v590_v48  ;;  %v843_v20 = vmul.f32 %v2261_v46, %v842_v62 }
  0xe4   : > { %v1078_v7 = vsel %vm1075_vm0, %v1077_v16, %v1073_v19  ;;  %vm845_vm1 = vweird.f32 %v2228_v15  ;;  %vm846_vm2 = vweird.f32 %v2261_v46  ;;  %v849_v22 = vand.u32 2147483647, %v2228_v15 }
  0xe5   : > { %v1689_v24 = vpop.eup %1688  ;;  %1363 = vst [vmem:[%s2046_s8 + $0x28] sm:$0xff] %v1331_v58  ;;  %v844_v18 = vadd.f32 %v2261_v46, %v843_v20  ;;  %v851_v25 = vand.u32 2147483648, %v2228_v15  ;;  %1698 = vtanh.f32 %v545_v2  ;;  %v486_v27 = vadd.f32 %v485_v17, %v1956_v39  ;;  %vm2303_vm3 = vmor %vm845_vm1, %vm846_vm2 }
  0xe6   : > { %v2300_v29 = vpop.eup %1690  ;;  %v1081_v30 = vmul.f32 %v1689_v24, %v2278_v59  ;;  %vm2307_vm4 = vcmp.eq.f32.partialorder %v849_v22, 8.507059e+37  ;;  %v441_v10 = vadd.f32 %v440_v21, %v1956_v39  ;;  %v593_v15 = vadd.f32 %v592_v54, %v1963_v49 }
  0xe7   : > { %v1693_v33 = vpop.eup %1692  ;;  %v856_v34 = vmul.f32 %v2300_v29, %v2280_v1  ;;  %v848_v35 = vsel %vm2303_vm3, %v2261_v46, %v844_v18  ;;  %v852_v37 = vor.u32 1.1754944e-38, %v851_v25  ;;  %v1582_v40 = vmul.f32 -1.442695, %v486_v27  ;;  %v1316_v18 = vld [vmem:[%s2008_s5 + $0xb0] sm:$0xff] }
  0xe8   : > { %v1695_v41 = vpop.eup %1694  ;;  %v1082_v23 = vsub.f32 1.0, %v1081_v30  ;;  %v2318_v42 = vadd.f32 1.0, %v1693_v33  ;;  %v1567_v43 = vmul.f32 -1.442695, %v441_v10  ;;  %vm1085_vm5 = vweird.f32 %v2278_v59  ;;  %v595_v63 = vpop.f32.mrf.mxu3 }
  0xe9   : > { %v1697_v45 = vpop.eup %1696  ;;  %v857_v47 = vsub.f32 1.0, %v856_v34  ;;  %v2321_v50 = vadd.f32 1.0, %v1695_v41  ;;  %v853_v28 = vsel %vm2307_vm4, %v852_v37, %v848_v35  ;;  %1700 = vpow2.f32 %v1582_v40  ;;  %v1301_v34 = vld [vmem:[%s2008_s5 + $0x38] sm:$0xff] }
  0xea   : > { %1702 = vrcp.f32 %v2318_v42  ;;  %v1283_v46 = vmul.f32 %v1697_v45, %v1078_v7  ;;  %v1083_v52 = vmul.f32 %v1689_v24, %v1082_v23  ;;  %vm1086_vm6 = vweird.f32 %v1689_v24 }
  0xeb   : > { %v1699_v53 = vpop.eup %1698  ;;  %1704 = vrcp.f32 %v2321_v50  ;;  %v1089_v55 = vand.u32 2147483647, %v2278_v59  ;;  %v1091_v56 = vand.u32 2147483648, %v2278_v59  ;;  %v548_v57 = vadd.f32 %v547_v44, %v1963_v49  ;;  %vm1087_vm7 = vmor %vm1085_vm5, %vm1086_vm6 }
  0xec   : > { %v1347_v36 = vadd.f32 %v1315_v51, %v1283_v46  ;;  %v1268_v60 = vmul.f32 %v1699_v53, %v853_v28  ;;  %1706 = vpow2.f32 %v1567_v43  ;;  %v1084_v38 = vadd.f32 %v1689_v24, %v1083_v52  ;;  %v446_v51 = vpop.f32.mrf.mxu0 }
  0xed   : > { %vm1090_vm8 = vcmp.eq.f32.partialorder %v1089_v55, 8.507059e+37  ;;  %v1092_v61 = vor.u32 1.1754944e-38, %v1091_v56  ;;  %1708 = vtanh.f32 %v593_v15  ;;  %v858_v62 = vmul.f32 %v2300_v29, %v857_v47  ;;  %v491_v47 = vpop.f32.mrf.mxu2 }
  0xee   : > { %1379 = vst [vmem:[%s2046_s8 + $0xa8] sm:$0xff] %v1347_v36  ;;  %v1332_v48 = vadd.f32 %v1300_v26, %v1268_v60  ;;  %v1088_v5 = vsel %vm1087_vm7, %v1689_v24, %v1084_v38  ;;  %vm860_vm9 = vweird.f32 %v2280_v1  ;;  %vm861_vm10 = vweird.f32 %v2300_v29 }
  0xef   : > { %v1701_v0 = vpop.eup %1700  ;;  %v1093_v6 = vsel %vm1090_vm8, %v1092_v61, %v1088_v5  ;;  %v859_v59 = vadd.f32 %v2300_v29, %v858_v62  ;;  %v864_v8 = vand.u32 2147483647, %v2280_v1  ;;  %v866_v9 = vand.u32 2147483648, %v2280_v1  ;;  %vm2344_vm11 = vmor %vm860_vm9, %vm861_vm10 }
  0xf0   : > { %v1703_v11 = vpop.eup %1702  ;;  %1364 = vst [vmem:[%s2046_s8 + $0x30] sm:$0xff] %v1332_v48  ;;  %v2342_v12 = vadd.f32 1.0, %v1701_v0  ;;  %1710 = vtanh.f32 %v548_v57  ;;  %v489_v14 = vadd.f32 %v488_v3, %v1956_v39  ;;  %v444_v16 = vadd.f32 %v443_v4, %v1956_v39  ;;  %v598_v26 = vpop.f32.mrf.mxu3 }
  0xf1   : > { %v2350_v2 = vpop.eup %1704  ;;  %v1096_v17 = vmul.f32 %v1703_v11, %v2318_v42  ;;  %v863_v1 = vsel %vm2344_vm11, %v2300_v29, %v859_v59  ;;  %vm865_vm12 = vcmp.eq.f32.partialorder %v864_v8, 8.507059e+37  ;;  %v867_v58 = vor.u32 1.1754944e-38, %v866_v9  ;;  %v550_v29 = vpop.f32.mrf.mxu1  ;;  %v1317_v8 = vld [vmem:[%s2008_s5 + $0xb8] sm:$0xff] }
  0xf2   : > { %v1707_v19 = vpop.eup %1706  ;;  %v871_v20 = vmul.f32 %v2350_v2, %v2321_v50  ;;  %1712 = vrcp.f32 %v2342_v12  ;;  %v1583_v21 = vmul.f32 -1.442695, %v489_v14  ;;  %v1568_v54 = vmul.f32 -1.442695, %v444_v16 }
  0xf3   : > { %v1709_v7 = vpop.eup %1708  ;;  %v1097_v22 = vsub.f32 1.0, %v1096_v17  ;;  %v2359_v24 = vadd.f32 1.0, %v1707_v19  ;;  %v868_v25 = vsel %vm865_vm12, %v867_v58, %v863_v1  ;;  %v596_v27 = vadd.f32 %v595_v63, %v1963_v49  ;;  %v1302_v19 = vld [vmem:[%s2008_s5 + $0x40] sm:$0xff] }
  0xf4   : > { %v872_v30 = vsub.f32 1.0, %v871_v20  ;;  %v1284_v31 = vmul.f32 %v1709_v7, %v1093_v6  ;;  %1714 = vpow2.f32 %v1583_v21  ;;  %vm1100_vm13 = vweird.f32 %v2318_v42 }
  0xf5   : > { %1716 = vrcp.f32 %v2359_v24  ;;  %v1098_v32 = vmul.f32 %v1703_v11, %v1097_v22  ;;  %vm1101_vm14 = vweird.f32 %v1703_v11  ;;  %v1104_v10 = vand.u32 2147483647, %v2318_v42 }
  0xf6   : > { %v1711_v15 = vpop.eup %1710  ;;  %v1348_v33 = vadd.f32 %v1316_v18, %v1284_v31  ;;  %1718 = vpow2.f32 %v1568_v54  ;;  %v1106_v35 = vand.u32 2147483648, %v2318_v42  ;;  %v551_v37 = vadd.f32 %v550_v29, %v1963_v49  ;;  %vm1102_vm0 = vmor %vm1100_vm13, %vm1101_vm14  ;;  %v449_v29 = vpop.f32.mrf.mxu0 }
  0xf7   : > { %v1269_v40 = vmul.f32 %v1711_v15, %v868_v25  ;;  %v1099_v41 = vadd.f32 %v1703_v11, %v1098_v32  ;;  %vm2369_vm15 = vcmp.eq.f32.partialorder %v1104_v10, 8.507059e+37  ;;  %1720 = vtanh.f32 %v596_v27  ;;  %v494_v27 = vpop.f32.mrf.mxu2 }
  0xf8   : > { %v2373_v43 = vpop.eup %1712  ;;  %1380 = vst [vmem:[%s2046_s8 + $0xb0] sm:$0xff] %v1348_v33  ;;  %v1107_v44 = vor.u32 1.1754944e-38, %v1106_v35  ;;  %v873_v45 = vmul.f32 %v2350_v2, %v872_v30  ;;  %vm875_vm1 = vweird.f32 %v2321_v50  ;;  %vm876_vm2 = vweird.f32 %v2350_v2  ;;  %v601_v32 = vpop.f32.mrf.mxu3 }
  0xf9   : > { %v1111_v28 = vmul.f32 %v2373_v43, %v2342_v12  ;;  %v1333_v46 = vadd.f32 %v1301_v34, %v1269_v40  ;;  %v1103_v52 = vsel %vm1102_vm0, %v1703_v11, %v1099_v41  ;;  %v879_v53 = vand.u32 2147483647, %v2321_v50  ;;  %vm2397_vm3 = vmor %vm875_vm1, %vm876_vm2  ;;  %v553_v11 = vpop.f32.mrf.mxu1 }
  0xfa   : > { %v1715_v42 = vpop.eup %1714  ;;  %v1108_v55 = vsel %vm2369_vm15, %v1107_v44, %v1103_v52  ;;  %v874_v56 = vadd.f32 %v2350_v2, %v873_v45  ;;  %v881_v57 = vand.u32 2147483648, %v2321_v50  ;;  %1722 = vtanh.f32 %v551_v37 }
  0xfb   : > { %v2388_v36 = vpop.eup %1716  ;;  %v1112_v60 = vsub.f32 1.0, %v1111_v28  ;;  %1365 = vst [vmem:[%s2046_s8 + $0x38] sm:$0xff] %v1333_v46  ;;  %v2391_v38 = vadd.f32 1.0, %v1715_v42  ;;  %vm2401_vm4 = vcmp.eq.f32.partialorder %v879_v53, 8.507059e+37  ;;  %v492_v3 = vadd.f32 %v491_v47, %v1956_v39 }
  0xfc   : > { %v1719_v4 = vpop.eup %1718  ;;  %v886_v48 = vmul.f32 %v2388_v36, %v2359_v24  ;;  %v878_v5 = vsel %vm2397_vm3, %v2350_v2, %v874_v56  ;;  %v882_v0 = vor.u32 1.1754944e-38, %v881_v57  ;;  %v447_v50 = vadd.f32 %v446_v51, %v1956_v39  ;;  %v1318_v56 = vld [vmem:[%s2008_s5 + $0xc0] sm:$0xff] }
  0xfd   : > { %v1721_v6 = vpop.eup %1720  ;;  %1724 = vrcp.f32 %v2391_v38  ;;  %v2413_v59 = vadd.f32 1.0, %v1719_v4  ;;  %v1584_v9 = vmul.f32 -1.442695, %v492_v3  ;;  %v599_v63 = vadd.f32 %v598_v26, %v1963_v49 }
  0xfe   : > { %v887_v13 = vsub.f32 1.0, %v886_v48  ;;  %v1285_v14 = vmul.f32 %v1721_v6, %v1108_v55  ;;  %v883_v16 = vsel %vm2401_vm4, %v882_v0, %v878_v5  ;;  %v1569_v2 = vmul.f32 -1.442695, %v447_v50  ;;  %v1303_v5 = vld [vmem:[%s2008_s5 + $0x48] sm:$0xff] }
  0xff   : > { %1726 = vrcp.f32 %v2413_v59  ;;  %v1113_v17 = vmul.f32 %v2373_v43, %v1112_v60  ;;  %vm1115_vm5 = vweird.f32 %v2342_v12  ;;  %vm1116_vm6 = vweird.f32 %v2373_v43 }
 0x100   : > { %v1723_v1 = vpop.eup %1722  ;;  %v1349_v58 = vadd.f32 %v1317_v8, %v1285_v14  ;;  %1728 = vpow2.f32 %v1584_v9  ;;  %v1119_v20 = vand.u32 2147483647, %v2342_v12  ;;  %v1121_v21 = vand.u32 2147483648, %v2342_v12  ;;  %vm1117_vm7 = vmor %vm1115_vm5, %vm1116_vm6  ;;  %v452_v14 = vpop.f32.mrf.mxu0 }
 0x101   : > { %v1270_v54 = vmul.f32 %v1723_v1, %v883_v16  ;;  %1730 = vpow2.f32 %v1569_v2  ;;  %v1114_v7 = vadd.f32 %v2373_v43, %v1113_v17  ;;  %v554_v22 = vadd.f32 %v553_v11, %v1963_v49  ;;  %v556_v53 = vpop.f32.mrf.mxu1 }
 0x102   : > { %1381 = vst [vmem:[%s2046_s8 + $0xb8] sm:$0xff] %v1349_v58  ;;  %vm1120_vm8 = vcmp.eq.f32.partialorder %v1119_v20, 8.507059e+37  ;;  %v1122_v18 = vor.u32 1.1754944e-38, %v1121_v21  ;;  %1732 = vtanh.f32 %v599_v63  ;;  %v888_v25 = vmul.f32 %v2388_v36, %v887_v13  ;;  %v497_v63 = vpop.f32.mrf.mxu2 }
 0x103   : > { %v2430_v30 = vpop.eup %1724  ;;  %v1334_v31 = vadd.f32 %v1302_v19, %v1270_v54  ;;  %v1118_v12 = vsel %vm1117_vm7, %v2373_v43, %v1114_v7  ;;  %vm890_vm9 = vweird.f32 %v2359_v24  ;;  %vm891_vm10 = vweird.f32 %v2388_v36 }
 0x104   : > { %v1126_v10 = vmul.f32 %v2430_v30, %v2391_v38  ;;  %v1123_v15 = vsel %vm1120_vm8, %v1122_v18, %v1118_v12  ;;  %v889_v33 = vadd.f32 %v2388_v36, %v888_v25  ;;  %v894_v34 = vand.u32 2147483647, %v2359_v24  ;;  %vm2442_vm11 = vmor %vm890_vm9, %vm891_vm10 }
 0x105   : > { %v2439_v35 = vpop.eup %1726  ;;  %1366 = vst [vmem:[%s2046_s8 + $0x40] sm:$0xff] %v1334_v31  ;;  %v896_v40 = vand.u32 2147483648, %v2359_v24  ;;  %1734 = vtanh.f32 %v554_v22  ;;  %v495_v41 = vadd.f32 %v494_v27, %v1956_v39  ;;  %v450_v23 = vadd.f32 %v449_v29, %v1956_v39 }
 0x106   : > { %v1729_v43 = vpop.eup %1728  ;;  %v1127_v44 = vsub.f32 1.0, %v1126_v10  ;;  %v901_v45 = vmul.f32 %v2439_v35, %v2413_v59  ;;  %v893_v47 = vsel %vm2442_vm11, %v2388_v36, %v889_v33  ;;  %vm895_vm12 = vcmp.eq.f32.partialorder %v894_v34, 8.507059e+37 }
 0x107   : > { %v1731_v51 = vpop.eup %1730  ;;  %v2454_v28 = vadd.f32 1.0, %v1729_v43  ;;  %v897_v24 = vor.u32 1.1754944e-38, %v896_v40  ;;  %v1585_v46 = vmul.f32 -1.442695, %v495_v41  ;;  %v1570_v52 = vmul.f32 -1.442695, %v450_v23 }
 0x108   : > { %v1733_v26 = vpop.eup %1732  ;;  %v902_v42 = vsub.f32 1.0, %v901_v45  ;;  %v2456_v55 = vadd.f32 1.0, %v1731_v51  ;;  %v602_v57 = vadd.f32 %v601_v32, %v1963_v49  ;;  %v1128_v60 = vmul.f32 %v2430_v30, %v1127_v44  ;;  %v1319_v40 = vld [vmem:[%s2008_s5 + $0xc8] sm:$0xff]  ;;  %v1304_v43 = vld [vmem:[%s2008_s5 + $0x50] sm:$0xff] }
 0x109   : > { %1736 = vrcp.f32 %v2454_v28  ;;  %v1286_v36 = vmul.f32 %v1733_v26, %v1123_v15  ;;  %v898_v61 = vsel %vm895_vm12, %v897_v24, %v893_v47  ;;  %vm1130_vm13 = vweird.f32 %v2391_v38  ;;  %v559_v31 = vpop.f32.mrf.mxu1 }
 0x10a   : > { %1738 = vrcp.f32 %v2456_v55  ;;  %v1129_v62 = vadd.f32 %v2430_v30, %v1128_v60  ;;  %vm1131_vm14 = vweird.f32 %v2430_v30  ;;  %v1134_v3 = vand.u32 2147483647, %v2391_v38 }
 0x10b   : > { %v1735_v4 = vpop.eup %1734  ;;  %v1350_v48 = vadd.f32 %v1318_v56, %v1286_v36  ;;  %1740 = vpow2.f32 %v1585_v46  ;;  %vm2468_vm15 = vmor %vm1130_vm13, %vm1131_vm14  ;;  %v1136_v50 = vand.u32 2147483648, %v2391_v38  ;;  %v557_v6 = vadd.f32 %v556_v53, %v1963_v49  ;;  %v604_v38 = vpop.f32.mrf.mxu3 }
 0x10c   : > { %v1271_v8 = vmul.f32 %v1735_v4, %v898_v61  ;;  %1742 = vpow2.f32 %v1570_v52  ;;  %v1133_v9 = vsel %vm2468_vm15, %v2430_v30, %v1129_v62  ;;  %vm1135_vm0 = vcmp.eq.f32.partialorder %v1134_v3, 8.507059e+37  ;;  %v500_v52 = vpop.f32.mrf.mxu2 }
 0x10d   : > { %1382 = vst [vmem:[%s2046_s8 + $0xc0] sm:$0xff] %v1350_v48  ;;  %v1137_v11 = vor.u32 1.1754944e-38, %v1136_v50  ;;  %1744 = vtanh.f32 %v602_v57  ;;  %v903_v13 = vmul.f32 %v2439_v35, %v902_v42  ;;  %vm905_vm1 = vweird.f32 %v2413_v59  ;;  %v455_v42 = vpop.f32.mrf.mxu0 }
 0x10e   : > { %v1335_v16 = vadd.f32 %v1303_v5, %v1271_v8  ;;  %vm906_vm2 = vweird.f32 %v2439_v35  ;;  %v909_v2 = vand.u32 2147483647, %v2413_v59  ;;  %v911_v17 = vand.u32 2147483648, %v2413_v59 }
 0x10f   : > { %v1737_v1 = vpop.eup %1736  ;;  %v1138_v58 = vsel %vm1135_vm0, %v1137_v11, %v1133_v9  ;;  %v904_v19 = vadd.f32 %v2439_v35, %v903_v13  ;;  %1746 = vtanh.f32 %v557_v6  ;;  %v498_v20 = vadd.f32 %v497_v63, %v1956_v39  ;;  %vm907_vm3 = vmor %vm905_vm1, %vm906_vm2 }
 0x110   : > { %v2485_v21 = vpop.eup %1738  ;;  %v1141_v54 = vmul.f32 %v1737_v1, %v2454_v28  ;;  %1367 = vst [vmem:[%s2046_s8 + $0x48] sm:$0xff] %v1335_v16  ;;  %vm910_vm4 = vcmp.eq.f32.partialorder %v909_v2, 8.507059e+37  ;;  %v912_v7 = vor.u32 1.1754944e-38, %v911_v17  ;;  %v453_v22 = vadd.f32 %v452_v14, %v1956_v39 }
 0x111   : > { %v1741_v18 = vpop.eup %1740  ;;  %v916_v25 = vmul.f32 %v2485_v21, %v2456_v55  ;;  %v908_v27 = vsel %vm907_vm3, %v2439_v35, %v904_v19  ;;  %v1586_v29 = vmul.f32 -1.442695, %v498_v20  ;;  %v605_v30 = vadd.f32 %v604_v38, %v1963_v49  ;;  %v562_v63 = vpop.f32.mrf.mxu1 }
 0x112   : > { %v1743_v12 = vpop.eup %1742  ;;  %v1142_v32 = vsub.f32 1.0, %v1141_v54  ;;  %v2496_v59 = vadd.f32 1.0, %v1741_v18  ;;  %v913_v10 = vsel %vm910_vm4, %v912_v7, %v908_v27  ;;  %v1571_v15 = vmul.f32 -1.442695, %v453_v22 }
 0x113   : > { %v1745_v33 = vpop.eup %1744  ;;  %v917_v34 = vsub.f32 1.0, %v916_v25  ;;  %v2498_v37 = vadd.f32 1.0, %v1743_v12  ;;  %1748 = vpow2.f32 %v1586_v29  ;;  %vm1145_vm5 = vweird.f32 %v2454_v28  ;;  %v607_v56 = vpop.f32.mrf.mxu3  ;;  %v1305_v25 = vld [vmem:[%s2008_s5 + $0x58] sm:$0xff] }
 0x114   : > { %1750 = vrcp.f32 %v2496_v59  ;;  %v1287_v35 = vmul.f32 %v1745_v33, %v1138_v58  ;;  %v1143_v41 = vmul.f32 %v1737_v1, %v1142_v32  ;;  %vm1146_vm6 = vweird.f32 %v1737_v1 }
 0x115   : > { %v1747_v23 = vpop.eup %1746  ;;  %1752 = vrcp.f32 %v2498_v37  ;;  %v1149_v44 = vand.u32 2147483647, %v2454_v28  ;;  %v1151_v45 = vand.u32 2147483648, %v2454_v28  ;;  %v560_v47 = vadd.f32 %v559_v31, %v1963_v49  ;;  %vm1147_vm7 = vmor %vm1145_vm5, %vm1146_vm6 }
 0x116   : > { %v1351_v51 = vadd.f32 %v1319_v40, %v1287_v35  ;;  %v1272_v24 = vmul.f32 %v1747_v23, %v913_v10  ;;  %1754 = vpow2.f32 %v1571_v15  ;;  %v1144_v46 = vadd.f32 %v1737_v1, %v1143_v41 }
 0x117   : > { %vm1150_vm8 = vcmp.eq.f32.partialorder %v1149_v44, 8.507059e+37  ;;  %v1152_v53 = vor.u32 1.1754944e-38, %v1151_v45  ;;  %1756 = vtanh.f32 %v605_v30  ;;  %v918_v26 = vmul.f32 %v2485_v21, %v917_v34  ;;  %v503_v34 = vpop.f32.mrf.mxu2 }
 0x118   : > { %1383 = vst [vmem:[%s2046_s8 + $0xc8] sm:$0xff] %v1351_v51  ;;  %v1336_v57 = vadd.f32 %v1304_v43, %v1272_v24  ;;  %v1148_v60 = vsel %vm1147_vm7, %v1737_v1, %v1144_v46  ;;  %vm920_vm9 = vweird.f32 %v2456_v55  ;;  %vm921_vm10 = vweird.f32 %v2485_v21  ;;  %v1320_v1 = vld [vmem:[%s2008_s5 + $0xd0] sm:$0xff]  ;;  %v458_v43 = vpop.f32.mrf.mxu0 }
 0x119   : > { %v1749_v36 = vpop.eup %1748  ;;  %v1153_v61 = vsel %vm1150_vm8, %v1152_v53, %v1148_v60  ;;  %v919_v28 = vadd.f32 %v2485_v21, %v918_v26  ;;  %v924_v62 = vand.u32 2147483647, %v2456_v55  ;;  %v926_v3 = vand.u32 2147483648, %v2456_v55  ;;  %vm2520_vm11 = vmor %vm920_vm9, %vm921_vm10 }
 0x11a   : > { %v1751_v4 = vpop.eup %1750  ;;  %1368 = vst [vmem:[%s2046_s8 + $0x50] sm:$0xff] %v1336_v57  ;;  %v2518_v48 = vadd.f32 1.0, %v1749_v36  ;;  %1758 = vtanh.f32 %v560_v47  ;;  %v501_v0 = vadd.f32 %v500_v52, %v1956_v39  ;;  %v456_v50 = vadd.f32 %v455_v42, %v1956_v39  ;;  %v565_v42 = vpop.f32.mrf.mxu1 }
 0x11b   : > { %v2526_v6 = vpop.eup %1752  ;;  %v1156_v8 = vmul.f32 %v1751_v4, %v2496_v59  ;;  %v923_v55 = vsel %vm2520_vm11, %v2485_v21, %v919_v28  ;;  %vm925_vm12 = vcmp.eq.f32.partialorder %v924_v62, 8.507059e+37  ;;  %v927_v9 = vor.u32 1.1754944e-38, %v926_v3  ;;  %v610_v32 = vpop.f32.mrf.mxu3  ;;  %v1321_v62 = vld [vmem:[%s2008_s5 + $0xd8] sm:$0xff] }
 0x11c   : > { %v1755_v11 = vpop.eup %1754  ;;  %v931_v13 = vmul.f32 %v2526_v6, %v2498_v37  ;;  %1760 = vrcp.f32 %v2518_v48  ;;  %v1587_v14 = vmul.f32 -1.442695, %v501_v0  ;;  %v1572_v38 = vmul.f32 -1.442695, %v456_v50 }
 0x11d   : > { %v1757_v16 = vpop.eup %1756  ;;  %v1157_v2 = vsub.f32 1.0, %v1156_v8  ;;  %v2535_v17 = vadd.f32 1.0, %v1755_v11  ;;  %v928_v58 = vsel %vm925_vm12, %v927_v9, %v923_v55  ;;  %v608_v19 = vadd.f32 %v607_v56, %v1963_v49 }
 0x11e   : > { %v932_v20 = vsub.f32 1.0, %v931_v13  ;;  %v1288_v21 = vmul.f32 %v1757_v16, %v1153_v61  ;;  %1762 = vpow2.f32 %v1587_v14  ;;  %vm1160_vm13 = vweird.f32 %v2496_v59 }
 0x11f   : > { %1764 = vrcp.f32 %v2535_v17  ;;  %v1158_v54 = vmul.f32 %v1751_v4, %v1157_v2  ;;  %vm1161_vm14 = vweird.f32 %v1751_v4  ;;  %v1164_v7 = vand.u32 2147483647, %v2496_v59 }
 0x120   : > { %v1759_v22 = vpop.eup %1758  ;;  %v1352_v18 = vadd.f32 %v1320_v1, %v1288_v21  ;;  %1766 = vpow2.f32 %v1572_v38  ;;  %v1166_v27 = vand.u32 2147483648, %v2496_v59  ;;  %v563_v29 = vadd.f32 %v562_v63, %v1963_v49  ;;  %vm1162_vm0 = vmor %vm1160_vm13, %vm1161_vm14  ;;  %v1306_v63 = vld [vmem:[%s2008_s5 + $0x60] sm:$0xff] }
 0x121   : > { %v1273_v30 = vmul.f32 %v1759_v22, %v928_v58  ;;  %v1159_v31 = vadd.f32 %v1751_v4, %v1158_v54  ;;  %vm2545_vm15 = vcmp.eq.f32.partialorder %v1164_v7, 8.507059e+37  ;;  %1768 = vtanh.f32 %v608_v19 }
 0x122   : > { %v2549_v10 = vpop.eup %1760  ;;  %1384 = vst [vmem:[%s2046_s8 + $0xd0] sm:$0xff] %v1352_v18  ;;  %v1167_v15 = vor.u32 1.1754944e-38, %v1166_v27  ;;  %v933_v33 = vmul.f32 %v2526_v6, %v932_v20  ;;  %vm935_vm1 = vweird.f32 %v2498_v37  ;;  %vm936_vm2 = vweird.f32 %v2526_v6  ;;  %v506_v20 = vpop.f32.mrf.mxu2 }
 0x123   : > { %v1171_v40 = vmul.f32 %v2549_v10, %v2518_v48  ;;  %v1337_v35 = vadd.f32 %v1305_v25, %v1273_v30  ;;  %v1163_v41 = vsel %vm1162_vm0, %v1751_v4, %v1159_v31  ;;  %v939_v23 = vand.u32 2147483647, %v2498_v37  ;;  %vm2574_vm3 = vmor %vm935_vm1, %vm936_vm2  ;;  %v613_v2 = vpop.f32.mrf.mxu3  ;;  %v568_v12 = vpop.f32.mrf.mxu1 }
 0x124   : > { %v1763_v44 = vpop.eup %1762  ;;  %v1168_v59 = vsel %vm2545_vm15, %v1167_v15, %v1163_v41  ;;  %v934_v45 = vadd.f32 %v2526_v6, %v933_v33  ;;  %v941_v47 = vand.u32 2147483648, %v2498_v37  ;;  %1770 = vtanh.f32 %v563_v29 }
 0x125   : > { %v2565_v51 = vpop.eup %1764  ;;  %v1172_v24 = vsub.f32 1.0, %v1171_v40  ;;  %1369 = vst [vmem:[%s2046_s8 + $0x58] sm:$0xff] %v1337_v35  ;;  %v2568_v46 = vadd.f32 1.0, %v1763_v44  ;;  %vm2578_vm4 = vcmp.eq.f32.partialorder %v939_v23, 8.507059e+37  ;;  %v504_v26 = vadd.f32 %v503_v34, %v1956_v39  ;;  %v1322_v44 = vld [vmem:[%s2008_s5 + $0xe0] sm:$0xff] }
 0x126   : > { %v1767_v56 = vpop.eup %1766  ;;  %v946_v57 = vmul.f32 %v2565_v51, %v2535_v17  ;;  %v938_v60 = vsel %vm2574_vm3, %v2526_v6, %v934_v45  ;;  %v942_v37 = vor.u32 1.1754944e-38, %v941_v47  ;;  %v459_v36 = vadd.f32 %v458_v43, %v1956_v39 }
 0x127   : > { %v1769_v61 = vpop.eup %1768  ;;  %1772 = vrcp.f32 %v2568_v46  ;;  %v2590_v28 = vadd.f32 1.0, %v1767_v56  ;;  %v1588_v3 = vmul.f32 -1.442695, %v504_v26  ;;  %v611_v4 = vadd.f32 %v610_v32, %v1963_v49 }
 0x128   : > { %v947_v5 = vsub.f32 1.0, %v946_v57  ;;  %v1289_v0 = vmul.f32 %v1769_v61, %v1168_v59  ;;  %v943_v50 = vsel %vm2578_vm4, %v942_v37, %v938_v60  ;;  %v1573_v8 = vmul.f32 -1.442695, %v459_v36 }
 0x129   : > { %1774 = vrcp.f32 %v2590_v28  ;;  %v1173_v6 = vmul.f32 %v2549_v10, %v1172_v24  ;;  %vm1175_vm5 = vweird.f32 %v2518_v48  ;;  %vm1176_vm6 = vweird.f32 %v2549_v10 }
 0x12a   : > { %v1771_v55 = vpop.eup %1770  ;;  %v1353_v9 = vadd.f32 %v1321_v62, %v1289_v0  ;;  %1776 = vpow2.f32 %v1588_v3  ;;  %v1179_v11 = vand.u32 2147483647, %v2518_v48  ;;  %v1181_v13 = vand.u32 2147483648, %v2518_v48  ;;  %vm2606_vm7 = vmor %vm1175_vm5, %vm1176_vm6 }
 0x12b   : > { %v1274_v14 = vmul.f32 %v1771_v55, %v943_v50  ;;  %1778 = vpow2.f32 %v1573_v8  ;;  %v1174_v38 = vadd.f32 %v2549_v10, %v1173_v6  ;;  %v566_v16 = vadd.f32 %v565_v42, %v1963_v49  ;;  %v1307_v42 = vld [vmem:[%s2008_s5 + $0x68] sm:$0xff]  ;;  %v616_v37 = vpop.f32.mrf.mxu3  ;;  %v571_v55 = vpop.f32.mrf.mxu1 }
 0x12c   : > { %1385 = vst [vmem:[%s2046_s8 + $0xd8] sm:$0xff] %v1353_v9  ;;  %v1182_v58 = vor.u32 1.1754944e-38, %v1181_v13  ;;  %1780 = vtanh.f32 %v611_v4  ;;  %v948_v19 = vmul.f32 %v2565_v51, %v947_v5  ;;  %vm950_vm8 = vweird.f32 %v2535_v17 }
 0x12d   : > { %v2611_v21 = vpop.eup %1772  ;;  %v1338_v48 = vadd.f32 %v1306_v63, %v1274_v14  ;;  %v1178_v54 = vsel %vm2606_vm7, %v2549_v10, %v1174_v38  ;;  %vm951_vm9 = vweird.f32 %v2565_v51  ;;  %vm1180_vm10 = vcmp.eq.f32.partialorder %v1179_v11, 8.507059e+37 }
 0x12e   : > { %v1186_v7 = vmul.f32 %v2611_v21, %v2568_v46  ;;  %v949_v22 = vadd.f32 %v2565_v51, %v948_v19  ;;  %v954_v18 = vand.u32 2147483647, %v2535_v17  ;;  %v1183_v27 = vsel %vm1180_vm10, %v1182_v58, %v1178_v54  ;;  %vm2625_vm11 = vmor %vm950_vm8, %vm951_vm9  ;;  %v1323_v58 = vld [vmem:[%s2008_s5 + $0xe8] sm:$0xff] }
 0x12f   : > { %v2622_v25 = vpop.eup %1774  ;;  %1370 = vst [vmem:[%s2046_s8 + $0x60] sm:$0xff] %v1338_v48  ;;  %v956_v30 = vand.u32 2147483648, %v2535_v17  ;;  %1782 = vtanh.f32 %v566_v16  ;;  %v507_v31 = vadd.f32 %v506_v20, %v1956_v39  ;;  %v614_v34 = vadd.f32 %v613_v2, %v1963_v49 }
 0x130   : > { %v1777_v32 = vpop.eup %1776  ;;  %v1187_v10 = vsub.f32 1.0, %v1186_v7  ;;  %v961_v15 = vmul.f32 %v2622_v25, %v2590_v28  ;;  %v953_v33 = vsel %vm2625_vm11, %v2565_v51, %v949_v22  ;;  %vm955_vm12 = vcmp.eq.f32.partialorder %v954_v18, 8.507059e+37  ;;  %v1308_v22 = vld [vmem:[%s2008_s5 + $0x70] sm:$0xff] }
 0x131   : > { %v1779_v40 = vpop.eup %1778  ;;  %v2637_v35 = vadd.f32 1.0, %v1777_v32  ;;  %v957_v17 = vor.u32 1.1754944e-38, %v956_v30  ;;  %v1589_v41 = vmul.f32 -1.442695, %v507_v31  ;;  %vm1191_vm13 = vweird.f32 %v2611_v21 }
 0x132   : > { %v1781_v23 = vpop.eup %1780  ;;  %v962_v39 = vsub.f32 1.0, %v961_v15  ;;  %v2639_v43 = vadd.f32 1.0, %v1779_v40  ;;  %v1188_v59 = vmul.f32 %v2611_v21, %v1187_v10  ;;  %vm1190_vm14 = vweird.f32 %v2568_v46 }
 0x133   : > { %1784 = vrcp.f32 %v2637_v35  ;;  %v1290_v45 = vmul.f32 %v1781_v23, %v1183_v27  ;;  %v958_v47 = vsel %vm955_vm12, %v957_v17, %v953_v33  ;;  %v1196_v24 = vand.u32 2147483648, %v2568_v46  ;;  %vm2651_vm15 = vmor %vm1190_vm14, %vm1191_vm13  ;;  %v1324_v23 = vld [vmem:[%s2008_s5 + $0xf0] sm:$0xff] }
 0x134   : > { %1786 = vrcp.f32 %v2639_v43  ;;  %v1189_v51 = vadd.f32 %v2611_v21, %v1188_v59  ;;  %v569_v52 = vadd.f32 %v568_v12, %v1963_v49  ;;  %v1194_v57 = vand.u32 2147483647, %v2568_v46  ;;  %v619_v12 = vpop.f32.mrf.mxu3 }
 0x135   : > { %v1783_v53 = vpop.eup %1782  ;;  %v1354_v26 = vadd.f32 %v1322_v44, %v1290_v45  ;;  %1788 = vpow2.f32 %v1589_v41  ;;  %v963_v60 = vmul.f32 %v2622_v25, %v962_v39  ;;  %vm965_vm0 = vweird.f32 %v2590_v28 }
 0x136   : > { %v1275_v36 = vmul.f32 %v1783_v53, %v958_v47  ;;  %v1193_v61 = vsel %vm2651_vm15, %v2611_v21, %v1189_v51  ;;  %1790 = vtanh.f32 %v614_v34  ;;  %vm966_vm1 = vweird.f32 %v2622_v25 }
 0x137   : > { %1386 = vst [vmem:[%s2046_s8 + $0xe0] sm:$0xff] %v1354_v26  ;;  %v964_v62 = vadd.f32 %v2622_v25, %v963_v60  ;;  %v969_v3 = vand.u32 2147483647, %v2590_v28  ;;  %v1197_v4 = vor.u32 1.1754944e-38, %v1196_v24  ;;  %vm2665_vm2 = vmor %vm965_vm0, %vm966_vm1  ;;  %v971_v0 = vand.u32 2147483648, %v2590_v28 }
 0x138   : > { %v1339_v46 = vadd.f32 %v1307_v42, %v1275_v36  ;;  %1792 = vtanh.f32 %v569_v52  ;;  %vm1195_vm3 = vcmp.eq.f32.partialorder %v1194_v57, 8.507059e+37  ;;  %v617_v6 = vadd.f32 %v616_v37, %v1963_v49  ;;  %v1309_v52 = vld [vmem:[%s2008_s5 + $0x78] sm:$0xff] }
 0x139   : > { %v1785_v50 = vpop.eup %1784  ;;  %v968_v8 = vsel %vm2665_vm2, %v2622_v25, %v964_v62  ;;  %v1198_v11 = vsel %vm1195_vm3, %v1197_v4, %v1193_v61  ;;  %vm970_vm4 = vcmp.eq.f32.partialorder %v969_v3, 8.507059e+37  ;;  %v972_v13 = vor.u32 1.1754944e-38, %v971_v0  ;;  %v1325_v62 = vld [vmem:[%s2008_s5 + $0xf8] sm:$0xff] }
 0x13a   : > { %v1787_v9 = vpop.eup %1786  ;;  %v1201_v63 = vmul.f32 %v1785_v50, %v2637_v35  ;;  %1371 = vst [vmem:[%s2046_s8 + $0x68] sm:$0xff] %v1339_v46  ;;  %vm1206_vm5 = vweird.f32 %v1785_v50  ;;  %v1209_v38 = vand.u32 2147483647, %v2637_v35  ;;  %1794 = vtanh.f32 %v617_v6 }
 0x13b   : > { %v1789_v14 = vpop.eup %1788  ;;  %v976_v28 = vmul.f32 %v1787_v9, %v2639_v43  ;;  %v973_v19 = vsel %vm970_vm4, %v972_v13, %v968_v8  ;;  %v572_v20 = vadd.f32 %v571_v55, %v1963_v49  ;;  %v1211_v54 = vand.u32 2147483648, %v2637_v35 }
 0x13c   : > { %v1791_v16 = vpop.eup %1790  ;;  %v1202_v2 = vsub.f32 1.0, %v1201_v63  ;;  %v749_v1 = vadd.f32 1.0, %v1789_v14  ;;  %vm980_vm6 = vweird.f32 %v2639_v43  ;;  %vm981_vm7 = vweird.f32 %v1787_v9 }
 0x13d   : > { %v977_v21 = vsub.f32 1.0, %v976_v28  ;;  %v1291_v48 = vmul.f32 %v1791_v16, %v1198_v11  ;;  %v984_v25 = vand.u32 2147483647, %v2639_v43  ;;  %v986_v31 = vand.u32 2147483648, %v2639_v43  ;;  %vm982_vm11 = vmor %vm980_vm6, %vm981_vm7 }
 0x13e   : > { %v1793_v7 = vpop.eup %1792  ;;  %1796 = vrcp.f32 %v749_v1  ;;  %v1203_v18 = vmul.f32 %v1785_v50, %v1202_v2  ;;  %vm1205_vm8 = vweird.f32 %v2637_v35  ;;  %v1212_v33 = vor.u32 1.1754944e-38, %v1211_v54 }
 0x13f   : > { %v1355_v27 = vadd.f32 %v1323_v58, %v1291_v48  ;;  %v1276_v29 = vmul.f32 %v1793_v7, %v973_v19  ;;  %v978_v30 = vmul.f32 %v1787_v9, %v977_v21  ;;  %1798 = vtanh.f32 %v572_v20  ;;  %vm1207_vm9 = vmor %vm1205_vm8, %vm1206_vm5 }
 0x140   : > { %v1204_v32 = vadd.f32 %v1785_v50, %v1203_v18  ;;  %v1795_v10 = vpop.eup %1794  ;;  %vm1210_vm10 = vcmp.eq.f32.partialorder %v1209_v38, 8.507059e+37  ;;  %v987_v17 = vor.u32 1.1754944e-38, %v986_v31  ;;  %v620_v41 = vadd.f32 %v619_v12, %v1963_v49 }
 0x141   : > { %1387 = vst [vmem:[%s2046_s8 + $0xe8] sm:$0xff] %v1355_v27  ;;  %v1340_v15 = vadd.f32 %v1308_v22, %v1276_v29  ;;  %v979_v34 = vadd.f32 %v1787_v9, %v978_v30  ;;  %vm985_vm12 = vcmp.eq.f32.partialorder %v984_v25, 8.507059e+37  ;;  %v1226_v49 = vand.u32 2147483648, %v749_v1 }
 0x142   : > { %v1208_v40 = vsel %vm1207_vm9, %v1785_v50, %v1204_v32  ;;  %1800 = vtanh.f32 %v620_v41  ;;  %v1224_v56 = vand.u32 2147483647, %v749_v1  ;;  %vm1220_vm14 = vweird.f32 %v749_v1 }
 0x143   : > { %1372 = vst [vmem:[%s2046_s8 + $0x70] sm:$0xff] %v1340_v15  ;;  %v1213_v35 = vsel %vm1210_vm10, %v1212_v33, %v1208_v40  ;;  %v983_v39 = vsel %vm982_vm11, %v1787_v9, %v979_v34  ;;  %v1227_v37 = vor.u32 1.1754944e-38, %v1226_v49 }
 0x144   : > { %v1797_v44 = vpop.eup %1796  ;;  %v1292_v59 = vmul.f32 %v1795_v10, %v1213_v35  ;;  %v988_v45 = vsel %vm985_vm12, %v987_v17, %v983_v39  ;;  %vm1225_vm0 = vcmp.eq.f32.partialorder %v1224_v56, 8.507059e+37 }
 0x145   : > { %v1216_v47 = vmul.f32 %v1797_v44, %v749_v1  ;;  %v1799_v51 = vpop.eup %1798  ;;  %vm1221_vm13 = vweird.f32 %v1797_v44 }
 0x146   : > { %v1356_v24 = vadd.f32 %v1324_v23, %v1292_v59  ;;  %v1277_v53 = vmul.f32 %v1799_v51, %v988_v45  ;;  %vm1222_vm15 = vmor %vm1220_vm14, %vm1221_vm13 }
 0x147   : > { %v1217_v43 = vsub.f32 1.0, %v1216_v47 }
 0x148   : > { %1388 = vst [vmem:[%s2046_s8 + $0xf0] sm:$0xff] %v1356_v24  ;;  %v1341_v26 = vadd.f32 %v1309_v52, %v1277_v53  ;;  %v1801_v60 = vpop.eup %1800 }
 0x149   : > { %v1218_v42 = vmul.f32 %v1797_v44, %v1217_v43 }
 0x14a   : > { %1373 = vst [vmem:[%s2046_s8 + $0x78] sm:$0xff] %v1341_v26 }
 0x14b   : > { %v1219_v57 = vadd.f32 %v1797_v44, %v1218_v42 }
 0x14d   : > { %v1223_v36 = vsel %vm1222_vm15, %v1797_v44, %v1219_v57 }
 0x14e   : > { %v1228_v61 = vsel %vm1225_vm0, %v1227_v37, %v1223_v36 }
 0x14f   : > { %v1293_v3 = vmul.f32 %v1801_v60, %v1228_v61 }
 0x151   : > { %v1357_v46 = vadd.f32 %v1325_v62, %v1293_v3 }
 0x153   : > { %1389 = vst [vmem:[%s2046_s8 + $0xf8] sm:$0xff] %v1357_v46 }
 0x154 PF: > { %s14_s15 = sadd.s32 1, %s1808_s15  }
 0x155   : > { %p11_p4 = scmp.ge.s32.totalorder %s14_s15, 10  }
 0x157   :  { %13 = sbr.rel (!%p11_p4) target bundleno = 1 (0x1), region = 75 }

</bundles_post_ra>
